<compile_context>
chip_gen: v7x
topology: tpu7x:2x2x1
jax: 0.10.0
libtpu: 0.0.40
codegen_flags: <defaults>
</compile_context>

<pallas_src>
import functools

import jax
import jax.numpy as jnp
import numpy as np
from jax import lax
from jax.experimental import pallas as pl
from jax.experimental.pallas import tpu as pltpu

MATRIX_SIZE = 32
NUM_SELECTIONS = 9  # 3x3 kernel


# ---------------------------------------------------------------------------
# Fused Pallas kernel: conv1 -> relu -> conv2 -> relu -> conv3 -> gram -> fc
# ---------------------------------------------------------------------------
def cnn_fused_kernel(a_ref, x_ref, w1_ref, b1_ref, w2_ref, b2_ref,
                     w3_ref, b3_ref, fcw_ref, fcb_ref, o_ref, *, inv_n):
    """Whole CNN.forward in a single kernel invocation (no grid).

    a_ref   : (S, N, N)        bf16  dense per-selection adjacency
    x_ref   : (N, 512)         f32   node features
    w*_ref  : (S, Cin, Cout)   bf16 ; b*_ref : (1, Cout) f32
    fcw_ref : (F, F)           f32   (pre-transposed fc weight)
    fcb_ref : (1, F)           f32
    o_ref   : (1, F)           f32
    """
    bf16 = jnp.bfloat16
    f32 = jnp.float32

    def selection_conv(h_bf, w_ref, b_ref, apply_relu):
        n, c_out = h_bf.shape[0], w_ref.shape[2]
        acc = jnp.zeros((n, c_out), f32)
        # Fully unrolled, visible loop over the 9 selections (no grid steps).
        for s in range(NUM_SELECTIONS):
            t = jnp.dot(h_bf, w_ref[s], preferred_element_type=f32)      # (N, Cout)
            acc = acc + jnp.dot(a_ref[s], t.astype(bf16),
                                preferred_element_type=f32)
        out = acc + b_ref[...]
        if apply_relu:
            out = jnp.maximum(out, 0.0)
        return out

    x_bf = x_ref[...].astype(bf16)
    h1 = selection_conv(x_bf, w1_ref, b1_ref, True)                       # (N, 256) f32
    h2 = selection_conv(h1.astype(bf16), w2_ref, b2_ref, True)            # (N, 128) f32
    h3 = selection_conv(h2.astype(bf16), w3_ref, b3_ref, False)           # (N, 32)  f32

    # Flattened Gram matrix without any in-kernel reshape:
    #   g_flat[k] = (1/N) * sum_m h3[m, k // 32] * h3[m, k % 32]
    # built with two exact 0/1 selector matmuls (f32, trivial FLOPs).
    m = MATRIX_SIZE
    f = m * m
    shift = m.bit_length() - 1                       # log2(32) = 5
    col = lax.broadcasted_iota(jnp.int32, (m, f), 1)
    row = lax.broadcasted_iota(jnp.int32, (m, f), 0)
    sel_hi = jnp.where((col >> shift) == row, 1.0, 0.0)    # picks a = k // 32
    sel_lo = jnp.where((col & (m - 1)) == row, 1.0, 0.0)   # picks b = k % 32
    p = jnp.dot(h3, sel_hi, preferred_element_type=f32)    # p[n,k] = h3[n, k//32]
    q = jnp.dot(h3, sel_lo, preferred_element_type=f32)    # q[n,k] = h3[n, k%32]
    g_flat = jnp.sum(p * q, axis=0, keepdims=True) * inv_n  # (1, F) == vec(h3^T h3)/N

    o_ref[...] = (jnp.dot(g_flat, fcw_ref[...], preferred_element_type=f32)
                  + fcb_ref[...])


# ---------------------------------------------------------------------------
# Wrappers
# ---------------------------------------------------------------------------
def build_adjacency(edge_index, selections, interp_values, num_nodes, num_sel):
    # TODO(synk): for large N, replace dense A (O(9*N^2)) with scalar-prefetched
    # edge lists (PrefetchScalarGridSpec) and row gathers; fine at N=64.
    src, dst = edge_index[0], edge_index[1]
    if interp_values is None:
        interp_values = jnp.ones(src.shape, jnp.float32)
    A = jnp.zeros((num_sel, num_nodes, num_nodes), jnp.float32)
    return A.at[selections, dst, src].add(interp_values)


def prepare_params(params):
    """One-time (outside jit) prep: bf16 weight cast, fc_w transpose, bias reshape."""
    return {
        "w1": params["w1"].astype(jnp.bfloat16),
        "b1": params["b1"].reshape(1, -1),
        "w2": params["w2"].astype(jnp.bfloat16),
        "b2": params["b2"].reshape(1, -1),
        "w3": params["w3"].astype(jnp.bfloat16),
        "b3": params["b3"].reshape(1, -1),
        "fc_wt": params["fc_w"].T.astype(jnp.float32),   # pre-transposed, f32
        "fc_b": params["fc_b"].reshape(1, -1),
    }


def cnn_forward(prep, x, edge_index, selections, interp_values=None):
    n = x.shape[0]
    a = build_adjacency(edge_index, selections, interp_values, n,
                        NUM_SELECTIONS).astype(jnp.bfloat16)
    kernel = functools.partial(cnn_fused_kernel, inv_n=1.0 / n)
    y = pl.pallas_call(
        kernel,
        out_shape=jax.ShapeDtypeStruct((1, MATRIX_SIZE * MATRIX_SIZE),
                                       jnp.float32),
        compiler_params=pltpu.CompilerParams(
            vmem_limit_bytes=48 * 1024 * 1024),
    )(a, x, prep["w1"], prep["b1"], prep["w2"], prep["b2"],
      prep["w3"], prep["b3"], prep["fc_wt"], prep["fc_b"])
    return y.reshape(-1)                                  # [1024]


def cnn_forward_ref(params, x, edge_index, selections, interp_values=None):
    """Pure-JAX reference for correctness checking."""
    n = x.shape[0]
    A = build_adjacency(edge_index, selections, interp_values, n, NUM_SELECTIONS)

    def sconv(A, x, w, b):
        return jnp.einsum("snm,mc,sco->no", A, x, w) + b

    out = jax.nn.relu(sconv(A, x, params["w1"], params["b1"]))
    out = jax.nn.relu(sconv(A, out, params["w2"], params["b2"]))
    out = sconv(A, out, params["w3"], params["b3"])
    g = (out.T @ out) / out.shape[0]
    return g.reshape(-1) @ params["fc_w"].T + params["fc_b"]


def init_params(key):
    ks = jax.random.split(key, 8)

    def w(k, s, fan_in):
        return (jax.random.normal(k, s, jnp.float32) / np.sqrt(fan_in)).astype(jnp.float32)

    return {
        "w1": w(ks[0], (NUM_SELECTIONS, 512, 256), 512 * NUM_SELECTIONS),
        "b1": jnp.zeros((256,), jnp.float32),
        "w2": w(ks[1], (NUM_SELECTIONS, 256, 128), 256 * NUM_SELECTIONS),
        "b2": jnp.zeros((128,), jnp.float32),
        "w3": w(ks[2], (NUM_SELECTIONS, 128, MATRIX_SIZE), 128 * NUM_SELECTIONS),
        "b3": jnp.zeros((MATRIX_SIZE,), jnp.float32),
        "fc_w": w(ks[3], (MATRIX_SIZE * MATRIX_SIZE, MATRIX_SIZE * MATRIX_SIZE),
                  MATRIX_SIZE * MATRIX_SIZE),
        "fc_b": w(ks[4], (MATRIX_SIZE * MATRIX_SIZE,), MATRIX_SIZE * MATRIX_SIZE),
    }


if __name__ == "__main__":
    key = jax.random.PRNGKey(0)
    k_param, k_x, k_src, k_dst, k_sel, k_int = jax.random.split(key, 6)

    N, E = 64, 256
    params = init_params(k_param)
    prep = prepare_params(params)           # one-time param prep, outside jit
    x = jax.random.normal(k_x, (N, 512), jnp.float32)
    edge_index = jnp.stack([
        jax.random.randint(k_src, (E,), 0, N),
        jax.random.randint(k_dst, (E,), 0, N),
    ])
    selections = jax.random.randint(k_sel, (E,), 0, NUM_SELECTIONS)
    interp_values = jax.random.uniform(k_int, (E,), jnp.float32)

    fwd = jax.jit(cnn_forward)
    y = fwd(prep, x, edge_index, selections, interp_values)
    jax.block_until_ready(y)

    y_ref = cnn_forward_ref(params, x, edge_index, selections, interp_values)
    np.testing.assert_allclose(np.asarray(y), np.asarray(y_ref),
                               rtol=2e-2, atol=3e-3)
    assert y.shape == (MATRIX_SIZE * MATRIX_SIZE,)
    print("KERNEL_OK")
</pallas_src>

<mosaic_0001>
module attributes {stable_mosaic.version = 11 : i64} {
  func.func private @main(%arg0: i32) attributes {dimension_semantics = [#tpu.dimension_semantics<core_parallel>], iteration_bounds = array<i64: 2>, tpu.core_type = #tpu.core_type<sc_scalar_subcore>, window_params = []} {
    return
  }
}

module attributes {stable_mosaic.version = 11 : i64} {
  func.func private @main(%arg0: i32) attributes {dimension_semantics = [#tpu.dimension_semantics<core_parallel>], iteration_bounds = array<i64: 2>, tpu.core_type = #tpu.core_type<sc_scalar_subcore>, window_params = []} {
    return
  }
}

module attributes {stable_mosaic.version = 11 : i64} {
  func.func @cnn_fused_kernel(%arg0: memref<9x64x64xbf16, #tpu.memory_space<vmem>>, %arg1: memref<64x512xf32, #tpu.memory_space<vmem>>, %arg2: memref<9x512x256xbf16, #tpu.memory_space<vmem>>, %arg3: memref<1x256xf32, #tpu.memory_space<vmem>>, %arg4: memref<9x256x128xbf16, #tpu.memory_space<vmem>>, %arg5: memref<1x128xf32, #tpu.memory_space<vmem>>, %arg6: memref<9x128x32xbf16, #tpu.memory_space<vmem>>, %arg7: memref<1x32xf32, #tpu.memory_space<vmem>>, %arg8: memref<1024x1024xf32, #tpu.memory_space<vmem>>, %arg9: memref<1x1024xf32, #tpu.memory_space<vmem>>, %arg10: memref<1x1024xf32, #tpu.memory_space<vmem>>) attributes {dimension_semantics = [], scalar_prefetch = 0 : i64, scratch_operands = 0 : i64, tpu.core_type = #tpu.core_type<tc>} {
    %c0 = arith.constant 0 : index
    %c0_0 = arith.constant 0 : index
    %0 = vector.load %arg1[%c0, %c0_0] : memref<64x512xf32, #tpu.memory_space<vmem>>, vector<64x512xf32>
    %1 = arith.truncf %0 : vector<64x512xf32> to vector<64x512xbf16>
    %cst = arith.constant 0.000000e+00 : f32
    %2 = vector.broadcast %cst : f32 to vector<64x256xf32>
    %c0_1 = arith.constant 0 : index
    %c0_2 = arith.constant 0 : index
    %c0_3 = arith.constant 0 : index
    %3 = vector.load %arg2[%c0_1, %c0_2, %c0_3] : memref<9x512x256xbf16, #tpu.memory_space<vmem>>, vector<1x512x256xbf16>
    %4 = vector.shape_cast %3 : vector<1x512x256xbf16> to vector<512x256xbf16>
    %cst_4 = arith.constant dense<0.000000e+00> : vector<64x256xf32>
    %5 = tpu.matmul %1, %4, %cst_4 {dimension_numbers = #tpu.dot_dimension_numbers<[1], [0], [0], [1], [0, 0, 1, 1], [], []>} : vector<64x512xbf16>, vector<512x256xbf16>, vector<64x256xf32> -> vector<64x256xf32>
    %c0_5 = arith.constant 0 : index
    %c0_6 = arith.constant 0 : index
    %c0_7 = arith.constant 0 : index
    %6 = vector.load %arg0[%c0_5, %c0_6, %c0_7] : memref<9x64x64xbf16, #tpu.memory_space<vmem>>, vector<1x64x64xbf16>
    %7 = vector.shape_cast %6 : vector<1x64x64xbf16> to vector<64x64xbf16>
    %8 = arith.truncf %5 : vector<64x256xf32> to vector<64x256xbf16>
    %cst_8 = arith.constant dense<0.000000e+00> : vector<64x256xf32>
    %9 = tpu.matmul %7, %8, %cst_8 {dimension_numbers = #tpu.dot_dimension_numbers<[1], [0], [0], [1], [0, 0, 1, 1], [], []>} : vector<64x64xbf16>, vector<64x256xbf16>, vector<64x256xf32> -> vector<64x256xf32>
    %10 = arith.addf %2, %9 : vector<64x256xf32>
    %c1 = arith.constant 1 : index
    %c0_9 = arith.constant 0 : index
    %c0_10 = arith.constant 0 : index
    %11 = vector.load %arg2[%c1, %c0_9, %c0_10] : memref<9x512x256xbf16, #tpu.memory_space<vmem>>, vector<1x512x256xbf16>
    %12 = vector.shape_cast %11 : vector<1x512x256xbf16> to vector<512x256xbf16>
    %cst_11 = arith.constant dense<0.000000e+00> : vector<64x256xf32>
    %13 = tpu.matmul %1, %12, %cst_11 {dimension_numbers = #tpu.dot_dimension_numbers<[1], [0], [0], [1], [0, 0, 1, 1], [], []>} : vector<64x512xbf16>, vector<512x256xbf16>, vector<64x256xf32> -> vector<64x256xf32>
    %c1_12 = arith.constant 1 : index
    %c0_13 = arith.constant 0 : index
    %c0_14 = arith.constant 0 : index
    %14 = vector.load %arg0[%c1_12, %c0_13, %c0_14] : memref<9x64x64xbf16, #tpu.memory_space<vmem>>, vector<1x64x64xbf16>
    %15 = vector.shape_cast %14 : vector<1x64x64xbf16> to vector<64x64xbf16>
    %16 = arith.truncf %13 : vector<64x256xf32> to vector<64x256xbf16>
    %cst_15 = arith.constant dense<0.000000e+00> : vector<64x256xf32>
    %17 = tpu.matmul %15, %16, %cst_15 {dimension_numbers = #tpu.dot_dimension_numbers<[1], [0], [0], [1], [0, 0, 1, 1], [], []>} : vector<64x64xbf16>, vector<64x256xbf16>, vector<64x256xf32> -> vector<64x256xf32>
    %18 = arith.addf %10, %17 : vector<64x256xf32>
    %c2 = arith.constant 2 : index
    %c0_16 = arith.constant 0 : index
    %c0_17 = arith.constant 0 : index
    %19 = vector.load %arg2[%c2, %c0_16, %c0_17] : memref<9x512x256xbf16, #tpu.memory_space<vmem>>, vector<1x512x256xbf16>
    %20 = vector.shape_cast %19 : vector<1x512x256xbf16> to vector<512x256xbf16>
    %cst_18 = arith.constant dense<0.000000e+00> : vector<64x256xf32>
    %21 = tpu.matmul %1, %20, %cst_18 {dimension_numbers = #tpu.dot_dimension_numbers<[1], [0], [0], [1], [0, 0, 1, 1], [], []>} : vector<64x512xbf16>, vector<512x256xbf16>, vector<64x256xf32> -> vector<64x256xf32>
    %c2_19 = arith.constant 2 : index
    %c0_20 = arith.constant 0 : index
    %c0_21 = arith.constant 0 : index
    %22 = vector.load %arg0[%c2_19, %c0_20, %c0_21] : memref<9x64x64xbf16, #tpu.memory_space<vmem>>, vector<1x64x64xbf16>
    %23 = vector.shape_cast %22 : vector<1x64x64xbf16> to vector<64x64xbf16>
    %24 = arith.truncf %21 : vector<64x256xf32> to vector<64x256xbf16>
    %cst_22 = arith.constant dense<0.000000e+00> : vector<64x256xf32>
    %25 = tpu.matmul %23, %24, %cst_22 {dimension_numbers = #tpu.dot_dimension_numbers<[1], [0], [0], [1], [0, 0, 1, 1], [], []>} : vector<64x64xbf16>, vector<64x256xbf16>, vector<64x256xf32> -> vector<64x256xf32>
    %26 = arith.addf %18, %25 : vector<64x256xf32>
    %c3 = arith.constant 3 : index
    %c0_23 = arith.constant 0 : index
    %c0_24 = arith.constant 0 : index
    %27 = vector.load %arg2[%c3, %c0_23, %c0_24] : memref<9x512x256xbf16, #tpu.memory_space<vmem>>, vector<1x512x256xbf16>
    %28 = vector.shape_cast %27 : vector<1x512x256xbf16> to vector<512x256xbf16>
    %cst_25 = arith.constant dense<0.000000e+00> : vector<64x256xf32>
    %29 = tpu.matmul %1, %28, %cst_25 {dimension_numbers = #tpu.dot_dimension_numbers<[1], [0], [0], [1], [0, 0, 1, 1], [], []>} : vector<64x512xbf16>, vector<512x256xbf16>, vector<64x256xf32> -> vector<64x256xf32>
    %c3_26 = arith.constant 3 : index
    %c0_27 = arith.constant 0 : index
    %c0_28 = arith.constant 0 : index
    %30 = vector.load %arg0[%c3_26, %c0_27, %c0_28] : memref<9x64x64xbf16, #tpu.memory_space<vmem>>, vector<1x64x64xbf16>
    %31 = vector.shape_cast %30 : vector<1x64x64xbf16> to vector<64x64xbf16>
    %32 = arith.truncf %29 : vector<64x256xf32> to vector<64x256xbf16>
    %cst_29 = arith.constant dense<0.000000e+00> : vector<64x256xf32>
    %33 = tpu.matmul %31, %32, %cst_29 {dimension_numbers = #tpu.dot_dimension_numbers<[1], [0], [0], [1], [0, 0, 1, 1], [], []>} : vector<64x64xbf16>, vector<64x256xbf16>, vector<64x256xf32> -> vector<64x256xf32>
    %34 = arith.addf %26, %33 : vector<64x256xf32>
    %c4 = arith.constant 4 : index
    %c0_30 = arith.constant 0 : index
    %c0_31 = arith.constant 0 : index
    %35 = vector.load %arg2[%c4, %c0_30, %c0_31] : memref<9x512x256xbf16, #tpu.memory_space<vmem>>, vector<1x512x256xbf16>
    %36 = vector.shape_cast %35 : vector<1x512x256xbf16> to vector<512x256xbf16>
    %cst_32 = arith.constant dense<0.000000e+00> : vector<64x256xf32>
    %37 = tpu.matmul %1, %36, %cst_32 {dimension_numbers = #tpu.dot_dimension_numbers<[1], [0], [0], [1], [0, 0, 1, 1], [], []>} : vector<64x512xbf16>, vector<512x256xbf16>, vector<64x256xf32> -> vector<64x256xf32>
    %c4_33 = arith.constant 4 : index
    %c0_34 = arith.constant 0 : index
    %c0_35 = arith.constant 0 : index
    %38 = vector.load %arg0[%c4_33, %c0_34, %c0_35] : memref<9x64x64xbf16, #tpu.memory_space<vmem>>, vector<1x64x64xbf16>
    %39 = vector.shape_cast %38 : vector<1x64x64xbf16> to vector<64x64xbf16>
    %40 = arith.truncf %37 : vector<64x256xf32> to vector<64x256xbf16>
    %cst_36 = arith.constant dense<0.000000e+00> : vector<64x256xf32>
    %41 = tpu.matmul %39, %40, %cst_36 {dimension_numbers = #tpu.dot_dimension_numbers<[1], [0], [0], [1], [0, 0, 1, 1], [], []>} : vector<64x64xbf16>, vector<64x256xbf16>, vector<64x256xf32> -> vector<64x256xf32>
    %42 = arith.addf %34, %41 : vector<64x256xf32>
    %c5 = arith.constant 5 : index
    %c0_37 = arith.constant 0 : index
    %c0_38 = arith.constant 0 : index
    %43 = vector.load %arg2[%c5, %c0_37, %c0_38] : memref<9x512x256xbf16, #tpu.memory_space<vmem>>, vector<1x512x256xbf16>
    %44 = vector.shape_cast %43 : vector<1x512x256xbf16> to vector<512x256xbf16>
    %cst_39 = arith.constant dense<0.000000e+00> : vector<64x256xf32>
    %45 = tpu.matmul %1, %44, %cst_39 {dimension_numbers = #tpu.dot_dimension_numbers<[1], [0], [0], [1], [0, 0, 1, 1], [], []>} : vector<64x512xbf16>, vector<512x256xbf16>, vector<64x256xf32> -> vector<64x256xf32>
    %c5_40 = arith.constant 5 : index
    %c0_41 = arith.constant 0 : index
    %c0_42 = arith.constant 0 : index
    %46 = vector.load %arg0[%c5_40, %c0_41, %c0_42] : memref<9x64x64xbf16, #tpu.memory_space<vmem>>, vector<1x64x64xbf16>
    %47 = vector.shape_cast %46 : vector<1x64x64xbf16> to vector<64x64xbf16>
    %48 = arith.truncf %45 : vector<64x256xf32> to vector<64x256xbf16>
    %cst_43 = arith.constant dense<0.000000e+00> : vector<64x256xf32>
    %49 = tpu.matmul %47, %48, %cst_43 {dimension_numbers = #tpu.dot_dimension_numbers<[1], [0], [0], [1], [0, 0, 1, 1], [], []>} : vector<64x64xbf16>, vector<64x256xbf16>, vector<64x256xf32> -> vector<64x256xf32>
    %50 = arith.addf %42, %49 : vector<64x256xf32>
    %c6 = arith.constant 6 : index
    %c0_44 = arith.constant 0 : index
    %c0_45 = arith.constant 0 : index
    %51 = vector.load %arg2[%c6, %c0_44, %c0_45] : memref<9x512x256xbf16, #tpu.memory_space<vmem>>, vector<1x512x256xbf16>
    %52 = vector.shape_cast %51 : vector<1x512x256xbf16> to vector<512x256xbf16>
    %cst_46 = arith.constant dense<0.000000e+00> : vector<64x256xf32>
    %53 = tpu.matmul %1, %52, %cst_46 {dimension_numbers = #tpu.dot_dimension_numbers<[1], [0], [0], [1], [0, 0, 1, 1], [], []>} : vector<64x512xbf16>, vector<512x256xbf16>, vector<64x256xf32> -> vector<64x256xf32>
    %c6_47 = arith.constant 6 : index
    %c0_48 = arith.constant 0 : index
    %c0_49 = arith.constant 0 : index
    %54 = vector.load %arg0[%c6_47, %c0_48, %c0_49] : memref<9x64x64xbf16, #tpu.memory_space<vmem>>, vector<1x64x64xbf16>
    %55 = vector.shape_cast %54 : vector<1x64x64xbf16> to vector<64x64xbf16>
    %56 = arith.truncf %53 : vector<64x256xf32> to vector<64x256xbf16>
    %cst_50 = arith.constant dense<0.000000e+00> : vector<64x256xf32>
    %57 = tpu.matmul %55, %56, %cst_50 {dimension_numbers = #tpu.dot_dimension_numbers<[1], [0], [0], [1], [0, 0, 1, 1], [], []>} : vector<64x64xbf16>, vector<64x256xbf16>, vector<64x256xf32> -> vector<64x256xf32>
    %58 = arith.addf %50, %57 : vector<64x256xf32>
    %c7 = arith.constant 7 : index
    %c0_51 = arith.constant 0 : index
    %c0_52 = arith.constant 0 : index
    %59 = vector.load %arg2[%c7, %c0_51, %c0_52] : memref<9x512x256xbf16, #tpu.memory_space<vmem>>, vector<1x512x256xbf16>
    %60 = vector.shape_cast %59 : vector<1x512x256xbf16> to vector<512x256xbf16>
    %cst_53 = arith.constant dense<0.000000e+00> : vector<64x256xf32>
    %61 = tpu.matmul %1, %60, %cst_53 {dimension_numbers = #tpu.dot_dimension_numbers<[1], [0], [0], [1], [0, 0, 1, 1], [], []>} : vector<64x512xbf16>, vector<512x256xbf16>, vector<64x256xf32> -> vector<64x256xf32>
    %c7_54 = arith.constant 7 : index
    %c0_55 = arith.constant 0 : index
    %c0_56 = arith.constant 0 : index
    %62 = vector.load %arg0[%c7_54, %c0_55, %c0_56] : memref<9x64x64xbf16, #tpu.memory_space<vmem>>, vector<1x64x64xbf16>
    %63 = vector.shape_cast %62 : vector<1x64x64xbf16> to vector<64x64xbf16>
    %64 = arith.truncf %61 : vector<64x256xf32> to vector<64x256xbf16>
    %cst_57 = arith.constant dense<0.000000e+00> : vector<64x256xf32>
    %65 = tpu.matmul %63, %64, %cst_57 {dimension_numbers = #tpu.dot_dimension_numbers<[1], [0], [0], [1], [0, 0, 1, 1], [], []>} : vector<64x64xbf16>, vector<64x256xbf16>, vector<64x256xf32> -> vector<64x256xf32>
    %66 = arith.addf %58, %65 : vector<64x256xf32>
    %c8 = arith.constant 8 : index
    %c0_58 = arith.constant 0 : index
    %c0_59 = arith.constant 0 : index
    %67 = vector.load %arg2[%c8, %c0_58, %c0_59] : memref<9x512x256xbf16, #tpu.memory_space<vmem>>, vector<1x512x256xbf16>
    %68 = vector.shape_cast %67 : vector<1x512x256xbf16> to vector<512x256xbf16>
    %cst_60 = arith.constant dense<0.000000e+00> : vector<64x256xf32>
    %69 = tpu.matmul %1, %68, %cst_60 {dimension_numbers = #tpu.dot_dimension_numbers<[1], [0], [0], [1], [0, 0, 1, 1], [], []>} : vector<64x512xbf16>, vector<512x256xbf16>, vector<64x256xf32> -> vector<64x256xf32>
    %c8_61 = arith.constant 8 : index
    %c0_62 = arith.constant 0 : index
    %c0_63 = arith.constant 0 : index
    %70 = vector.load %arg0[%c8_61, %c0_62, %c0_63] : memref<9x64x64xbf16, #tpu.memory_space<vmem>>, vector<1x64x64xbf16>
    %71 = vector.shape_cast %70 : vector<1x64x64xbf16> to vector<64x64xbf16>
    %72 = arith.truncf %69 : vector<64x256xf32> to vector<64x256xbf16>
    %cst_64 = arith.constant dense<0.000000e+00> : vector<64x256xf32>
    %73 = tpu.matmul %71, %72, %cst_64 {dimension_numbers = #tpu.dot_dimension_numbers<[1], [0], [0], [1], [0, 0, 1, 1], [], []>} : vector<64x64xbf16>, vector<64x256xbf16>, vector<64x256xf32> -> vector<64x256xf32>
    %74 = arith.addf %66, %73 : vector<64x256xf32>
    %c0_65 = arith.constant 0 : index
    %c0_66 = arith.constant 0 : index
    %75 = vector.load %arg3[%c0_65, %c0_66] : memref<1x256xf32, #tpu.memory_space<vmem>>, vector<1x256xf32>
    %76 = vector.broadcast %75 : vector<1x256xf32> to vector<64x256xf32>
    %77 = arith.addf %74, %76 : vector<64x256xf32>
    %cst_67 = arith.constant 0.000000e+00 : f32
    %78 = vector.broadcast %cst_67 : f32 to vector<64x256xf32>
    %79 = arith.maximumf %77, %78 : vector<64x256xf32>
    %80 = arith.truncf %79 : vector<64x256xf32> to vector<64x256xbf16>
    %cst_68 = arith.constant 0.000000e+00 : f32
    %81 = vector.broadcast %cst_68 : f32 to vector<64x128xf32>
    %c0_69 = arith.constant 0 : index
    %c0_70 = arith.constant 0 : index
    %c0_71 = arith.constant 0 : index
    %82 = vector.load %arg4[%c0_69, %c0_70, %c0_71] : memref<9x256x128xbf16, #tpu.memory_space<vmem>>, vector<1x256x128xbf16>
    %83 = vector.shape_cast %82 : vector<1x256x128xbf16> to vector<256x128xbf16>
    %cst_72 = arith.constant dense<0.000000e+00> : vector<64x128xf32>
    %84 = tpu.matmul %80, %83, %cst_72 {dimension_numbers = #tpu.dot_dimension_numbers<[1], [0], [0], [1], [0, 0, 1, 1], [], []>} : vector<64x256xbf16>, vector<256x128xbf16>, vector<64x128xf32> -> vector<64x128xf32>
    %c0_73 = arith.constant 0 : index
    %c0_74 = arith.constant 0 : index
    %c0_75 = arith.constant 0 : index
    %85 = vector.load %arg0[%c0_73, %c0_74, %c0_75] : memref<9x64x64xbf16, #tpu.memory_space<vmem>>, vector<1x64x64xbf16>
    %86 = vector.shape_cast %85 : vector<1x64x64xbf16> to vector<64x64xbf16>
    %87 = arith.truncf %84 : vector<64x128xf32> to vector<64x128xbf16>
    %cst_76 = arith.constant dense<0.000000e+00> : vector<64x128xf32>
    %88 = tpu.matmul %86, %87, %cst_76 {dimension_numbers = #tpu.dot_dimension_numbers<[1], [0], [0], [1], [0, 0, 1, 1], [], []>} : vector<64x64xbf16>, vector<64x128xbf16>, vector<64x128xf32> -> vector<64x128xf32>
    %89 = arith.addf %81, %88 : vector<64x128xf32>
    %c1_77 = arith.constant 1 : index
    %c0_78 = arith.constant 0 : index
    %c0_79 = arith.constant 0 : index
    %90 = vector.load %arg4[%c1_77, %c0_78, %c0_79] : memref<9x256x128xbf16, #tpu.memory_space<vmem>>, vector<1x256x128xbf16>
    %91 = vector.shape_cast %90 : vector<1x256x128xbf16> to vector<256x128xbf16>
    %cst_80 = arith.constant dense<0.000000e+00> : vector<64x128xf32>
    %92 = tpu.matmul %80, %91, %cst_80 {dimension_numbers = #tpu.dot_dimension_numbers<[1], [0], [0], [1], [0, 0, 1, 1], [], []>} : vector<64x256xbf16>, vector<256x128xbf16>, vector<64x128xf32> -> vector<64x128xf32>
    %c1_81 = arith.constant 1 : index
    %c0_82 = arith.constant 0 : index
    %c0_83 = arith.constant 0 : index
    %93 = vector.load %arg0[%c1_81, %c0_82, %c0_83] : memref<9x64x64xbf16, #tpu.memory_space<vmem>>, vector<1x64x64xbf16>
    %94 = vector.shape_cast %93 : vector<1x64x64xbf16> to vector<64x64xbf16>
    %95 = arith.truncf %92 : vector<64x128xf32> to vector<64x128xbf16>
    %cst_84 = arith.constant dense<0.000000e+00> : vector<64x128xf32>
    %96 = tpu.matmul %94, %95, %cst_84 {dimension_numbers = #tpu.dot_dimension_numbers<[1], [0], [0], [1], [0, 0, 1, 1], [], []>} : vector<64x64xbf16>, vector<64x128xbf16>, vector<64x128xf32> -> vector<64x128xf32>
    %97 = arith.addf %89, %96 : vector<64x128xf32>
    %c2_85 = arith.constant 2 : index
    %c0_86 = arith.constant 0 : index
    %c0_87 = arith.constant 0 : index
    %98 = vector.load %arg4[%c2_85, %c0_86, %c0_87] : memref<9x256x128xbf16, #tpu.memory_space<vmem>>, vector<1x256x128xbf16>
    %99 = vector.shape_cast %98 : vector<1x256x128xbf16> to vector<256x128xbf16>
    %cst_88 = arith.constant dense<0.000000e+00> : vector<64x128xf32>
    %100 = tpu.matmul %80, %99, %cst_88 {dimension_numbers = #tpu.dot_dimension_numbers<[1], [0], [0], [1], [0, 0, 1, 1], [], []>} : vector<64x256xbf16>, vector<256x128xbf16>, vector<64x128xf32> -> vector<64x128xf32>
    %c2_89 = arith.constant 2 : index
    %c0_90 = arith.constant 0 : index
    %c0_91 = arith.constant 0 : index
    %101 = vector.load %arg0[%c2_89, %c0_90, %c0_91] : memref<9x64x64xbf16, #tpu.memory_space<vmem>>, vector<1x64x64xbf16>
    %102 = vector.shape_cast %101 : vector<1x64x64xbf16> to vector<64x64xbf16>
    %103 = arith.truncf %100 : vector<64x128xf32> to vector<64x128xbf16>
    %cst_92 = arith.constant dense<0.000000e+00> : vector<64x128xf32>
    %104 = tpu.matmul %102, %103, %cst_92 {dimension_numbers = #tpu.dot_dimension_numbers<[1], [0], [0], [1], [0, 0, 1, 1], [], []>} : vector<64x64xbf16>, vector<64x128xbf16>, vector<64x128xf32> -> vector<64x128xf32>
    %105 = arith.addf %97, %104 : vector<64x128xf32>
    %c3_93 = arith.constant 3 : index
    %c0_94 = arith.constant 0 : index
    %c0_95 = arith.constant 0 : index
    %106 = vector.load %arg4[%c3_93, %c0_94, %c0_95] : memref<9x256x128xbf16, #tpu.memory_space<vmem>>, vector<1x256x128xbf16>
    %107 = vector.shape_cast %106 : vector<1x256x128xbf16> to vector<256x128xbf16>
    %cst_96 = arith.constant dense<0.000000e+00> : vector<64x128xf32>
    %108 = tpu.matmul %80, %107, %cst_96 {dimension_numbers = #tpu.dot_dimension_numbers<[1], [0], [0], [1], [0, 0, 1, 1], [], []>} : vector<64x256xbf16>, vector<256x128xbf16>, vector<64x128xf32> -> vector<64x128xf32>
    %c3_97 = arith.constant 3 : index
    %c0_98 = arith.constant 0 : index
    %c0_99 = arith.constant 0 : index
    %109 = vector.load %arg0[%c3_97, %c0_98, %c0_99] : memref<9x64x64xbf16, #tpu.memory_space<vmem>>, vector<1x64x64xbf16>
    %110 = vector.shape_cast %109 : vector<1x64x64xbf16> to vector<64x64xbf16>
    %111 = arith.truncf %108 : vector<64x128xf32> to vector<64x128xbf16>
    %cst_100 = arith.constant dense<0.000000e+00> : vector<64x128xf32>
    %112 = tpu.matmul %110, %111, %cst_100 {dimension_numbers = #tpu.dot_dimension_numbers<[1], [0], [0], [1], [0, 0, 1, 1], [], []>} : vector<64x64xbf16>, vector<64x128xbf16>, vector<64x128xf32> -> vector<64x128xf32>
    %113 = arith.addf %105, %112 : vector<64x128xf32>
    %c4_101 = arith.constant 4 : index
    %c0_102 = arith.constant 0 : index
    %c0_103 = arith.constant 0 : index
    %114 = vector.load %arg4[%c4_101, %c0_102, %c0_103] : memref<9x256x128xbf16, #tpu.memory_space<vmem>>, vector<1x256x128xbf16>
    %115 = vector.shape_cast %114 : vector<1x256x128xbf16> to vector<256x128xbf16>
    %cst_104 = arith.constant dense<0.000000e+00> : vector<64x128xf32>
    %116 = tpu.matmul %80, %115, %cst_104 {dimension_numbers = #tpu.dot_dimension_numbers<[1], [0], [0], [1], [0, 0, 1, 1], [], []>} : vector<64x256xbf16>, vector<256x128xbf16>, vector<64x128xf32> -> vector<64x128xf32>
    %c4_105 = arith.constant 4 : index
    %c0_106 = arith.constant 0 : index
    %c0_107 = arith.constant 0 : index
    %117 = vector.load %arg0[%c4_105, %c0_106, %c0_107] : memref<9x64x64xbf16, #tpu.memory_space<vmem>>, vector<1x64x64xbf16>
    %118 = vector.shape_cast %117 : vector<1x64x64xbf16> to vector<64x64xbf16>
    %119 = arith.truncf %116 : vector<64x128xf32> to vector<64x128xbf16>
    %cst_108 = arith.constant dense<0.000000e+00> : vector<64x128xf32>
    %120 = tpu.matmul %118, %119, %cst_108 {dimension_numbers = #tpu.dot_dimension_numbers<[1], [0], [0], [1], [0, 0, 1, 1], [], []>} : vector<64x64xbf16>, vector<64x128xbf16>, vector<64x128xf32> -> vector<64x128xf32>
    %121 = arith.addf %113, %120 : vector<64x128xf32>
    %c5_109 = arith.constant 5 : index
    %c0_110 = arith.constant 0 : index
    %c0_111 = arith.constant 0 : index
    %122 = vector.load %arg4[%c5_109, %c0_110, %c0_111] : memref<9x256x128xbf16, #tpu.memory_space<vmem>>, vector<1x256x128xbf16>
    %123 = vector.shape_cast %122 : vector<1x256x128xbf16> to vector<256x128xbf16>
    %cst_112 = arith.constant dense<0.000000e+00> : vector<64x128xf32>
    %124 = tpu.matmul %80, %123, %cst_112 {dimension_numbers = #tpu.dot_dimension_numbers<[1], [0], [0], [1], [0, 0, 1, 1], [], []>} : vector<64x256xbf16>, vector<256x128xbf16>, vector<64x128xf32> -> vector<64x128xf32>
    %c5_113 = arith.constant 5 : index
    %c0_114 = arith.constant 0 : index
    %c0_115 = arith.constant 0 : index
    %125 = vector.load %arg0[%c5_113, %c0_114, %c0_115] : memref<9x64x64xbf16, #tpu.memory_space<vmem>>, vector<1x64x64xbf16>
    %126 = vector.shape_cast %125 : vector<1x64x64xbf16> to vector<64x64xbf16>
    %127 = arith.truncf %124 : vector<64x128xf32> to vector<64x128xbf16>
    %cst_116 = arith.constant dense<0.000000e+00> : vector<64x128xf32>
    %128 = tpu.matmul %126, %127, %cst_116 {dimension_numbers = #tpu.dot_dimension_numbers<[1], [0], [0], [1], [0, 0, 1, 1], [], []>} : vector<64x64xbf16>, vector<64x128xbf16>, vector<64x128xf32> -> vector<64x128xf32>
    %129 = arith.addf %121, %128 : vector<64x128xf32>
    %c6_117 = arith.constant 6 : index
    %c0_118 = arith.constant 0 : index
    %c0_119 = arith.constant 0 : index
    %130 = vector.load %arg4[%c6_117, %c0_118, %c0_119] : memref<9x256x128xbf16, #tpu.memory_space<vmem>>, vector<1x256x128xbf16>
    %131 = vector.shape_cast %130 : vector<1x256x128xbf16> to vector<256x128xbf16>
    %cst_120 = arith.constant dense<0.000000e+00> : vector<64x128xf32>
    %132 = tpu.matmul %80, %131, %cst_120 {dimension_numbers = #tpu.dot_dimension_numbers<[1], [0], [0], [1], [0, 0, 1, 1], [], []>} : vector<64x256xbf16>, vector<256x128xbf16>, vector<64x128xf32> -> vector<64x128xf32>
    %c6_121 = arith.constant 6 : index
    %c0_122 = arith.constant 0 : index
    %c0_123 = arith.constant 0 : index
    %133 = vector.load %arg0[%c6_121, %c0_122, %c0_123] : memref<9x64x64xbf16, #tpu.memory_space<vmem>>, vector<1x64x64xbf16>
    %134 = vector.shape_cast %133 : vector<1x64x64xbf16> to vector<64x64xbf16>
    %135 = arith.truncf %132 : vector<64x128xf32> to vector<64x128xbf16>
    %cst_124 = arith.constant dense<0.000000e+00> : vector<64x128xf32>
    %136 = tpu.matmul %134, %135, %cst_124 {dimension_numbers = #tpu.dot_dimension_numbers<[1], [0], [0], [1], [0, 0, 1, 1], [], []>} : vector<64x64xbf16>, vector<64x128xbf16>, vector<64x128xf32> -> vector<64x128xf32>
    %137 = arith.addf %129, %136 : vector<64x128xf32>
    %c7_125 = arith.constant 7 : index
    %c0_126 = arith.constant 0 : index
    %c0_127 = arith.constant 0 : index
    %138 = vector.load %arg4[%c7_125, %c0_126, %c0_127] : memref<9x256x128xbf16, #tpu.memory_space<vmem>>, vector<1x256x128xbf16>
    %139 = vector.shape_cast %138 : vector<1x256x128xbf16> to vector<256x128xbf16>
    %cst_128 = arith.constant dense<0.000000e+00> : vector<64x128xf32>
    %140 = tpu.matmul %80, %139, %cst_128 {dimension_numbers = #tpu.dot_dimension_numbers<[1], [0], [0], [1], [0, 0, 1, 1], [], []>} : vector<64x256xbf16>, vector<256x128xbf16>, vector<64x128xf32> -> vector<64x128xf32>
    %c7_129 = arith.constant 7 : index
    %c0_130 = arith.constant 0 : index
    %c0_131 = arith.constant 0 : index
    %141 = vector.load %arg0[%c7_129, %c0_130, %c0_131] : memref<9x64x64xbf16, #tpu.memory_space<vmem>>, vector<1x64x64xbf16>
    %142 = vector.shape_cast %141 : vector<1x64x64xbf16> to vector<64x64xbf16>
    %143 = arith.truncf %140 : vector<64x128xf32> to vector<64x128xbf16>
    %cst_132 = arith.constant dense<0.000000e+00> : vector<64x128xf32>
    %144 = tpu.matmul %142, %143, %cst_132 {dimension_numbers = #tpu.dot_dimension_numbers<[1], [0], [0], [1], [0, 0, 1, 1], [], []>} : vector<64x64xbf16>, vector<64x128xbf16>, vector<64x128xf32> -> vector<64x128xf32>
    %145 = arith.addf %137, %144 : vector<64x128xf32>
    %c8_133 = arith.constant 8 : index
    %c0_134 = arith.constant 0 : index
    %c0_135 = arith.constant 0 : index
    %146 = vector.load %arg4[%c8_133, %c0_134, %c0_135] : memref<9x256x128xbf16, #tpu.memory_space<vmem>>, vector<1x256x128xbf16>
    %147 = vector.shape_cast %146 : vector<1x256x128xbf16> to vector<256x128xbf16>
    %cst_136 = arith.constant dense<0.000000e+00> : vector<64x128xf32>
    %148 = tpu.matmul %80, %147, %cst_136 {dimension_numbers = #tpu.dot_dimension_numbers<[1], [0], [0], [1], [0, 0, 1, 1], [], []>} : vector<64x256xbf16>, vector<256x128xbf16>, vector<64x128xf32> -> vector<64x128xf32>
    %c8_137 = arith.constant 8 : index
    %c0_138 = arith.constant 0 : index
    %c0_139 = arith.constant 0 : index
    %149 = vector.load %arg0[%c8_137, %c0_138, %c0_139] : memref<9x64x64xbf16, #tpu.memory_space<vmem>>, vector<1x64x64xbf16>
    %150 = vector.shape_cast %149 : vector<1x64x64xbf16> to vector<64x64xbf16>
    %151 = arith.truncf %148 : vector<64x128xf32> to vector<64x128xbf16>
    %cst_140 = arith.constant dense<0.000000e+00> : vector<64x128xf32>
    %152 = tpu.matmul %150, %151, %cst_140 {dimension_numbers = #tpu.dot_dimension_numbers<[1], [0], [0], [1], [0, 0, 1, 1], [], []>} : vector<64x64xbf16>, vector<64x128xbf16>, vector<64x128xf32> -> vector<64x128xf32>
    %153 = arith.addf %145, %152 : vector<64x128xf32>
    %c0_141 = arith.constant 0 : index
    %c0_142 = arith.constant 0 : index
    %154 = vector.load %arg5[%c0_141, %c0_142] : memref<1x128xf32, #tpu.memory_space<vmem>>, vector<1x128xf32>
    %155 = vector.broadcast %154 : vector<1x128xf32> to vector<64x128xf32>
    %156 = arith.addf %153, %155 : vector<64x128xf32>
    %cst_143 = arith.constant 0.000000e+00 : f32
    %157 = vector.broadcast %cst_143 : f32 to vector<64x128xf32>
    %158 = arith.maximumf %156, %157 : vector<64x128xf32>
    %159 = arith.truncf %158 : vector<64x128xf32> to vector<64x128xbf16>
    %cst_144 = arith.constant 0.000000e+00 : f32
    %160 = vector.broadcast %cst_144 : f32 to vector<64x32xf32>
    %c0_145 = arith.constant 0 : index
    %c0_146 = arith.constant 0 : index
    %c0_147 = arith.constant 0 : index
    %161 = vector.load %arg6[%c0_145, %c0_146, %c0_147] : memref<9x128x32xbf16, #tpu.memory_space<vmem>>, vector<1x128x32xbf16>
    %162 = vector.shape_cast %161 : vector<1x128x32xbf16> to vector<128x32xbf16>
    %cst_148 = arith.constant dense<0.000000e+00> : vector<64x32xf32>
    %163 = tpu.matmul %159, %162, %cst_148 {dimension_numbers = #tpu.dot_dimension_numbers<[1], [0], [0], [1], [0, 0, 1, 1], [], []>} : vector<64x128xbf16>, vector<128x32xbf16>, vector<64x32xf32> -> vector<64x32xf32>
    %c0_149 = arith.constant 0 : index
    %c0_150 = arith.constant 0 : index
    %c0_151 = arith.constant 0 : index
    %164 = vector.load %arg0[%c0_149, %c0_150, %c0_151] : memref<9x64x64xbf16, #tpu.memory_space<vmem>>, vector<1x64x64xbf16>
    %165 = vector.shape_cast %164 : vector<1x64x64xbf16> to vector<64x64xbf16>
    %166 = arith.truncf %163 : vector<64x32xf32> to vector<64x32xbf16>
    %cst_152 = arith.constant dense<0.000000e+00> : vector<64x32xf32>
    %167 = tpu.matmul %165, %166, %cst_152 {dimension_numbers = #tpu.dot_dimension_numbers<[1], [0], [0], [1], [0, 0, 1, 1], [], []>} : vector<64x64xbf16>, vector<64x32xbf16>, vector<64x32xf32> -> vector<64x32xf32>
    %168 = arith.addf %160, %167 : vector<64x32xf32>
    %c1_153 = arith.constant 1 : index
    %c0_154 = arith.constant 0 : index
    %c0_155 = arith.constant 0 : index
    %169 = vector.load %arg6[%c1_153, %c0_154, %c0_155] : memref<9x128x32xbf16, #tpu.memory_space<vmem>>, vector<1x128x32xbf16>
    %170 = vector.shape_cast %169 : vector<1x128x32xbf16> to vector<128x32xbf16>
    %cst_156 = arith.constant dense<0.000000e+00> : vector<64x32xf32>
    %171 = tpu.matmul %159, %170, %cst_156 {dimension_numbers = #tpu.dot_dimension_numbers<[1], [0], [0], [1], [0, 0, 1, 1], [], []>} : vector<64x128xbf16>, vector<128x32xbf16>, vector<64x32xf32> -> vector<64x32xf32>
    %c1_157 = arith.constant 1 : index
    %c0_158 = arith.constant 0 : index
    %c0_159 = arith.constant 0 : index
    %172 = vector.load %arg0[%c1_157, %c0_158, %c0_159] : memref<9x64x64xbf16, #tpu.memory_space<vmem>>, vector<1x64x64xbf16>
    %173 = vector.shape_cast %172 : vector<1x64x64xbf16> to vector<64x64xbf16>
    %174 = arith.truncf %171 : vector<64x32xf32> to vector<64x32xbf16>
    %cst_160 = arith.constant dense<0.000000e+00> : vector<64x32xf32>
    %175 = tpu.matmul %173, %174, %cst_160 {dimension_numbers = #tpu.dot_dimension_numbers<[1], [0], [0], [1], [0, 0, 1, 1], [], []>} : vector<64x64xbf16>, vector<64x32xbf16>, vector<64x32xf32> -> vector<64x32xf32>
    %176 = arith.addf %168, %175 : vector<64x32xf32>
    %c2_161 = arith.constant 2 : index
    %c0_162 = arith.constant 0 : index
    %c0_163 = arith.constant 0 : index
    %177 = vector.load %arg6[%c2_161, %c0_162, %c0_163] : memref<9x128x32xbf16, #tpu.memory_space<vmem>>, vector<1x128x32xbf16>
    %178 = vector.shape_cast %177 : vector<1x128x32xbf16> to vector<128x32xbf16>
    %cst_164 = arith.constant dense<0.000000e+00> : vector<64x32xf32>
    %179 = tpu.matmul %159, %178, %cst_164 {dimension_numbers = #tpu.dot_dimension_numbers<[1], [0], [0], [1], [0, 0, 1, 1], [], []>} : vector<64x128xbf16>, vector<128x32xbf16>, vector<64x32xf32> -> vector<64x32xf32>
    %c2_165 = arith.constant 2 : index
    %c0_166 = arith.constant 0 : index
    %c0_167 = arith.constant 0 : index
    %180 = vector.load %arg0[%c2_165, %c0_166, %c0_167] : memref<9x64x64xbf16, #tpu.memory_space<vmem>>, vector<1x64x64xbf16>
    %181 = vector.shape_cast %180 : vector<1x64x64xbf16> to vector<64x64xbf16>
    %182 = arith.truncf %179 : vector<64x32xf32> to vector<64x32xbf16>
    %cst_168 = arith.constant dense<0.000000e+00> : vector<64x32xf32>
    %183 = tpu.matmul %181, %182, %cst_168 {dimension_numbers = #tpu.dot_dimension_numbers<[1], [0], [0], [1], [0, 0, 1, 1], [], []>} : vector<64x64xbf16>, vector<64x32xbf16>, vector<64x32xf32> -> vector<64x32xf32>
    %184 = arith.addf %176, %183 : vector<64x32xf32>
    %c3_169 = arith.constant 3 : index
    %c0_170 = arith.constant 0 : index
    %c0_171 = arith.constant 0 : index
    %185 = vector.load %arg6[%c3_169, %c0_170, %c0_171] : memref<9x128x32xbf16, #tpu.memory_space<vmem>>, vector<1x128x32xbf16>
    %186 = vector.shape_cast %185 : vector<1x128x32xbf16> to vector<128x32xbf16>
    %cst_172 = arith.constant dense<0.000000e+00> : vector<64x32xf32>
    %187 = tpu.matmul %159, %186, %cst_172 {dimension_numbers = #tpu.dot_dimension_numbers<[1], [0], [0], [1], [0, 0, 1, 1], [], []>} : vector<64x128xbf16>, vector<128x32xbf16>, vector<64x32xf32> -> vector<64x32xf32>
    %c3_173 = arith.constant 3 : index
    %c0_174 = arith.constant 0 : index
    %c0_175 = arith.constant 0 : index
    %188 = vector.load %arg0[%c3_173, %c0_174, %c0_175] : memref<9x64x64xbf16, #tpu.memory_space<vmem>>, vector<1x64x64xbf16>
    %189 = vector.shape_cast %188 : vector<1x64x64xbf16> to vector<64x64xbf16>
    %190 = arith.truncf %187 : vector<64x32xf32> to vector<64x32xbf16>
    %cst_176 = arith.constant dense<0.000000e+00> : vector<64x32xf32>
    %191 = tpu.matmul %189, %190, %cst_176 {dimension_numbers = #tpu.dot_dimension_numbers<[1], [0], [0], [1], [0, 0, 1, 1], [], []>} : vector<64x64xbf16>, vector<64x32xbf16>, vector<64x32xf32> -> vector<64x32xf32>
    %192 = arith.addf %184, %191 : vector<64x32xf32>
    %c4_177 = arith.constant 4 : index
    %c0_178 = arith.constant 0 : index
    %c0_179 = arith.constant 0 : index
    %193 = vector.load %arg6[%c4_177, %c0_178, %c0_179] : memref<9x128x32xbf16, #tpu.memory_space<vmem>>, vector<1x128x32xbf16>
    %194 = vector.shape_cast %193 : vector<1x128x32xbf16> to vector<128x32xbf16>
    %cst_180 = arith.constant dense<0.000000e+00> : vector<64x32xf32>
    %195 = tpu.matmul %159, %194, %cst_180 {dimension_numbers = #tpu.dot_dimension_numbers<[1], [0], [0], [1], [0, 0, 1, 1], [], []>} : vector<64x128xbf16>, vector<128x32xbf16>, vector<64x32xf32> -> vector<64x32xf32>
    %c4_181 = arith.constant 4 : index
    %c0_182 = arith.constant 0 : index
    %c0_183 = arith.constant 0 : index
    %196 = vector.load %arg0[%c4_181, %c0_182, %c0_183] : memref<9x64x64xbf16, #tpu.memory_space<vmem>>, vector<1x64x64xbf16>
    %197 = vector.shape_cast %196 : vector<1x64x64xbf16> to vector<64x64xbf16>
    %198 = arith.truncf %195 : vector<64x32xf32> to vector<64x32xbf16>
    %cst_184 = arith.constant dense<0.000000e+00> : vector<64x32xf32>
    %199 = tpu.matmul %197, %198, %cst_184 {dimension_numbers = #tpu.dot_dimension_numbers<[1], [0], [0], [1], [0, 0, 1, 1], [], []>} : vector<64x64xbf16>, vector<64x32xbf16>, vector<64x32xf32> -> vector<64x32xf32>
    %200 = arith.addf %192, %199 : vector<64x32xf32>
    %c5_185 = arith.constant 5 : index
    %c0_186 = arith.constant 0 : index
    %c0_187 = arith.constant 0 : index
    %201 = vector.load %arg6[%c5_185, %c0_186, %c0_187] : memref<9x128x32xbf16, #tpu.memory_space<vmem>>, vector<1x128x32xbf16>
    %202 = vector.shape_cast %201 : vector<1x128x32xbf16> to vector<128x32xbf16>
    %cst_188 = arith.constant dense<0.000000e+00> : vector<64x32xf32>
    %203 = tpu.matmul %159, %202, %cst_188 {dimension_numbers = #tpu.dot_dimension_numbers<[1], [0], [0], [1], [0, 0, 1, 1], [], []>} : vector<64x128xbf16>, vector<128x32xbf16>, vector<64x32xf32> -> vector<64x32xf32>
    %c5_189 = arith.constant 5 : index
    %c0_190 = arith.constant 0 : index
    %c0_191 = arith.constant 0 : index
    %204 = vector.load %arg0[%c5_189, %c0_190, %c0_191] : memref<9x64x64xbf16, #tpu.memory_space<vmem>>, vector<1x64x64xbf16>
    %205 = vector.shape_cast %204 : vector<1x64x64xbf16> to vector<64x64xbf16>
    %206 = arith.truncf %203 : vector<64x32xf32> to vector<64x32xbf16>
    %cst_192 = arith.constant dense<0.000000e+00> : vector<64x32xf32>
    %207 = tpu.matmul %205, %206, %cst_192 {dimension_numbers = #tpu.dot_dimension_numbers<[1], [0], [0], [1], [0, 0, 1, 1], [], []>} : vector<64x64xbf16>, vector<64x32xbf16>, vector<64x32xf32> -> vector<64x32xf32>
    %208 = arith.addf %200, %207 : vector<64x32xf32>
    %c6_193 = arith.constant 6 : index
    %c0_194 = arith.constant 0 : index
    %c0_195 = arith.constant 0 : index
    %209 = vector.load %arg6[%c6_193, %c0_194, %c0_195] : memref<9x128x32xbf16, #tpu.memory_space<vmem>>, vector<1x128x32xbf16>
    %210 = vector.shape_cast %209 : vector<1x128x32xbf16> to vector<128x32xbf16>
    %cst_196 = arith.constant dense<0.000000e+00> : vector<64x32xf32>
    %211 = tpu.matmul %159, %210, %cst_196 {dimension_numbers = #tpu.dot_dimension_numbers<[1], [0], [0], [1], [0, 0, 1, 1], [], []>} : vector<64x128xbf16>, vector<128x32xbf16>, vector<64x32xf32> -> vector<64x32xf32>
    %c6_197 = arith.constant 6 : index
    %c0_198 = arith.constant 0 : index
    %c0_199 = arith.constant 0 : index
    %212 = vector.load %arg0[%c6_197, %c0_198, %c0_199] : memref<9x64x64xbf16, #tpu.memory_space<vmem>>, vector<1x64x64xbf16>
    %213 = vector.shape_cast %212 : vector<1x64x64xbf16> to vector<64x64xbf16>
    %214 = arith.truncf %211 : vector<64x32xf32> to vector<64x32xbf16>
    %cst_200 = arith.constant dense<0.000000e+00> : vector<64x32xf32>
    %215 = tpu.matmul %213, %214, %cst_200 {dimension_numbers = #tpu.dot_dimension_numbers<[1], [0], [0], [1], [0, 0, 1, 1], [], []>} : vector<64x64xbf16>, vector<64x32xbf16>, vector<64x32xf32> -> vector<64x32xf32>
    %216 = arith.addf %208, %215 : vector<64x32xf32>
    %c7_201 = arith.constant 7 : index
    %c0_202 = arith.constant 0 : index
    %c0_203 = arith.constant 0 : index
    %217 = vector.load %arg6[%c7_201, %c0_202, %c0_203] : memref<9x128x32xbf16, #tpu.memory_space<vmem>>, vector<1x128x32xbf16>
    %218 = vector.shape_cast %217 : vector<1x128x32xbf16> to vector<128x32xbf16>
    %cst_204 = arith.constant dense<0.000000e+00> : vector<64x32xf32>
    %219 = tpu.matmul %159, %218, %cst_204 {dimension_numbers = #tpu.dot_dimension_numbers<[1], [0], [0], [1], [0, 0, 1, 1], [], []>} : vector<64x128xbf16>, vector<128x32xbf16>, vector<64x32xf32> -> vector<64x32xf32>
    %c7_205 = arith.constant 7 : index
    %c0_206 = arith.constant 0 : index
    %c0_207 = arith.constant 0 : index
    %220 = vector.load %arg0[%c7_205, %c0_206, %c0_207] : memref<9x64x64xbf16, #tpu.memory_space<vmem>>, vector<1x64x64xbf16>
    %221 = vector.shape_cast %220 : vector<1x64x64xbf16> to vector<64x64xbf16>
    %222 = arith.truncf %219 : vector<64x32xf32> to vector<64x32xbf16>
    %cst_208 = arith.constant dense<0.000000e+00> : vector<64x32xf32>
    %223 = tpu.matmul %221, %222, %cst_208 {dimension_numbers = #tpu.dot_dimension_numbers<[1], [0], [0], [1], [0, 0, 1, 1], [], []>} : vector<64x64xbf16>, vector<64x32xbf16>, vector<64x32xf32> -> vector<64x32xf32>
    %224 = arith.addf %216, %223 : vector<64x32xf32>
    %c8_209 = arith.constant 8 : index
    %c0_210 = arith.constant 0 : index
    %c0_211 = arith.constant 0 : index
    %225 = vector.load %arg6[%c8_209, %c0_210, %c0_211] : memref<9x128x32xbf16, #tpu.memory_space<vmem>>, vector<1x128x32xbf16>
    %226 = vector.shape_cast %225 : vector<1x128x32xbf16> to vector<128x32xbf16>
    %cst_212 = arith.constant dense<0.000000e+00> : vector<64x32xf32>
    %227 = tpu.matmul %159, %226, %cst_212 {dimension_numbers = #tpu.dot_dimension_numbers<[1], [0], [0], [1], [0, 0, 1, 1], [], []>} : vector<64x128xbf16>, vector<128x32xbf16>, vector<64x32xf32> -> vector<64x32xf32>
    %c8_213 = arith.constant 8 : index
    %c0_214 = arith.constant 0 : index
    %c0_215 = arith.constant 0 : index
    %228 = vector.load %arg0[%c8_213, %c0_214, %c0_215] : memref<9x64x64xbf16, #tpu.memory_space<vmem>>, vector<1x64x64xbf16>
    %229 = vector.shape_cast %228 : vector<1x64x64xbf16> to vector<64x64xbf16>
    %230 = arith.truncf %227 : vector<64x32xf32> to vector<64x32xbf16>
    %cst_216 = arith.constant dense<0.000000e+00> : vector<64x32xf32>
    %231 = tpu.matmul %229, %230, %cst_216 {dimension_numbers = #tpu.dot_dimension_numbers<[1], [0], [0], [1], [0, 0, 1, 1], [], []>} : vector<64x64xbf16>, vector<64x32xbf16>, vector<64x32xf32> -> vector<64x32xf32>
    %232 = arith.addf %224, %231 : vector<64x32xf32>
    %c0_217 = arith.constant 0 : index
    %c0_218 = arith.constant 0 : index
    %233 = vector.load %arg7[%c0_217, %c0_218] : memref<1x32xf32, #tpu.memory_space<vmem>>, vector<1x32xf32>
    %234 = vector.broadcast %233 : vector<1x32xf32> to vector<64x32xf32>
    %235 = arith.addf %232, %234 : vector<64x32xf32>
    %236 = tpu.iota {dimensions = array<i32: 1>} : vector<32x1024xi32>
    %237 = tpu.iota {dimensions = array<i32: 0>} : vector<32x1024xi32>
    %c5_i32 = arith.constant 5 : i32
    %238 = vector.broadcast %c5_i32 : i32 to vector<32x1024xi32>
    %239 = arith.shrsi %236, %238 : vector<32x1024xi32>
    %240 = arith.cmpi eq, %239, %237 : vector<32x1024xi32>
    %cst_219 = arith.constant 1.000000e+00 : f32
    %cst_220 = arith.constant 0.000000e+00 : f32
    %241 = vector.broadcast %cst_219 : f32 to vector<32x1024xf32>
    %242 = vector.broadcast %cst_220 : f32 to vector<32x1024xf32>
    %243 = arith.select %240, %241, %242 : vector<32x1024xi1>, vector<32x1024xf32>
    %c31_i32 = arith.constant 31 : i32
    %244 = vector.broadcast %c31_i32 : i32 to vector<32x1024xi32>
    %245 = arith.andi %236, %244 : vector<32x1024xi32>
    %246 = arith.cmpi eq, %245, %237 : vector<32x1024xi32>
    %cst_221 = arith.constant 1.000000e+00 : f32
    %cst_222 = arith.constant 0.000000e+00 : f32
    %247 = vector.broadcast %cst_221 : f32 to vector<32x1024xf32>
    %248 = vector.broadcast %cst_222 : f32 to vector<32x1024xf32>
    %249 = arith.select %246, %247, %248 : vector<32x1024xi1>, vector<32x1024xf32>
    %cst_223 = arith.constant dense<0.000000e+00> : vector<64x1024xf32>
    %250 = tpu.matmul %235, %243, %cst_223 {dimension_numbers = #tpu.dot_dimension_numbers<[1], [0], [0], [1], [0, 0, 1, 1], [], []>} : vector<64x32xf32>, vector<32x1024xf32>, vector<64x1024xf32> -> vector<64x1024xf32>
    %cst_224 = arith.constant dense<0.000000e+00> : vector<64x1024xf32>
    %251 = tpu.matmul %235, %249, %cst_224 {dimension_numbers = #tpu.dot_dimension_numbers<[1], [0], [0], [1], [0, 0, 1, 1], [], []>} : vector<64x32xf32>, vector<32x1024xf32>, vector<64x1024xf32> -> vector<64x1024xf32>
    %252 = arith.mulf %250, %251 : vector<64x1024xf32>
    %cst_225 = arith.constant dense<0.000000e+00> : vector<1024xf32>
    %253 = vector.multi_reduction <add>, %252, %cst_225 [0] : vector<64x1024xf32> to vector<1024xf32>
    %254 = vector.shape_cast %253 : vector<1024xf32> to vector<1x1024xf32>
    %cst_226 = arith.constant 1.562500e-02 : f32
    %255 = vector.broadcast %cst_226 : f32 to vector<1x1024xf32>
    %256 = arith.mulf %254, %255 : vector<1x1024xf32>
    %c0_227 = arith.constant 0 : index
    %c0_228 = arith.constant 0 : index
    %257 = vector.load %arg8[%c0_227, %c0_228] : memref<1024x1024xf32, #tpu.memory_space<vmem>>, vector<1024x1024xf32>
    %cst_229 = arith.constant dense<0.000000e+00> : vector<1x1024xf32>
    %258 = tpu.matmul %256, %257, %cst_229 {dimension_numbers = #tpu.dot_dimension_numbers<[1], [0], [0], [1], [0, 0, 1, 1], [], []>} : vector<1x1024xf32>, vector<1024x1024xf32>, vector<1x1024xf32> -> vector<1x1024xf32>
    %c0_230 = arith.constant 0 : index
    %c0_231 = arith.constant 0 : index
    %259 = vector.load %arg9[%c0_230, %c0_231] : memref<1x1024xf32, #tpu.memory_space<vmem>>, vector<1x1024xf32>
    %260 = arith.addf %258, %259 : vector<1x1024xf32>
    %c0_232 = arith.constant 0 : index
    %c0_233 = arith.constant 0 : index
    %261 = vector.load %arg10[%c0_232, %c0_233] : memref<1x1024xf32, #tpu.memory_space<vmem>>, vector<1x1024xf32>
    tpu.vector_store %arg10[%c0_232, %c0_233], %260 {strides = array<i32>} : memref<1x1024xf32, #tpu.memory_space<vmem>>, vector<1x1024xf32>,
    return
  }
}

</mosaic_0001>

<bundles_post_ra>
// kernel: cnn_forward.1
= control target key start
LH: loop header
LB: loop body
LE: loop exit
PB: predicated region body
PF: predicated region fallthrough
CT: control target
= control target key end

     0   :  { %vm1199_vm0 = vcmask 523264   ;;  %s27285_s0 = inlined_call_operand.vmem [shape: bf16[9,64,64], index: 0, kind: input, shape index: {}]   ;;  %s27286_s1 = inlined_call_operand.vmem [shape: f32[64,512], index: 1, kind: input, shape index: {}]   ;;  %s27287_s2 = inlined_call_operand.vmem [shape: bf16[9,512,256], index: 2, kind: input, shape index: {}]   ;;  %s27288_s3 = inlined_call_operand.vmem [shape: f32[1,256], index: 3, kind: input, shape index: {}]   ;;  %s27289_s4 = inlined_call_operand.vmem [shape: bf16[9,256,128], index: 4, kind: input, shape index: {}]   ;;  %s27290_s5 = inlined_call_operand.vmem [shape: f32[1,128], index: 5, kind: input, shape index: {}]   ;;  %s27291_s6 = inlined_call_operand.vmem [shape: bf16[9,128,32], index: 6, kind: input, shape index: {}]   ;;  %s27292_s7 = inlined_call_operand.vmem [shape: f32[1,32], index: 7, kind: input, shape index: {}]   ;;  %s27293_s8 = inlined_call_operand.vmem [shape: f32[1024,1024], index: 8, kind: input, shape index: {}]   ;;  %s27294_s9 = inlined_call_operand.vmem [shape: f32[1,1024], index: 9, kind: input, shape index: {}]   ;;  %s27295_s10 = inlined_call_operand.hbm [shape: f32[1,1024], index: 10, kind: output, shape index: {}]  }
   0x1   :  { %v18644_v0 = vld [vmem:[%s27287_s2 + $0x204] ss:$8 sps:$4 sm:$0xff]   ;;  %v18646_v1 = vld [vmem:[%s27287_s2 + $0x200] ss:$8 sps:$4 sm:$0xff]   ;;  %v18647_v2 = vld [vmem:[%s27287_s2 + $0x214] ss:$8 sps:$4 sm:$0xff]  }
   0x2   :  { %1016 = vmatprep.subr.bf16.mxu1 %v18644_v0  ;;  %v18649_v3 = vld [vmem:[%s27287_s2 + $0x210] ss:$8 sps:$4 sm:$0xff]   ;;  %v18650_v4 = vld [vmem:[%s27287_s2 + $0x224] ss:$8 sps:$4 sm:$0xff]   ;;  %v18652_v5 = vld [vmem:[%s27287_s2 + $0x220] ss:$8 sps:$4 sm:$0xff]  }
   0x3   :  { %1017 = vmatpush1.bf16.msra.mxu1 %v18646_v1  ;;  %v18653_v6 = vld [vmem:[%s27287_s2 + $0x234] ss:$8 sps:$4 sm:$0xff]   ;;  %v18655_v7 = vld [vmem:[%s27287_s2 + $0x230] ss:$8 sps:$4 sm:$0xff]   ;;  %v18668_v8 = vld [vmem:[%s27287_s2 + $0x4] ss:$8 sps:$4 sm:$0xff]  }
   0x4   :  { %1018 = vmatprep.subr.bf16.mxu1 %v18647_v2  ;;  %v18670_v9 = vld [vmem:[%s27287_s2] ss:$8 sps:$4 sm:$0xff]   ;;  %v18656_v10 = vld [vmem:[%s27287_s2 + $0x244] ss:$8 sps:$4 sm:$0xff]   ;;  %469 = vmatprep.subr.bf16.mxu0 %v18668_v8  ;;  %v18674_v11 = vld [vmem:[%s27287_s2 + $0x14] ss:$8 sps:$4 sm:$0xff]  }
   0x5   :  { %470 = vmatpush1.bf16.msra.mxu0 %v18670_v9  ;;  %v18676_v12 = vld [vmem:[%s27287_s2 + $0x10] ss:$8 sps:$4 sm:$0xff]   ;;  %v18658_v13 = vld [vmem:[%s27287_s2 + $0x240] ss:$8 sps:$4 sm:$0xff]   ;;  %v18659_v14 = vld [vmem:[%s27287_s2 + $0x254] ss:$8 sps:$4 sm:$0xff]  }
   0x6   :  { %471 = vmatprep.subr.bf16.mxu0 %v18674_v11  ;;  %v18680_v15 = vld [vmem:[%s27287_s2 + $0x24] ss:$8 sps:$4 sm:$0xff]   ;;  %v18682_v16 = vld [vmem:[%s27287_s2 + $0x20] ss:$8 sps:$4 sm:$0xff]   ;;  %v18661_v17 = vld [vmem:[%s27287_s2 + $0x250] ss:$8 sps:$4 sm:$0xff]  }
   0x7   :  { %1019 = vmatpush1.bf16.msra.mxu1 %v18649_v3  ;;  %v18686_v18 = vld [vmem:[%s27287_s2 + $0x34] ss:$8 sps:$4 sm:$0xff]   ;;  %v18662_v19 = vld [vmem:[%s27287_s2 + $0x264] ss:$8 sps:$4 sm:$0xff]   ;;  %v18688_v20 = vld [vmem:[%s27287_s2 + $0x30] ss:$8 sps:$4 sm:$0xff]  }
   0x8   :  { %1020 = vmatprep.subr.bf16.mxu1 %v18650_v4  ;;  %v18664_v21 = vld [vmem:[%s27287_s2 + $0x260] ss:$8 sps:$4 sm:$0xff]   ;;  %v18692_v22 = vld [vmem:[%s27287_s2 + $0x44] ss:$8 sps:$4 sm:$0xff]   ;;  %v18665_v23 = vld [vmem:[%s27287_s2 + $0x274] ss:$8 sps:$4 sm:$0xff]  }
   0x9   :  { %472 = vmatpush1.bf16.msra.mxu0 %v18676_v12  ;;  %v18694_v24 = vld [vmem:[%s27287_s2 + $0x40] ss:$8 sps:$4 sm:$0xff]   ;;  %v18667_v25 = vld [vmem:[%s27287_s2 + $0x270] ss:$8 sps:$4 sm:$0xff]   ;;  %v18698_v26 = vld [vmem:[%s27287_s2 + $0x54] ss:$8 sps:$4 sm:$0xff]  }
   0xa   :  { %473 = vmatprep.subr.bf16.mxu0 %v18680_v15  ;;  %v18671_v27 = vld [vmem:[%s27287_s2 + $0x284] ss:$8 sps:$4 sm:$0xff]   ;;  %v18700_v28 = vld [vmem:[%s27287_s2 + $0x50] ss:$8 sps:$4 sm:$0xff]   ;;  %v18673_v29 = vld [vmem:[%s27287_s2 + $0x280] ss:$8 sps:$4 sm:$0xff]  }
   0xb   :  { %1021 = vmatpush1.bf16.msra.mxu1 %v18652_v5  ;;  %v18704_v30 = vld [vmem:[%s27287_s2 + $0x64] ss:$8 sps:$4 sm:$0xff]   ;;  %v18677_v31 = vld [vmem:[%s27287_s2 + $0x294] ss:$8 sps:$4 sm:$0xff]   ;;  %v18706_v34 = vld [vmem:[%s27287_s2 + $0x60] ss:$8 sps:$4 sm:$0xff]  }
   0xc   :  { %1022 = vmatprep.subr.bf16.mxu1 %v18653_v6  ;;  %v38_v32 = vld [vmem:[%s27286_s1 + $0x8] sm:$0xff]  ;;  %v18679_v36 = vld [vmem:[%s27287_s2 + $0x290] ss:$8 sps:$4 sm:$0xff]   ;;  %v18710_v37 = vld [vmem:[%s27287_s2 + $0x74] ss:$8 sps:$4 sm:$0xff]  }
   0xd   :  { %474 = vmatpush1.bf16.msra.mxu0 %v18682_v16  ;;  %v42_v33 = vld [vmem:[%s27286_s1 + $0x28] sm:$0xff]  ;;  %v18712_v39 = vld [vmem:[%s27287_s2 + $0x70] ss:$8 sps:$4 sm:$0xff]   ;;  %v18689_v42 = vld [vmem:[%s27287_s2 + $0x2b4] ss:$8 sps:$4 sm:$0xff]  }
   0xe   :  { %475 = vmatprep.subr.bf16.mxu0 %v18686_v18  ;;  %v19996_v35 = vpack.c.bf16 %v42_v33, %v38_v32  ;;  %v18683_v38 = vld [vmem:[%s27287_s2 + $0x2a4] ss:$8 sps:$4 sm:$0xff]   ;;  %v18685_v40 = vld [vmem:[%s27287_s2 + $0x2a0] ss:$8 sps:$4 sm:$0xff]   ;;  %v18691_v44 = vld [vmem:[%s27287_s2 + $0x2b0] ss:$8 sps:$4 sm:$0xff]  }
   0xf   :  { %1023 = vmatpush1.bf16.msra.mxu1 %v18655_v7  ;;  %v18716_v41 = vld [vmem:[%s27287_s2 + $0x84] ss:$8 sps:$4 sm:$0xff]   ;;  %v18718_v43 = vld [vmem:[%s27287_s2 + $0x80] ss:$8 sps:$4 sm:$0xff]   ;;  %v18722_v45 = vld [vmem:[%s27287_s2 + $0x94] ss:$8 sps:$4 sm:$0xff]  }
  0x10   :  { %1024 = vmatprep.subr.bf16.mxu1 %v18656_v10  ;;  %1048 = vmatprep.mubr.bf16.mxu1 %v19996_v35  ;;  %v18695_v46 = vld [vmem:[%s27287_s2 + $0x2c4] ss:$8 sps:$4 sm:$0xff]   ;;  %v18724_v47 = vld [vmem:[%s27287_s2 + $0x90] ss:$8 sps:$4 sm:$0xff]   ;;  %v18697_v48 = vld [vmem:[%s27287_s2 + $0x2c0] ss:$8 sps:$4 sm:$0xff]  }
  0x11   :  { %476 = vmatpush1.bf16.msra.mxu0 %v18688_v20  ;;  %501 = vmatprep.mubr.bf16.mxu0 %v19996_v35  ;;  %v18728_v49 = vld [vmem:[%s27287_s2 + $0xa4] ss:$8 sps:$4 sm:$0xff]   ;;  %v18701_v50 = vld [vmem:[%s27287_s2 + $0x2d4] ss:$8 sps:$4 sm:$0xff]   ;;  %v18730_v51 = vld [vmem:[%s27287_s2 + $0xa0] ss:$8 sps:$4 sm:$0xff]  }
  0x12   :  { %477 = vmatprep.subr.bf16.mxu0 %v18692_v22  ;;  %v18703_v52 = vld [vmem:[%s27287_s2 + $0x2d0] ss:$8 sps:$4 sm:$0xff]   ;;  %v18734_v53 = vld [vmem:[%s27287_s2 + $0xb4] ss:$8 sps:$4 sm:$0xff]   ;;  %v18707_v54 = vld [vmem:[%s27287_s2 + $0x2e4] ss:$8 sps:$4 sm:$0xff]  }
  0x13   :  { %1025 = vmatpush1.bf16.msra.mxu1 %v18658_v13  ;;  %v18736_v55 = vld [vmem:[%s27287_s2 + $0xb0] ss:$8 sps:$4 sm:$0xff]   ;;  %v18709_v56 = vld [vmem:[%s27287_s2 + $0x2e0] ss:$8 sps:$4 sm:$0xff]   ;;  %v18740_v57 = vld [vmem:[%s27287_s2 + $0xc4] ss:$8 sps:$4 sm:$0xff]  }
  0x14   :  { %1026 = vmatprep.subr.bf16.mxu1 %v18659_v14  ;;  %v18713_v58 = vld [vmem:[%s27287_s2 + $0x2f4] ss:$8 sps:$4 sm:$0xff]   ;;  %v18715_v59 = vld [vmem:[%s27287_s2 + $0x2f0] ss:$8 sps:$4 sm:$0xff]   ;;  %v37_v60 = vld [vmem:[%s27286_s1] sm:$0xff] }
  0x15   :  { %478 = vmatpush1.bf16.msra.mxu0 %v18694_v24  ;;  %v18742_v61 = vld [vmem:[%s27287_s2 + $0xc0] ss:$8 sps:$4 sm:$0xff]   ;;  %v18746_v63 = vld [vmem:[%s27287_s2 + $0xd4] ss:$8 sps:$4 sm:$0xff]   ;;  %v18721_v0 = vld [vmem:[%s27287_s2 + $0x304] ss:$8 sps:$4 sm:$0xff]  }
  0x16   :  { %479 = vmatprep.subr.bf16.mxu0 %v18698_v26  ;;  %v41_v62 = vld [vmem:[%s27286_s1 + $0x20] sm:$0xff]  ;;  %v46_v1 = vld [vmem:[%s27286_s1 + $0x48] sm:$0xff]  ;;  %v18748_v4 = vld [vmem:[%s27287_s2 + $0xd0] ss:$8 sps:$4 sm:$0xff]  }
  0x17   :  { %1027 = vmatpush1.bf16.msra.mxu1 %v18661_v17  ;;  %v50_v2 = vld [vmem:[%s27286_s1 + $0x68] sm:$0xff]  ;;  %v20093_v3 = vpack.c.bf16 %v41_v62, %v37_v60  ;;  %v18727_v7 = vld [vmem:[%s27287_s2 + $0x314] ss:$8 sps:$4 sm:$0xff]   ;;  %v18725_v9 = vld [vmem:[%s27287_s2 + $0x310] ss:$8 sps:$4 sm:$0xff]  }
  0x18   :  { %1028 = vmatprep.subr.bf16.mxu1 %v18662_v19  ;;  %v18719_v5 = vld [vmem:[%s27287_s2 + $0x300] ss:$8 sps:$4 sm:$0xff]   ;;  %v18752_v6 = vld [vmem:[%s27287_s2 + $0xe4] ss:$8 sps:$4 sm:$0xff]   ;;  %v20107_v8 = vpack.c.bf16 %v50_v2, %v46_v1  ;;  %v18758_v11 = vld [vmem:[%s27287_s2 + $0xf4] ss:$8 sps:$4 sm:$0xff]  }
  0x19   :  { %480 = vmatpush1.bf16.msra.mxu0 %v18700_v28  ;;  %v18754_v10 = vld [vmem:[%s27287_s2 + $0xe0] ss:$8 sps:$4 sm:$0xff]   ;;  %v18733_v14 = vld [vmem:[%s27287_s2 + $0x324] ss:$8 sps:$4 sm:$0xff]   ;;  %v18760_v17 = vld [vmem:[%s27287_s2 + $0xf0] ss:$8 sps:$4 sm:$0xff]  }
  0x1a   :  { %481 = vmatprep.subr.bf16.mxu0 %v18704_v30  ;;  %v45_v12 = vld [vmem:[%s27286_s1 + $0x40] sm:$0xff]  ;;  %v54_v15 = vld [vmem:[%s27286_s1 + $0x88] sm:$0xff]  ;;  %v18772_v26 = vld [vmem:[%s27287_s2 + $0x114] ss:$8 sps:$4 sm:$0xff]  }
  0x1b   :  { %1029 = vmatpush1.bf16.msra.mxu1 %v18664_v21  ;;  %v49_v13 = vld [vmem:[%s27286_s1 + $0x60] sm:$0xff]  ;;  %v58_v16 = vld [vmem:[%s27286_s1 + $0xa8] sm:$0xff]  ;;  %v18739_v21 = vld [vmem:[%s27287_s2 + $0x334] ss:$8 sps:$4 sm:$0xff]  }
  0x1c   :  { %1030 = vmatprep.subr.bf16.mxu1 %v18665_v23  ;;  %v20138_v18 = vpack.c.bf16 %v49_v13, %v45_v12  ;;  %v18731_v19 = vld [vmem:[%s27287_s2 + $0x320] ss:$8 sps:$4 sm:$0xff]   ;;  %v18766_v20 = vld [vmem:[%s27287_s2 + $0x104] ss:$8 sps:$4 sm:$0xff]   ;;  %v20149_v22 = vpack.c.bf16 %v58_v16, %v54_v15  ;;  %v18737_v23 = vld [vmem:[%s27287_s2 + $0x330] ss:$8 sps:$4 sm:$0xff]  }
  0x1d   :  { %482 = vmatpush1.bf16.msra.mxu0 %v18706_v34  ;;  %v18745_v24 = vld [vmem:[%s27287_s2 + $0x344] ss:$8 sps:$4 sm:$0xff]   ;;  %v18743_v33 = vld [vmem:[%s27287_s2 + $0x340] ss:$8 sps:$4 sm:$0xff]   ;;  %v18808_v62 = vld [vmem:[%s27287_s2 + $0x174] ss:$8 sps:$4 sm:$0xff]  }
  0x1e   :  { %483 = vmatprep.subr.bf16.mxu0 %v18710_v37  ;;  %v57_v28 = vld [vmem:[%s27286_s1 + $0xa0] sm:$0xff]  ;;  %v66_v30 = vld [vmem:[%s27286_s1 + $0xe8] sm:$0xff]  ;;  %v18799_v13 = vld [vmem:[%s27287_s2 + $0x3d4] ss:$8 sps:$4 sm:$0xff]  }
  0x1f   :  { %1031 = vmatpush1.bf16.msra.mxu1 %v18667_v25  ;;  %v18764_v25 = vld [vmem:[%s27287_s2 + $0x100] ss:$8 sps:$4 sm:$0xff]   ;;  %v18778_v34 = vld [vmem:[%s27287_s2 + $0x124] ss:$8 sps:$4 sm:$0xff]   ;;  %v18797_v15 = vld [vmem:[%s27287_s2 + $0x3d0] ss:$8 sps:$4 sm:$0xff]  }
  0x20   :  { %1032 = vmatprep.subr.bf16.mxu1 %v18671_v27  ;;  %v53_v27 = vld [vmem:[%s27286_s1 + $0x80] sm:$0xff]  ;;  %v18832_v16 = vld [vmem:[%s27287_s2 + $0x1b4] ss:$8 sps:$4 sm:$0xff]  }
  0x21   :  { %484 = vmatpush1.bf16.msra.mxu0 %v18712_v39  ;;  %v20181_v32 = vpack.c.bf16 %v57_v28, %v53_v27  ;;  %v18757_v39 = vld [vmem:[%s27287_s2 + $0x364] ss:$8 sps:$4 sm:$0xff]   ;;  %v18800_v60 = vld [vmem:[%s27287_s2 + $0x160] ss:$8 sps:$4 sm:$0xff]  }
  0x22   :  { %485 = vmatprep.subr.bf16.mxu0 %v18716_v41  ;;  %v18784_v41 = vld [vmem:[%s27287_s2 + $0x134] ss:$8 sps:$4 sm:$0xff]   ;;  %v18779_v1 = vld [vmem:[%s27287_s2 + $0x3a0] ss:$8 sps:$4 sm:$0xff]   ;;  %v18814_v2 = vld [vmem:[%s27287_s2 + $0x184] ss:$8 sps:$4 sm:$0xff]  }
  0x23   :  { %1033 = vmatpush1.bf16.msra.mxu1 %v18673_v29  ;;  %v62_v29 = vld [vmem:[%s27286_s1 + $0xc8] sm:$0xff] }
  0x24   :  { %1034 = vmatprep.subr.bf16.mxu1 %v18677_v31  ;;  %v18770_v31 = vld [vmem:[%s27287_s2 + $0x110] ss:$8 sps:$4 sm:$0xff]   ;;  %v20193_v37 = vpack.c.bf16 %v66_v30, %v62_v29  ;;  %v18826_v12 = vld [vmem:[%s27287_s2 + $0x1a4] ss:$8 sps:$4 sm:$0xff]   ;;  %v18836_v28 = vld [vmem:[%s27287_s2 + $0x1c0] ss:$8 sps:$4 sm:$0xff]  }
  0x25   :  { %486 = vmatpush1.bf16.msra.mxu0 %v18718_v43  ;;  %v65_v43 = vld [vmem:[%s27286_s1 + $0xe0] sm:$0xff]  ;;  %v48_v29 = vld [vmem:[%s27286_s1 + $0x58] sm:$0xff] }
  0x26   :  { %487 = vmatprep.subr.bf16.mxu0 %v18722_v45  ;;  %v44_v45 = vld [vmem:[%s27286_s1 + $0x38] sm:$0xff]  ;;  %v18817_v27 = vld [vmem:[%s27287_s2 + $0x404] ss:$8 sps:$4 sm:$0xff]  }
  0x27   :  { %1035 = vmatpush1.bf16.msra.mxu1 %v18679_v36  ;;  %v18751_v36 = vld [vmem:[%s27287_s2 + $0x354] ss:$8 sps:$4 sm:$0xff]  }
  0x28   :  { %1036 = vmatprep.subr.bf16.mxu1 %v18683_v38  ;;  %v18749_v38 = vld [vmem:[%s27287_s2 + $0x350] ss:$8 sps:$4 sm:$0xff]   ;;  %v18844_v30 = vld [vmem:[%s27287_s2 + $0x1d4] ss:$8 sps:$4 sm:$0xff]  }
  0x29   :  { %488 = vmatpush1.bf16.msra.mxu0 %v18724_v47 }
  0x2a   :  { %489 = vmatprep.subr.bf16.mxu0 %v18728_v49  ;;  %v18790_v49 = vld [vmem:[%s27287_s2 + $0x144] ss:$8 sps:$4 sm:$0xff]  }
  0x2b   :  { %1037 = vmatpush1.bf16.msra.mxu1 %v18685_v40  ;;  %v18776_v40 = vld [vmem:[%s27287_s2 + $0x120] ss:$8 sps:$4 sm:$0xff]  }
  0x2c   :  { %1038 = vmatprep.subr.bf16.mxu1 %v18689_v42  ;;  %v61_v42 = vld [vmem:[%s27286_s1 + $0xc0] sm:$0xff] }
  0x2d   :  { %490 = vmatpush1.bf16.msra.mxu0 %v18730_v51  ;;  %v20225_v47 = vpack.c.bf16 %v65_v43, %v61_v42  ;;  %v47_v42 = vld [vmem:[%s27286_s1 + $0x50] sm:$0xff] }
  0x2e   :  { %491 = vmatprep.subr.bf16.mxu0 %v18734_v53  ;;  %v18761_v53 = vld [vmem:[%s27287_s2 + $0x370] ss:$8 sps:$4 sm:$0xff]  }
  0x2f   :  { %1039 = vmatpush1.bf16.msra.mxu1 %v18691_v44  ;;  %v40_v44 = vld [vmem:[%s27286_s1 + $0x18] sm:$0xff]  ;;  %v51_v43 = vld [vmem:[%s27286_s1 + $0x70] sm:$0xff] }
  0x30   :  { %1040 = vmatprep.subr.bf16.mxu1 %v18695_v46  ;;  %v18782_v46 = vld [vmem:[%s27287_s2 + $0x130] ss:$8 sps:$4 sm:$0xff]   ;;  %v20237_v51 = vpack.c.bf16 %v44_v45, %v40_v44  ;;  %v18829_v44 = vld [vmem:[%s27287_s2 + $0x424] ss:$8 sps:$4 sm:$0xff]   ;;  %v18848_v45 = vld [vmem:[%s27287_s2 + $0x1e0] ss:$8 sps:$4 sm:$0xff]  }
  0x31   :  { %492 = vmatpush1.bf16.msra.mxu0 %v18736_v55  ;;  %v18769_v55 = vld [vmem:[%s27287_s2 + $0x384] ss:$8 sps:$4 sm:$0xff]  }
  0x32   :  { %493 = vmatprep.subr.bf16.mxu0 %v18740_v57  ;;  %v18767_v57 = vld [vmem:[%s27287_s2 + $0x380] ss:$8 sps:$4 sm:$0xff]  }
  0x33   :  { %1041 = vmatpush1.bf16.msra.mxu1 %v18697_v48  ;;  %v18755_v48 = vld [vmem:[%s27287_s2 + $0x360] ss:$8 sps:$4 sm:$0xff]  }
  0x34   :  { %1042 = vmatprep.subr.bf16.mxu1 %v18701_v50  ;;  %v18763_v50 = vld [vmem:[%s27287_s2 + $0x374] ss:$8 sps:$4 sm:$0xff]  }
  0x35   :  { %494 = vmatpush1.bf16.msra.mxu0 %v18742_v61  ;;  %v18773_v61 = vld [vmem:[%s27287_s2 + $0x390] ss:$8 sps:$4 sm:$0xff]  }
  0x36   :  { %495 = vmatprep.subr.bf16.mxu0 %v18746_v63  ;;  %v18781_v63 = vld [vmem:[%s27287_s2 + $0x3a4] ss:$8 sps:$4 sm:$0xff]  }
  0x37   :  { %1043 = vmatpush1.bf16.msra.mxu1 %v18703_v52  ;;  %v18788_v52 = vld [vmem:[%s27287_s2 + $0x140] ss:$8 sps:$4 sm:$0xff]  }
  0x38   :  { %1044 = vmatprep.subr.bf16.mxu1 %v18707_v54  ;;  %v18796_v54 = vld [vmem:[%s27287_s2 + $0x154] ss:$8 sps:$4 sm:$0xff]  }
  0x39   :  { %496 = vmatpush1.bf16.msra.mxu0 %v18748_v4  ;;  %v18787_v4 = vld [vmem:[%s27287_s2 + $0x3b4] ss:$8 sps:$4 sm:$0xff]  }
  0x3a   :  { %497 = vmatprep.subr.bf16.mxu0 %v18752_v6  ;;  %v18785_v6 = vld [vmem:[%s27287_s2 + $0x3b0] ss:$8 sps:$4 sm:$0xff]  }
  0x3b   :  { %1045 = vmatpush1.bf16.msra.mxu1 %v18709_v56  ;;  %v18794_v56 = vld [vmem:[%s27287_s2 + $0x150] ss:$8 sps:$4 sm:$0xff]  }
  0x3c   :  { %1046 = vmatprep.subr.bf16.mxu1 %v18713_v58  ;;  %v18802_v58 = vld [vmem:[%s27287_s2 + $0x164] ss:$8 sps:$4 sm:$0xff]  }
  0x3d   :  { %498 = vmatpush1.bf16.msra.mxu0 %v18754_v10  ;;  %v18818_v10 = vld [vmem:[%s27287_s2 + $0x190] ss:$8 sps:$4 sm:$0xff]  }
  0x3e   :  { %499 = vmatprep.subr.bf16.mxu0 %v18758_v11  ;;  %v18791_v11 = vld [vmem:[%s27287_s2 + $0x3c0] ss:$8 sps:$4 sm:$0xff]  }
  0x3f   :  { %1047 = vmatpush1.bf16.msra.mxu1 %v18715_v59  ;;  %v18775_v59 = vld [vmem:[%s27287_s2 + $0x394] ss:$8 sps:$4 sm:$0xff]  }
  0x40   :  { %1089 = vmatprep.subr.bf16.mxu1 %v18721_v0  ;;  %v18806_v0 = vld [vmem:[%s27287_s2 + $0x170] ss:$8 sps:$4 sm:$0xff]  }
  0x41   :  { %500 = vmatpush1.bf16.msra.mxu0 %v18760_v17  ;;  %v18805_v17 = vld [vmem:[%s27287_s2 + $0x3e4] ss:$8 sps:$4 sm:$0xff]  }
  0x42   :  { %1049 = vmatmul.mubr.bf16.vlgmr.msra.gmra.mrb[0].mxu1 %v20093_v3  ;;  %542 = vmatprep.subr.bf16.mxu0 %v18766_v20  ;;  %v18803_v20 = vld [vmem:[%s27287_s2 + $0x3e0] ss:$8 sps:$4 sm:$0xff]  }
  0x43   :  { %1090 = vmatpush1.bf16.msra.mxu1 %v18719_v5  ;;  %1058 = vmatprep.mubr.bf16.mxu1 %v20107_v8  ;;  %v18812_v5 = vld [vmem:[%s27287_s2 + $0x180] ss:$8 sps:$4 sm:$0xff]  }
  0x44   :  { %1091 = vmatprep.subr.bf16.mxu1 %v18727_v7  ;;  %502 = vmatmul.mubr.bf16.vlgmr.msra.gmra.mrb[0].mxu0 %v20093_v3  ;;  %v18820_v7 = vld [vmem:[%s27287_s2 + $0x194] ss:$8 sps:$4 sm:$0xff]  }
  0x45   :  { %543 = vmatpush1.bf16.msra.mxu0 %v18764_v25  ;;  %511 = vmatprep.mubr.bf16.mxu0 %v20107_v8  ;;  %v39_v25 = vld [vmem:[%s27286_s1 + $0x10] sm:$0xff] }
  0x46   :  { %544 = vmatprep.subr.bf16.mxu0 %v18772_v26  ;;  %v43_v26 = vld [vmem:[%s27286_s1 + $0x30] sm:$0xff] }
  0x47   :  { %1092 = vmatpush1.bf16.msra.mxu1 %v18725_v9  ;;  %v18793_v9 = vld [vmem:[%s27287_s2 + $0x3c4] ss:$8 sps:$4 sm:$0xff]  }
  0x48   :  { %1093 = vmatprep.subr.bf16.mxu1 %v18733_v14  ;;  %v18824_v14 = vld [vmem:[%s27287_s2 + $0x1a0] ss:$8 sps:$4 sm:$0xff]  }
  0x49   :  { %545 = vmatpush1.bf16.msra.mxu0 %v18770_v31  ;;  %v52_v31 = vld [vmem:[%s27286_s1 + $0x78] sm:$0xff] }
  0x4a   :  { %1059 = vmatmul.mubr.bf16.gmra.mrb[4].mxu1 %v20138_v18  ;;  %546 = vmatprep.subr.bf16.mxu0 %v18778_v34  ;;  %v18842_v34 = vld [vmem:[%s27287_s2 + $0x1d0] ss:$8 sps:$4 sm:$0xff]  }
  0x4b   :  { %1094 = vmatpush1.bf16.msra.mxu1 %v18731_v19  ;;  %1068 = vmatprep.mubr.bf16.mxu1 %v20149_v22  ;;  %v18830_v19 = vld [vmem:[%s27287_s2 + $0x1b0] ss:$8 sps:$4 sm:$0xff]  }
  0x4c   :  { %1095 = vmatprep.subr.bf16.mxu1 %v18739_v21  ;;  %512 = vmatmul.mubr.bf16.gmra.mrb[4].mxu0 %v20138_v18  ;;  %v18838_v21 = vld [vmem:[%s27287_s2 + $0x1c4] ss:$8 sps:$4 sm:$0xff]  }
  0x4d   :  { %547 = vmatpush1.bf16.msra.mxu0 %v18776_v40  ;;  %521 = vmatprep.mubr.bf16.mxu0 %v20149_v22  ;;  %v18850_v40 = vld [vmem:[%s27287_s2 + $0x1e4] ss:$8 sps:$4 sm:$0xff]  }
  0x4e   :  { %548 = vmatprep.subr.bf16.mxu0 %v18784_v41  ;;  %v18821_v41 = vld [vmem:[%s27287_s2 + $0x410] ss:$8 sps:$4 sm:$0xff]  }
  0x4f   :  { %1096 = vmatpush1.bf16.msra.mxu1 %v18737_v23  ;;  %v18811_v23 = vld [vmem:[%s27287_s2 + $0x3f4] ss:$8 sps:$4 sm:$0xff]  }
  0x50   :  { %1097 = vmatprep.subr.bf16.mxu1 %v18745_v24  ;;  %v18809_v24 = vld [vmem:[%s27287_s2 + $0x3f0] ss:$8 sps:$4 sm:$0xff]  }
  0x51   :  { %549 = vmatpush1.bf16.msra.mxu0 %v18782_v46  ;;  %v56_v46 = vld [vmem:[%s27286_s1 + $0x98] sm:$0xff] }
  0x52   :  { %1069 = vmatmul.mubr.bf16.gmra.mrb[8].mxu1 %v20181_v32  ;;  %550 = vmatprep.subr.bf16.mxu0 %v18790_v49  ;;  %v60_v49 = vld [vmem:[%s27286_s1 + $0xb8] sm:$0xff] }
  0x53   :  { %1098 = vmatpush1.bf16.msra.mxu1 %v18743_v33  ;;  %1078 = vmatprep.mubr.bf16.mxu1 %v20193_v37  ;;  %v20365_v33 = vpack.c.bf16 %v43_v26, %v39_v25  ;;  %v18875_v25 = vld [vmem:[%s27287_s2 + $0x4d0] ss:$8 sps:$4 sm:$0xff]   ;;  %v18880_v26 = vld [vmem:[%s27287_s2 + $0x4e4] ss:$8 sps:$4 sm:$0xff]  }
  0x54   :  { %1099 = vmatprep.subr.bf16.mxu1 %v18751_v36  ;;  %522 = vmatmul.mubr.bf16.gmra.mrb[8].mxu0 %v20181_v32  ;;  %v18815_v36 = vld [vmem:[%s27287_s2 + $0x400] ss:$8 sps:$4 sm:$0xff]  }
  0x55   :  { %551 = vmatpush1.bf16.msra.mxu0 %v18788_v52  ;;  %531 = vmatprep.mubr.bf16.mxu0 %v20193_v37  ;;  %v18854_v52 = vld [vmem:[%s27287_s2 + $0x1f0] ss:$8 sps:$4 sm:$0xff]  }
  0x56   :  { %552 = vmatprep.subr.bf16.mxu0 %v18796_v54  ;;  %v20415_v54 = vpack.c.bf16 %v60_v49, %v56_v46  ;;  %v18899_v46 = vld [vmem:[%s27287_s2 + $0x550] ss:$8 sps:$4 sm:$0xff]   ;;  %v18902_v49 = vld [vmem:[%s27287_s2 + $0x560] ss:$8 sps:$4 sm:$0xff]  }
  0x57   :  { %1100 = vmatpush1.bf16.msra.mxu1 %v18749_v38  ;;  %v18823_v38 = vld [vmem:[%s27287_s2 + $0x414] ss:$8 sps:$4 sm:$0xff]  }
  0x58   :  { %1101 = vmatprep.subr.bf16.mxu1 %v18757_v39  ;;  %v20376_v39 = vpack.c.bf16 %v52_v31, %v48_v29  ;;  %v18881_v29 = vld [vmem:[%s27287_s2 + $0x4f0] ss:$8 sps:$4 sm:$0xff]   ;;  %v18884_v31 = vld [vmem:[%s27287_s2 + $0x500] ss:$8 sps:$4 sm:$0xff]  }
  0x59   :  { %553 = vmatpush1.bf16.msra.mxu0 %v18794_v56  ;;  %v18833_v56 = vld [vmem:[%s27287_s2 + $0x430] ss:$8 sps:$4 sm:$0xff]  }
  0x5a   :  { %1079 = vmatmul.mubr.bf16.gmra.mrb[12].mxu1 %v20225_v47  ;;  %554 = vmatprep.subr.bf16.mxu0 %v18802_v58  ;;  %v59_v58 = vld [vmem:[%s27286_s1 + $0xb0] sm:$0xff] }
  0x5b   :  { %1102 = vmatpush1.bf16.msra.mxu1 %v18755_v48  ;;  %1121 = vmatprep.mubr.bf16.mxu1 %v20237_v51  ;;  %v18856_v48 = vld [vmem:[%s27287_s2 + $0x1f4] ss:$8 sps:$4 sm:$0xff]  }
  0x5c   :  { %1103 = vmatprep.subr.bf16.mxu1 %v18763_v50  ;;  %532 = vmatmul.mubr.bf16.gmra.mrb[12].mxu0 %v20225_v47  ;;  %v20407_v50 = vpack.c.bf16 %v51_v43, %v47_v42  ;;  %v18893_v42 = vld [vmem:[%s27287_s2 + $0x530] ss:$8 sps:$4 sm:$0xff]   ;;  %v18898_v43 = vld [vmem:[%s27287_s2 + $0x544] ss:$8 sps:$4 sm:$0xff]  }
  0x5d   :  { %555 = vmatpush1.bf16.msra.mxu0 %v18800_v60  ;;  %574 = vmatprep.mubr.bf16.mxu0 %v20237_v51  ;;  %v64_v60 = vld [vmem:[%s27286_s1 + $0xd8] sm:$0xff] }
  0x5e   :  { %556 = vmatprep.subr.bf16.mxu0 %v18808_v62  ;;  %v18839_v62 = vld [vmem:[%s27287_s2 + $0x440] ss:$8 sps:$4 sm:$0xff]  }
  0x5f   :  { %1104 = vmatpush1.bf16.msra.mxu1 %v18761_v53  ;;  %v18827_v53 = vld [vmem:[%s27287_s2 + $0x420] ss:$8 sps:$4 sm:$0xff]  }
  0x60   :  { %1105 = vmatprep.subr.bf16.mxu1 %v18769_v55  ;;  %v18835_v55 = vld [vmem:[%s27287_s2 + $0x434] ss:$8 sps:$4 sm:$0xff]  }
  0x61   :  { %557 = vmatpush1.bf16.msra.mxu0 %v18806_v0  ;;  %v18847_v0 = vld [vmem:[%s27287_s2 + $0x454] ss:$8 sps:$4 sm:$0xff]  }
  0x62   :  { %558 = vmatprep.subr.bf16.mxu0 %v18814_v2  ;;  %v18845_v2 = vld [vmem:[%s27287_s2 + $0x450] ss:$8 sps:$4 sm:$0xff]  }
  0x63   :  { %1106 = vmatpush1.bf16.msra.mxu1 %v18767_v57  ;;  %v55_v57 = vld [vmem:[%s27286_s1 + $0x90] sm:$0xff] }
  0x64   :  { %1107 = vmatprep.subr.bf16.mxu1 %v18775_v59  ;;  %v18841_v59 = vld [vmem:[%s27287_s2 + $0x444] ss:$8 sps:$4 sm:$0xff]  }
  0x65   :  { %559 = vmatpush1.bf16.msra.mxu0 %v18812_v5  ;;  %v67_v5 = vld [vmem:[%s27286_s1 + $0xf0] sm:$0xff] }
  0x66   :  { %560 = vmatprep.subr.bf16.mxu0 %v18820_v7  ;;  %v18851_v7 = vld [vmem:[%s27287_s2 + $0x460] ss:$8 sps:$4 sm:$0xff]  }
  0x67   :  { %1108 = vmatpush1.bf16.msra.mxu1 %v18773_v61  ;;  %v68_v61 = vld [vmem:[%s27286_s1 + $0xf8] sm:$0xff] }
  0x68   :  { %1109 = vmatprep.subr.bf16.mxu1 %v18781_v63  ;;  %v20444_v63 = vpack.c.bf16 %v59_v58, %v55_v57  ;;  %v18913_v57 = vld [vmem:[%s27287_s2 + $0x594] ss:$8 sps:$4 sm:$0xff]   ;;  %v18911_v58 = vld [vmem:[%s27287_s2 + $0x590] ss:$8 sps:$4 sm:$0xff]  }
  0x69   :  { %561 = vmatpush1.bf16.msra.mxu0 %v18818_v10  ;;  %v18859_v10 = vld [vmem:[%s27287_s2 + $0x474] ss:$8 sps:$4 sm:$0xff]  }
  0x6a   :  { %562 = vmatprep.subr.bf16.mxu0 %v18826_v12  ;;  %v18862_v12 = vld [vmem:[%s27287_s2 + $0x484] ss:$8 sps:$4 sm:$0xff]  }
  0x6b   :  { %1110 = vmatpush1.bf16.msra.mxu1 %v18779_v1  ;;  %v20450_v1 = vpack.c.bf16 %v68_v61, %v64_v60  ;;  %v18914_v60 = vld [vmem:[%s27287_s2 + $0x5a0] ss:$8 sps:$4 sm:$0xff]   ;;  %v18919_v61 = vld [vmem:[%s27287_s2 + $0x5b4] ss:$8 sps:$4 sm:$0xff]  }
  0x6c   :  { %1111 = vmatprep.subr.bf16.mxu1 %v18787_v4  ;;  %v63_v4 = vld [vmem:[%s27286_s1 + $0xd0] sm:$0xff] }
  0x6d   :  { %563 = vmatpush1.bf16.msra.mxu0 %v18824_v14  ;;  %v18865_v14 = vld [vmem:[%s27287_s2 + $0x494] ss:$8 sps:$4 sm:$0xff]  }
  0x6e   :  { %564 = vmatprep.subr.bf16.mxu0 %v18832_v16  ;;  %v18868_v16 = vld [vmem:[%s27287_s2 + $0x4a4] ss:$8 sps:$4 sm:$0xff]  }
  0x6f   :  { %1112 = vmatpush1.bf16.msra.mxu1 %v18785_v6  ;;  %v18853_v6 = vld [vmem:[%s27287_s2 + $0x464] ss:$8 sps:$4 sm:$0xff]  }
  0x70   :  { %1113 = vmatprep.subr.bf16.mxu1 %v18793_v9  ;;  %v20470_v9 = vpack.c.bf16 %v67_v5, %v63_v4  ;;  %v18925_v4 = vld [vmem:[%s27287_s2 + $0x5d4] ss:$8 sps:$4 sm:$0xff]   ;;  %v18923_v5 = vld [vmem:[%s27287_s2 + $0x5d0] ss:$8 sps:$4 sm:$0xff]  }
  0x71   :  { %565 = vmatpush1.bf16.msra.mxu0 %v18830_v19  ;;  %v18871_v19 = vld [vmem:[%s27287_s2 + $0x4b4] ss:$8 sps:$4 sm:$0xff]  }
  0x72   :  { %566 = vmatprep.subr.bf16.mxu0 %v18838_v21  ;;  %v18874_v21 = vld [vmem:[%s27287_s2 + $0x4c4] ss:$8 sps:$4 sm:$0xff]  }
  0x73   :  { %1114 = vmatpush1.bf16.msra.mxu1 %v18791_v11  ;;  %v18857_v11 = vld [vmem:[%s27287_s2 + $0x470] ss:$8 sps:$4 sm:$0xff]  }
  0x74   :  { %1115 = vmatprep.subr.bf16.mxu1 %v18799_v13  ;;  %v18860_v13 = vld [vmem:[%s27287_s2 + $0x480] ss:$8 sps:$4 sm:$0xff]  }
  0x75   :  { %567 = vmatpush1.bf16.msra.mxu0 %v18836_v28  ;;  %v18883_v28 = vld [vmem:[%s27287_s2 + $0x4f4] ss:$8 sps:$4 sm:$0xff]  }
  0x76   :  { %568 = vmatprep.subr.bf16.mxu0 %v18844_v30  ;;  %v18886_v30 = vld [vmem:[%s27287_s2 + $0x504] ss:$8 sps:$4 sm:$0xff]  }
  0x77   :  { %1116 = vmatpush1.bf16.msra.mxu1 %v18797_v15  ;;  %v18863_v15 = vld [vmem:[%s27287_s2 + $0x490] ss:$8 sps:$4 sm:$0xff]  }
  0x78   :  { %1117 = vmatprep.subr.bf16.mxu1 %v18805_v17  ;;  %v18866_v17 = vld [vmem:[%s27287_s2 + $0x4a0] ss:$8 sps:$4 sm:$0xff]  }
  0x79   :  { %569 = vmatpush1.bf16.msra.mxu0 %v18842_v34  ;;  %v18889_v34 = vld [vmem:[%s27287_s2 + $0x514] ss:$8 sps:$4 sm:$0xff]  }
  0x7a   :  { %570 = vmatprep.subr.bf16.mxu0 %v18850_v40  ;;  %v18890_v40 = vld [vmem:[%s27287_s2 + $0x520] ss:$8 sps:$4 sm:$0xff]  }
  0x7b   :  { %1118 = vmatpush1.bf16.msra.mxu1 %v18803_v20  ;;  %v18869_v20 = vld [vmem:[%s27287_s2 + $0x4b0] ss:$8 sps:$4 sm:$0xff]  }
  0x7c   :  { %1119 = vmatprep.subr.bf16.mxu1 %v18811_v23  ;;  %v18872_v23 = vld [vmem:[%s27287_s2 + $0x4c0] ss:$8 sps:$4 sm:$0xff]  }
  0x7d   :  { %571 = vmatpush1.bf16.msra.mxu0 %v18848_v45  ;;  %v18901_v45 = vld [vmem:[%s27287_s2 + $0x554] ss:$8 sps:$4 sm:$0xff]  }
  0x7e   :  { %572 = vmatprep.subr.bf16.mxu0 %v18856_v48  ;;  %v18904_v48 = vld [vmem:[%s27287_s2 + $0x564] ss:$8 sps:$4 sm:$0xff]  }
  0x7f   :  { %1120 = vmatpush1.bf16.msra.mxu1 %v18809_v24  ;;  %v18877_v24 = vld [vmem:[%s27287_s2 + $0x4d4] ss:$8 sps:$4 sm:$0xff]  }
  0x80   :  { %1775 = vmatprep.subr.bf16.mxu1 %v18817_v27  ;;  %v18878_v27 = vld [vmem:[%s27287_s2 + $0x4e0] ss:$8 sps:$4 sm:$0xff]  }
  0x81   :  { %573 = vmatpush1.bf16.msra.mxu0 %v18854_v52  ;;  %v18907_v52 = vld [vmem:[%s27287_s2 + $0x574] ss:$8 sps:$4 sm:$0xff]  }
  0x82   :  { %1122 = vmatmul.mubr.bf16.vlgmr.msra.gmra.mrb[0].mxu1 %v20365_v33 }
  0x83   :  { %1776 = vmatpush1.bf16.msra.mxu1 %v18815_v36  ;;  %1131 = vmatprep.mubr.bf16.mxu1 %v20376_v39  ;;  %v18887_v36 = vld [vmem:[%s27287_s2 + $0x510] ss:$8 sps:$4 sm:$0xff]  }
  0x84   :  { %1777 = vmatprep.subr.bf16.mxu1 %v18823_v38  ;;  %575 = vmatmul.mubr.bf16.vlgmr.msra.gmra.mrb[0].mxu0 %v20365_v33  ;;  %v18892_v38 = vld [vmem:[%s27287_s2 + $0x524] ss:$8 sps:$4 sm:$0xff]  }
  0x85   :  { %584 = vmatprep.mubr.bf16.mxu0 %v20376_v39 }
  0x87   :  { %1778 = vmatpush1.bf16.msra.mxu1 %v18821_v41  ;;  %v18895_v41 = vld [vmem:[%s27287_s2 + $0x534] ss:$8 sps:$4 sm:$0xff]  }
  0x88   :  { %1779 = vmatprep.subr.bf16.mxu1 %v18829_v44  ;;  %v18896_v44 = vld [vmem:[%s27287_s2 + $0x540] ss:$8 sps:$4 sm:$0xff]  }
  0x8a   :  { %1132 = vmatmul.mubr.bf16.gmra.mrb[4].mxu1 %v20407_v50 }
  0x8b   :  { %1780 = vmatpush1.bf16.msra.mxu1 %v18827_v53  ;;  %1141 = vmatprep.mubr.bf16.mxu1 %v20415_v54  ;;  %v18905_v53 = vld [vmem:[%s27287_s2 + $0x570] ss:$8 sps:$4 sm:$0xff]  }
  0x8c   :  { %1781 = vmatprep.subr.bf16.mxu1 %v18835_v55  ;;  %585 = vmatmul.mubr.bf16.gmra.mrb[4].mxu0 %v20407_v50  ;;  %v18910_v55 = vld [vmem:[%s27287_s2 + $0x584] ss:$8 sps:$4 sm:$0xff]  }
  0x8d   :  { %594 = vmatprep.mubr.bf16.mxu0 %v20415_v54 }
  0x8f   :  { %1782 = vmatpush1.bf16.msra.mxu1 %v18833_v56  ;;  %v18908_v56 = vld [vmem:[%s27287_s2 + $0x580] ss:$8 sps:$4 sm:$0xff]  }
  0x90   :  { %1783 = vmatprep.subr.bf16.mxu1 %v18841_v59  ;;  %v18916_v59 = vld [vmem:[%s27287_s2 + $0x5a4] ss:$8 sps:$4 sm:$0xff]  }
  0x92   :  { %1142 = vmatmul.mubr.bf16.gmra.mrb[8].mxu1 %v20444_v63 }
  0x93   :  { %1784 = vmatpush1.bf16.msra.mxu1 %v18839_v62  ;;  %1151 = vmatprep.mubr.bf16.mxu1 %v20450_v1  ;;  %v18917_v62 = vld [vmem:[%s27287_s2 + $0x5b0] ss:$8 sps:$4 sm:$0xff]  }
  0x94   :  { %1785 = vmatprep.subr.bf16.mxu1 %v18847_v0  ;;  %595 = vmatmul.mubr.bf16.gmra.mrb[8].mxu0 %v20444_v63  ;;  %v18922_v0 = vld [vmem:[%s27287_s2 + $0x5c4] ss:$8 sps:$4 sm:$0xff]  }
  0x95   :  { %604 = vmatprep.mubr.bf16.mxu0 %v20450_v1 }
  0x97   :  { %1786 = vmatpush1.bf16.msra.mxu1 %v18845_v2  ;;  %v18920_v2 = vld [vmem:[%s27287_s2 + $0x5c0] ss:$8 sps:$4 sm:$0xff]  }
  0x98   :  { %1787 = vmatprep.subr.bf16.mxu1 %v18853_v6  ;;  %v18928_v6 = vld [vmem:[%s27287_s2 + $0x5e4] ss:$8 sps:$4 sm:$0xff]  }
  0x9a   :  { %1152 = vmatmul.mubr.bf16.gmra.mrb[12].mxu1 %v20470_v9 }
  0x9b   :  { %1788 = vmatpush1.bf16.msra.mxu1 %v18851_v7  ;;  %1807 = vmatprep.mubr.bf16.mxu1 %v19996_v35  ;;  %v18926_v7 = vld [vmem:[%s27287_s2 + $0x5e0] ss:$8 sps:$4 sm:$0xff]  }
  0x9c   :  { %1789 = vmatprep.subr.bf16.mxu1 %v18859_v10  ;;  %605 = vmatmul.mubr.bf16.gmra.mrb[12].mxu0 %v20470_v9  ;;  %v19831_v10 = vmov 0  }
  0x9d   :  { %1244 = vmatprep.mubr.bf16.mxu0 %v19831_v10 }
  0x9f   :  { %1790 = vmatpush1.bf16.msra.mxu1 %v18857_v11  ;;  %v18931_v11 = vld [vmem:[%s27287_s2 + $0x5f4] ss:$8 sps:$4 sm:$0xff]  }
  0xa0   :  { %1791 = vmatprep.subr.bf16.mxu1 %v18862_v12  ;;  %v18929_v12 = vld [vmem:[%s27287_s2 + $0x5f0] ss:$8 sps:$4 sm:$0xff]  }
  0xa3   :  { %1792 = vmatpush1.bf16.msra.mxu1 %v18860_v13  ;;  %v18934_v13 = vld [vmem:[%s27287_s2 + $0x804] ss:$8 sps:$4 sm:$0xff]  }
  0xa4   :  { %1793 = vmatprep.subr.bf16.mxu1 %v18865_v14  ;;  %v18932_v14 = vld [vmem:[%s27287_s2 + $0x800] ss:$8 sps:$4 sm:$0xff]  }
  0xa7   :  { %1794 = vmatpush1.bf16.msra.mxu1 %v18863_v15  ;;  %v18937_v15 = vld [vmem:[%s27287_s2 + $0x814] ss:$8 sps:$4 sm:$0xff]  }
  0xa8   :  { %1795 = vmatprep.subr.bf16.mxu1 %v18868_v16  ;;  %v18935_v16 = vld [vmem:[%s27287_s2 + $0x810] ss:$8 sps:$4 sm:$0xff]  }
  0xab   :  { %1796 = vmatpush1.bf16.msra.mxu1 %v18866_v17  ;;  %v18941_v17 = vld [vmem:[%s27287_s2 + $0x824] ss:$8 sps:$4 sm:$0xff]  }
  0xac   :  { %1797 = vmatprep.subr.bf16.mxu1 %v18871_v19  ;;  %v18939_v19 = vld [vmem:[%s27287_s2 + $0x820] ss:$8 sps:$4 sm:$0xff]  }
  0xaf   :  { %1798 = vmatpush1.bf16.msra.mxu1 %v18869_v20  ;;  %v18944_v20 = vld [vmem:[%s27287_s2 + $0x834] ss:$8 sps:$4 sm:$0xff]  }
  0xb0   :  { %1799 = vmatprep.subr.bf16.mxu1 %v18874_v21  ;;  %v18942_v21 = vld [vmem:[%s27287_s2 + $0x830] ss:$8 sps:$4 sm:$0xff]  }
  0xb3   :  { %1800 = vmatpush1.bf16.msra.mxu1 %v18872_v23  ;;  %v18947_v23 = vld [vmem:[%s27287_s2 + $0x844] ss:$8 sps:$4 sm:$0xff]  }
  0xb4   :  { %1801 = vmatprep.subr.bf16.mxu1 %v18877_v24  ;;  %v18945_v24 = vld [vmem:[%s27287_s2 + $0x840] ss:$8 sps:$4 sm:$0xff]  }
  0xb7   :  { %1802 = vmatpush1.bf16.msra.mxu1 %v18875_v25  ;;  %v18950_v25 = vld [vmem:[%s27287_s2 + $0x854] ss:$8 sps:$4 sm:$0xff]  }
  0xb8   :  { %1803 = vmatprep.subr.bf16.mxu1 %v18880_v26  ;;  %v18948_v26 = vld [vmem:[%s27287_s2 + $0x850] ss:$8 sps:$4 sm:$0xff]  }
  0xbb   :  { %1804 = vmatpush1.bf16.msra.mxu1 %v18878_v27  ;;  %v18953_v27 = vld [vmem:[%s27287_s2 + $0x864] ss:$8 sps:$4 sm:$0xff]  }
  0xbc   :  { %1805 = vmatprep.subr.bf16.mxu1 %v18883_v28  ;;  %v18951_v28 = vld [vmem:[%s27287_s2 + $0x860] ss:$8 sps:$4 sm:$0xff]  }
  0xbf   :  { %1806 = vmatpush1.bf16.msra.mxu1 %v18881_v29  ;;  %v18956_v29 = vld [vmem:[%s27287_s2 + $0x874] ss:$8 sps:$4 sm:$0xff]  }
  0xc0   :  { %1848 = vmatprep.subr.bf16.mxu1 %v18886_v30  ;;  %v18954_v30 = vld [vmem:[%s27287_s2 + $0x870] ss:$8 sps:$4 sm:$0xff]  }
  0xc2   :  { %1808 = vmatmul.mubr.bf16.vlgmr.msra.gmra.mrb[16].mxu1 %v20093_v3 }
  0xc3   :  { %1849 = vmatpush1.bf16.msra.mxu1 %v18884_v31  ;;  %1817 = vmatprep.mubr.bf16.mxu1 %v20107_v8  ;;  %v18959_v31 = vld [vmem:[%s27287_s2 + $0x884] ss:$8 sps:$4 sm:$0xff]  }
  0xc4   :  { %1850 = vmatprep.subr.bf16.mxu1 %v18889_v34  ;;  %v18957_v34 = vld [vmem:[%s27287_s2 + $0x880] ss:$8 sps:$4 sm:$0xff]  }
  0xc7   :  { %1851 = vmatpush1.bf16.msra.mxu1 %v18887_v36  ;;  %v18962_v36 = vld [vmem:[%s27287_s2 + $0x894] ss:$8 sps:$4 sm:$0xff]  }
  0xc8   :  { %1852 = vmatprep.subr.bf16.mxu1 %v18892_v38  ;;  %v18960_v38 = vld [vmem:[%s27287_s2 + $0x890] ss:$8 sps:$4 sm:$0xff]  }
  0xca   :  { %1818 = vmatmul.mubr.bf16.gmra.mrb[20].mxu1 %v20138_v18 }
  0xcb   :  { %1853 = vmatpush1.bf16.msra.mxu1 %v18890_v40  ;;  %1827 = vmatprep.mubr.bf16.mxu1 %v20149_v22  ;;  %v18965_v40 = vld [vmem:[%s27287_s2 + $0x8a4] ss:$8 sps:$4 sm:$0xff]  }
  0xcc   :  { %1854 = vmatprep.subr.bf16.mxu1 %v18895_v41  ;;  %v18963_v41 = vld [vmem:[%s27287_s2 + $0x8a0] ss:$8 sps:$4 sm:$0xff]  }
  0xcf   :  { %1855 = vmatpush1.bf16.msra.mxu1 %v18893_v42  ;;  %v18968_v42 = vld [vmem:[%s27287_s2 + $0x8b4] ss:$8 sps:$4 sm:$0xff]  }
  0xd0   :  { %1856 = vmatprep.subr.bf16.mxu1 %v18898_v43  ;;  %v18966_v43 = vld [vmem:[%s27287_s2 + $0x8b0] ss:$8 sps:$4 sm:$0xff]  }
  0xd2   :  { %1828 = vmatmul.mubr.bf16.gmra.mrb[24].mxu1 %v20181_v32 }
  0xd3   :  { %1857 = vmatpush1.bf16.msra.mxu1 %v18896_v44  ;;  %1837 = vmatprep.mubr.bf16.mxu1 %v20193_v37  ;;  %v18971_v44 = vld [vmem:[%s27287_s2 + $0x8c4] ss:$8 sps:$4 sm:$0xff]  }
  0xd4   :  { %1858 = vmatprep.subr.bf16.mxu1 %v18901_v45  ;;  %v18969_v45 = vld [vmem:[%s27287_s2 + $0x8c0] ss:$8 sps:$4 sm:$0xff]  }
  0xd7   :  { %1859 = vmatpush1.bf16.msra.mxu1 %v18899_v46  ;;  %v18974_v46 = vld [vmem:[%s27287_s2 + $0x8d4] ss:$8 sps:$4 sm:$0xff]  }
  0xd8   :  { %1860 = vmatprep.subr.bf16.mxu1 %v18904_v48  ;;  %v18972_v48 = vld [vmem:[%s27287_s2 + $0x8d0] ss:$8 sps:$4 sm:$0xff]  }
  0xda   :  { %1838 = vmatmul.mubr.bf16.gmra.mrb[28].mxu1 %v20225_v47 }
  0xdb   :  { %1861 = vmatpush1.bf16.msra.mxu1 %v18902_v49  ;;  %1880 = vmatprep.mubr.bf16.mxu1 %v20237_v51  ;;  %v18977_v49 = vld [vmem:[%s27287_s2 + $0x8e4] ss:$8 sps:$4 sm:$0xff]  }
  0xdc   :  { %1862 = vmatprep.subr.bf16.mxu1 %v18907_v52  ;;  %v18975_v52 = vld [vmem:[%s27287_s2 + $0x8e0] ss:$8 sps:$4 sm:$0xff]  }
  0xdf   :  { %1863 = vmatpush1.bf16.msra.mxu1 %v18905_v53  ;;  %v18980_v53 = vld [vmem:[%s27287_s2 + $0x8f4] ss:$8 sps:$4 sm:$0xff]  }
  0xe0   :  { %1864 = vmatprep.subr.bf16.mxu1 %v18910_v55  ;;  %v18978_v55 = vld [vmem:[%s27287_s2 + $0x8f0] ss:$8 sps:$4 sm:$0xff]  }
  0xe3   :  { %1865 = vmatpush1.bf16.msra.mxu1 %v18908_v56  ;;  %v18983_v56 = vld [vmem:[%s27287_s2 + $0x904] ss:$8 sps:$4 sm:$0xff]  }
  0xe4   :  { %1866 = vmatprep.subr.bf16.mxu1 %v18913_v57  ;;  %v18981_v57 = vld [vmem:[%s27287_s2 + $0x900] ss:$8 sps:$4 sm:$0xff]  }
  0xe7   :  { %1867 = vmatpush1.bf16.msra.mxu1 %v18911_v58  ;;  %v18986_v58 = vld [vmem:[%s27287_s2 + $0x914] ss:$8 sps:$4 sm:$0xff]  }
  0xe8   :  { %1868 = vmatprep.subr.bf16.mxu1 %v18916_v59  ;;  %v18984_v59 = vld [vmem:[%s27287_s2 + $0x910] ss:$8 sps:$4 sm:$0xff]  }
  0xeb   :  { %1869 = vmatpush1.bf16.msra.mxu1 %v18914_v60  ;;  %v18989_v60 = vld [vmem:[%s27287_s2 + $0x924] ss:$8 sps:$4 sm:$0xff]  }
  0xec   :  { %1870 = vmatprep.subr.bf16.mxu1 %v18919_v61  ;;  %v18987_v61 = vld [vmem:[%s27287_s2 + $0x920] ss:$8 sps:$4 sm:$0xff]  }
  0xef   :  { %1871 = vmatpush1.bf16.msra.mxu1 %v18917_v62  ;;  %v18993_v62 = vld [vmem:[%s27287_s2 + $0x934] ss:$8 sps:$4 sm:$0xff]  }
  0xf0   :  { %1872 = vmatprep.subr.bf16.mxu1 %v18922_v0  ;;  %v18991_v0 = vld [vmem:[%s27287_s2 + $0x930] ss:$8 sps:$4 sm:$0xff]  }
  0xf3   :  { %1873 = vmatpush1.bf16.msra.mxu1 %v18920_v2  ;;  %v18996_v2 = vld [vmem:[%s27287_s2 + $0x944] ss:$8 sps:$4 sm:$0xff]  }
  0xf4   :  { %1874 = vmatprep.subr.bf16.mxu1 %v18925_v4  ;;  %v18994_v4 = vld [vmem:[%s27287_s2 + $0x940] ss:$8 sps:$4 sm:$0xff]  }
  0xf7   :  { %1875 = vmatpush1.bf16.msra.mxu1 %v18923_v5  ;;  %v19000_v5 = vld [vmem:[%s27287_s2 + $0x954] ss:$8 sps:$4 sm:$0xff]  }
  0xf8   :  { %1876 = vmatprep.subr.bf16.mxu1 %v18928_v6  ;;  %v18998_v6 = vld [vmem:[%s27287_s2 + $0x950] ss:$8 sps:$4 sm:$0xff]  }
  0xfb   :  { %1877 = vmatpush1.bf16.msra.mxu1 %v18926_v7  ;;  %v19003_v7 = vld [vmem:[%s27287_s2 + $0x964] ss:$8 sps:$4 sm:$0xff]  }
  0xfc   :  { %1878 = vmatprep.subr.bf16.mxu1 %v18931_v11 }
  0xff   :  { %1879 = vmatpush1.bf16.msra.mxu1 %v18929_v12 }
 0x100   :  { %3113 = vmatprep.subr.bf16.mxu1 %v18934_v13  ;;  %v19001_v13 = vld [vmem:[%s27287_s2 + $0x960] ss:$8 sps:$4 sm:$0xff]  }
 0x102   :  { %1881 = vmatmul.mubr.bf16.vlgmr.msra.gmra.mrb[16].mxu1 %v20365_v33 }
 0x103   :  { %1890 = vmatprep.mubr.bf16.mxu1 %v20376_v39  ;;  %3114 = vmatpush1.bf16.msra.mxu1 %v18932_v14 }
 0x104   :  { %3115 = vmatprep.subr.bf16.mxu1 %v18937_v15  ;;  %v19007_v15 = vld [vmem:[%s27287_s2 + $0x974] ss:$8 sps:$4 sm:$0xff]  }
 0x107   :  { %3116 = vmatpush1.bf16.msra.mxu1 %v18935_v16 }
 0x108   :  { %3117 = vmatprep.subr.bf16.mxu1 %v18941_v17 }
 0x10a   :  { %1891 = vmatmul.mubr.bf16.gmra.mrb[20].mxu1 %v20407_v50 }
 0x10b   :  { %1900 = vmatprep.mubr.bf16.mxu1 %v20415_v54  ;;  %3118 = vmatpush1.bf16.msra.mxu1 %v18939_v19 }
 0x10c   :  { %3119 = vmatprep.subr.bf16.mxu1 %v18944_v20  ;;  %v19005_v20 = vld [vmem:[%s27287_s2 + $0x970] ss:$8 sps:$4 sm:$0xff]  }
 0x10f   :  { %3120 = vmatpush1.bf16.msra.mxu1 %v18942_v21  ;;  %v19010_v21 = vld [vmem:[%s27287_s2 + $0x984] ss:$8 sps:$4 sm:$0xff]  }
 0x110   :  { %3121 = vmatprep.subr.bf16.mxu1 %v18947_v23 }
 0x112   :  { %1901 = vmatmul.mubr.bf16.gmra.mrb[24].mxu1 %v20444_v63 }
 0x113   :  { %1910 = vmatprep.mubr.bf16.mxu1 %v20450_v1  ;;  %3122 = vmatpush1.bf16.msra.mxu1 %v18945_v24 }
 0x114   :  { %3123 = vmatprep.subr.bf16.mxu1 %v18950_v25  ;;  %v19008_v25 = vld [vmem:[%s27287_s2 + $0x980] ss:$8 sps:$4 sm:$0xff]  }
 0x117   :  { %3124 = vmatpush1.bf16.msra.mxu1 %v18948_v26 }
 0x118   :  { %3125 = vmatprep.subr.bf16.mxu1 %v18953_v27  ;;  %v19014_v27 = vld [vmem:[%s27287_s2 + $0x994] ss:$8 sps:$4 sm:$0xff]  }
 0x11a   :  { %1911 = vmatmul.mubr.bf16.gmra.mrb[28].mxu1 %v20470_v9 }
 0x11b   :  { %3126 = vmatpush1.bf16.msra.mxu1 %v18951_v28  ;;  %3145 = vmatprep.mubr.bf16.mxu1 %v19996_v35 }
 0x11c   :  { %3127 = vmatprep.subr.bf16.mxu1 %v18956_v29 }
 0x11f   :  { %3128 = vmatpush1.bf16.msra.mxu1 %v18954_v30 }
 0x120   :  { %3129 = vmatprep.subr.bf16.mxu1 %v18959_v31 }
 0x123   :  { %3130 = vmatpush1.bf16.msra.mxu1 %v18957_v34 }
 0x124   :  { %3131 = vmatprep.subr.bf16.mxu1 %v18962_v36 }
 0x127   :  { %3132 = vmatpush1.bf16.msra.mxu1 %v18960_v38  ;;  %v19012_v38 = vld [vmem:[%s27287_s2 + $0x990] ss:$8 sps:$4 sm:$0xff]  }
 0x128   :  { %3133 = vmatprep.subr.bf16.mxu1 %v18965_v40 }
 0x12b   :  { %3134 = vmatpush1.bf16.msra.mxu1 %v18963_v41 }
 0x12c   :  { %3135 = vmatprep.subr.bf16.mxu1 %v18968_v42  ;;  %v19017_v42 = vld [vmem:[%s27287_s2 + $0x9a4] ss:$8 sps:$4 sm:$0xff]  }
 0x12f   :  { %3136 = vmatpush1.bf16.msra.mxu1 %v18966_v43 }
 0x130   :  { %3137 = vmatprep.subr.bf16.mxu1 %v18971_v44 }
 0x133   :  { %3138 = vmatpush1.bf16.msra.mxu1 %v18969_v45 }
 0x134   :  { %3139 = vmatprep.subr.bf16.mxu1 %v18974_v46  ;;  %v19015_v46 = vld [vmem:[%s27287_s2 + $0x9a0] ss:$8 sps:$4 sm:$0xff]  }
 0x137   :  { %3140 = vmatpush1.bf16.msra.mxu1 %v18972_v48 }
 0x138   :  { %3141 = vmatprep.subr.bf16.mxu1 %v18977_v49  ;;  %v19021_v49 = vld [vmem:[%s27287_s2 + $0x9b4] ss:$8 sps:$4 sm:$0xff]  }
 0x13b   :  { %3142 = vmatpush1.bf16.msra.mxu1 %v18975_v52 }
 0x13c   :  { %3143 = vmatprep.subr.bf16.mxu1 %v18980_v53 }
 0x13f   :  { %3144 = vmatpush1.bf16.msra.mxu1 %v18978_v55 }
 0x140   :  { %3186 = vmatprep.subr.bf16.mxu1 %v18983_v56 }
 0x142   :  { %3146 = vmatmul.mubr.bf16.vlgmr.msra.gmra.mrb[32].mxu1 %v20093_v3 }
 0x143   :  { %3187 = vmatpush1.bf16.msra.mxu1 %v18981_v57  ;;  %3155 = vmatprep.mubr.bf16.mxu1 %v20107_v8 }
 0x144   :  { %3188 = vmatprep.subr.bf16.mxu1 %v18986_v58 }
 0x147   :  { %3189 = vmatpush1.bf16.msra.mxu1 %v18984_v59  ;;  %v19019_v59 = vld [vmem:[%s27287_s2 + $0x9b0] ss:$8 sps:$4 sm:$0xff]  }
 0x148   :  { %3190 = vmatprep.subr.bf16.mxu1 %v18989_v60 }
 0x14a   :  { %3156 = vmatmul.mubr.bf16.gmra.mrb[36].mxu1 %v20138_v18 }
 0x14b   :  { %3191 = vmatpush1.bf16.msra.mxu1 %v18987_v61  ;;  %3165 = vmatprep.mubr.bf16.mxu1 %v20149_v22 }
 0x14c   :  { %3192 = vmatprep.subr.bf16.mxu1 %v18993_v62  ;;  %v19024_v62 = vld [vmem:[%s27287_s2 + $0x9c4] ss:$8 sps:$4 sm:$0xff]  }
 0x14f   :  { %3193 = vmatpush1.bf16.msra.mxu1 %v18991_v0 }
 0x150   :  { %3194 = vmatprep.subr.bf16.mxu1 %v18996_v2 }
 0x152   :  { %3166 = vmatmul.mubr.bf16.gmra.mrb[40].mxu1 %v20181_v32 }
 0x153   :  { %3195 = vmatpush1.bf16.msra.mxu1 %v18994_v4  ;;  %3175 = vmatprep.mubr.bf16.mxu1 %v20193_v37 }
 0x154   :  { %3196 = vmatprep.subr.bf16.mxu1 %v19000_v5  ;;  %v19022_v5 = vld [vmem:[%s27287_s2 + $0x9c0] ss:$8 sps:$4 sm:$0xff]  }
 0x155   :  { %v1123_v11 = vpop.f32.mrb[0].mxu1 }
 0x156   :  { %v1125_v12 = vpop.f32.mrb[1].mxu1 }
 0x157   :  { %v1127_v14 = vpop.f32.mrb[2].mxu1  ;;  %3197 = vmatpush1.bf16.msra.mxu1 %v18998_v6  ;;  %v20806_v30 = vpop.f32.mrb[0].mxu0 }
 0x158   :  { %v1171_v16 = vpack.c.bf16 %v1127_v14, %v1123_v11  ;;  %v1129_v17 = vpop.f32.mrb[3].mxu1  ;;  %3198 = vmatprep.subr.bf16.mxu1 %v19003_v7  ;;  %v578_v34 = vpop.f32.mrb[1].mxu0  ;;  %v19028_v7 = vld [vmem:[%s27287_s2 + $0x9d4] ss:$8 sps:$4 sm:$0xff]  }
 0x159   :  { %v1172_v19 = vpack.c.bf16 %v1129_v17, %v1125_v12  ;;  %v580_v36 = vpop.f32.mrb[2].mxu0  ;;  %v18938_v17 = vld [vmem:[%s27285_s0 + $0x20] sm:$0xff]  }
 0x15a   :  { %3176 = vmatmul.mubr.bf16.gmra.mrb[44].mxu1 %v20225_v47  ;;  %v623_v40 = vpack.c.bf16 %v580_v36, %v20806_v30  ;;  %v582_v41 = vpop.f32.mrb[3].mxu0  ;;  %v19033_v36 = vld [vmem:[%s27287_s2 + $0x9f0] ss:$8 sps:$4 sm:$0xff]  }
 0x15b   :  { %1212 = vmatprep.subr.bf16.mxu0 %v1172_v19  ;;  %3199 = vmatpush1.bf16.msra.mxu1 %v19001_v13  ;;  %v624_v43 = vpack.c.bf16 %v582_v41, %v578_v34  ;;  %v18990_v34 = vld [vmem:[%s27285_s0 + $0x28] sm:$0xff]  }
 0x15c   :  { %1213 = vmatpush1.bf16.msra.mxu0 %v1171_v16  ;;  %3200 = vmatprep.subr.bf16.mxu1 %v19007_v15  ;;  %v19036_v41 = vld [vmem:[%s27287_s2 + $0xa00] ss:$8 sps:$4 sm:$0xff]  }
 0x15d   :  { %v1133_v23 = vpop.f32.mrb[4].mxu1  ;;  %3218 = vmatprep.mubr.bf16.mxu1 %v20237_v51 }
 0x15e   :  { %v1135_v24 = vpop.f32.mrb[5].mxu1 }
 0x15f   :  { %v1137_v26 = vpop.f32.mrb[6].mxu1  ;;  %3201 = vmatpush1.bf16.msra.mxu1 %v19005_v20  ;;  %v586_v55 = vpop.f32.mrb[4].mxu0 }
 0x160   :  { %v1173_v28 = vpack.c.bf16 %v1137_v26, %v1133_v23  ;;  %v1139_v29 = vpop.f32.mrb[7].mxu1  ;;  %3202 = vmatprep.subr.bf16.mxu1 %v19010_v21  ;;  %v588_v57 = vpop.f32.mrb[5].mxu0  ;;  %v19026_v21 = vld [vmem:[%s27287_s2 + $0x9d0] ss:$8 sps:$4 sm:$0xff]  }
 0x161   :  { %v1174_v31 = vpack.c.bf16 %v1139_v29, %v1135_v24  ;;  %v590_v58 = vpop.f32.mrb[6].mxu0  ;;  %v19031_v24 = vld [vmem:[%s27287_s2 + $0x9e4] ss:$8 sps:$4 sm:$0xff]  }
 0x162   :  { %v625_v60 = vpack.c.bf16 %v590_v58, %v586_v55  ;;  %v592_v61 = vpop.f32.mrb[7].mxu0  ;;  %v19061_v55 = vld [vmem:[%s27287_s2 + $0xa40] ss:$8 sps:$4 sm:$0xff]   ;;  %v19067_v58 = vld [vmem:[%s27287_s2 + $0xa50] ss:$8 sps:$4 sm:$0xff]  }
 0x163   :  { %1214 = vmatprep.subr.bf16.mxu0 %v1174_v31  ;;  %3203 = vmatpush1.bf16.msra.mxu1 %v19008_v25  ;;  %v626_v0 = vpack.c.bf16 %v592_v61, %v588_v57  ;;  %v19029_v25 = vld [vmem:[%s27287_s2 + $0x9e0] ss:$8 sps:$4 sm:$0xff]   ;;  %v19081_v61 = vld [vmem:[%s27287_s2 + $0xa74] ss:$8 sps:$4 sm:$0xff]  }
 0x164   :  { %1215 = vmatpush1.bf16.msra.mxu0 %v1173_v28  ;;  %3204 = vmatprep.subr.bf16.mxu1 %v19014_v27  ;;  %v19035_v27 = vld [vmem:[%s27287_s2 + $0x9f4] ss:$8 sps:$4 sm:$0xff]   ;;  %v19011_v57 = vld [vmem:[%s27285_s0] sm:$0xff]  }
 0x165   :  { %v1143_v44 = vpop.f32.mrb[8].mxu1 }
 0x166   :  { %v1145_v45 = vpop.f32.mrb[9].mxu1 }
 0x167   :  { %v1147_v48 = vpop.f32.mrb[10].mxu1  ;;  %3205 = vmatpush1.bf16.msra.mxu1 %v19012_v38  ;;  %v596_v13 = vpop.f32.mrb[8].mxu0 }
 0x168   :  { %v1175_v52 = vpack.c.bf16 %v1147_v48, %v1143_v44  ;;  %v1149_v53 = vpop.f32.mrb[11].mxu1  ;;  %3206 = vmatprep.subr.bf16.mxu1 %v19017_v42  ;;  %v598_v15 = vpop.f32.mrb[9].mxu0  ;;  %v19045_v42 = vld [vmem:[%s27287_s2 + $0xa14] ss:$8 sps:$4 sm:$0xff]   ;;  %v19043_v44 = vld [vmem:[%s27287_s2 + $0xa10] ss:$8 sps:$4 sm:$0xff]  }
 0x169   :  { %v1176_v56 = vpack.c.bf16 %v1149_v53, %v1145_v45  ;;  %v600_v16 = vpop.f32.mrb[10].mxu0  ;;  %v19051_v45 = vld [vmem:[%s27287_s2 + $0xa24] ss:$8 sps:$4 sm:$0xff]   ;;  %v19057_v48 = vld [vmem:[%s27287_s2 + $0xa34] ss:$8 sps:$4 sm:$0xff]  }
 0x16a   :  { %v627_v19 = vpack.c.bf16 %v600_v16, %v596_v13  ;;  %v602_v20 = vpop.f32.mrb[11].mxu0  ;;  %v19063_v53 = vld [vmem:[%s27287_s2 + $0xa44] ss:$8 sps:$4 sm:$0xff]   ;;  %v19106_v13 = vld [vmem:[%s27287_s2 + $0xab4] ss:$8 sps:$4 sm:$0xff]  }
 0x16b   :  { %1216 = vmatprep.subr.bf16.mxu0 %v1176_v56  ;;  %3207 = vmatpush1.bf16.msra.mxu1 %v19015_v46  ;;  %v628_v23 = vpack.c.bf16 %v602_v20, %v598_v15  ;;  %v19049_v46 = vld [vmem:[%s27287_s2 + $0xa20] ss:$8 sps:$4 sm:$0xff]   ;;  %v19069_v56 = vld [vmem:[%s27287_s2 + $0xa54] ss:$8 sps:$4 sm:$0xff]   ;;  %v19104_v15 = vld [vmem:[%s27287_s2 + $0xab0] ss:$8 sps:$4 sm:$0xff]  }
 0x16c   :  { %1217 = vmatpush1.bf16.msra.mxu0 %v1175_v52  ;;  %3208 = vmatprep.subr.bf16.mxu1 %v19021_v49  ;;  %v19004_v49 = vld [vmem:[%s27285_s0 + $0x38] sm:$0xff]   ;;  %v19112_v16 = vld [vmem:[%s27287_s2 + $0xac4] ss:$8 sps:$4 sm:$0xff]  }
 0x16d   :  { %v1153_v2 = vpop.f32.mrb[12].mxu1  ;;  %v19055_v52 = vld [vmem:[%s27287_s2 + $0xa30] ss:$8 sps:$4 sm:$0xff]  }
 0x16e   :  { %v1155_v4 = vpop.f32.mrb[13].mxu1  ;;  %v19117_v20 = vld [vmem:[%s27287_s2 + $0xad0] ss:$8 sps:$4 sm:$0xff]  }
 0x16f   :  { %v1157_v6 = vpop.f32.mrb[14].mxu1  ;;  %3209 = vmatpush1.bf16.msra.mxu1 %v19019_v59  ;;  %v606_v26 = vpop.f32.mrb[12].mxu0  ;;  %v19075_v59 = vld [vmem:[%s27287_s2 + $0xa64] ss:$8 sps:$4 sm:$0xff]  }
 0x170   :  { %v1177_v11 = vpack.c.bf16 %v1157_v6, %v1153_v2  ;;  %v1159_v12 = vpop.f32.mrb[15].mxu1  ;;  %3210 = vmatprep.subr.bf16.mxu1 %v19024_v62  ;;  %v608_v28 = vpop.f32.mrb[13].mxu0  ;;  %v19018_v62 = vld [vmem:[%s27285_s0 + $0x8] sm:$0xff]   ;;  %v19025_v6 = vld [vmem:[%s27285_s0 + $0x10] sm:$0xff]  }
 0x171   :  { %v1178_v14 = vpack.c.bf16 %v1159_v12, %v1155_v4  ;;  %v610_v29 = vpop.f32.mrb[14].mxu0  ;;  %v19087_v2 = vld [vmem:[%s27287_s2 + $0xa84] ss:$8 sps:$4 sm:$0xff]   ;;  %v19085_v4 = vld [vmem:[%s27287_s2 + $0xa80] ss:$8 sps:$4 sm:$0xff]  }
 0x172   :  { %v629_v30 = vpack.c.bf16 %v610_v29, %v606_v26  ;;  %v612_v31 = vpop.f32.mrb[15].mxu0  ;;  %v19097_v12 = vld [vmem:[%s27287_s2 + $0xaa0] ss:$8 sps:$4 sm:$0xff]   ;;  %v19138_v26 = vld [vmem:[%s27287_s2 + $0xb04] ss:$8 sps:$4 sm:$0xff]  }
 0x173   :  { %1218 = vmatprep.subr.bf16.mxu0 %v1178_v14  ;;  %3211 = vmatpush1.bf16.msra.mxu1 %v19022_v5  ;;  %v630_v38 = vpack.c.bf16 %v612_v31, %v608_v28  ;;  %v19093_v5 = vld [vmem:[%s27287_s2 + $0xa94] ss:$8 sps:$4 sm:$0xff]   ;;  %v19142_v29 = vld [vmem:[%s27287_s2 + $0xb10] ss:$8 sps:$4 sm:$0xff]   ;;  %v19148_v31 = vld [vmem:[%s27287_s2 + $0xb20] ss:$8 sps:$4 sm:$0xff]  }
 0x174   :  { %1219 = vmatpush1.bf16.msra.mxu0 %v1177_v11  ;;  %3212 = vmatprep.subr.bf16.mxu1 %v19028_v7  ;;  %v19091_v7 = vld [vmem:[%s27287_s2 + $0xa90] ss:$8 sps:$4 sm:$0xff]   ;;  %v19099_v11 = vld [vmem:[%s27287_s2 + $0xaa4] ss:$8 sps:$4 sm:$0xff]   ;;  %v19144_v28 = vld [vmem:[%s27287_s2 + $0xb14] ss:$8 sps:$4 sm:$0xff]  }
 0x175   :  { %1317 = vmatprep.subr.bf16.mxu0 %v624_v43  ;;  %v18997_v43 = vld [vmem:[%s27285_s0 + $0x30] sm:$0xff]   ;;  %v19032_v14 = vld [vmem:[%s27285_s0 + $0x18] sm:$0xff]  }
 0x177   :  { %14177 = vmatmul.mubr.msk.bf16.vlgmr.msra.gmra.mrb[16].mxu0 %vm1199_vm0, %v18938_v17  ;;  %3213 = vmatpush1.bf16.msra.mxu1 %v19026_v21  ;;  %v19110_v17 = vld [vmem:[%s27287_s2 + $0xac0] ss:$8 sps:$4 sm:$0xff]   ;;  %v19125_v21 = vld [vmem:[%s27287_s2 + $0xae4] ss:$8 sps:$4 sm:$0xff]  }
 0x178   :  { %1318 = vmatpush1.bf16.msra.mxu0 %v623_v40  ;;  %1254 = vmatprep.mubr.bf16.mxu0 %v19831_v10  ;;  %v19038_v40 = vld [vmem:[%s27287_s2 + $0xa04] ss:$8 sps:$4 sm:$0xff]  }
 0x179   :  { %1319 = vmatprep.subr.bf16.mxu0 %v626_v0  ;;  %3214 = vmatprep.subr.bf16.mxu1 %v19031_v24  ;;  %v19079_v0 = vld [vmem:[%s27287_s2 + $0xa70] ss:$8 sps:$4 sm:$0xff]   ;;  %v19132_v24 = vld [vmem:[%s27287_s2 + $0xaf4] ss:$8 sps:$4 sm:$0xff]  }
 0x17b   :  { %3215 = vmatpush1.bf16.msra.mxu1 %v19029_v25  ;;  %v19130_v25 = vld [vmem:[%s27287_s2 + $0xaf0] ss:$8 sps:$4 sm:$0xff]  }
 0x17c   :  { %1320 = vmatpush1.bf16.msra.mxu0 %v625_v60  ;;  %3216 = vmatprep.subr.bf16.mxu1 %v19035_v27  ;;  %v19073_v60 = vld [vmem:[%s27287_s2 + $0xa60] ss:$8 sps:$4 sm:$0xff]  }
 0x17d   :  { %1321 = vmatprep.subr.bf16.mxu0 %v628_v23  ;;  %v19123_v23 = vld [vmem:[%s27287_s2 + $0xae0] ss:$8 sps:$4 sm:$0xff]  }
 0x17e   :  { %v19136_v27 = vld [vmem:[%s27287_s2 + $0xb00] ss:$8 sps:$4 sm:$0xff]  }
 0x17f   :  { %14178 = vmatmul.mubr.msk.bf16.gmra.mrb[20].mxu0 %vm1199_vm0, %v18990_v34  ;;  %3217 = vmatpush1.bf16.msra.mxu1 %v19033_v36  ;;  %v19156_v34 = vld [vmem:[%s27287_s2 + $0xb34] ss:$8 sps:$4 sm:$0xff]   ;;  %v19154_v36 = vld [vmem:[%s27287_s2 + $0xb30] ss:$8 sps:$4 sm:$0xff]  }
 0x180   :  { %1322 = vmatpush1.bf16.msra.mxu0 %v627_v19  ;;  %1264 = vmatprep.mubr.bf16.mxu0 %v19831_v10  ;;  %v19119_v19 = vld [vmem:[%s27287_s2 + $0xad4] ss:$8 sps:$4 sm:$0xff]  }
 0x181   :  { %1323 = vmatprep.subr.bf16.mxu0 %v630_v38  ;;  %3782 = vmatprep.subr.bf16.mxu1 %v19038_v40  ;;  %v19162_v38 = vld [vmem:[%s27287_s2 + $0xb44] ss:$8 sps:$4 sm:$0xff]   ;;  %v19160_v40 = vld [vmem:[%s27287_s2 + $0xb40] ss:$8 sps:$4 sm:$0xff]  }
 0x182   :  { %3219 = vmatmul.mubr.bf16.vlgmr.msra.gmra.mrb[32].mxu1 %v20365_v33 }
 0x183   :  { %3783 = vmatpush1.bf16.msra.mxu1 %v19036_v41  ;;  %3228 = vmatprep.mubr.bf16.mxu1 %v20376_v39  ;;  %v19168_v41 = vld [vmem:[%s27287_s2 + $0xb54] ss:$8 sps:$4 sm:$0xff]  }
 0x184   :  { %1324 = vmatpush1.bf16.msra.mxu0 %v629_v30  ;;  %3784 = vmatprep.subr.bf16.mxu1 %v19045_v42  ;;  %v19150_v30 = vld [vmem:[%s27287_s2 + $0xb24] ss:$8 sps:$4 sm:$0xff]   ;;  %v19166_v42 = vld [vmem:[%s27287_s2 + $0xb50] ss:$8 sps:$4 sm:$0xff]  }
 0x187   :  { %14179 = vmatmul.mubr.msk.bf16.gmra.mrb[24].mxu0 %vm1199_vm0, %v18997_v43  ;;  %3785 = vmatpush1.bf16.msra.mxu1 %v19043_v44  ;;  %v19174_v43 = vld [vmem:[%s27287_s2 + $0xb64] ss:$8 sps:$4 sm:$0xff]  }
 0x188   :  { %1274 = vmatprep.mubr.bf16.mxu0 %v19831_v10  ;;  %3786 = vmatprep.subr.bf16.mxu1 %v19051_v45 }
 0x18a   :  { %3229 = vmatmul.mubr.bf16.gmra.mrb[36].mxu1 %v20407_v50 }
 0x18b   :  { %3787 = vmatpush1.bf16.msra.mxu1 %v19049_v46  ;;  %3238 = vmatprep.mubr.bf16.mxu1 %v20415_v54 }
 0x18c   :  { %3788 = vmatprep.subr.bf16.mxu1 %v19057_v48  ;;  %v19172_v48 = vld [vmem:[%s27287_s2 + $0xb60] ss:$8 sps:$4 sm:$0xff]  }
 0x18f   :  { %14180 = vmatmul.mubr.msk.bf16.gmra.mrb[28].mxu0 %vm1199_vm0, %v19004_v49  ;;  %3789 = vmatpush1.bf16.msra.mxu1 %v19055_v52 }
 0x190   :  { %1349 = vmatprep.mubr.bf16.mxu0 %v19831_v10  ;;  %3790 = vmatprep.subr.bf16.mxu1 %v19063_v53  ;;  %v19180_v53 = vld [vmem:[%s27287_s2 + $0xb74] ss:$8 sps:$4 sm:$0xff]  }
 0x192   :  { %3239 = vmatmul.mubr.bf16.gmra.mrb[40].mxu1 %v20444_v63 }
 0x193   :  { %3791 = vmatpush1.bf16.msra.mxu1 %v19061_v55  ;;  %3248 = vmatprep.mubr.bf16.mxu1 %v20450_v1 }
 0x194   :  { %3792 = vmatprep.subr.bf16.mxu1 %v19069_v56  ;;  %v19178_v56 = vld [vmem:[%s27287_s2 + $0xb70] ss:$8 sps:$4 sm:$0xff]  }
 0x197   :  { %14185 = vmatmul.mubr.msk.bf16.vlgmr.msra.gmra.mrb[16].mxu0 %vm1199_vm0, %v19011_v57  ;;  %3793 = vmatpush1.bf16.msra.mxu1 %v19067_v58  ;;  %v19186_v57 = vld [vmem:[%s27287_s2 + $0xb84] ss:$8 sps:$4 sm:$0xff]  }
 0x198   :  { %1359 = vmatprep.mubr.bf16.mxu0 %v19831_v10  ;;  %3794 = vmatprep.subr.bf16.mxu1 %v19075_v59 }
 0x19a   :  { %3249 = vmatmul.mubr.bf16.gmra.mrb[44].mxu1 %v20470_v9 }
 0x19b   :  { %3795 = vmatpush1.bf16.msra.mxu1 %v19073_v60  ;;  %3814 = vmatprep.mubr.bf16.mxu1 %v19996_v35 }
 0x19c   :  { %3796 = vmatprep.subr.bf16.mxu1 %v19081_v61  ;;  %v19184_v61 = vld [vmem:[%s27287_s2 + $0xb80] ss:$8 sps:$4 sm:$0xff]  }
 0x19f   :  { %14186 = vmatmul.mubr.msk.bf16.gmra.mrb[20].mxu0 %vm1199_vm0, %v19018_v62  ;;  %3797 = vmatpush1.bf16.msra.mxu1 %v19079_v0 }
 0x1a0   :  { %1369 = vmatprep.mubr.bf16.mxu0 %v19831_v10  ;;  %3798 = vmatprep.subr.bf16.mxu1 %v19087_v2  ;;  %v19192_v2 = vld [vmem:[%s27287_s2 + $0xb94] ss:$8 sps:$4 sm:$0xff]  }
 0x1a3   :  { %3799 = vmatpush1.bf16.msra.mxu1 %v19085_v4 }
 0x1a4   :  { %3800 = vmatprep.subr.bf16.mxu1 %v19093_v5  ;;  %v19190_v5 = vld [vmem:[%s27287_s2 + $0xb90] ss:$8 sps:$4 sm:$0xff]  }
 0x1a7   :  { %14187 = vmatmul.mubr.msk.bf16.gmra.mrb[24].mxu0 %vm1199_vm0, %v19025_v6  ;;  %3801 = vmatpush1.bf16.msra.mxu1 %v19091_v7  ;;  %v19198_v6 = vld [vmem:[%s27287_s2 + $0xba4] ss:$8 sps:$4 sm:$0xff]  }
 0x1a8   :  { %1379 = vmatprep.mubr.bf16.mxu0 %v19831_v10  ;;  %3802 = vmatprep.subr.bf16.mxu1 %v19099_v11 }
 0x1ab   :  { %3803 = vmatpush1.bf16.msra.mxu1 %v19097_v12 }
 0x1ac   :  { %3804 = vmatprep.subr.bf16.mxu1 %v19106_v13  ;;  %v19196_v13 = vld [vmem:[%s27287_s2 + $0xba0] ss:$8 sps:$4 sm:$0xff]  }
 0x1af   :  { %14188 = vmatmul.mubr.msk.bf16.gmra.mrb[28].mxu0 %vm1199_vm0, %v19032_v14  ;;  %3805 = vmatpush1.bf16.msra.mxu1 %v19104_v15 }
 0x1b0   :  { %2002 = vmatprep.mubr.bf16.mxu0 %v19831_v10  ;;  %3806 = vmatprep.subr.bf16.mxu1 %v19112_v16  ;;  %v19204_v16 = vld [vmem:[%s27287_s2 + $0xbb4] ss:$8 sps:$4 sm:$0xff]  }
 0x1b3   :  { %3807 = vmatpush1.bf16.msra.mxu1 %v19110_v17 }
 0x1b4   :  { %3808 = vmatprep.subr.bf16.mxu1 %v19119_v19  ;;  %v19202_v19 = vld [vmem:[%s27287_s2 + $0xbb0] ss:$8 sps:$4 sm:$0xff]  }
 0x1b7   :  { %3809 = vmatpush1.bf16.msra.mxu1 %v19117_v20  ;;  %v19210_v20 = vld [vmem:[%s27287_s2 + $0xbc4] ss:$8 sps:$4 sm:$0xff]  }
 0x1b8   :  { %3810 = vmatprep.subr.bf16.mxu1 %v19125_v21 }
 0x1bb   :  { %3811 = vmatpush1.bf16.msra.mxu1 %v19123_v23 }
 0x1bc   :  { %3812 = vmatprep.subr.bf16.mxu1 %v19132_v24 }
 0x1bf   :  { %3813 = vmatpush1.bf16.msra.mxu1 %v19130_v25  ;;  %v19208_v25 = vld [vmem:[%s27287_s2 + $0xbc0] ss:$8 sps:$4 sm:$0xff]  }
 0x1c0   :  { %3855 = vmatprep.subr.bf16.mxu1 %v19138_v26 }
 0x1c2   :  { %3815 = vmatmul.mubr.bf16.vlgmr.msra.gmra.mrb[48].mxu1 %v20093_v3 }
 0x1c3   :  { %3856 = vmatpush1.bf16.msra.mxu1 %v19136_v27  ;;  %3824 = vmatprep.mubr.bf16.mxu1 %v20107_v8 }
 0x1c4   :  { %3857 = vmatprep.subr.bf16.mxu1 %v19144_v28  ;;  %v19041_v28 = vld [vmem:[%s27287_s2 + $0x604] ss:$8 sps:$4 sm:$0xff]  }
 0x1c7   :  { %3858 = vmatpush1.bf16.msra.mxu1 %v19142_v29  ;;  %v19216_v29 = vld [vmem:[%s27287_s2 + $0xbd4] ss:$8 sps:$4 sm:$0xff]  }
 0x1c8   :  { %3859 = vmatprep.subr.bf16.mxu1 %v19150_v30 }
 0x1ca   :  { %3825 = vmatmul.mubr.bf16.gmra.mrb[52].mxu1 %v20138_v18 }
 0x1cb   :  { %3860 = vmatpush1.bf16.msra.mxu1 %v19148_v31  ;;  %3834 = vmatprep.mubr.bf16.mxu1 %v20149_v22  ;;  %v19042_v31 = vld [vmem:[%s27285_s0 + $0x40] sm:$0xff]  }
 0x1cc   :  { %3861 = vmatprep.subr.bf16.mxu1 %v19156_v34  ;;  %v19214_v34 = vld [vmem:[%s27287_s2 + $0xbd0] ss:$8 sps:$4 sm:$0xff]  }
 0x1cf   :  { %3862 = vmatpush1.bf16.msra.mxu1 %v19154_v36  ;;  %v19039_v36 = vld [vmem:[%s27287_s2 + $0x600] ss:$8 sps:$4 sm:$0xff]  }
 0x1d0   :  { %3863 = vmatprep.subr.bf16.mxu1 %v19162_v38  ;;  %v19048_v38 = vld [vmem:[%s27287_s2 + $0x614] ss:$8 sps:$4 sm:$0xff]  }
 0x1d2   :  { %3835 = vmatmul.mubr.bf16.gmra.mrb[56].mxu1 %v20181_v32 }
 0x1d3   :  { %3864 = vmatpush1.bf16.msra.mxu1 %v19160_v40  ;;  %3844 = vmatprep.mubr.bf16.mxu1 %v20193_v37  ;;  %v19222_v40 = vld [vmem:[%s27287_s2 + $0xbe4] ss:$8 sps:$4 sm:$0xff]  }
 0x1d4   :  { %3865 = vmatprep.subr.bf16.mxu1 %v19168_v41  ;;  %v19220_v41 = vld [vmem:[%s27287_s2 + $0xbe0] ss:$8 sps:$4 sm:$0xff]  }
 0x1d5   :  { %v1882_v44 = vpop.f32.mrb[16].mxu1 }
 0x1d6   :  { %v1884_v45 = vpop.f32.mrb[17].mxu1 }
 0x1d7   :  { %v1886_v46 = vpop.f32.mrb[18].mxu1  ;;  %3866 = vmatpush1.bf16.msra.mxu1 %v19166_v42  ;;  %v19046_v42 = vld [vmem:[%s27287_s2 + $0x610] ss:$8 sps:$4 sm:$0xff]  }
 0x1d8   :  { %v1930_v49 = vpack.c.bf16 %v1886_v46, %v1882_v44  ;;  %v1888_v52 = vpop.f32.mrb[19].mxu1  ;;  %3867 = vmatprep.subr.bf16.mxu1 %v19174_v43  ;;  %v19228_v43 = vld [vmem:[%s27287_s2 + $0xbf4] ss:$8 sps:$4 sm:$0xff]   ;;  %v19054_v44 = vld [vmem:[%s27287_s2 + $0x624] ss:$8 sps:$4 sm:$0xff]  }
 0x1d9   :  { %v1931_v55 = vpack.c.bf16 %v1888_v52, %v1884_v45  ;;  %v19103_v45 = vld [vmem:[%s27285_s0 + $0x48] sm:$0xff]   ;;  %v19226_v46 = vld [vmem:[%s27287_s2 + $0xbf0] ss:$8 sps:$4 sm:$0xff]  }
 0x1da   :  { %3845 = vmatmul.mubr.bf16.gmra.mrb[60].mxu1 %v20225_v47  ;;  %v19058_v52 = vld [vmem:[%s27287_s2 + $0x630] ss:$8 sps:$4 sm:$0xff]  }
 0x1db   :  { %1970 = vmatprep.subr.bf16.mxu0 %v1931_v55  ;;  %3868 = vmatpush1.bf16.msra.mxu1 %v19172_v48  ;;  %v19052_v48 = vld [vmem:[%s27287_s2 + $0x620] ss:$8 sps:$4 sm:$0xff]   ;;  %v19116_v55 = vld [vmem:[%s27285_s0 + $0x50] sm:$0xff]  }
 0x1dc   :  { %1971 = vmatpush1.bf16.msra.mxu0 %v1930_v49  ;;  %3869 = vmatprep.subr.bf16.mxu1 %v19180_v53  ;;  %v19060_v49 = vld [vmem:[%s27287_s2 + $0x634] ss:$8 sps:$4 sm:$0xff]   ;;  %v19066_v53 = vld [vmem:[%s27287_s2 + $0x644] ss:$8 sps:$4 sm:$0xff]  }
 0x1dd   :  { %v1892_v58 = vpop.f32.mrb[20].mxu1  ;;  %3887 = vmatprep.mubr.bf16.mxu1 %v20237_v51 }
 0x1de   :  { %v1894_v59 = vpop.f32.mrb[21].mxu1 }
 0x1df   :  { %v1896_v60 = vpop.f32.mrb[22].mxu1  ;;  %3870 = vmatpush1.bf16.msra.mxu1 %v19178_v56  ;;  %v19064_v56 = vld [vmem:[%s27287_s2 + $0x640] ss:$8 sps:$4 sm:$0xff]  }
 0x1e0   :  { %v1898_v62 = vpop.f32.mrb[23].mxu1  ;;  %v1932_v0 = vpack.c.bf16 %v1896_v60, %v1892_v58  ;;  %3871 = vmatprep.subr.bf16.mxu1 %v19186_v57 }
 0x1e1   :  { %v1933_v4 = vpack.c.bf16 %v1898_v62, %v1894_v59 }
 0x1e3   :  { %1972 = vmatprep.subr.bf16.mxu0 %v1933_v4  ;;  %3872 = vmatpush1.bf16.msra.mxu1 %v19184_v61 }
 0x1e4   :  { %1973 = vmatpush1.bf16.msra.mxu0 %v1932_v0  ;;  %3873 = vmatprep.subr.bf16.mxu1 %v19192_v2 }
 0x1e5   :  { %v1902_v7 = vpop.f32.mrb[24].mxu1 }
 0x1e6   :  { %v1904_v11 = vpop.f32.mrb[25].mxu1 }
 0x1e7   :  { %v1906_v12 = vpop.f32.mrb[26].mxu1  ;;  %3874 = vmatpush1.bf16.msra.mxu1 %v19190_v5 }
 0x1e8   :  { %v1934_v14 = vpack.c.bf16 %v1906_v12, %v1902_v7  ;;  %v1908_v15 = vpop.f32.mrb[27].mxu1  ;;  %3875 = vmatprep.subr.bf16.mxu1 %v19198_v6 }
 0x1e9   :  { %v1935_v17 = vpack.c.bf16 %v1908_v15, %v1904_v11 }
 0x1eb   :  { %1974 = vmatprep.subr.bf16.mxu0 %v1935_v17  ;;  %3876 = vmatpush1.bf16.msra.mxu1 %v19196_v13 }
 0x1ec   :  { %1975 = vmatpush1.bf16.msra.mxu0 %v1934_v14  ;;  %3877 = vmatprep.subr.bf16.mxu1 %v19204_v16 }
 0x1ed   :  { %v1912_v21 = vpop.f32.mrb[28].mxu1 }
 0x1ee   :  { %v1914_v23 = vpop.f32.mrb[29].mxu1 }
 0x1ef   :  { %v1916_v24 = vpop.f32.mrb[30].mxu1  ;;  %3878 = vmatpush1.bf16.msra.mxu1 %v19202_v19 }
 0x1f0   :  { %v1936_v26 = vpack.c.bf16 %v1916_v24, %v1912_v21  ;;  %v1918_v27 = vpop.f32.mrb[31].mxu1  ;;  %3879 = vmatprep.subr.bf16.mxu1 %v19210_v20 }
 0x1f1   :  { %v1937_v30 = vpack.c.bf16 %v1918_v27, %v1914_v23 }
 0x1f3   :  { %1976 = vmatprep.subr.bf16.mxu0 %v1937_v30  ;;  %3880 = vmatpush1.bf16.msra.mxu1 %v19208_v25 }
 0x1f4   :  { %1977 = vmatpush1.bf16.msra.mxu0 %v1936_v26  ;;  %3881 = vmatprep.subr.bf16.mxu1 %v19216_v29 }
 0x1f5   :  { %2444 = vmatprep.subr.bf16.mxu0 %v19041_v28 }
 0x1f7   :  { %14329 = vmatmul.mubr.msk.bf16.vlgmr.msra.gmra.mrb[16].mxu0 %vm1199_vm0, %v19042_v31  ;;  %3882 = vmatpush1.bf16.msra.mxu1 %v19214_v34 }
 0x1f8   :  { %2445 = vmatpush1.bf16.msra.mxu0 %v19039_v36  ;;  %2012 = vmatprep.mubr.bf16.mxu0 %v19831_v10 }
 0x1f9   :  { %2446 = vmatprep.subr.bf16.mxu0 %v19048_v38  ;;  %3883 = vmatprep.subr.bf16.mxu1 %v19222_v40 }
 0x1fb   :  { %3884 = vmatpush1.bf16.msra.mxu1 %v19220_v41 }
 0x1fc   :  { %2447 = vmatpush1.bf16.msra.mxu0 %v19046_v42  ;;  %3885 = vmatprep.subr.bf16.mxu1 %v19228_v43 }
 0x1fd   :  { %2448 = vmatprep.subr.bf16.mxu0 %v19054_v44 }
 0x1ff   :  { %14330 = vmatmul.mubr.msk.bf16.gmra.mrb[20].mxu0 %vm1199_vm0, %v19103_v45  ;;  %3886 = vmatpush1.bf16.msra.mxu1 %v19226_v46 }
 0x200   :  { %2449 = vmatpush1.bf16.msra.mxu0 %v19052_v48  ;;  %2022 = vmatprep.mubr.bf16.mxu0 %v19831_v10 }
 0x201   :  { %2450 = vmatprep.subr.bf16.mxu0 %v19060_v49 }
 0x202   :  { %3888 = vmatmul.mubr.bf16.vlgmr.msra.gmra.mrb[48].mxu1 %v20365_v33 }
 0x203   :  { %3897 = vmatprep.mubr.bf16.mxu1 %v20376_v39 }
 0x204   :  { %2451 = vmatpush1.bf16.msra.mxu0 %v19058_v52 }
 0x205   :  { %15 = vsyncpa [#allocation3], 0  ;;  %2452 = vmatprep.subr.bf16.mxu0 %v19066_v53  ;;  %v19072_v57 = vld [vmem:[%s27287_s2 + $0x654] ss:$8 sps:$4 sm:$0xff]   ;;  %v19070_v58 = vld [vmem:[%s27287_s2 + $0x650] ss:$8 sps:$4 sm:$0xff]  }
 0x206   :  { %v19078_v59 = vld [vmem:[%s27287_s2 + $0x664] ss:$8 sps:$4 sm:$0xff]   ;;  %v19129_v60 = vld [vmem:[%s27285_s0 + $0x58] sm:$0xff]   ;;  %v19076_v61 = vld [vmem:[%s27287_s2 + $0x660] ss:$8 sps:$4 sm:$0xff]  }
 0x207   :  { %14331 = vmatmul.mubr.msk.bf16.gmra.mrb[24].mxu0 %vm1199_vm0, %v19116_v55  ;;  %v19084_v62 = vld [vmem:[%s27287_s2 + $0x674] ss:$8 sps:$4 sm:$0xff]   ;;  %v19082_v0 = vld [vmem:[%s27287_s2 + $0x670] ss:$8 sps:$4 sm:$0xff]   ;;  %v19090_v2 = vld [vmem:[%s27287_s2 + $0x684] ss:$8 sps:$4 sm:$0xff]  }
 0x208   :  { %2453 = vmatpush1.bf16.msra.mxu0 %v19064_v56  ;;  %2032 = vmatprep.mubr.bf16.mxu0 %v19831_v10  ;;  %v19088_v4 = vld [vmem:[%s27287_s2 + $0x680] ss:$8 sps:$4 sm:$0xff]   ;;  %v19096_v5 = vld [vmem:[%s27287_s2 + $0x694] ss:$8 sps:$4 sm:$0xff]   ;;  %v19094_v6 = vld [vmem:[%s27287_s2 + $0x690] ss:$8 sps:$4 sm:$0xff]  }
 0x209   :  { %2454 = vmatprep.subr.bf16.mxu0 %v19072_v57  ;;  %v19102_v7 = vld [vmem:[%s27287_s2 + $0x6a4] ss:$8 sps:$4 sm:$0xff]   ;;  %v19100_v11 = vld [vmem:[%s27287_s2 + $0x6a0] ss:$8 sps:$4 sm:$0xff]   ;;  %v19109_v12 = vld [vmem:[%s27287_s2 + $0x6b4] ss:$8 sps:$4 sm:$0xff]  }
 0x20a   :  { %3898 = vmatmul.mubr.bf16.gmra.mrb[52].mxu1 %v20407_v50  ;;  %v19107_v13 = vld [vmem:[%s27287_s2 + $0x6b0] ss:$8 sps:$4 sm:$0xff]   ;;  %v19115_v14 = vld [vmem:[%s27287_s2 + $0x6c4] ss:$8 sps:$4 sm:$0xff]   ;;  %v19113_v15 = vld [vmem:[%s27287_s2 + $0x6c0] ss:$8 sps:$4 sm:$0xff]  }
 0x20b   :  { %3907 = vmatprep.mubr.bf16.mxu1 %v20415_v54  ;;  %v19122_v16 = vld [vmem:[%s27287_s2 + $0x6d4] ss:$8 sps:$4 sm:$0xff]   ;;  %v19120_v17 = vld [vmem:[%s27287_s2 + $0x6d0] ss:$8 sps:$4 sm:$0xff]   ;;  %v19128_v19 = vld [vmem:[%s27287_s2 + $0x6e4] ss:$8 sps:$4 sm:$0xff]  }
 0x20c   :  { %2455 = vmatpush1.bf16.msra.mxu0 %v19070_v58  ;;  %v19126_v20 = vld [vmem:[%s27287_s2 + $0x6e0] ss:$8 sps:$4 sm:$0xff]   ;;  %v19135_v21 = vld [vmem:[%s27287_s2 + $0x6f4] ss:$8 sps:$4 sm:$0xff]   ;;  %v19133_v23 = vld [vmem:[%s27287_s2 + $0x6f0] ss:$8 sps:$4 sm:$0xff]  }
 0x20d   :  { %2456 = vmatprep.subr.bf16.mxu0 %v19078_v59  ;;  %v19141_v24 = vld [vmem:[%s27287_s2 + $0x704] ss:$8 sps:$4 sm:$0xff]   ;;  %v19139_v25 = vld [vmem:[%s27287_s2 + $0x700] ss:$8 sps:$4 sm:$0xff]   ;;  %v19147_v26 = vld [vmem:[%s27287_s2 + $0x714] ss:$8 sps:$4 sm:$0xff]  }
 0x20e   :  { %v19145_v27 = vld [vmem:[%s27287_s2 + $0x710] ss:$8 sps:$4 sm:$0xff]   ;;  %v19153_v28 = vld [vmem:[%s27287_s2 + $0x724] ss:$8 sps:$4 sm:$0xff]   ;;  %v19151_v29 = vld [vmem:[%s27287_s2 + $0x720] ss:$8 sps:$4 sm:$0xff]  }
 0x20f   :  { %14332 = vmatmul.mubr.msk.bf16.gmra.mrb[28].mxu0 %vm1199_vm0, %v19129_v60  ;;  %v19159_v30 = vld [vmem:[%s27287_s2 + $0x734] ss:$8 sps:$4 sm:$0xff]   ;;  %v19157_v31 = vld [vmem:[%s27287_s2 + $0x730] ss:$8 sps:$4 sm:$0xff]   ;;  %v19165_v34 = vld [vmem:[%s27287_s2 + $0x744] ss:$8 sps:$4 sm:$0xff]  }
 0x210   :  { %2457 = vmatpush1.bf16.msra.mxu0 %v19076_v61  ;;  %2476 = vmatprep.mubr.bf16.mxu0 %v19996_v35  ;;  %v19163_v36 = vld [vmem:[%s27287_s2 + $0x740] ss:$8 sps:$4 sm:$0xff]   ;;  %v19171_v38 = vld [vmem:[%s27287_s2 + $0x754] ss:$8 sps:$4 sm:$0xff]   ;;  %v19169_v40 = vld [vmem:[%s27287_s2 + $0x750] ss:$8 sps:$4 sm:$0xff]  }
 0x211   :  { %2458 = vmatprep.subr.bf16.mxu0 %v19084_v62  ;;  %v19177_v41 = vld [vmem:[%s27287_s2 + $0x764] ss:$8 sps:$4 sm:$0xff]   ;;  %v19175_v42 = vld [vmem:[%s27287_s2 + $0x760] ss:$8 sps:$4 sm:$0xff]   ;;  %v19183_v43 = vld [vmem:[%s27287_s2 + $0x774] ss:$8 sps:$4 sm:$0xff]  }
 0x212   :  { %3908 = vmatmul.mubr.bf16.gmra.mrb[56].mxu1 %v20444_v63  ;;  %v19181_v44 = vld [vmem:[%s27287_s2 + $0x770] ss:$8 sps:$4 sm:$0xff]   ;;  %v19189_v45 = vld [vmem:[%s27287_s2 + $0x784] ss:$8 sps:$4 sm:$0xff]   ;;  %v19187_v46 = vld [vmem:[%s27287_s2 + $0x780] ss:$8 sps:$4 sm:$0xff]  }
 0x213   :  { %3917 = vmatprep.mubr.bf16.mxu1 %v20450_v1  ;;  %v19195_v48 = vld [vmem:[%s27287_s2 + $0x794] ss:$8 sps:$4 sm:$0xff]   ;;  %v19193_v55 = vld [vmem:[%s27287_s2 + $0x790] ss:$8 sps:$4 sm:$0xff]   ;;  %v19201_v58 = vld [vmem:[%s27287_s2 + $0x7a4] ss:$8 sps:$4 sm:$0xff]  }
 0x214   :  { %2459 = vmatpush1.bf16.msra.mxu0 %v19082_v0  ;;  %v19199_v60 = vld [vmem:[%s27287_s2 + $0x7a0] ss:$8 sps:$4 sm:$0xff]   ;;  %v19207_v61 = vld [vmem:[%s27287_s2 + $0x7b4] ss:$8 sps:$4 sm:$0xff]  }
 0x215   :  { %2460 = vmatprep.subr.bf16.mxu0 %v19090_v2 }
 0x218   :  { %2461 = vmatpush1.bf16.msra.mxu0 %v19088_v4  ;;  %v19205_v4 = vld [vmem:[%s27287_s2 + $0x7b0] ss:$8 sps:$4 sm:$0xff]  }
 0x219   :  { %2462 = vmatprep.subr.bf16.mxu0 %v19096_v5 }
 0x21a   :  { %3918 = vmatmul.mubr.bf16.gmra.mrb[60].mxu1 %v20470_v9 }
 0x21b   :  { %5152 = vmatprep.mubr.bf16.mxu1 %v19996_v35 }
 0x21c   :  { %2463 = vmatpush1.bf16.msra.mxu0 %v19094_v6 }
 0x21d   :  { %2464 = vmatprep.subr.bf16.mxu0 %v19102_v7  ;;  %v19213_v7 = vld [vmem:[%s27287_s2 + $0x7c4] ss:$8 sps:$4 sm:$0xff]  }
 0x220   :  { %2465 = vmatpush1.bf16.msra.mxu0 %v19100_v11 }
 0x221   :  { %2466 = vmatprep.subr.bf16.mxu0 %v19109_v12  ;;  %v19211_v12 = vld [vmem:[%s27287_s2 + $0x7c0] ss:$8 sps:$4 sm:$0xff]  }
 0x224   :  { %2467 = vmatpush1.bf16.msra.mxu0 %v19107_v13  ;;  %v19219_v13 = vld [vmem:[%s27287_s2 + $0x7d4] ss:$8 sps:$4 sm:$0xff]  }
 0x225   :  { %2468 = vmatprep.subr.bf16.mxu0 %v19115_v14 }
 0x228   :  { %2469 = vmatpush1.bf16.msra.mxu0 %v19113_v15 }
 0x229   :  { %2470 = vmatprep.subr.bf16.mxu0 %v19122_v16 }
 0x22c   :  { %2471 = vmatpush1.bf16.msra.mxu0 %v19120_v17  ;;  %v19217_v17 = vld [vmem:[%s27287_s2 + $0x7d0] ss:$8 sps:$4 sm:$0xff]  }
 0x22d   :  { %2472 = vmatprep.subr.bf16.mxu0 %v19128_v19  ;;  %v19325_v19 = vld [vmem:[%s27287_s2 + $0xf20] ss:$8 sps:$4 sm:$0xff]  }
 0x230   :  { %2473 = vmatpush1.bf16.msra.mxu0 %v19126_v20 }
 0x231   :  { %2474 = vmatprep.subr.bf16.mxu0 %v19135_v21  ;;  %v19225_v21 = vld [vmem:[%s27287_s2 + $0x7e4] ss:$8 sps:$4 sm:$0xff]  }
 0x234   :  { %2475 = vmatpush1.bf16.msra.mxu0 %v19133_v23 }
 0x235   :  { %2517 = vmatprep.subr.bf16.mxu0 %v19141_v24  ;;  %v19223_v24 = vld [vmem:[%s27287_s2 + $0x7e0] ss:$8 sps:$4 sm:$0xff]  }
 0x237   :  { %2477 = vmatmul.mubr.bf16.vlgmr.msra.gmra.mrb[32].mxu0 %v20093_v3 }
 0x238   :  { %2518 = vmatpush1.bf16.msra.mxu0 %v19139_v25  ;;  %2486 = vmatprep.mubr.bf16.mxu0 %v20107_v8  ;;  %v19231_v25 = vld [vmem:[%s27287_s2 + $0x7f4] ss:$8 sps:$4 sm:$0xff]  }
 0x239   :  { %2519 = vmatprep.subr.bf16.mxu0 %v19147_v26 }
 0x23c   :  { %2520 = vmatpush1.bf16.msra.mxu0 %v19145_v27 }
 0x23d   :  { %2521 = vmatprep.subr.bf16.mxu0 %v19153_v28 }
 0x23f   :  { %2487 = vmatmul.mubr.bf16.gmra.mrb[36].mxu0 %v20138_v18 }
 0x240   :  { %2522 = vmatpush1.bf16.msra.mxu0 %v19151_v29  ;;  %2496 = vmatprep.mubr.bf16.mxu0 %v20149_v22  ;;  %v19229_v29 = vld [vmem:[%s27287_s2 + $0x7f0] ss:$8 sps:$4 sm:$0xff]  }
 0x241   :  { %2523 = vmatprep.subr.bf16.mxu0 %v19159_v30 }
 0x244   :  { %2524 = vmatpush1.bf16.msra.mxu0 %v19157_v31 }
 0x245   :  { %2525 = vmatprep.subr.bf16.mxu0 %v19165_v34 }
 0x247   :  { %2497 = vmatmul.mubr.bf16.gmra.mrb[40].mxu0 %v20181_v32 }
 0x248   :  { %2526 = vmatpush1.bf16.msra.mxu0 %v19163_v36  ;;  %2506 = vmatprep.mubr.bf16.mxu0 %v20193_v37 }
 0x249   :  { %2527 = vmatprep.subr.bf16.mxu0 %v19171_v38 }
 0x24c   :  { %2528 = vmatpush1.bf16.msra.mxu0 %v19169_v40 }
 0x24d   :  { %2529 = vmatprep.subr.bf16.mxu0 %v19177_v41  ;;  %v19243_v41 = vld [vmem:[%s27287_s2 + $0xe20] ss:$8 sps:$4 sm:$0xff]  }
 0x24f   :  { %2507 = vmatmul.mubr.bf16.gmra.mrb[44].mxu0 %v20225_v47 }
 0x250   :  { %2530 = vmatpush1.bf16.msra.mxu0 %v19175_v42  ;;  %2549 = vmatprep.mubr.bf16.mxu0 %v20237_v51 }
 0x251   :  { %2531 = vmatprep.subr.bf16.mxu0 %v19183_v43  ;;  %v19266_v43 = vld [vmem:[%s27287_s2 + $0xe84] ss:$8 sps:$4 sm:$0xff]  }
 0x254   :  { %2532 = vmatpush1.bf16.msra.mxu0 %v19181_v44 }
 0x255   :  { %2533 = vmatprep.subr.bf16.mxu0 %v19189_v45  ;;  %v21285_v49 = vpop.f32.mrb[32].mxu1 }
 0x256   :  { %v21287_v52 = vpop.f32.mrb[33].mxu1 }
 0x257   :  { %v21289_v53 = vpop.f32.mrb[34].mxu1 }
 0x258   :  { %2534 = vmatpush1.bf16.msra.mxu0 %v19187_v46  ;;  %v3268_v56 = vpack.c.bf16 %v21289_v53, %v21285_v49  ;;  %v21296_v57 = vpop.f32.mrb[35].mxu1  ;;  %v19376_v49 = vld [vmem:[%s27287_s2 + $0xfa0] ss:$8 sps:$4 sm:$0xff]  }
 0x259   :  { %2535 = vmatprep.subr.bf16.mxu0 %v19195_v48  ;;  %v3269_v59 = vpack.c.bf16 %v21296_v57, %v21287_v52  ;;  %v19245_v48 = vld [vmem:[%s27287_s2 + $0xe24] ss:$8 sps:$4 sm:$0xff]  }
 0x25a   :  { %v19378_v52 = vld [vmem:[%s27287_s2 + $0xfa4] ss:$8 sps:$4 sm:$0xff]  }
 0x25b   :  { %v19233_v57 = vld [vmem:[%s27285_s0 + $0x68] sm:$0xff]  }
 0x25c   :  { %2536 = vmatpush1.bf16.msra.mxu0 %v19193_v55 }
 0x25d   :  { %2537 = vmatprep.subr.bf16.mxu0 %v19201_v58  ;;  %v21309_v62 = vpop.f32.mrb[36].mxu1  ;;  %v19242_v58 = vld [vmem:[%s27287_s2 + $0xe14] ss:$8 sps:$4 sm:$0xff]  }
 0x25e   :  { %v21311_v0 = vpop.f32.mrb[37].mxu1 }
 0x25f   :  { %v21313_v2 = vpop.f32.mrb[38].mxu1 }
 0x260   :  { %2538 = vmatpush1.bf16.msra.mxu0 %v19199_v60  ;;  %v21320_v6 = vpop.f32.mrb[39].mxu1  ;;  %v27302_v53 = vpack.c.bf16 %v21313_v2, %v21309_v62 }
 0x261   :  { %2539 = vmatprep.subr.bf16.mxu0 %v19207_v61  ;;  %v3271_v11 = vpack.c.bf16 %v21320_v6, %v21311_v0  ;;  %v19382_v0 = vld [vmem:[%s27287_s2 + $0xfb0] ss:$8 sps:$4 sm:$0xff]   ;;  %v19390_v6 = vld [vmem:[%s27287_s2 + $0xfc4] ss:$8 sps:$4 sm:$0xff]  }
 0x264   :  { %2540 = vmatpush1.bf16.msra.mxu0 %v19205_v4 }
 0x265   :  { %2541 = vmatprep.subr.bf16.mxu0 %v19213_v7  ;;  %v21333_v14 = vpop.f32.mrb[40].mxu1  ;;  %v19236_v7 = vld [vmem:[%s27287_s2 + $0xe00] ss:$8 sps:$4 sm:$0xff]  }
 0x266   :  { %v21335_v15 = vpop.f32.mrb[41].mxu1 }
 0x267   :  { %v21337_v16 = vpop.f32.mrb[42].mxu1 }
 0x268   :  { %2542 = vmatpush1.bf16.msra.mxu0 %v19211_v12  ;;  %v21344_v20 = vpop.f32.mrb[43].mxu1  ;;  %v27304_v62 = vpack.c.bf16 %v21337_v16, %v21333_v14  ;;  %v19388_v14 = vld [vmem:[%s27287_s2 + $0xfc0] ss:$8 sps:$4 sm:$0xff]  }
 0x269   :  { %2543 = vmatprep.subr.bf16.mxu0 %v19219_v13  ;;  %v19238_v13 = vld [vmem:[%s27287_s2 + $0xe04] ss:$8 sps:$4 sm:$0xff]  }
 0x26a   :  { %5120 = vmatprep.subr.bf16.mxu1 %v19238_v13  ;;  %v19247_v13 = vld [vmem:[%s27287_s2 + $0xe30] ss:$8 sps:$4 sm:$0xff]  }
 0x26b   :  { %5121 = vmatpush1.bf16.msra.mxu1 %v19236_v7  ;;  %v19249_v7 = vld [vmem:[%s27287_s2 + $0xe34] ss:$8 sps:$4 sm:$0xff]  }
 0x26c   :  { %2544 = vmatpush1.bf16.msra.mxu0 %v19217_v17  ;;  %5122 = vmatprep.subr.bf16.mxu1 %v19242_v58  ;;  %v19252_v58 = vld [vmem:[%s27287_s2 + $0xe44] ss:$8 sps:$4 sm:$0xff]  }
 0x26d   :  { %2545 = vmatprep.subr.bf16.mxu0 %v19225_v21  ;;  %v21357_v26 = vpop.f32.mrb[44].mxu1 }
 0x26e   :  { %v21359_v27 = vpop.f32.mrb[45].mxu1 }
 0x26f   :  { %v21361_v28 = vpop.f32.mrb[46].mxu1 }
 0x270   :  { %2546 = vmatpush1.bf16.msra.mxu0 %v19223_v24  ;;  %v21368_v31 = vpop.f32.mrb[47].mxu1 }
 0x271   :  { %2547 = vmatprep.subr.bf16.mxu0 %v19231_v25  ;;  %v19240_v25 = vld [vmem:[%s27287_s2 + $0xe10] ss:$8 sps:$4 sm:$0xff]   ;;  %v27305_v2 = vpack.c.bf16 %v21368_v31, %v21359_v27  ;;  %v19400_v31 = vld [vmem:[%s27287_s2 + $0xfe0] ss:$8 sps:$4 sm:$0xff]  }
 0x272   :  { %5123 = vmatpush1.bf16.msra.mxu1 %v19240_v25  ;;  %v19250_v25 = vld [vmem:[%s27287_s2 + $0xe40] ss:$8 sps:$4 sm:$0xff]   ;;  %v19394_v27 = vld [vmem:[%s27287_s2 + $0xfd0] ss:$8 sps:$4 sm:$0xff]  }
 0x273   :  { %5124 = vmatprep.subr.bf16.mxu1 %v19245_v48  ;;  %v19254_v48 = vld [vmem:[%s27287_s2 + $0xe50] ss:$8 sps:$4 sm:$0xff]  }
 0x274   :  { %2548 = vmatpush1.bf16.msra.mxu0 %v19229_v29 }
 0x276   :  { %5125 = vmatpush1.bf16.msra.mxu1 %v19243_v41  ;;  %v19256_v41 = vld [vmem:[%s27287_s2 + $0xe54] ss:$8 sps:$4 sm:$0xff]  }
 0x277   :  { %2550 = vmatmul.mubr.bf16.vlgmr.msra.gmra.mrb[32].mxu0 %v20365_v33  ;;  %5126 = vmatprep.subr.bf16.mxu1 %v19249_v7  ;;  %v19259_v7 = vld [vmem:[%s27287_s2 + $0xe64] ss:$8 sps:$4 sm:$0xff]  }
 0x278   :  { %2559 = vmatprep.mubr.bf16.mxu0 %v20376_v39 }
 0x27a   :  { %5127 = vmatpush1.bf16.msra.mxu1 %v19247_v13  ;;  %v19257_v13 = vld [vmem:[%s27287_s2 + $0xe60] ss:$8 sps:$4 sm:$0xff]  }
 0x27b   :  { %5128 = vmatprep.subr.bf16.mxu1 %v19252_v58  ;;  %v19263_v58 = vld [vmem:[%s27287_s2 + $0xe74] ss:$8 sps:$4 sm:$0xff]  }
 0x27e   :  { %5129 = vmatpush1.bf16.msra.mxu1 %v19250_v25  ;;  %v19261_v25 = vld [vmem:[%s27287_s2 + $0xe70] ss:$8 sps:$4 sm:$0xff]  }
 0x27f   :  { %2560 = vmatmul.mubr.bf16.gmra.mrb[36].mxu0 %v20407_v50  ;;  %5130 = vmatprep.subr.bf16.mxu1 %v19256_v41  ;;  %v19264_v41 = vld [vmem:[%s27287_s2 + $0xe80] ss:$8 sps:$4 sm:$0xff]  }
 0x280   :  { %2569 = vmatprep.mubr.bf16.mxu0 %v20415_v54 }
 0x282   :  { %5131 = vmatpush1.bf16.msra.mxu1 %v19254_v48  ;;  %v19273_v48 = vld [vmem:[%s27287_s2 + $0xe94] ss:$8 sps:$4 sm:$0xff]  }
 0x283   :  { %5132 = vmatprep.subr.bf16.mxu1 %v19259_v7  ;;  %v19271_v7 = vld [vmem:[%s27287_s2 + $0xe90] ss:$8 sps:$4 sm:$0xff]  }
 0x286   :  { %5133 = vmatpush1.bf16.msra.mxu1 %v19257_v13  ;;  %v19279_v13 = vld [vmem:[%s27287_s2 + $0xea4] ss:$8 sps:$4 sm:$0xff]  }
 0x287   :  { %2570 = vmatmul.mubr.bf16.gmra.mrb[40].mxu0 %v20444_v63  ;;  %5134 = vmatprep.subr.bf16.mxu1 %v19263_v58  ;;  %v19277_v58 = vld [vmem:[%s27287_s2 + $0xea0] ss:$8 sps:$4 sm:$0xff]  }
 0x288   :  { %2579 = vmatprep.mubr.bf16.mxu0 %v20450_v1 }
 0x28a   :  { %5135 = vmatpush1.bf16.msra.mxu1 %v19261_v25  ;;  %v19283_v25 = vld [vmem:[%s27287_s2 + $0xeb0] ss:$8 sps:$4 sm:$0xff]  }
 0x28b   :  { %5136 = vmatprep.subr.bf16.mxu1 %v19266_v43  ;;  %v19285_v43 = vld [vmem:[%s27287_s2 + $0xeb4] ss:$8 sps:$4 sm:$0xff]  }
 0x28e   :  { %5137 = vmatpush1.bf16.msra.mxu1 %v19264_v41  ;;  %v19291_v41 = vld [vmem:[%s27287_s2 + $0xec4] ss:$8 sps:$4 sm:$0xff]  }
 0x28f   :  { %2580 = vmatmul.mubr.bf16.gmra.mrb[44].mxu0 %v20470_v9  ;;  %5138 = vmatprep.subr.bf16.mxu1 %v19273_v48  ;;  %v19289_v48 = vld [vmem:[%s27287_s2 + $0xec0] ss:$8 sps:$4 sm:$0xff]  }
 0x290   :  { %2671 = vmatprep.mubr.bf16.mxu0 %v19831_v10 }
 0x292   :  { %5139 = vmatpush1.bf16.msra.mxu1 %v19271_v7  ;;  %v19297_v7 = vld [vmem:[%s27287_s2 + $0xed4] ss:$8 sps:$4 sm:$0xff]  }
 0x293   :  { %5140 = vmatprep.subr.bf16.mxu1 %v19279_v13  ;;  %v19295_v13 = vld [vmem:[%s27287_s2 + $0xed0] ss:$8 sps:$4 sm:$0xff]  }
 0x296   :  { %5141 = vmatpush1.bf16.msra.mxu1 %v19277_v58  ;;  %v19303_v58 = vld [vmem:[%s27287_s2 + $0xee4] ss:$8 sps:$4 sm:$0xff]  }
 0x297   :  { %5142 = vmatprep.subr.bf16.mxu1 %v19285_v43  ;;  %v19301_v43 = vld [vmem:[%s27287_s2 + $0xee0] ss:$8 sps:$4 sm:$0xff]  }
 0x29a   :  { %5143 = vmatpush1.bf16.msra.mxu1 %v19283_v25  ;;  %v19309_v25 = vld [vmem:[%s27287_s2 + $0xef4] ss:$8 sps:$4 sm:$0xff]  }
 0x29b   :  { %5144 = vmatprep.subr.bf16.mxu1 %v19291_v41  ;;  %v19307_v41 = vld [vmem:[%s27287_s2 + $0xef0] ss:$8 sps:$4 sm:$0xff]  }
 0x29e   :  { %5145 = vmatpush1.bf16.msra.mxu1 %v19289_v48  ;;  %v19315_v48 = vld [vmem:[%s27287_s2 + $0xf04] ss:$8 sps:$4 sm:$0xff]  }
 0x29f   :  { %5146 = vmatprep.subr.bf16.mxu1 %v19297_v7  ;;  %v19313_v7 = vld [vmem:[%s27287_s2 + $0xf00] ss:$8 sps:$4 sm:$0xff]  }
 0x2a2   :  { %5147 = vmatpush1.bf16.msra.mxu1 %v19295_v13 }
 0x2a3   :  { %5148 = vmatprep.subr.bf16.mxu1 %v19303_v58 }
 0x2a6   :  { %5149 = vmatpush1.bf16.msra.mxu1 %v19301_v43  ;;  %v19321_v43 = vld [vmem:[%s27287_s2 + $0xf14] ss:$8 sps:$4 sm:$0xff]  }
 0x2a7   :  { %5150 = vmatprep.subr.bf16.mxu1 %v19309_v25 }
 0x2aa   :  { %5151 = vmatpush1.bf16.msra.mxu1 %v19307_v41  ;;  %v19319_v41 = vld [vmem:[%s27287_s2 + $0xf10] ss:$8 sps:$4 sm:$0xff]  }
 0x2ab   :  { %5193 = vmatprep.subr.bf16.mxu1 %v19315_v48 }
 0x2ad   :  { %5153 = vmatmul.mubr.bf16.vlgmr.msra.gmra.mrb[64].mxu1 %v20093_v3 }
 0x2ae   :  { %5194 = vmatpush1.bf16.msra.mxu1 %v19313_v7  ;;  %5162 = vmatprep.mubr.bf16.mxu1 %v20107_v8  ;;  %v19327_v7 = vld [vmem:[%s27287_s2 + $0xf24] ss:$8 sps:$4 sm:$0xff]  }
 0x2af   :  { %5195 = vmatprep.subr.bf16.mxu1 %v19321_v43 }
 0x2b2   :  { %5196 = vmatpush1.bf16.msra.mxu1 %v19319_v41  ;;  %v19338_v41 = vld [vmem:[%s27287_s2 + $0xf40] ss:$8 sps:$4 sm:$0xff]  }
 0x2b3   :  { %5197 = vmatprep.subr.bf16.mxu1 %v19327_v7 }
 0x2b5   :  { %5163 = vmatmul.mubr.bf16.gmra.mrb[68].mxu1 %v20138_v18 }
 0x2b6   :  { %5198 = vmatpush1.bf16.msra.mxu1 %v19325_v19  ;;  %5172 = vmatprep.mubr.bf16.mxu1 %v20149_v22  ;;  %v19340_v19 = vld [vmem:[%s27287_s2 + $0xf44] ss:$8 sps:$4 sm:$0xff]  }
 0x2bd   :  { %5173 = vmatmul.mubr.bf16.gmra.mrb[72].mxu1 %v20181_v32 }
 0x2be   :  { %5182 = vmatprep.mubr.bf16.mxu1 %v20193_v37 }
 0x2c5   :  { %5183 = vmatmul.mubr.bf16.gmra.mrb[76].mxu1 %v20225_v47 }
 0x2c6   :  { %5225 = vmatprep.mubr.bf16.mxu1 %v20237_v51 }
 0x2d5   :  { %v21380_v36 = vpop.f32.mrb[48].mxu1 }
 0x2d6   :  { %v21382_v38 = vpop.f32.mrb[49].mxu1 }
 0x2d7   :  { %v21384_v40 = vpop.f32.mrb[50].mxu1 }
 0x2d8   :  { %v21388_v42 = vpop.f32.mrb[51].mxu1 }
 0x2d9   :  { %v27307_v16 = vpack.c.bf16 %v21388_v42, %v21382_v38  ;;  %v19408_v38 = vld [vmem:[%s27287_s2 + $0xff4] ss:$8 sps:$4 sm:$0xff]   ;;  %v19406_v42 = vld [vmem:[%s27287_s2 + $0xff0] ss:$8 sps:$4 sm:$0xff]  }
 0x2dd   :  { %v21392_v44 = vpop.f32.mrb[52].mxu1 }
 0x2de   :  { %v21394_v45 = vpop.f32.mrb[53].mxu1 }
 0x2df   :  { %v21396_v46 = vpop.f32.mrb[54].mxu1 }
 0x2e0   :  { %v21400_v55 = vpop.f32.mrb[55].mxu1 }
 0x2e5   :  { %v21404_v60 = vpop.f32.mrb[56].mxu1 }
 0x2e6   :  { %v21406_v61 = vpop.f32.mrb[57].mxu1 }
 0x2e7   :  { %v21408_v4 = vpop.f32.mrb[58].mxu1 }
 0x2e8   :  { %v21412_v12 = vpop.f32.mrb[59].mxu1 }
 0x2ed   :  { %v21416_v17 = vpop.f32.mrb[60].mxu1 }
 0x2ee   :  { %v21418_v21 = vpop.f32.mrb[61].mxu1 }
 0x2ef   :  { %v21420_v24 = vpop.f32.mrb[62].mxu1 }
 0x2f0   :  { %v21424_v29 = vpop.f32.mrb[63].mxu1 }
 0x34a   :  { %v2551_v13 = vpop.f32.mrb[32].mxu0 }
 0x34b   :  { %v2553_v58 = vpop.f32.mrb[33].mxu0 }
 0x34c   :  { %v2555_v25 = vpop.f32.mrb[34].mxu0 }
 0x34d   :  { %v2599_v30 = vpack.c.bf16 %v2555_v25, %v2551_v13  ;;  %v2557_v34 = vpop.f32.mrb[35].mxu0  ;;  %v19334_v13 = vld [vmem:[%s27287_s2 + $0xf34] ss:$8 sps:$4 sm:$0xff]  }
 0x34e   :  { %v2600_v48 = vpack.c.bf16 %v2557_v34, %v2553_v58  ;;  %v19332_v58 = vld [vmem:[%s27287_s2 + $0xf30] ss:$8 sps:$4 sm:$0xff]   ;;  %5199 = vmatprep.subr.bf16.mxu1 %v19334_v13 }
 0x34f   :  { %5200 = vmatpush1.bf16.msra.mxu1 %v19332_v58  ;;  %v19345_v13 = vld [vmem:[%s27287_s2 + $0xf50] ss:$8 sps:$4 sm:$0xff]  }
 0x350   :  { %2639 = vmatprep.subr.bf16.mxu0 %v2600_v48  ;;  %5201 = vmatprep.subr.bf16.mxu1 %v19340_v19 }
 0x351   :  { %2640 = vmatpush1.bf16.msra.mxu0 %v2599_v30 }
 0x352   :  { %v2561_v23 = vpop.f32.mrb[36].mxu0 }
 0x353   :  { %v2563_v5 = vpop.f32.mrb[37].mxu0  ;;  %5202 = vmatpush1.bf16.msra.mxu1 %v19338_v41 }
 0x354   :  { %v2565_v34 = vpop.f32.mrb[38].mxu0 }
 0x355   :  { %v2601_v43 = vpack.c.bf16 %v2565_v34, %v2561_v23  ;;  %v2567_v25 = vpop.f32.mrb[39].mxu0  ;;  %v19347_v23 = vld [vmem:[%s27287_s2 + $0xf54] ss:$8 sps:$4 sm:$0xff]  }
 0x356   :  { %v2602_v30 = vpack.c.bf16 %v2567_v25, %v2563_v5  ;;  %5203 = vmatprep.subr.bf16.mxu1 %v19347_v23  ;;  %v19353_v25 = vld [vmem:[%s27287_s2 + $0xf64] ss:$8 sps:$4 sm:$0xff]   ;;  %v19358_v23 = vld [vmem:[%s27287_s2 + $0xf70] ss:$8 sps:$4 sm:$0xff]  }
 0x357   :  { %5204 = vmatpush1.bf16.msra.mxu1 %v19345_v13 }
 0x358   :  { %2641 = vmatprep.subr.bf16.mxu0 %v2602_v30  ;;  %v19351_v30 = vld [vmem:[%s27287_s2 + $0xf60] ss:$8 sps:$4 sm:$0xff]   ;;  %5205 = vmatprep.subr.bf16.mxu1 %v19353_v25 }
 0x359   :  { %2642 = vmatpush1.bf16.msra.mxu0 %v2601_v43  ;;  %v19364_v25 = vld [vmem:[%s27287_s2 + $0xf80] ss:$8 sps:$4 sm:$0xff]  }
 0x35a   :  { %v2571_v48 = vpop.f32.mrb[40].mxu0 }
 0x35b   :  { %v2573_v7 = vpop.f32.mrb[41].mxu0  ;;  %5206 = vmatpush1.bf16.msra.mxu1 %v19351_v30  ;;  %v19372_v30 = vld [vmem:[%s27287_s2 + $0xf94] ss:$8 sps:$4 sm:$0xff]  }
 0x35c   :  { %v2575_v5 = vpop.f32.mrb[42].mxu0 }
 0x35d   :  { %v2603_v34 = vpack.c.bf16 %v2575_v5, %v2571_v48  ;;  %v2577_v58 = vpop.f32.mrb[43].mxu0  ;;  %v19360_v48 = vld [vmem:[%s27287_s2 + $0xf74] ss:$8 sps:$4 sm:$0xff]  }
 0x35e   :  { %v2604_v43 = vpack.c.bf16 %v2577_v58, %v2573_v7  ;;  %5207 = vmatprep.subr.bf16.mxu1 %v19360_v48  ;;  %v19366_v58 = vld [vmem:[%s27287_s2 + $0xf84] ss:$8 sps:$4 sm:$0xff]   ;;  %v27308_v48 = vpack.c.bf16 %v21384_v40, %v21380_v36  ;;  %v27312_v36 = vpack.c.bf16 %v21408_v4, %v21404_v60  ;;  %v27313_v40 = vpack.c.bf16 %v21424_v29, %v21418_v21  ;;  %v19276_v4 = vld [vmem:[%s27287_s2 + $0xc14] ss:$8 sps:$4 sm:$0xff]  }
 0x35f   :  { %5208 = vmatpush1.bf16.msra.mxu1 %v19358_v23  ;;  %v19246_v23 = vld [vmem:[%s27285_s0 + $0x88] sm:$0xff]   ;;  %v19270_v60 = vld [vmem:[%s27285_s0 + $0xa0] sm:$0xff]   ;;  %v19288_v29 = vld [vmem:[%s27287_s2 + $0xc34] ss:$8 sps:$4 sm:$0xff]  }
 0x360   :  { %2643 = vmatprep.subr.bf16.mxu0 %v2604_v43  ;;  %v19232_v43 = vld [vmem:[%s27285_s0 + $0x60] sm:$0xff]   ;;  %5209 = vmatprep.subr.bf16.mxu1 %v19366_v58  ;;  %v19331_v21 = vld [vmem:[%s27285_s0 + $0xa8] sm:$0xff]  }
 0x361   :  { %2644 = vmatpush1.bf16.msra.mxu0 %v2603_v34  ;;  %v19294_v58 = vld [vmem:[%s27287_s2 + $0xc44] ss:$8 sps:$4 sm:$0xff]  }
 0x362   :  { %v2581_v19 = vpop.f32.mrb[44].mxu0 }
 0x363   :  { %v2583_v41 = vpop.f32.mrb[45].mxu0  ;;  %5210 = vmatpush1.bf16.msra.mxu1 %v19364_v25  ;;  %v19292_v25 = vld [vmem:[%s27287_s2 + $0xc40] ss:$8 sps:$4 sm:$0xff]  }
 0x364   :  { %v2585_v7 = vpop.f32.mrb[46].mxu0  ;;  %5211 = vmatprep.subr.bf16.mxu1 %v19372_v30  ;;  %v19300_v30 = vld [vmem:[%s27287_s2 + $0xc54] ss:$8 sps:$4 sm:$0xff]  }
 0x365   :  { %v2605_v5 = vpack.c.bf16 %v2585_v7, %v2581_v19  ;;  %v2587_v13 = vpop.f32.mrb[47].mxu0  ;;  %v19370_v19 = vld [vmem:[%s27287_s2 + $0xf90] ss:$8 sps:$4 sm:$0xff]   ;;  %v27309_v7 = vpack.c.bf16 %v21400_v55, %v21394_v45 }
 0x366   :  { %v2606_v34 = vpack.c.bf16 %v2587_v13, %v2583_v41  ;;  %v19239_v41 = vld [vmem:[%s27285_s0 + $0x80] sm:$0xff]   ;;  %v27311_v13 = vpack.c.bf16 %v21412_v12, %v21406_v61  ;;  %v19253_v45 = vld [vmem:[%s27285_s0 + $0x90] sm:$0xff]   ;;  %v19260_v55 = vld [vmem:[%s27285_s0 + $0x98] sm:$0xff]  }
 0x367   :  { %5212 = vmatpush1.bf16.msra.mxu1 %v19370_v19  ;;  %v19267_v61 = vld [vmem:[%s27287_s2 + $0xc00] ss:$8 sps:$4 sm:$0xff]   ;;  %v19274_v12 = vld [vmem:[%s27287_s2 + $0xc10] ss:$8 sps:$4 sm:$0xff]  }
 0x368   :  { %2645 = vmatprep.subr.bf16.mxu0 %v2606_v34  ;;  %5213 = vmatprep.subr.bf16.mxu1 %v19378_v52  ;;  %v19286_v34 = vld [vmem:[%s27287_s2 + $0xc30] ss:$8 sps:$4 sm:$0xff]   ;;  %v19306_v52 = vld [vmem:[%s27287_s2 + $0xc64] ss:$8 sps:$4 sm:$0xff]  }
 0x369   :  { %2646 = vmatpush1.bf16.msra.mxu0 %v2605_v5  ;;  %v27310_v5 = vpack.c.bf16 %v21396_v46, %v21392_v44  ;;  %v19269_v44 = vld [vmem:[%s27287_s2 + $0xc04] ss:$8 sps:$4 sm:$0xff]   ;;  %v27314_v46 = vpack.c.bf16 %v21420_v24, %v21416_v17  ;;  %v19280_v24 = vld [vmem:[%s27287_s2 + $0xc20] ss:$8 sps:$4 sm:$0xff]   ;;  %v19298_v19 = vld [vmem:[%s27287_s2 + $0xc50] ss:$8 sps:$4 sm:$0xff]  }
 0x36a   :  { %3308 = vmatprep.subr.bf16.mxu0 %v3269_v59  ;;  %v19384_v59 = vld [vmem:[%s27287_s2 + $0xfb4] ss:$8 sps:$4 sm:$0xff]   ;;  %v19282_v17 = vld [vmem:[%s27287_s2 + $0xc24] ss:$8 sps:$4 sm:$0xff]  }
 0x36b   :  { %5214 = vmatpush1.bf16.msra.mxu1 %v19376_v49  ;;  %v19304_v49 = vld [vmem:[%s27287_s2 + $0xc60] ss:$8 sps:$4 sm:$0xff]  }
 0x36c   :  { %14473 = vmatmul.mubr.msk.bf16.vlgmr.msra.gmra.mrb[16].mxu0 %vm1199_vm0, %v19232_v43  ;;  %5215 = vmatprep.subr.bf16.mxu1 %v19384_v59  ;;  %v19344_v43 = vld [vmem:[%s27285_s0 + $0xb0] sm:$0xff]   ;;  %v19318_v59 = vld [vmem:[%s27287_s2 + $0xc84] ss:$8 sps:$4 sm:$0xff]  }
 0x36d   :  { %3309 = vmatpush1.bf16.msra.mxu0 %v3268_v56  ;;  %2681 = vmatprep.mubr.bf16.mxu0 %v19831_v10  ;;  %v27303_v56 = vpack.c.bf16 %v21344_v20, %v21335_v15  ;;  %v27306_v15 = vpack.c.bf16 %v21361_v28, %v21357_v26  ;;  %v19396_v20 = vld [vmem:[%s27287_s2 + $0xfd4] ss:$8 sps:$4 sm:$0xff]   ;;  %v19402_v26 = vld [vmem:[%s27287_s2 + $0xfe4] ss:$8 sps:$4 sm:$0xff]  }
 0x36e   :  { %3310 = vmatprep.subr.bf16.mxu0 %v3271_v11  ;;  %v19234_v11 = vld [vmem:[%s27285_s0 + $0x70] sm:$0xff]   ;;  %v19235_v28 = vld [vmem:[%s27285_s0 + $0x78] sm:$0xff]  }
 0x36f   :  { %5216 = vmatpush1.bf16.msra.mxu1 %v19382_v0  ;;  %v19316_v0 = vld [vmem:[%s27287_s2 + $0xc80] ss:$8 sps:$4 sm:$0xff]  }
 0x370   :  { %5217 = vmatprep.subr.bf16.mxu1 %v19390_v6  ;;  %v19330_v6 = vld [vmem:[%s27287_s2 + $0xca4] ss:$8 sps:$4 sm:$0xff]  }
 0x371   :  { %3311 = vmatpush1.bf16.msra.mxu0 %v27302_v53  ;;  %v19312_v53 = vld [vmem:[%s27287_s2 + $0xc74] ss:$8 sps:$4 sm:$0xff]  }
 0x372   :  { %3312 = vmatprep.subr.bf16.mxu0 %v27303_v56  ;;  %v19310_v56 = vld [vmem:[%s27287_s2 + $0xc70] ss:$8 sps:$4 sm:$0xff]  }
 0x373   :  { %5218 = vmatpush1.bf16.msra.mxu1 %v19388_v14  ;;  %v19337_v14 = vld [vmem:[%s27287_s2 + $0xcb4] ss:$8 sps:$4 sm:$0xff]  }
 0x374   :  { %14474 = vmatmul.mubr.msk.bf16.gmra.mrb[20].mxu0 %vm1199_vm0, %v19233_v57  ;;  %5219 = vmatprep.subr.bf16.mxu1 %v19396_v20  ;;  %v19357_v57 = vld [vmem:[%s27285_s0 + $0xb8] sm:$0xff]   ;;  %v19341_v20 = vld [vmem:[%s27287_s2 + $0xcc0] ss:$8 sps:$4 sm:$0xff]  }
 0x375   :  { %3313 = vmatpush1.bf16.msra.mxu0 %v27304_v62  ;;  %2691 = vmatprep.mubr.bf16.mxu0 %v19831_v10  ;;  %v19324_v62 = vld [vmem:[%s27287_s2 + $0xc94] ss:$8 sps:$4 sm:$0xff]  }
 0x376   :  { %3314 = vmatprep.subr.bf16.mxu0 %v27305_v2  ;;  %v19322_v2 = vld [vmem:[%s27287_s2 + $0xc90] ss:$8 sps:$4 sm:$0xff]  }
 0x377   :  { %5220 = vmatpush1.bf16.msra.mxu1 %v19394_v27  ;;  %v19350_v27 = vld [vmem:[%s27287_s2 + $0xcd4] ss:$8 sps:$4 sm:$0xff]  }
 0x378   :  { %5221 = vmatprep.subr.bf16.mxu1 %v19402_v26  ;;  %v19348_v26 = vld [vmem:[%s27287_s2 + $0xcd0] ss:$8 sps:$4 sm:$0xff]  }
 0x379   :  { %3315 = vmatpush1.bf16.msra.mxu0 %v27306_v15  ;;  %v19335_v15 = vld [vmem:[%s27287_s2 + $0xcb0] ss:$8 sps:$4 sm:$0xff]  }
 0x37a   :  { %3977 = vmatprep.subr.bf16.mxu0 %v27307_v16  ;;  %v19343_v16 = vld [vmem:[%s27287_s2 + $0xcc4] ss:$8 sps:$4 sm:$0xff]  }
 0x37b   :  { %5222 = vmatpush1.bf16.msra.mxu1 %v19400_v31  ;;  %v19354_v31 = vld [vmem:[%s27287_s2 + $0xce0] ss:$8 sps:$4 sm:$0xff]  }
 0x37c   :  { %14475 = vmatmul.mubr.msk.bf16.gmra.mrb[24].mxu0 %vm1199_vm0, %v19234_v11  ;;  %5223 = vmatprep.subr.bf16.mxu1 %v19408_v38  ;;  %v19328_v11 = vld [vmem:[%s27287_s2 + $0xca0] ss:$8 sps:$4 sm:$0xff]   ;;  %v19363_v38 = vld [vmem:[%s27287_s2 + $0xcf4] ss:$8 sps:$4 sm:$0xff]  }
 0x37d   :  { %2701 = vmatprep.mubr.bf16.mxu0 %v19831_v10 }
 0x37f   :  { %5224 = vmatpush1.bf16.msra.mxu1 %v19406_v42  ;;  %v19361_v42 = vld [vmem:[%s27287_s2 + $0xcf0] ss:$8 sps:$4 sm:$0xff]  }
 0x382   :  { %5226 = vmatmul.mubr.bf16.vlgmr.msra.gmra.mrb[64].mxu1 %v20365_v33 }
 0x383   :  { %5235 = vmatprep.mubr.bf16.mxu1 %v20376_v39 }
 0x384   :  { %14476 = vmatmul.mubr.msk.bf16.gmra.mrb[28].mxu0 %vm1199_vm0, %v19235_v28  ;;  %v19356_v28 = vld [vmem:[%s27287_s2 + $0xce4] ss:$8 sps:$4 sm:$0xff]  }
 0x385   :  { %3340 = vmatprep.mubr.bf16.mxu0 %v19831_v10 }
 0x38a   :  { %5236 = vmatmul.mubr.bf16.gmra.mrb[68].mxu1 %v20407_v50 }
 0x38b   :  { %5245 = vmatprep.mubr.bf16.mxu1 %v20415_v54 }
 0x38c   :  { %14617 = vmatmul.mubr.msk.bf16.vlgmr.msra.gmra.mrb[16].mxu0 %vm1199_vm0, %v19239_v41  ;;  %v19369_v41 = vld [vmem:[%s27287_s2 + $0xd04] ss:$8 sps:$4 sm:$0xff]  }
 0x38d   :  { %3978 = vmatpush1.bf16.msra.mxu0 %v27308_v48  ;;  %3350 = vmatprep.mubr.bf16.mxu0 %v19831_v10  ;;  %v19367_v48 = vld [vmem:[%s27287_s2 + $0xd00] ss:$8 sps:$4 sm:$0xff]  }
 0x38e   :  { %3979 = vmatprep.subr.bf16.mxu0 %v27309_v7  ;;  %v19375_v7 = vld [vmem:[%s27287_s2 + $0xd14] ss:$8 sps:$4 sm:$0xff]  }
 0x391   :  { %3980 = vmatpush1.bf16.msra.mxu0 %v27310_v5  ;;  %v19381_v5 = vld [vmem:[%s27287_s2 + $0xd24] ss:$8 sps:$4 sm:$0xff]  }
 0x392   :  { %3981 = vmatprep.subr.bf16.mxu0 %v27311_v13  ;;  %5246 = vmatmul.mubr.bf16.gmra.mrb[72].mxu1 %v20444_v63  ;;  %v19379_v13 = vld [vmem:[%s27287_s2 + $0xd20] ss:$8 sps:$4 sm:$0xff]  }
 0x393   :  { %5255 = vmatprep.mubr.bf16.mxu1 %v20450_v1 }
 0x394   :  { %14618 = vmatmul.mubr.msk.bf16.gmra.mrb[20].mxu0 %vm1199_vm0, %v19246_v23  ;;  %v19373_v23 = vld [vmem:[%s27287_s2 + $0xd10] ss:$8 sps:$4 sm:$0xff]  }
 0x395   :  { %3982 = vmatpush1.bf16.msra.mxu0 %v27312_v36  ;;  %3360 = vmatprep.mubr.bf16.mxu0 %v19831_v10  ;;  %v19387_v36 = vld [vmem:[%s27287_s2 + $0xd34] ss:$8 sps:$4 sm:$0xff]  }
 0x396   :  { %3983 = vmatprep.subr.bf16.mxu0 %v27313_v40  ;;  %v19385_v40 = vld [vmem:[%s27287_s2 + $0xd30] ss:$8 sps:$4 sm:$0xff]  }
 0x399   :  { %3984 = vmatpush1.bf16.msra.mxu0 %v27314_v46  ;;  %v19399_v46 = vld [vmem:[%s27287_s2 + $0xd54] ss:$8 sps:$4 sm:$0xff]  }
 0x39a   :  { %4451 = vmatprep.subr.bf16.mxu0 %v19269_v44  ;;  %5256 = vmatmul.mubr.bf16.gmra.mrb[76].mxu1 %v20470_v9  ;;  %v19393_v44 = vld [vmem:[%s27287_s2 + $0xd44] ss:$8 sps:$4 sm:$0xff]  }
 0x39c   :  { %14619 = vmatmul.mubr.msk.bf16.gmra.mrb[24].mxu0 %vm1199_vm0, %v19253_v45  ;;  %v19391_v45 = vld [vmem:[%s27287_s2 + $0xd40] ss:$8 sps:$4 sm:$0xff]  }
 0x39d   :  { %3370 = vmatprep.mubr.bf16.mxu0 %v19831_v10 }
 0x3a4   :  { %14620 = vmatmul.mubr.msk.bf16.gmra.mrb[28].mxu0 %vm1199_vm0, %v19260_v55  ;;  %v19397_v55 = vld [vmem:[%s27287_s2 + $0xd50] ss:$8 sps:$4 sm:$0xff]  }
 0x3a5   :  { %4009 = vmatprep.mubr.bf16.mxu0 %v19831_v10 }
 0x3ac   :  { %14761 = vmatmul.mubr.msk.bf16.vlgmr.msra.gmra.mrb[16].mxu0 %vm1199_vm0, %v19270_v60  ;;  %v19405_v60 = vld [vmem:[%s27287_s2 + $0xd64] ss:$8 sps:$4 sm:$0xff]  }
 0x3ad   :  { %4452 = vmatpush1.bf16.msra.mxu0 %v19267_v61  ;;  %4019 = vmatprep.mubr.bf16.mxu0 %v19831_v10  ;;  %v19403_v61 = vld [vmem:[%s27287_s2 + $0xd60] ss:$8 sps:$4 sm:$0xff]  }
 0x3ae   :  { %4453 = vmatprep.subr.bf16.mxu0 %v19276_v4  ;;  %v19411_v4 = vld [vmem:[%s27287_s2 + $0xd74] ss:$8 sps:$4 sm:$0xff]  }
 0x3b1   :  { %4454 = vmatpush1.bf16.msra.mxu0 %v19274_v12  ;;  %v19409_v12 = vld [vmem:[%s27287_s2 + $0xd70] ss:$8 sps:$4 sm:$0xff]  }
 0x3b2   :  { %4455 = vmatprep.subr.bf16.mxu0 %v19282_v17  ;;  %v19414_v17 = vld [vmem:[%s27287_s2 + $0xd84] ss:$8 sps:$4 sm:$0xff]  }
 0x3b4   :  { %14762 = vmatmul.mubr.msk.bf16.gmra.mrb[20].mxu0 %vm1199_vm0, %v19331_v21  ;;  %v19412_v21 = vld [vmem:[%s27287_s2 + $0xd80] ss:$8 sps:$4 sm:$0xff]  }
 0x3b5   :  { %4456 = vmatpush1.bf16.msra.mxu0 %v19280_v24  ;;  %4029 = vmatprep.mubr.bf16.mxu0 %v19831_v10  ;;  %v19417_v24 = vld [vmem:[%s27287_s2 + $0xd94] ss:$8 sps:$4 sm:$0xff]  }
 0x3b6   :  { %4457 = vmatprep.subr.bf16.mxu0 %v19288_v29  ;;  %v19415_v29 = vld [vmem:[%s27287_s2 + $0xd90] ss:$8 sps:$4 sm:$0xff]  }
 0x3b9   :  { %4458 = vmatpush1.bf16.msra.mxu0 %v19286_v34  ;;  %v19420_v34 = vld [vmem:[%s27287_s2 + $0xda4] ss:$8 sps:$4 sm:$0xff]  }
 0x3ba   :  { %4459 = vmatprep.subr.bf16.mxu0 %v19294_v58  ;;  %v19418_v58 = vld [vmem:[%s27287_s2 + $0xda0] ss:$8 sps:$4 sm:$0xff]  }
 0x3bc   :  { %14763 = vmatmul.mubr.msk.bf16.gmra.mrb[24].mxu0 %vm1199_vm0, %v19344_v43  ;;  %v19423_v43 = vld [vmem:[%s27287_s2 + $0xdb4] ss:$8 sps:$4 sm:$0xff]  }
 0x3bd   :  { %4460 = vmatpush1.bf16.msra.mxu0 %v19292_v25  ;;  %4039 = vmatprep.mubr.bf16.mxu0 %v19831_v10  ;;  %v19421_v25 = vld [vmem:[%s27287_s2 + $0xdb0] ss:$8 sps:$4 sm:$0xff]  }
 0x3be   :  { %4461 = vmatprep.subr.bf16.mxu0 %v19300_v30  ;;  %v19426_v30 = vld [vmem:[%s27287_s2 + $0xdc4] ss:$8 sps:$4 sm:$0xff]  }
 0x3c1   :  { %4462 = vmatpush1.bf16.msra.mxu0 %v19298_v19  ;;  %v19424_v19 = vld [vmem:[%s27287_s2 + $0xdc0] ss:$8 sps:$4 sm:$0xff]  }
 0x3c2   :  { %4463 = vmatprep.subr.bf16.mxu0 %v19306_v52  ;;  %v19429_v52 = vld [vmem:[%s27287_s2 + $0xdd4] ss:$8 sps:$4 sm:$0xff]  }
 0x3c4   :  { %14764 = vmatmul.mubr.msk.bf16.gmra.mrb[28].mxu0 %vm1199_vm0, %v19357_v57  ;;  %v19427_v57 = vld [vmem:[%s27287_s2 + $0xdd0] ss:$8 sps:$4 sm:$0xff]  }
 0x3c5   :  { %4464 = vmatpush1.bf16.msra.mxu0 %v19304_v49  ;;  %4483 = vmatprep.mubr.bf16.mxu0 %v19996_v35  ;;  %v19432_v49 = vld [vmem:[%s27287_s2 + $0xde4] ss:$8 sps:$4 sm:$0xff]  }
 0x3c6   :  { %4465 = vmatprep.subr.bf16.mxu0 %v19312_v53  ;;  %v19430_v53 = vld [vmem:[%s27287_s2 + $0xde0] ss:$8 sps:$4 sm:$0xff]  }
 0x3c9   :  { %4466 = vmatpush1.bf16.msra.mxu0 %v19310_v56  ;;  %v19435_v56 = vld [vmem:[%s27287_s2 + $0xdf4] ss:$8 sps:$4 sm:$0xff]  }
 0x3ca   :  { %4467 = vmatprep.subr.bf16.mxu0 %v19318_v59  ;;  %v19433_v59 = vld [vmem:[%s27287_s2 + $0xdf0] ss:$8 sps:$4 sm:$0xff]  }
 0x3cd   :  { %4468 = vmatpush1.bf16.msra.mxu0 %v19316_v0 }
 0x3ce   :  { %4469 = vmatprep.subr.bf16.mxu0 %v19324_v62 }
 0x3d1   :  { %4470 = vmatpush1.bf16.msra.mxu0 %v19322_v2 }
 0x3d2   :  { %4471 = vmatprep.subr.bf16.mxu0 %v19330_v6 }
 0x3d5   :  { %4472 = vmatpush1.bf16.msra.mxu0 %v19328_v11 }
 0x3d6   :  { %4473 = vmatprep.subr.bf16.mxu0 %v19337_v14 }
 0x3d9   :  { %4474 = vmatpush1.bf16.msra.mxu0 %v19335_v15 }
 0x3da   :  { %4475 = vmatprep.subr.bf16.mxu0 %v19343_v16 }
 0x3dd   :  { %4476 = vmatpush1.bf16.msra.mxu0 %v19341_v20 }
 0x3de   :  { %4477 = vmatprep.subr.bf16.mxu0 %v19350_v27 }
 0x3e1   :  { %4478 = vmatpush1.bf16.msra.mxu0 %v19348_v26 }
 0x3e2   :  { %4479 = vmatprep.subr.bf16.mxu0 %v19356_v28 }
 0x3e5   :  { %4480 = vmatpush1.bf16.msra.mxu0 %v19354_v31 }
 0x3e6   :  { %4481 = vmatprep.subr.bf16.mxu0 %v19363_v38 }
 0x3e9   :  { %4482 = vmatpush1.bf16.msra.mxu0 %v19361_v42 }
 0x3ea   :  { %4524 = vmatprep.subr.bf16.mxu0 %v19369_v41 }
 0x3ec   :  { %4484 = vmatmul.mubr.bf16.vlgmr.msra.gmra.mrb[48].mxu0 %v20093_v3 }
 0x3ed   :  { %4525 = vmatpush1.bf16.msra.mxu0 %v19367_v48  ;;  %4493 = vmatprep.mubr.bf16.mxu0 %v20107_v8 }
 0x3ee   :  { %4526 = vmatprep.subr.bf16.mxu0 %v19375_v7 }
 0x3f1   :  { %4527 = vmatpush1.bf16.msra.mxu0 %v19373_v23 }
 0x3f2   :  { %4528 = vmatprep.subr.bf16.mxu0 %v19381_v5 }
 0x3f4   :  { %4494 = vmatmul.mubr.bf16.gmra.mrb[52].mxu0 %v20138_v18 }
 0x3f5   :  { %4529 = vmatpush1.bf16.msra.mxu0 %v19379_v13  ;;  %4503 = vmatprep.mubr.bf16.mxu0 %v20149_v22 }
 0x3f6   :  { %4530 = vmatprep.subr.bf16.mxu0 %v19387_v36 }
 0x3f9   :  { %4531 = vmatpush1.bf16.msra.mxu0 %v19385_v40 }
 0x3fa   :  { %4532 = vmatprep.subr.bf16.mxu0 %v19393_v44 }
 0x3fc   :  { %4504 = vmatmul.mubr.bf16.gmra.mrb[56].mxu0 %v20181_v32 }
 0x3fd   :  { %4533 = vmatpush1.bf16.msra.mxu0 %v19391_v45  ;;  %4513 = vmatprep.mubr.bf16.mxu0 %v20193_v37 }
 0x3fe   :  { %4534 = vmatprep.subr.bf16.mxu0 %v19399_v46 }
 0x401   :  { %4535 = vmatpush1.bf16.msra.mxu0 %v19397_v55 }
 0x402   :  { %4536 = vmatprep.subr.bf16.mxu0 %v19405_v60 }
 0x404   :  { %4514 = vmatmul.mubr.bf16.gmra.mrb[60].mxu0 %v20225_v47 }
 0x405   :  { %4537 = vmatpush1.bf16.msra.mxu0 %v19403_v61  ;;  %4556 = vmatprep.mubr.bf16.mxu0 %v20237_v51 }
 0x406   :  { %4538 = vmatprep.subr.bf16.mxu0 %v19411_v4 }
 0x409   :  { %4539 = vmatpush1.bf16.msra.mxu0 %v19409_v12 }
 0x40a   :  { %4540 = vmatprep.subr.bf16.mxu0 %v19414_v17 }
 0x40d   :  { %4541 = vmatpush1.bf16.msra.mxu0 %v19412_v21 }
 0x40e   :  { %4542 = vmatprep.subr.bf16.mxu0 %v19417_v24 }
 0x411   :  { %4543 = vmatpush1.bf16.msra.mxu0 %v19415_v29 }
 0x412   :  { %4544 = vmatprep.subr.bf16.mxu0 %v19420_v34 }
 0x415   :  { %4545 = vmatpush1.bf16.msra.mxu0 %v19418_v58 }
 0x416   :  { %4546 = vmatprep.subr.bf16.mxu0 %v19423_v43 }
 0x419   :  { %4547 = vmatpush1.bf16.msra.mxu0 %v19421_v25 }
 0x41a   :  { %4548 = vmatprep.subr.bf16.mxu0 %v19426_v30 }
 0x41d   :  { %4549 = vmatpush1.bf16.msra.mxu0 %v19424_v19 }
 0x41e   :  { %4550 = vmatprep.subr.bf16.mxu0 %v19429_v52 }
 0x421   :  { %4551 = vmatpush1.bf16.msra.mxu0 %v19427_v57 }
 0x422   :  { %4552 = vmatprep.subr.bf16.mxu0 %v19432_v49 }
 0x425   :  { %4553 = vmatpush1.bf16.msra.mxu0 %v19430_v53 }
 0x426   :  { %4554 = vmatprep.subr.bf16.mxu0 %v19435_v56 }
 0x429   :  { %4555 = vmatpush1.bf16.msra.mxu0 %v19433_v59 }
 0x42c   :  { %4557 = vmatmul.mubr.bf16.vlgmr.msra.gmra.mrb[48].mxu0 %v20365_v33 }
 0x42d   :  { %4566 = vmatprep.mubr.bf16.mxu0 %v20376_v39 }
 0x434   :  { %4567 = vmatmul.mubr.bf16.gmra.mrb[52].mxu0 %v20407_v50 }
 0x435   :  { %4576 = vmatprep.mubr.bf16.mxu0 %v20415_v54 }
 0x43c   :  { %4577 = vmatmul.mubr.bf16.gmra.mrb[56].mxu0 %v20444_v63 }
 0x43d   :  { %4586 = vmatprep.mubr.bf16.mxu0 %v20450_v1 }
 0x444   :  { %4587 = vmatmul.mubr.bf16.gmra.mrb[60].mxu0 %v20470_v9 }
 0x445   :  { %4678 = vmatprep.mubr.bf16.mxu0 %v19831_v10 }
 0x455   :  { %v5227_v0 = vpop.f32.mrb[64].mxu1 }
 0x456   :  { %v5229_v62 = vpop.f32.mrb[65].mxu1 }
 0x457   :  { %v5231_v2 = vpop.f32.mrb[66].mxu1 }
 0x458   :  { %v5275_v6 = vpack.c.bf16 %v5231_v2, %v5227_v0  ;;  %v5233_v11 = vpop.f32.mrb[67].mxu1  ;;  %v19437_v2 = vld [vmem:[%s27285_s0 + $0xc8] sm:$0xff]  }
 0x459   :  { %v5276_v14 = vpack.c.bf16 %v5233_v11, %v5229_v62  ;;  %v19436_v62 = vld [vmem:[%s27285_s0 + $0xc0] sm:$0xff]  }
 0x45a   :  { %v19442_v11 = vld [vmem:[%s27287_s2 + $0x1004] ss:$8 sps:$4 sm:$0xff]  }
 0x45d   :  { %v5237_v15 = vpop.f32.mrb[68].mxu1 }
 0x45e   :  { %v5239_v16 = vpop.f32.mrb[69].mxu1 }
 0x45f   :  { %v5241_v20 = vpop.f32.mrb[70].mxu1 }
 0x460   :  { %v5277_v27 = vpack.c.bf16 %v5241_v20, %v5237_v15  ;;  %v5243_v26 = vpop.f32.mrb[71].mxu1  ;;  %v19443_v15 = vld [vmem:[%s27285_s0 + $0xe0] sm:$0xff]   ;;  %v19446_v20 = vld [vmem:[%s27287_s2 + $0x1014] ss:$8 sps:$4 sm:$0xff]  }
 0x461   :  { %v5278_v28 = vpack.c.bf16 %v5243_v26, %v5239_v16  ;;  %v19440_v16 = vld [vmem:[%s27287_s2 + $0x1000] ss:$8 sps:$4 sm:$0xff]   ;;  %v19449_v26 = vld [vmem:[%s27287_s2 + $0x1024] ss:$8 sps:$4 sm:$0xff]  }
 0x465   :  { %v5247_v31 = vpop.f32.mrb[72].mxu1 }
 0x466   :  { %v5249_v38 = vpop.f32.mrb[73].mxu1 }
 0x467   :  { %v5251_v42 = vpop.f32.mrb[74].mxu1 }
 0x468   :  { %v5279_v41 = vpack.c.bf16 %v5251_v42, %v5247_v31  ;;  %v5253_v48 = vpop.f32.mrb[75].mxu1  ;;  %v19447_v31 = vld [vmem:[%s27287_s2 + $0x1020] ss:$8 sps:$4 sm:$0xff]   ;;  %v19450_v42 = vld [vmem:[%s27287_s2 + $0x1030] ss:$8 sps:$4 sm:$0xff]  }
 0x469   :  { %v5280_v7 = vpack.c.bf16 %v5253_v48, %v5249_v38  ;;  %v19452_v38 = vld [vmem:[%s27287_s2 + $0x1034] ss:$8 sps:$4 sm:$0xff]  }
 0x46a   :  { %v19481_v48 = vld [vmem:[%s27285_s0 + $0xf0] sm:$0xff]  }
 0x46d   :  { %v5257_v23 = vpop.f32.mrb[76].mxu1 }
 0x46e   :  { %v5259_v5 = vpop.f32.mrb[77].mxu1 }
 0x46f   :  { %v5261_v13 = vpop.f32.mrb[78].mxu1 }
 0x470   :  { %v5281_v36 = vpack.c.bf16 %v5261_v13, %v5257_v23  ;;  %v5263_v40 = vpop.f32.mrb[79].mxu1  ;;  %v19458_v23 = vld [vmem:[%s27287_s2 + $0x1054] ss:$8 sps:$4 sm:$0xff]   ;;  %v19461_v13 = vld [vmem:[%s27287_s2 + $0x1064] ss:$8 sps:$4 sm:$0xff]  }
 0x471   :  { %v5282_v44 = vpack.c.bf16 %v5263_v40, %v5259_v5  ;;  %v19456_v5 = vld [vmem:[%s27287_s2 + $0x1050] ss:$8 sps:$4 sm:$0xff]   ;;  %v19459_v40 = vld [vmem:[%s27287_s2 + $0x1060] ss:$8 sps:$4 sm:$0xff]  }
 0x4ff   :  { %v4558_v45 = vpop.f32.mrb[48].mxu0 }
 0x500   :  { %v4560_v46 = vpop.f32.mrb[49].mxu0 }
 0x501   :  { %v4562_v55 = vpop.f32.mrb[50].mxu0 }
 0x502   :  { %v4606_v60 = vpack.c.bf16 %v4562_v55, %v4558_v45  ;;  %v4564_v61 = vpop.f32.mrb[51].mxu0  ;;  %v19462_v45 = vld [vmem:[%s27287_s2 + $0x1070] ss:$8 sps:$4 sm:$0xff]   ;;  %v19465_v55 = vld [vmem:[%s27287_s2 + $0x1080] ss:$8 sps:$4 sm:$0xff]  }
 0x503   :  { %v4607_v4 = vpack.c.bf16 %v4564_v61, %v4560_v46  ;;  %v19467_v46 = vld [vmem:[%s27287_s2 + $0x1084] ss:$8 sps:$4 sm:$0xff]  }
 0x504   :  { %v19473_v61 = vld [vmem:[%s27287_s2 + $0x10a4] ss:$8 sps:$4 sm:$0xff]  }
 0x505   :  { %4646 = vmatprep.subr.bf16.mxu0 %v4607_v4  ;;  %v19471_v4 = vld [vmem:[%s27287_s2 + $0x10a0] ss:$8 sps:$4 sm:$0xff]  }
 0x506   :  { %4647 = vmatpush1.bf16.msra.mxu0 %v4606_v60  ;;  %v19470_v60 = vld [vmem:[%s27287_s2 + $0x1094] ss:$8 sps:$4 sm:$0xff]  }
 0x507   :  { %v4568_v12 = vpop.f32.mrb[52].mxu0 }
 0x508   :  { %v4570_v17 = vpop.f32.mrb[53].mxu0 }
 0x509   :  { %v4572_v21 = vpop.f32.mrb[54].mxu0 }
 0x50a   :  { %v4608_v24 = vpack.c.bf16 %v4572_v21, %v4568_v12  ;;  %v4574_v29 = vpop.f32.mrb[55].mxu0  ;;  %v19477_v12 = vld [vmem:[%s27287_s2 + $0x10b4] ss:$8 sps:$4 sm:$0xff]   ;;  %v19480_v21 = vld [vmem:[%s27287_s2 + $0x10c4] ss:$8 sps:$4 sm:$0xff]  }
 0x50b   :  { %v4609_v34 = vpack.c.bf16 %v4574_v29, %v4570_v17  ;;  %v19475_v17 = vld [vmem:[%s27287_s2 + $0x10b0] ss:$8 sps:$4 sm:$0xff]   ;;  %v19484_v29 = vld [vmem:[%s27287_s2 + $0x10d4] ss:$8 sps:$4 sm:$0xff]  }
 0x50d   :  { %4648 = vmatprep.subr.bf16.mxu0 %v4609_v34  ;;  %v19482_v34 = vld [vmem:[%s27287_s2 + $0x10d0] ss:$8 sps:$4 sm:$0xff]  }
 0x50e   :  { %4649 = vmatpush1.bf16.msra.mxu0 %v4608_v24  ;;  %v19478_v24 = vld [vmem:[%s27287_s2 + $0x10c0] ss:$8 sps:$4 sm:$0xff]  }
 0x50f   :  { %v4578_v58 = vpop.f32.mrb[56].mxu0 }
 0x510   :  { %v4580_v43 = vpop.f32.mrb[57].mxu0 }
 0x511   :  { %v4582_v25 = vpop.f32.mrb[58].mxu0 }
 0x512   :  { %v4610_v30 = vpack.c.bf16 %v4582_v25, %v4578_v58  ;;  %v4584_v19 = vpop.f32.mrb[59].mxu0  ;;  %v19487_v58 = vld [vmem:[%s27287_s2 + $0x10e4] ss:$8 sps:$4 sm:$0xff]   ;;  %v19491_v25 = vld [vmem:[%s27287_s2 + $0x10f4] ss:$8 sps:$4 sm:$0xff]  }
 0x513   :  { %v4611_v52 = vpack.c.bf16 %v4584_v19, %v4580_v43  ;;  %v19485_v43 = vld [vmem:[%s27287_s2 + $0x10e0] ss:$8 sps:$4 sm:$0xff]   ;;  %v19494_v19 = vld [vmem:[%s27287_s2 + $0x1104] ss:$8 sps:$4 sm:$0xff]  }
 0x515   :  { %4650 = vmatprep.subr.bf16.mxu0 %v4611_v52  ;;  %v19492_v52 = vld [vmem:[%s27287_s2 + $0x1100] ss:$8 sps:$4 sm:$0xff]  }
 0x516   :  { %4651 = vmatpush1.bf16.msra.mxu0 %v4610_v30  ;;  %v19489_v30 = vld [vmem:[%s27287_s2 + $0x10f0] ss:$8 sps:$4 sm:$0xff]  }
 0x517   :  { %v4588_v57 = vpop.f32.mrb[60].mxu0 }
 0x518   :  { %v4590_v49 = vpop.f32.mrb[61].mxu0 }
 0x519   :  { %v4592_v53 = vpop.f32.mrb[62].mxu0 }
 0x51a   :  { %v4612_v56 = vpack.c.bf16 %v4592_v53, %v4588_v57  ;;  %v4594_v59 = vpop.f32.mrb[63].mxu0  ;;  %v19497_v57 = vld [vmem:[%s27287_s2 + $0x1114] ss:$8 sps:$4 sm:$0xff]   ;;  %v19500_v53 = vld [vmem:[%s27287_s2 + $0x1124] ss:$8 sps:$4 sm:$0xff]  }
 0x51b   :  { %v4613_v0 = vpack.c.bf16 %v4594_v59, %v4590_v49  ;;  %v19495_v49 = vld [vmem:[%s27287_s2 + $0x1110] ss:$8 sps:$4 sm:$0xff]   ;;  %v19506_v59 = vld [vmem:[%s27287_s2 + $0x1144] ss:$8 sps:$4 sm:$0xff]  }
 0x51d   :  { %4652 = vmatprep.subr.bf16.mxu0 %v4613_v0  ;;  %v19504_v0 = vld [vmem:[%s27287_s2 + $0x1140] ss:$8 sps:$4 sm:$0xff]  }
 0x51e   :  { %4653 = vmatpush1.bf16.msra.mxu0 %v4612_v56  ;;  %v19498_v56 = vld [vmem:[%s27287_s2 + $0x1120] ss:$8 sps:$4 sm:$0xff]  }
 0x51f   :  { %5315 = vmatprep.subr.bf16.mxu0 %v5276_v14  ;;  %v19439_v14 = vld [vmem:[%s27285_s0 + $0xd8] sm:$0xff]  }
 0x521   :  { %14905 = vmatmul.mubr.msk.bf16.vlgmr.msra.gmra.mrb[16].mxu0 %vm1199_vm0, %v19436_v62  ;;  %v19512_v62 = vld [vmem:[%s27287_s2 + $0x1164] ss:$8 sps:$4 sm:$0xff]  }
 0x522   :  { %5316 = vmatpush1.bf16.msra.mxu0 %v5275_v6  ;;  %4688 = vmatprep.mubr.bf16.mxu0 %v19831_v10  ;;  %v19438_v6 = vld [vmem:[%s27285_s0 + $0xd0] sm:$0xff]  }
 0x523   :  { %5317 = vmatprep.subr.bf16.mxu0 %v5278_v28  ;;  %v19474_v28 = vld [vmem:[%s27285_s0 + $0xe8] sm:$0xff]  }
 0x526   :  { %5318 = vmatpush1.bf16.msra.mxu0 %v5277_v27  ;;  %v19444_v27 = vld [vmem:[%s27287_s2 + $0x1010] ss:$8 sps:$4 sm:$0xff]  }
 0x527   :  { %5319 = vmatprep.subr.bf16.mxu0 %v5280_v7  ;;  %v19453_v7 = vld [vmem:[%s27287_s2 + $0x1040] ss:$8 sps:$4 sm:$0xff]  }
 0x529   :  { %14906 = vmatmul.mubr.msk.bf16.gmra.mrb[20].mxu0 %vm1199_vm0, %v19437_v2  ;;  %v19510_v2 = vld [vmem:[%s27287_s2 + $0x1160] ss:$8 sps:$4 sm:$0xff]  }
 0x52a   :  { %5320 = vmatpush1.bf16.msra.mxu0 %v5279_v41  ;;  %4698 = vmatprep.mubr.bf16.mxu0 %v19831_v10  ;;  %v19455_v41 = vld [vmem:[%s27287_s2 + $0x1044] ss:$8 sps:$4 sm:$0xff]  }
 0x52b   :  { %5321 = vmatprep.subr.bf16.mxu0 %v5282_v44  ;;  %v19464_v44 = vld [vmem:[%s27287_s2 + $0x1074] ss:$8 sps:$4 sm:$0xff]  }
 0x52e   :  { %5322 = vmatpush1.bf16.msra.mxu0 %v5281_v36  ;;  %v19488_v36 = vld [vmem:[%s27285_s0 + $0xf8] sm:$0xff]  }
 0x52f   :  { %5789 = vmatprep.subr.bf16.mxu0 %v19442_v11  ;;  %v19518_v11 = vld [vmem:[%s27287_s2 + $0x1184] ss:$8 sps:$4 sm:$0xff]  }
 0x531   :  { %14907 = vmatmul.mubr.msk.bf16.gmra.mrb[24].mxu0 %vm1199_vm0, %v19438_v6  ;;  %v19516_v6 = vld [vmem:[%s27287_s2 + $0x1180] ss:$8 sps:$4 sm:$0xff]  }
 0x532   :  { %4708 = vmatprep.mubr.bf16.mxu0 %v19831_v10 }
 0x539   :  { %14908 = vmatmul.mubr.msk.bf16.gmra.mrb[28].mxu0 %vm1199_vm0, %v19439_v14  ;;  %v19524_v14 = vld [vmem:[%s27287_s2 + $0x11a4] ss:$8 sps:$4 sm:$0xff]  }
 0x53a   :  { %5347 = vmatprep.mubr.bf16.mxu0 %v19831_v10 }
 0x541   :  { %15049 = vmatmul.mubr.msk.bf16.vlgmr.msra.gmra.mrb[16].mxu0 %vm1199_vm0, %v19443_v15  ;;  %v19522_v15 = vld [vmem:[%s27287_s2 + $0x11a0] ss:$8 sps:$4 sm:$0xff]  }
 0x542   :  { %5790 = vmatpush1.bf16.msra.mxu0 %v19440_v16  ;;  %5357 = vmatprep.mubr.bf16.mxu0 %v19831_v10  ;;  %v19527_v16 = vld [vmem:[%s27287_s2 + $0x11b4] ss:$8 sps:$4 sm:$0xff]  }
 0x543   :  { %5791 = vmatprep.subr.bf16.mxu0 %v19446_v20  ;;  %v19525_v20 = vld [vmem:[%s27287_s2 + $0x11b0] ss:$8 sps:$4 sm:$0xff]  }
 0x546   :  { %5792 = vmatpush1.bf16.msra.mxu0 %v19444_v27  ;;  %v19530_v27 = vld [vmem:[%s27287_s2 + $0x11c4] ss:$8 sps:$4 sm:$0xff]  }
 0x547   :  { %5793 = vmatprep.subr.bf16.mxu0 %v19449_v26  ;;  %v19528_v26 = vld [vmem:[%s27287_s2 + $0x11c0] ss:$8 sps:$4 sm:$0xff]  }
 0x549   :  { %15050 = vmatmul.mubr.msk.bf16.gmra.mrb[20].mxu0 %vm1199_vm0, %v19474_v28  ;;  %v19533_v28 = vld [vmem:[%s27287_s2 + $0x11d4] ss:$8 sps:$4 sm:$0xff]  }
 0x54a   :  { %5794 = vmatpush1.bf16.msra.mxu0 %v19447_v31  ;;  %5367 = vmatprep.mubr.bf16.mxu0 %v19831_v10  ;;  %v19531_v31 = vld [vmem:[%s27287_s2 + $0x11d0] ss:$8 sps:$4 sm:$0xff]  }
 0x54b   :  { %5795 = vmatprep.subr.bf16.mxu0 %v19452_v38  ;;  %v19536_v38 = vld [vmem:[%s27287_s2 + $0x11e4] ss:$8 sps:$4 sm:$0xff]  }
 0x54e   :  { %5796 = vmatpush1.bf16.msra.mxu0 %v19450_v42  ;;  %v19534_v42 = vld [vmem:[%s27287_s2 + $0x11e0] ss:$8 sps:$4 sm:$0xff]  }
 0x54f   :  { %5797 = vmatprep.subr.bf16.mxu0 %v19455_v41  ;;  %v19539_v41 = vld [vmem:[%s27287_s2 + $0x11f4] ss:$8 sps:$4 sm:$0xff]  }
 0x551   :  { %15051 = vmatmul.mubr.msk.bf16.gmra.mrb[24].mxu0 %vm1199_vm0, %v19481_v48  ;;  %v19537_v48 = vld [vmem:[%s27287_s2 + $0x11f0] ss:$8 sps:$4 sm:$0xff]  }
 0x552   :  { %5798 = vmatpush1.bf16.msra.mxu0 %v19453_v7  ;;  %5377 = vmatprep.mubr.bf16.mxu0 %v19831_v10  ;;  %v19544_v7 = vld [vmem:[%s27289_s4 + $0x40] sm:$0xff]  }
 0x553   :  { %5799 = vmatprep.subr.bf16.mxu0 %v19458_v23  ;;  %15999 = vmatprep.subr.bf16.mxu1 %v19544_v7  ;;  %v19560_v23 = vld [vmem:[%s27289_s4 + $0x60] sm:$0xff]  }
 0x556   :  { %5800 = vmatpush1.bf16.msra.mxu0 %v19456_v5  ;;  %v19562_v5 = vld [vmem:[%s27289_s4 + $0x20] sm:$0xff]  }
 0x557   :  { %5801 = vmatprep.subr.bf16.mxu0 %v19461_v13  ;;  %v19564_v13 = vld [vmem:[%s27289_s4 + $0x68] sm:$0xff]  }
 0x559   :  { %15052 = vmatmul.mubr.msk.bf16.gmra.mrb[28].mxu0 %vm1199_vm0, %v19488_v36 }
 0x55a   :  { %5802 = vmatpush1.bf16.msra.mxu0 %v19459_v40  ;;  %5821 = vmatprep.mubr.bf16.mxu0 %v19996_v35  ;;  %v19468_v35 = vld [vmem:[%s27287_s2 + $0x1090] ss:$8 sps:$4 sm:$0xff]  }
 0x55b   :  { %5803 = vmatprep.subr.bf16.mxu0 %v19464_v44 }
 0x55e   :  { %5804 = vmatpush1.bf16.msra.mxu0 %v19462_v45 }
 0x55f   :  { %5805 = vmatprep.subr.bf16.mxu0 %v19467_v46 }
 0x562   :  { %5806 = vmatpush1.bf16.msra.mxu0 %v19465_v55 }
 0x563   :  { %5807 = vmatprep.subr.bf16.mxu0 %v19470_v60 }
 0x566   :  { %5808 = vmatpush1.bf16.msra.mxu0 %v19468_v35 }
 0x567   :  { %5809 = vmatprep.subr.bf16.mxu0 %v19473_v61 }
 0x56a   :  { %5810 = vmatpush1.bf16.msra.mxu0 %v19471_v4 }
 0x56b   :  { %5811 = vmatprep.subr.bf16.mxu0 %v19477_v12 }
 0x56e   :  { %5812 = vmatpush1.bf16.msra.mxu0 %v19475_v17 }
 0x56f   :  { %5813 = vmatprep.subr.bf16.mxu0 %v19480_v21 }
 0x572   :  { %5814 = vmatpush1.bf16.msra.mxu0 %v19478_v24 }
 0x573   :  { %5815 = vmatprep.subr.bf16.mxu0 %v19484_v29 }
 0x576   :  { %5816 = vmatpush1.bf16.msra.mxu0 %v19482_v34 }
 0x577   :  { %5817 = vmatprep.subr.bf16.mxu0 %v19487_v58 }
 0x57a   :  { %5818 = vmatpush1.bf16.msra.mxu0 %v19485_v43 }
 0x57b   :  { %5819 = vmatprep.subr.bf16.mxu0 %v19491_v25 }
 0x57e   :  { %5820 = vmatpush1.bf16.msra.mxu0 %v19489_v30 }
 0x57f   :  { %5862 = vmatprep.subr.bf16.mxu0 %v19494_v19 }
 0x581   :  { %5822 = vmatmul.mubr.bf16.vlgmr.msra.gmra.mrb[64].mxu0 %v20093_v3  ;;  %v19503_v3 = vld [vmem:[%s27287_s2 + $0x1134] ss:$8 sps:$4 sm:$0xff]  }
 0x582   :  { %5863 = vmatpush1.bf16.msra.mxu0 %v19492_v52  ;;  %5831 = vmatprep.mubr.bf16.mxu0 %v20107_v8  ;;  %v19501_v8 = vld [vmem:[%s27287_s2 + $0x1130] ss:$8 sps:$4 sm:$0xff]  }
 0x583   :  { %5864 = vmatprep.subr.bf16.mxu0 %v19497_v57 }
 0x586   :  { %5865 = vmatpush1.bf16.msra.mxu0 %v19495_v49 }
 0x587   :  { %5866 = vmatprep.subr.bf16.mxu0 %v19500_v53  ;;  %v19545_v53 = vld [vmem:[%s27289_s4 + $0x1c0] sm:$0xff]  }
 0x589   :  { %5832 = vmatmul.mubr.bf16.gmra.mrb[68].mxu0 %v20138_v18  ;;  %v19509_v18 = vld [vmem:[%s27287_s2 + $0x1154] ss:$8 sps:$4 sm:$0xff]  }
 0x58a   :  { %5867 = vmatpush1.bf16.msra.mxu0 %v19498_v56  ;;  %5841 = vmatprep.mubr.bf16.mxu0 %v20149_v22  ;;  %v19507_v22 = vld [vmem:[%s27287_s2 + $0x1150] ss:$8 sps:$4 sm:$0xff]   ;;  %v19540_v56 = vld [vmem:[%s27285_s0 + $0x100] sm:$0xff]  }
 0x58b   :  { %5868 = vmatprep.subr.bf16.mxu0 %v19503_v3  ;;  %v19547_v3 = vld [vmem:[%s27289_s4 + $0x180] sm:$0xff]  }
 0x58e   :  { %5869 = vmatpush1.bf16.msra.mxu0 %v19501_v8  ;;  %v19549_v8 = vld [vmem:[%s27289_s4 + $0x1c8] sm:$0xff]  }
 0x58f   :  { %5870 = vmatprep.subr.bf16.mxu0 %v19506_v59  ;;  %v19551_v59 = vld [vmem:[%s27289_s4 + $0x188] sm:$0xff]  }
 0x591   :  { %5842 = vmatmul.mubr.bf16.gmra.mrb[72].mxu0 %v20181_v32  ;;  %v19515_v32 = vld [vmem:[%s27287_s2 + $0x1174] ss:$8 sps:$4 sm:$0xff]  }
 0x592   :  { %5871 = vmatpush1.bf16.msra.mxu0 %v19504_v0  ;;  %5851 = vmatprep.mubr.bf16.mxu0 %v20193_v37  ;;  %v19513_v37 = vld [vmem:[%s27287_s2 + $0x1170] ss:$8 sps:$4 sm:$0xff]  }
 0x593   :  { %5872 = vmatprep.subr.bf16.mxu0 %v19509_v18  ;;  %v19553_v0 = vld [vmem:[%s27289_s4 + $0x1d0] sm:$0xff]   ;;  %v19541_v18 = vld [vmem:[%s27285_s0 + $0x108] sm:$0xff]  }
 0x596   :  { %5873 = vmatpush1.bf16.msra.mxu0 %v19507_v22  ;;  %v19555_v22 = vld [vmem:[%s27289_s4 + $0x190] sm:$0xff]  }
 0x597   :  { %5874 = vmatprep.subr.bf16.mxu0 %v19512_v62  ;;  %v19557_v62 = vld [vmem:[%s27289_s4 + $0x1d8] sm:$0xff]  }
 0x599   :  { %5852 = vmatmul.mubr.bf16.gmra.mrb[76].mxu0 %v20225_v47  ;;  %v19521_v47 = vld [vmem:[%s27287_s2 + $0x1194] ss:$8 sps:$4 sm:$0xff]  }
 0x59a   :  { %5875 = vmatpush1.bf16.msra.mxu0 %v19510_v2  ;;  %5894 = vmatprep.mubr.bf16.mxu0 %v20237_v51  ;;  %v19519_v51 = vld [vmem:[%s27287_s2 + $0x1190] ss:$8 sps:$4 sm:$0xff]  }
 0x59b   :  { %5876 = vmatprep.subr.bf16.mxu0 %v19515_v32  ;;  %v19559_v2 = vld [vmem:[%s27289_s4 + $0x198] sm:$0xff]   ;;  %v19561_v32 = vld [vmem:[%s27289_s4 + $0x1e0] sm:$0xff]  }
 0x59e   :  { %5877 = vmatpush1.bf16.msra.mxu0 %v19513_v37  ;;  %v19542_v37 = vld [vmem:[%s27285_s0 + $0x110] sm:$0xff]  }
 0x59f   :  { %5878 = vmatprep.subr.bf16.mxu0 %v19518_v11  ;;  %v19563_v11 = vld [vmem:[%s27289_s4 + $0x1a0] sm:$0xff]  }
 0x5a2   :  { %5879 = vmatpush1.bf16.msra.mxu0 %v19516_v6  ;;  %v19565_v6 = vld [vmem:[%s27289_s4 + $0x1e8] sm:$0xff]  }
 0x5a3   :  { %5880 = vmatprep.subr.bf16.mxu0 %v19521_v47  ;;  %v19543_v47 = vld [vmem:[%s27285_s0 + $0x118] sm:$0xff]  }
 0x5a6   :  { %5881 = vmatpush1.bf16.msra.mxu0 %v19519_v51  ;;  %v19566_v51 = vld [vmem:[%s27289_s4 + $0x28] sm:$0xff]  }
 0x5a7   :  { %5882 = vmatprep.subr.bf16.mxu0 %v19524_v14  ;;  %v19567_v14 = vld [vmem:[%s27289_s4 + $0x1a8] sm:$0xff]  }
 0x5aa   :  { %5883 = vmatpush1.bf16.msra.mxu0 %v19522_v15  ;;  %v19569_v15 = vld [vmem:[%s27289_s4 + $0x1f0] sm:$0xff]  }
 0x5ab   :  { %5884 = vmatprep.subr.bf16.mxu0 %v19527_v16  ;;  %v19570_v16 = vld [vmem:[%s27289_s4 + $0x30] sm:$0xff]  }
 0x5ae   :  { %5885 = vmatpush1.bf16.msra.mxu0 %v19525_v20  ;;  %v19571_v20 = vld [vmem:[%s27289_s4 + $0x1b0] sm:$0xff]  }
 0x5af   :  { %5886 = vmatprep.subr.bf16.mxu0 %v19530_v27  ;;  %v19572_v27 = vld [vmem:[%s27289_s4 + $0x78] sm:$0xff]  }
 0x5b2   :  { %5887 = vmatpush1.bf16.msra.mxu0 %v19528_v26  ;;  %v19573_v26 = vld [vmem:[%s27289_s4 + $0x1f8] sm:$0xff]  }
 0x5b3   :  { %5888 = vmatprep.subr.bf16.mxu0 %v19533_v28  ;;  %v19574_v28 = vld [vmem:[%s27289_s4 + $0x38] sm:$0xff]  }
 0x5b6   :  { %5889 = vmatpush1.bf16.msra.mxu0 %v19531_v31  ;;  %v19575_v31 = vld [vmem:[%s27289_s4 + $0x1b8] sm:$0xff]  }
 0x5b7   :  { %5890 = vmatprep.subr.bf16.mxu0 %v19536_v38  ;;  %v19576_v38 = vld [vmem:[%s27289_s4 + $0xc0] sm:$0xff]  }
 0x5ba   :  { %5891 = vmatpush1.bf16.msra.mxu0 %v19534_v42  ;;  %v19577_v42 = vld [vmem:[%s27289_s4 + $0x240] sm:$0xff]  }
 0x5bb   :  { %5892 = vmatprep.subr.bf16.mxu0 %v19539_v41  ;;  %v6075_v41 = vlaneseq }
 0x5be   :  { %5893 = vmatpush1.bf16.msra.mxu0 %v19537_v48  ;;  %v22321_v48 = vshrl.u32 %v6075_v41, 7 }
 0x5c0   :  { %27315 = vst [vmem:[#allocation5_spill] sm:$0xff] %v22321_v48  ;;  %v27297_v7 = vsub.s32 0, %v22321_v48 }
 0x5c1   :  { %5895 = vmatmul.mubr.bf16.vlgmr.msra.gmra.mrb[64].mxu0 %v20365_v33  ;;  %v19546_v33 = vld [vmem:[%s27289_s4] sm:$0xff]  }
 0x5c2   :  { %5904 = vmatprep.mubr.bf16.mxu0 %v20376_v39  ;;  %v19548_v39 = vld [vmem:[%s27289_s4 + $0x48] sm:$0xff]   ;;  %16000 = vmatpush3.bf16.msra.mxu1 %v19546_v33  ;;  %v6073_v33 = vld [vmem:[%s27288_s3] sm:$0x3] }
 0x5c3   :  { %16001 = vmatprep.subr.bf16.mxu1 %v19548_v39  ;;  %v27296_v39 = vsub.s32 1, %v22321_v48 }
 0x5c9   :  { %5905 = vmatmul.mubr.bf16.gmra.mrb[68].mxu0 %v20407_v50  ;;  %v19550_v50 = vld [vmem:[%s27289_s4 + $0x8] sm:$0xff]  }
 0x5ca   :  { %5914 = vmatprep.mubr.bf16.mxu0 %v20415_v54  ;;  %v19552_v54 = vld [vmem:[%s27289_s4 + $0x50] sm:$0xff]   ;;  %16002 = vmatpush3.bf16.msra.mxu1 %v19550_v50  ;;  %v22330_v50 = vrot.slane %v6073_v33, %v27297_v7 }
 0x5cb   :  { %16003 = vmatprep.subr.bf16.mxu1 %v19552_v54  ;;  %v22334_v54 = vrot.slane %v6073_v33, %v27296_v39 }
 0x5d1   :  { %5915 = vmatmul.mubr.bf16.gmra.mrb[72].mxu0 %v20444_v63  ;;  %v19554_v63 = vld [vmem:[%s27289_s4 + $0x10] sm:$0xff]  }
 0x5d2   :  { %5924 = vmatprep.mubr.bf16.mxu0 %v20450_v1  ;;  %v19556_v1 = vld [vmem:[%s27289_s4 + $0x58] sm:$0xff]   ;;  %16004 = vmatpush3.bf16.msra.mxu1 %v19554_v63 }
 0x5d3   :  { %16005 = vmatprep.subr.bf16.mxu1 %v19556_v1 }
 0x5d9   :  { %5925 = vmatmul.mubr.bf16.gmra.mrb[76].mxu0 %v20470_v9  ;;  %v19558_v9 = vld [vmem:[%s27289_s4 + $0x18] sm:$0xff]  }
 0x5da   :  { %6016 = vmatprep.mubr.bf16.mxu0 %v19831_v10  ;;  %16006 = vmatpush3.bf16.msra.mxu1 %v19558_v9 }
 0x5db   :  { %16007 = vmatprep.subr.bf16.mxu1 %v19560_v23 }
 0x5de   :  { %16008 = vmatpush3.bf16.msra.mxu1 %v19562_v5 }
 0x5df   :  { %16009 = vmatprep.subr.bf16.mxu1 %v19564_v13 }
 0x5e2   :  { %16010 = vmatpush3.bf16.msra.mxu1 %v19566_v51 }
 0x694   :  { %v5896_v36 = vpop.f32.mrb[64].mxu0 }
 0x695   :  { %v5898_v40 = vpop.f32.mrb[65].mxu0 }
 0x696   :  { %v5900_v44 = vpop.f32.mrb[66].mxu0 }
 0x697   :  { %v5944_v45 = vpack.c.bf16 %v5900_v44, %v5896_v36  ;;  %v5902_v46 = vpop.f32.mrb[67].mxu0 }
 0x698   :  { %v5945_v55 = vpack.c.bf16 %v5902_v46, %v5898_v40 }
 0x69a   :  { %5984 = vmatprep.subr.bf16.mxu0 %v5945_v55 }
 0x69b   :  { %5985 = vmatpush1.bf16.msra.mxu0 %v5944_v45 }
 0x69c   :  { %v5906_v60 = vpop.f32.mrb[68].mxu0 }
 0x69d   :  { %v5908_v35 = vpop.f32.mrb[69].mxu0 }
 0x69e   :  { %v5910_v61 = vpop.f32.mrb[70].mxu0 }
 0x69f   :  { %v5946_v4 = vpack.c.bf16 %v5910_v61, %v5906_v60  ;;  %v5912_v12 = vpop.f32.mrb[71].mxu0 }
 0x6a0   :  { %v5947_v17 = vpack.c.bf16 %v5912_v12, %v5908_v35  ;;  %v19579_v12 = vld [vmem:[%s27289_s4 + $0x200] sm:$0xff]  }
 0x6a2   :  { %5986 = vmatprep.subr.bf16.mxu0 %v5947_v17 }
 0x6a3   :  { %5987 = vmatpush1.bf16.msra.mxu0 %v5946_v4  ;;  %v19578_v4 = vld [vmem:[%s27289_s4 + $0x80] sm:$0xff]  }
 0x6a4   :  { %v5916_v21 = vpop.f32.mrb[72].mxu0 }
 0x6a5   :  { %v5918_v24 = vpop.f32.mrb[73].mxu0 }
 0x6a6   :  { %v5920_v29 = vpop.f32.mrb[74].mxu0 }
 0x6a7   :  { %v5948_v34 = vpack.c.bf16 %v5920_v29, %v5916_v21  ;;  %v5922_v58 = vpop.f32.mrb[75].mxu0  ;;  %v19581_v29 = vld [vmem:[%s27289_s4 + $0x248] sm:$0xff]  }
 0x6a8   :  { %v5949_v43 = vpack.c.bf16 %v5922_v58, %v5918_v24  ;;  %v19580_v24 = vld [vmem:[%s27289_s4 + $0xc8] sm:$0xff]  }
 0x6aa   :  { %5988 = vmatprep.subr.bf16.mxu0 %v5949_v43 }
 0x6ab   :  { %5989 = vmatpush1.bf16.msra.mxu0 %v5948_v34 }
 0x6ac   :  { %v5926_v25 = vpop.f32.mrb[76].mxu0 }
 0x6ad   :  { %v5928_v30 = vpop.f32.mrb[77].mxu0 }
 0x6ae   :  { %v5930_v19 = vpop.f32.mrb[78].mxu0 }
 0x6af   :  { %v5950_v52 = vpack.c.bf16 %v5930_v19, %v5926_v25  ;;  %v5932_v57 = vpop.f32.mrb[79].mxu0  ;;  %v19582_v19 = vld [vmem:[%s27289_s4 + $0x88] sm:$0xff]  }
 0x6b0   :  { %v5951_v49 = vpack.c.bf16 %v5932_v57, %v5928_v30 }
 0x6b2   :  { %5990 = vmatprep.subr.bf16.mxu0 %v5951_v49 }
 0x6b3   :  { %5991 = vmatpush1.bf16.msra.mxu0 %v5950_v52  ;;  %v19583_v52 = vld [vmem:[%s27289_s4 + $0x208] sm:$0xff]  }
 0x6b4   :  { %16143 = vmatprep.subr.bf16.mxu0 %v19545_v53  ;;  %v19584_v53 = vld [vmem:[%s27289_s4 + $0xd0] sm:$0xff]  }
 0x6b6   :  { %15193 = vmatmul.mubr.msk.bf16.vlgmr.msra.gmra.mrb[16].mxu0 %vm1199_vm0, %v19540_v56  ;;  %v19585_v56 = vld [vmem:[%s27289_s4 + $0x250] sm:$0xff]  }
 0x6b7   :  { %6026 = vmatprep.mubr.bf16.mxu0 %v19831_v10  ;;  %16144 = vmatpush3.bf16.msra.mxu0 %v19547_v3 }
 0x6b8   :  { %16145 = vmatprep.subr.bf16.mxu0 %v19549_v8 }
 0x6bb   :  { %16146 = vmatpush3.bf16.msra.mxu0 %v19551_v59 }
 0x6bc   :  { %16147 = vmatprep.subr.bf16.mxu0 %v19553_v0 }
 0x6be   :  { %15194 = vmatmul.mubr.msk.bf16.gmra.mrb[20].mxu0 %vm1199_vm0, %v19541_v18 }
 0x6bf   :  { %6036 = vmatprep.mubr.bf16.mxu0 %v19831_v10  ;;  %16148 = vmatpush3.bf16.msra.mxu0 %v19555_v22  ;;  %v19586_v22 = vld [vmem:[%s27289_s4 + $0x90] sm:$0xff]  }
 0x6c0   :  { %16149 = vmatprep.subr.bf16.mxu0 %v19557_v62  ;;  %v19587_v62 = vld [vmem:[%s27289_s4 + $0x210] sm:$0xff]  }
 0x6c3   :  { %16150 = vmatpush3.bf16.msra.mxu0 %v19559_v2 }
 0x6c4   :  { %16151 = vmatprep.subr.bf16.mxu0 %v19561_v32 }
 0x6c6   :  { %15195 = vmatmul.mubr.msk.bf16.gmra.mrb[24].mxu0 %vm1199_vm0, %v19542_v37  ;;  %v19588_v37 = vld [vmem:[%s27289_s4 + $0xd8] sm:$0xff]  }
 0x6c7   :  { %6046 = vmatprep.mubr.bf16.mxu0 %v19831_v10  ;;  %16152 = vmatpush3.bf16.msra.mxu0 %v19563_v11  ;;  %v19568_v10 = vld [vmem:[%s27289_s4 + $0x70] sm:$0xff]   ;;  %v19589_v11 = vld [vmem:[%s27289_s4 + $0x258] sm:$0xff]  }
 0x6c8   :  { %16153 = vmatprep.subr.bf16.mxu0 %v19565_v6  ;;  %16011 = vmatprep.subr.bf16.mxu1 %v19568_v10 }
 0x6c9   :  { %16012 = vmatpush3.bf16.msra.mxu1 %v19570_v16  ;;  %v19591_v16 = vld [vmem:[%s27289_s4 + $0x218] sm:$0xff]  }
 0x6ca   :  { %16013 = vmatprep.subr.bf16.mxu1 %v19572_v27 }
 0x6cb   :  { %16154 = vmatpush3.bf16.msra.mxu0 %v19567_v14 }
 0x6cc   :  { %16155 = vmatprep.subr.bf16.mxu0 %v19569_v15  ;;  %v19590_v15 = vld [vmem:[%s27289_s4 + $0x98] sm:$0xff]  }
 0x6cd   :  { %16014 = vmatpush3.bf16.msra.mxu1 %v19574_v28  ;;  %v19593_v28 = vld [vmem:[%s27289_s4 + $0x260] sm:$0xff]  }
 0x6ce   :  { %15196 = vmatmul.mubr.msk.bf16.gmra.mrb[28].mxu0 %vm1199_vm0, %v19543_v47  ;;  %16039 = vmatprep.subr.bf16.mxu1 %v19576_v38 }
 0x6cf   :  { %16156 = vmatpush3.bf16.msra.mxu0 %v19571_v20 }
 0x6d0   :  { %16157 = vmatprep.subr.bf16.mxu0 %v19573_v26  ;;  %v19592_v26 = vld [vmem:[%s27289_s4 + $0xe0] sm:$0xff]  }
 0x6d3   :  { %16158 = vmatpush3.bf16.msra.mxu0 %v19575_v31 }
 0x6d4   :  { %16191 = vmatprep.subr.bf16.mxu0 %v19577_v42 }
 0x789   :  { %v6018_v63 = vpop.f32.mrb[16].mxu0 }
 0x78a   :  { %v6085_v1 = vadd.f32 %v22330_v50, %v6018_v63  ;;  %v6020_v9 = vpop.f32.mrb[17].mxu0 }
 0x78b   :  { %v6086_v23 = vadd.f32 %v22334_v54, %v6020_v9  ;;  %v6022_v5 = vpop.f32.mrb[18].mxu0  ;;  %v19595_v9 = vld [vmem:[%s27289_s4 + $0x220] sm:$0xff]  }
 0x78c   :  { %v6087_v13 = vadd.f32 %v22330_v50, %v6022_v5  ;;  %v6024_v36 = vpop.f32.mrb[19].mxu0  ;;  %v6101_v44 = vmax.f32 %v6085_v1, 0.0  ;;  %v19594_v1 = vld [vmem:[%s27289_s4 + $0xa0] sm:$0xff]  }
 0x78d   :  { %v6088_v40 = vadd.f32 %v22334_v54, %v6024_v36  ;;  %v6102_v46 = vmax.f32 %v6086_v23, 0.0  ;;  %v19597_v36 = vld [vmem:[%s27289_s4 + $0x268] sm:$0xff]  }
 0x78e   :  { %v6103_v45 = vmax.f32 %v6087_v13, 0.0  ;;  %v19596_v13 = vld [vmem:[%s27289_s4 + $0xe8] sm:$0xff]  }
 0x78f   :  { %v6104_v55 = vmax.f32 %v6088_v40, 0.0 }
 0x790   :  { %v22340_v60 = vpack.c.bf16 %v6103_v45, %v6101_v44 }
 0x791   :  { %v22342_v35 = vpack.c.bf16 %v6104_v55, %v6102_v46  ;;  %v6028_v61 = vpop.f32.mrb[20].mxu0 }
 0x792   :  { %v6089_v17 = vadd.f32 %v22330_v50, %v6028_v61  ;;  %v6030_v21 = vpop.f32.mrb[21].mxu0  ;;  %v19598_v61 = vld [vmem:[%s27289_s4 + $0xa8] sm:$0xff]  }
 0x793   :  { %v6090_v34 = vadd.f32 %v22334_v54, %v6030_v21  ;;  %v6032_v58 = vpop.f32.mrb[22].mxu0  ;;  %6285 = vmatprep.mubr.bf16.mxu1 %v22342_v35  ;;  %7082 = vmatprep.mubr.bf16.mxu0 %v22342_v35 }
 0x794   :  { %v6091_v43 = vadd.f32 %v22330_v50, %v6032_v58  ;;  %v6034_v25 = vpop.f32.mrb[23].mxu0  ;;  %6286 = vmatmul.mubr.bf16.vlgmr.msra.gmra.mrb[80].mxu1 %v22340_v60  ;;  %7083 = vmatmul.mubr.bf16.vlgmr.msra.gmra.mrb[80].mxu0 %v22340_v60  ;;  %v6105_v57 = vmax.f32 %v6089_v17, 0.0  ;;  %v19602_v58 = vld [vmem:[%s27289_s4 + $0xb0] sm:$0xff]  }
 0x795   :  { %v6092_v30 = vadd.f32 %v22334_v54, %v6034_v25  ;;  %16040 = vmatpush3.bf16.msra.mxu1 %v19578_v4  ;;  %16192 = vmatpush3.bf16.msra.mxu0 %v19579_v12  ;;  %v6106_v3 = vmax.f32 %v6090_v34, 0.0  ;;  %v19599_v4 = vld [vmem:[%s27289_s4 + $0x228] sm:$0xff]   ;;  %v19604_v25 = vld [vmem:[%s27289_s4 + $0xf8] sm:$0xff]  }
 0x796   :  { %v6107_v49 = vmax.f32 %v6091_v43, 0.0  ;;  %16041 = vmatprep.subr.bf16.mxu1 %v19580_v24  ;;  %16193 = vmatprep.subr.bf16.mxu0 %v19581_v29  ;;  %v19603_v43 = vld [vmem:[%s27289_s4 + $0x230] sm:$0xff]  }
 0x797   :  { %v6108_v8 = vmax.f32 %v6092_v30, 0.0  ;;  %v19605_v30 = vld [vmem:[%s27289_s4 + $0x278] sm:$0xff]  }
 0x798   :  { %v22376_v59 = vpack.c.bf16 %v6107_v49, %v6105_v57  ;;  %v19608_v57 = vld [vmem:[%s27289_s4 + $0x340] sm:$0xff]  }
 0x799   :  { %v22378_v0 = vpack.c.bf16 %v6108_v8, %v6106_v3  ;;  %v6038_v18 = vpop.f32.mrb[24].mxu0  ;;  %16042 = vmatpush3.bf16.msra.mxu1 %v19582_v19  ;;  %16194 = vmatpush3.bf16.msra.mxu0 %v19583_v52  ;;  %v19606_v19 = vld [vmem:[%s27289_s4 + $0xb8] sm:$0xff]   ;;  %v19609_v49 = vld [vmem:[%s27289_s4 + $0x300] sm:$0xff]   ;;  %v19612_v3 = vld [vmem:[%s27289_s4 + $0x350] sm:$0xff]  }
 0x79a   :  { %v6093_v2 = vadd.f32 %v22330_v50, %v6038_v18  ;;  %v6040_v32 = vpop.f32.mrb[25].mxu0  ;;  %16043 = vmatprep.subr.bf16.mxu1 %v19584_v53  ;;  %16195 = vmatprep.subr.bf16.mxu0 %v19585_v56  ;;  %v19607_v52 = vld [vmem:[%s27289_s4 + $0x238] sm:$0xff]   ;;  %v19610_v53 = vld [vmem:[%s27289_s4 + $0x348] sm:$0xff]   ;;  %v19613_v8 = vld [vmem:[%s27289_s4 + $0x310] sm:$0xff]  }
 0x79b   :  { %v6094_v6 = vadd.f32 %v22334_v54, %v6040_v32  ;;  %v6042_v47 = vpop.f32.mrb[26].mxu0  ;;  %6293 = vmatprep.mubr.bf16.mxu1 %v22378_v0  ;;  %7090 = vmatprep.mubr.bf16.mxu0 %v22378_v0  ;;  %v19611_v56 = vld [vmem:[%s27289_s4 + $0x308] sm:$0xff]   ;;  %v19614_v18 = vld [vmem:[%s27289_s4 + $0x358] sm:$0xff]  }
 0x79c   :  { %v6095_v51 = vadd.f32 %v22330_v50, %v6042_v47  ;;  %v6044_v14 = vpop.f32.mrb[27].mxu0  ;;  %6294 = vmatmul.mubr.bf16.gmra.mrb[84].mxu1 %v22376_v59  ;;  %7091 = vmatmul.mubr.bf16.gmra.mrb[84].mxu0 %v22376_v59  ;;  %v6109_v20 = vmax.f32 %v6093_v2, 0.0  ;;  %v19617_v2 = vld [vmem:[%s27289_s4 + $0x320] sm:$0xff]   ;;  %v19618_v32 = vld [vmem:[%s27289_s4 + $0x368] sm:$0xff]   ;;  %v19622_v47 = vld [vmem:[%s27289_s4 + $0x378] sm:$0xff]  }
 0x79d   :  { %v6096_v10 = vadd.f32 %v22334_v54, %v6044_v14  ;;  %16044 = vmatpush3.bf16.msra.mxu1 %v19586_v22  ;;  %16196 = vmatpush3.bf16.msra.mxu0 %v19587_v62  ;;  %v6110_v31 = vmax.f32 %v6094_v6, 0.0  ;;  %v19615_v22 = vld [vmem:[%s27289_s4 + $0x318] sm:$0xff]   ;;  %v19616_v62 = vld [vmem:[%s27289_s4 + $0x360] sm:$0xff]   ;;  %v19621_v6 = vld [vmem:[%s27289_s4 + $0x330] sm:$0xff]  }
 0x79e   :  { %v6111_v27 = vmax.f32 %v6095_v51, 0.0  ;;  %16045 = vmatprep.subr.bf16.mxu1 %v19588_v37  ;;  %16197 = vmatprep.subr.bf16.mxu0 %v19589_v11  ;;  %v19619_v37 = vld [vmem:[%s27289_s4 + $0x328] sm:$0xff]   ;;  %v19620_v11 = vld [vmem:[%s27289_s4 + $0x370] sm:$0xff]   ;;  %v19760_v51 = vld [vmem:[%s27285_s0 + $0x20] sm:$0xff]  }
 0x79f   :  { %v6112_v38 = vmax.f32 %v6096_v10, 0.0  ;;  %v19623_v14 = vld [vmem:[%s27289_s4 + $0x338] sm:$0xff]   ;;  %v19624_v10 = vld [vmem:[%s27289_s4 + $0x3c0] sm:$0xff]  }
 0x7a0   :  { %v22412_v42 = vpack.c.bf16 %v6111_v27, %v6109_v20  ;;  %v19627_v20 = vld [vmem:[%s27289_s4 + $0x388] sm:$0xff]   ;;  %v19628_v27 = vld [vmem:[%s27289_s4 + $0x3d0] sm:$0xff]  }
 0x7a1   :  { %v22414_v33 = vpack.c.bf16 %v6112_v38, %v6110_v31  ;;  %v6048_v63 = vpop.f32.mrb[28].mxu0  ;;  %16046 = vmatpush3.bf16.msra.mxu1 %v19590_v15  ;;  %16198 = vmatpush3.bf16.msra.mxu0 %v19591_v16  ;;  %v19625_v15 = vld [vmem:[%s27289_s4 + $0x380] sm:$0xff]   ;;  %v19626_v16 = vld [vmem:[%s27289_s4 + $0x3c8] sm:$0xff]   ;;  %v19631_v31 = vld [vmem:[%s27289_s4 + $0x398] sm:$0xff]  }
 0x7a2   :  { %v6097_v23 = vadd.f32 %v22330_v50, %v6048_v63  ;;  %v6050_v5 = vpop.f32.mrb[29].mxu0  ;;  %16047 = vmatprep.subr.bf16.mxu1 %v19592_v26  ;;  %16199 = vmatprep.subr.bf16.mxu0 %v19593_v28  ;;  %v19629_v26 = vld [vmem:[%s27289_s4 + $0x390] sm:$0xff]   ;;  %v19630_v28 = vld [vmem:[%s27289_s4 + $0x3d8] sm:$0xff]   ;;  %v19632_v38 = vld [vmem:[%s27289_s4 + $0x3e0] sm:$0xff]  }
 0x7a3   :  { %v6098_v40 = vadd.f32 %v22334_v54, %v6050_v5  ;;  %v6052_v44 = vpop.f32.mrb[30].mxu0  ;;  %6301 = vmatprep.mubr.bf16.mxu1 %v22414_v33  ;;  %7098 = vmatprep.mubr.bf16.mxu0 %v22414_v33  ;;  %v19633_v63 = vld [vmem:[%s27289_s4 + $0x3a0] sm:$0xff]   ;;  %v19637_v5 = vld [vmem:[%s27289_s4 + $0x3b0] sm:$0xff]  }
 0x7a4   :  { %v6099_v45 = vadd.f32 %v22330_v50, %v6052_v44  ;;  %v6054_v46 = vpop.f32.mrb[31].mxu0  ;;  %6302 = vmatmul.mubr.bf16.gmra.mrb[88].mxu1 %v22412_v42  ;;  %7099 = vmatmul.mubr.bf16.gmra.mrb[88].mxu0 %v22412_v42  ;;  %v6113_v12 = vmax.f32 %v6097_v23, 0.0  ;;  %v19600_v50 = vld [vmem:[%s27289_s4 + $0xf0] sm:$0xff]   ;;  %v19641_v44 = vld [vmem:[%s27289_s4 + $0x400] sm:$0xff]  }
 0x7a5   :  { %v6100_v55 = vadd.f32 %v22334_v54, %v6054_v46  ;;  %16048 = vmatpush3.bf16.msra.mxu1 %v19594_v1  ;;  %16200 = vmatpush3.bf16.msra.mxu0 %v19595_v9  ;;  %v19601_v54 = vld [vmem:[%s27289_s4 + $0x270] sm:$0xff]   ;;  %v6114_v21 = vmax.f32 %v6098_v40, 0.0  ;;  %v19634_v1 = vld [vmem:[%s27289_s4 + $0x3e8] sm:$0xff]   ;;  %v19640_v40 = vld [vmem:[%s27289_s4 + $0x440] sm:$0xff]  }
 0x7a6   :  { %v6115_v17 = vmax.f32 %v6099_v45, 0.0  ;;  %16049 = vmatprep.subr.bf16.mxu1 %v19596_v13  ;;  %16201 = vmatprep.subr.bf16.mxu0 %v19597_v36  ;;  %v19635_v9 = vld [vmem:[%s27289_s4 + $0x3a8] sm:$0xff]   ;;  %v19636_v23 = vld [vmem:[%s27289_s4 + $0x3f0] sm:$0xff]   ;;  %v19638_v13 = vld [vmem:[%s27289_s4 + $0x3f8] sm:$0xff]  }
 0x7a7   :  { %v6116_v24 = vmax.f32 %v6100_v55, 0.0  ;;  %v19639_v36 = vld [vmem:[%s27289_s4 + $0x3b8] sm:$0xff]   ;;  %v19642_v45 = vld [vmem:[%s27289_s4 + $0x448] sm:$0xff]   ;;  %v19644_v55 = vld [vmem:[%s27289_s4 + $0x450] sm:$0xff]  }
 0x7a8   :  { %v22448_v29 = vpack.c.bf16 %v6115_v17, %v6113_v12  ;;  %v19643_v46 = vld [vmem:[%s27289_s4 + $0x408] sm:$0xff]   ;;  %v19647_v12 = vld [vmem:[%s27289_s4 + $0x418] sm:$0xff]   ;;  %v19648_v17 = vld [vmem:[%s27289_s4 + $0x460] sm:$0xff]  }
 0x7a9   :  { %v22450_v34 = vpack.c.bf16 %v6116_v24, %v6114_v21  ;;  %16050 = vmatpush3.bf16.msra.mxu1 %v19598_v61  ;;  %16202 = vmatpush3.bf16.msra.mxu0 %v19599_v4  ;;  %v19645_v61 = vld [vmem:[%s27289_s4 + $0x410] sm:$0xff]   ;;  %v19646_v4 = vld [vmem:[%s27289_s4 + $0x458] sm:$0xff]   ;;  %v19651_v21 = vld [vmem:[%s27289_s4 + $0x428] sm:$0xff]  }
 0x7aa   :  { %16051 = vmatprep.subr.bf16.mxu1 %v19600_v50  ;;  %16203 = vmatprep.subr.bf16.mxu0 %v19601_v54  ;;  %v19649_v50 = vld [vmem:[%s27289_s4 + $0x420] sm:$0xff]   ;;  %v19650_v54 = vld [vmem:[%s27289_s4 + $0x468] sm:$0xff]   ;;  %v19652_v24 = vld [vmem:[%s27289_s4 + $0x470] sm:$0xff]  }
 0x7ab   :  { %6309 = vmatprep.mubr.bf16.mxu1 %v22450_v34  ;;  %7106 = vmatprep.mubr.bf16.mxu0 %v22450_v34 }
 0x7ac   :  { %6310 = vmatmul.mubr.bf16.gmra.mrb[92].mxu1 %v22448_v29  ;;  %7107 = vmatmul.mubr.bf16.gmra.mrb[92].mxu0 %v22448_v29 }
 0x7ad   :  { %16052 = vmatpush3.bf16.msra.mxu1 %v19602_v58  ;;  %6483 = vmatprep.mubr.bf16.mxu1 %v22342_v35  ;;  %v19653_v58 = vld [vmem:[%s27289_s4 + $0x430] sm:$0xff]  }
 0x7ae   :  { %16204 = vmatpush3.bf16.msra.mxu0 %v19603_v43  ;;  %7353 = vmatprep.mubr.bf16.mxu0 %v22342_v35  ;;  %v19654_v43 = vld [vmem:[%s27289_s4 + $0x478] sm:$0xff]  }
 0x7af   :  { %16053 = vmatprep.subr.bf16.mxu1 %v19604_v25  ;;  %16205 = vmatprep.subr.bf16.mxu0 %v19605_v30  ;;  %v19655_v25 = vld [vmem:[%s27289_s4 + $0x438] sm:$0xff]  }
 0x7b1   :  { %16054 = vmatpush3.bf16.msra.mxu1 %v19606_v19 }
 0x7b2   :  { %16206 = vmatpush3.bf16.msra.mxu0 %v19607_v52 }
 0x7b3   :  { %16287 = vmatprep.subr.bf16.mxu0 %v19608_v57 }
 0x7b4   :  { %6484 = vmatmul.mubr.bf16.vlgmr.msra.gmra.mrb[96].mxu1 %v22340_v60 }
 0x7b5   :  { %7354 = vmatmul.mubr.bf16.vlgmr.msra.gmra.mrb[96].mxu0 %v22340_v60  ;;  %6491 = vmatprep.mubr.bf16.mxu1 %v22378_v0 }
 0x7b6   :  { %7361 = vmatprep.mubr.bf16.mxu0 %v22378_v0  ;;  %16288 = vmatpush3.bf16.msra.mxu0 %v19609_v49 }
 0x7b7   :  { %16289 = vmatprep.subr.bf16.mxu0 %v19610_v53 }
 0x7ba   :  { %16290 = vmatpush3.bf16.msra.mxu0 %v19611_v56 }
 0x7bb   :  { %16291 = vmatprep.subr.bf16.mxu0 %v19612_v3 }
 0x7bc   :  { %6492 = vmatmul.mubr.bf16.gmra.mrb[100].mxu1 %v22376_v59 }
 0x7bd   :  { %7362 = vmatmul.mubr.bf16.gmra.mrb[100].mxu0 %v22376_v59  ;;  %6499 = vmatprep.mubr.bf16.mxu1 %v22414_v33 }
 0x7be   :  { %7369 = vmatprep.mubr.bf16.mxu0 %v22414_v33  ;;  %16292 = vmatpush3.bf16.msra.mxu0 %v19613_v8 }
 0x7bf   :  { %16293 = vmatprep.subr.bf16.mxu0 %v19614_v18 }
 0x7c2   :  { %16294 = vmatpush3.bf16.msra.mxu0 %v19615_v22 }
 0x7c3   :  { %16295 = vmatprep.subr.bf16.mxu0 %v19616_v62 }
 0x7c4   :  { %6500 = vmatmul.mubr.bf16.gmra.mrb[104].mxu1 %v22412_v42 }
 0x7c5   :  { %7370 = vmatmul.mubr.bf16.gmra.mrb[104].mxu0 %v22412_v42  ;;  %6507 = vmatprep.mubr.bf16.mxu1 %v22450_v34 }
 0x7c6   :  { %7377 = vmatprep.mubr.bf16.mxu0 %v22450_v34  ;;  %16296 = vmatpush3.bf16.msra.mxu0 %v19617_v2 }
 0x7c7   :  { %16297 = vmatprep.subr.bf16.mxu0 %v19618_v32 }
 0x7ca   :  { %16298 = vmatpush3.bf16.msra.mxu0 %v19619_v37 }
 0x7cb   :  { %16299 = vmatprep.subr.bf16.mxu0 %v19620_v11 }
 0x7cc   :  { %6508 = vmatmul.mubr.bf16.gmra.mrb[108].mxu1 %v22448_v29 }
 0x7cd   :  { %7378 = vmatmul.mubr.bf16.gmra.mrb[108].mxu0 %v22448_v29  ;;  %16619 = vmatprep.mubr.msk.bf16.mxu1 %vm1199_vm0, %v19760_v51 }
 0x7ce   :  { %16300 = vmatpush3.bf16.msra.mxu0 %v19621_v6  ;;  %7895 = vmatprep.mubr.bf16.mxu0 %v22342_v35 }
 0x7cf   :  { %16301 = vmatprep.subr.bf16.mxu0 %v19622_v47 }
 0x7d2   :  { %16302 = vmatpush3.bf16.msra.mxu0 %v19623_v14 }
 0x7d3   :  { %16335 = vmatprep.subr.bf16.mxu0 %v19624_v10 }
 0x7d5   :  { %7896 = vmatmul.mubr.bf16.vlgmr.msra.gmra.mrb[112].mxu0 %v22340_v60 }
 0x7d6   :  { %7903 = vmatprep.mubr.bf16.mxu0 %v22378_v0  ;;  %16336 = vmatpush3.bf16.msra.mxu0 %v19625_v15 }
 0x7d7   :  { %16337 = vmatprep.subr.bf16.mxu0 %v19626_v16 }
 0x7da   :  { %16338 = vmatpush3.bf16.msra.mxu0 %v19627_v20 }
 0x7db   :  { %16339 = vmatprep.subr.bf16.mxu0 %v19628_v27 }
 0x7dd   :  { %7904 = vmatmul.mubr.bf16.gmra.mrb[116].mxu0 %v22376_v59 }
 0x7de   :  { %7911 = vmatprep.mubr.bf16.mxu0 %v22414_v33  ;;  %16340 = vmatpush3.bf16.msra.mxu0 %v19629_v26 }
 0x7df   :  { %16341 = vmatprep.subr.bf16.mxu0 %v19630_v28 }
 0x7e2   :  { %16342 = vmatpush3.bf16.msra.mxu0 %v19631_v31 }
 0x7e3   :  { %16343 = vmatprep.subr.bf16.mxu0 %v19632_v38 }
 0x7e5   :  { %7912 = vmatmul.mubr.bf16.gmra.mrb[120].mxu0 %v22412_v42 }
 0x7e6   :  { %7919 = vmatprep.mubr.bf16.mxu0 %v22450_v34  ;;  %16344 = vmatpush3.bf16.msra.mxu0 %v19633_v63 }
 0x7e7   :  { %16345 = vmatprep.subr.bf16.mxu0 %v19634_v1 }
 0x7ea   :  { %16346 = vmatpush3.bf16.msra.mxu0 %v19635_v9 }
 0x7eb   :  { %16347 = vmatprep.subr.bf16.mxu0 %v19636_v23 }
 0x7ed   :  { %7920 = vmatmul.mubr.bf16.gmra.mrb[124].mxu0 %v22448_v29 }
 0x7ee   :  { %16348 = vmatpush3.bf16.msra.mxu0 %v19637_v5  ;;  %8166 = vmatprep.mubr.bf16.mxu0 %v22342_v35 }
 0x7ef   :  { %16349 = vmatprep.subr.bf16.mxu0 %v19638_v13 }
 0x7f2   :  { %16350 = vmatpush3.bf16.msra.mxu0 %v19639_v36 }
 0x7f3   :  { %16383 = vmatprep.subr.bf16.mxu0 %v19640_v40 }
 0x7f5   :  { %8167 = vmatmul.mubr.bf16.vlgmr.msra.gmra.mrb[128].mxu0 %v22340_v60 }
 0x7f6   :  { %8174 = vmatprep.mubr.bf16.mxu0 %v22378_v0  ;;  %16384 = vmatpush3.bf16.msra.mxu0 %v19641_v44 }
 0x7f7   :  { %16385 = vmatprep.subr.bf16.mxu0 %v19642_v45 }
 0x7fa   :  { %16386 = vmatpush3.bf16.msra.mxu0 %v19643_v46 }
 0x7fb   :  { %16387 = vmatprep.subr.bf16.mxu0 %v19644_v55 }
 0x7fd   :  { %8175 = vmatmul.mubr.bf16.gmra.mrb[132].mxu0 %v22376_v59 }
 0x7fe   :  { %8182 = vmatprep.mubr.bf16.mxu0 %v22414_v33  ;;  %16388 = vmatpush3.bf16.msra.mxu0 %v19645_v61 }
 0x7ff   :  { %16389 = vmatprep.subr.bf16.mxu0 %v19646_v4 }
 0x802   :  { %16390 = vmatpush3.bf16.msra.mxu0 %v19647_v12 }
 0x803   :  { %16391 = vmatprep.subr.bf16.mxu0 %v19648_v17 }
 0x805   :  { %8183 = vmatmul.mubr.bf16.gmra.mrb[136].mxu0 %v22412_v42 }
 0x806   :  { %8190 = vmatprep.mubr.bf16.mxu0 %v22450_v34  ;;  %16392 = vmatpush3.bf16.msra.mxu0 %v19649_v50 }
 0x807   :  { %16393 = vmatprep.subr.bf16.mxu0 %v19650_v54 }
 0x80a   :  { %16394 = vmatpush3.bf16.msra.mxu0 %v19651_v21 }
 0x80b   :  { %16395 = vmatprep.subr.bf16.mxu0 %v19652_v24 }
 0x80d   :  { %8191 = vmatmul.mubr.bf16.gmra.mrb[140].mxu0 %v22448_v29 }
 0x80e   :  { %16396 = vmatpush3.bf16.msra.mxu0 %v19653_v58  ;;  %8437 = vmatprep.mubr.bf16.mxu0 %v22342_v35 }
 0x80f   :  { %16397 = vmatprep.subr.bf16.mxu0 %v19654_v43 }
 0x812   :  { %16398 = vmatpush3.bf16.msra.mxu0 %v19655_v25 }
 0x815   :  { %8438 = vmatmul.mubr.bf16.vlgmr.msra.gmra.mrb[144].mxu0 %v22340_v60 }
 0x816   :  { %8445 = vmatprep.mubr.bf16.mxu0 %v22378_v0 }
 0x81d   :  { %8446 = vmatmul.mubr.bf16.gmra.mrb[148].mxu0 %v22376_v59 }
 0x81e   :  { %8453 = vmatprep.mubr.bf16.mxu0 %v22414_v33 }
 0x825   :  { %8454 = vmatmul.mubr.bf16.gmra.mrb[152].mxu0 %v22412_v42 }
 0x826   :  { %8461 = vmatprep.mubr.bf16.mxu0 %v22450_v34 }
 0x82d   :  { %8462 = vmatmul.mubr.bf16.gmra.mrb[156].mxu0 %v22448_v29 }
 0x867   :  { %v16015_v30 = vpop.f32.mrb[80].mxu1  ;;  %v16159_v19 = vpop.f32.mrb[80].mxu0 }
 0x868   :  { %v16016_v52 = vpop.f32.mrb[81].mxu1  ;;  %v16160_v57 = vpop.f32.mrb[81].mxu0 }
 0x869   :  { %v16017_v49 = vadd.f32 %v16016_v52, %v16015_v30  ;;  %v16161_v53 = vadd.f32 %v16160_v57, %v16159_v19  ;;  %v16018_v56 = vpop.f32.mrb[82].mxu1  ;;  %v16162_v3 = vpop.f32.mrb[82].mxu0 }
 0x86a   :  { %v16019_v8 = vpop.f32.mrb[83].mxu1  ;;  %v16163_v18 = vpop.f32.mrb[83].mxu0 }
 0x86b   :  { %v16020_v22 = vadd.f32 %v16019_v8, %v16018_v56  ;;  %v16164_v62 = vadd.f32 %v16163_v18, %v16162_v3 }
 0x86d   :  { %v22662_v2 = vpack.c.bf16 %v16020_v22, %v16017_v49  ;;  %v22664_v32 = vpack.c.bf16 %v16164_v62, %v16161_v53 }
 0x86f   :  { %v16021_v37 = vpop.f32.mrb[84].mxu1  ;;  %v16165_v11 = vpop.f32.mrb[84].mxu0 }
 0x870   :  { %v16022_v6 = vpop.f32.mrb[85].mxu1  ;;  %v16166_v47 = vpop.f32.mrb[85].mxu0 }
 0x871   :  { %v16023_v51 = vadd.f32 %v16022_v6, %v16021_v37  ;;  %v16167_v14 = vadd.f32 %v16166_v47, %v16165_v11  ;;  %v16024_v10 = vpop.f32.mrb[86].mxu1  ;;  %v16168_v15 = vpop.f32.mrb[86].mxu0 }
 0x872   :  { %v16025_v16 = vpop.f32.mrb[87].mxu1  ;;  %v16169_v20 = vpop.f32.mrb[87].mxu0 }
 0x873   :  { %v16026_v27 = vadd.f32 %v16025_v16, %v16024_v10  ;;  %v16170_v26 = vadd.f32 %v16169_v20, %v16168_v15 }
 0x875   :  { %v22666_v28 = vpack.c.bf16 %v16026_v27, %v16023_v51  ;;  %v22668_v31 = vpack.c.bf16 %v16170_v26, %v16167_v14 }
 0x877   :  { %v16027_v38 = vpop.f32.mrb[88].mxu1  ;;  %v16171_v63 = vpop.f32.mrb[88].mxu0 }
 0x878   :  { %v16028_v1 = vpop.f32.mrb[89].mxu1  ;;  %v16172_v9 = vpop.f32.mrb[89].mxu0 }
 0x879   :  { %v16029_v23 = vadd.f32 %v16028_v1, %v16027_v38  ;;  %v16173_v5 = vadd.f32 %v16172_v9, %v16171_v63  ;;  %v16030_v13 = vpop.f32.mrb[90].mxu1  ;;  %v16174_v36 = vpop.f32.mrb[90].mxu0 }
 0x87a   :  { %v16031_v40 = vpop.f32.mrb[91].mxu1  ;;  %v16175_v44 = vpop.f32.mrb[91].mxu0 }
 0x87b   :  { %v16032_v45 = vadd.f32 %v16031_v40, %v16030_v13  ;;  %v16176_v46 = vadd.f32 %v16175_v44, %v16174_v36 }
 0x87d   :  { %v22670_v55 = vpack.c.bf16 %v16032_v45, %v16029_v23  ;;  %v22672_v61 = vpack.c.bf16 %v16176_v46, %v16173_v5 }
 0x87f   :  { %v16033_v4 = vpop.f32.mrb[92].mxu1  ;;  %v16177_v12 = vpop.f32.mrb[92].mxu0 }
 0x880   :  { %v16034_v17 = vpop.f32.mrb[93].mxu1  ;;  %v16178_v50 = vpop.f32.mrb[93].mxu0 }
 0x881   :  { %v16035_v54 = vadd.f32 %v16034_v17, %v16033_v4  ;;  %v16179_v21 = vadd.f32 %v16178_v50, %v16177_v12  ;;  %v16036_v24 = vpop.f32.mrb[94].mxu1  ;;  %v16180_v58 = vpop.f32.mrb[94].mxu0 }
 0x882   :  { %v16037_v43 = vpop.f32.mrb[95].mxu1  ;;  %v16181_v25 = vpop.f32.mrb[95].mxu0 }
 0x883   :  { %v16038_v30 = vadd.f32 %v16037_v43, %v16036_v24  ;;  %v16182_v19 = vadd.f32 %v16181_v25, %v16180_v58 }
 0x885   :  { %v22674_v52 = vpack.c.bf16 %v16038_v30, %v16035_v54  ;;  %v22676_v57 = vpack.c.bf16 %v16182_v19, %v16179_v21 }
 0x887   :  { %v16055_v49 = vpop.f32.mrb[96].mxu1 }
 0x888   :  { %v16207_v53 = vpop.f32.mrb[96].mxu0  ;;  %v16056_v56 = vpop.f32.mrb[97].mxu1 }
 0x889   :  { %v16057_v3 = vadd.f32 %v16056_v56, %v16055_v49  ;;  %v16208_v8 = vpop.f32.mrb[97].mxu0  ;;  %v16058_v18 = vpop.f32.mrb[98].mxu1 }
 0x88a   :  { %v16209_v22 = vadd.f32 %v16208_v8, %v16207_v53  ;;  %v16210_v62 = vpop.f32.mrb[98].mxu0  ;;  %v16059_v37 = vpop.f32.mrb[99].mxu1 }
 0x88b   :  { %v16060_v11 = vadd.f32 %v16059_v37, %v16058_v18  ;;  %v16211_v6 = vpop.f32.mrb[99].mxu0 }
 0x88c   :  { %v16212_v47 = vadd.f32 %v16211_v6, %v16210_v62 }
 0x88d   :  { %v6516_v51 = vpack.c.bf16 %v16060_v11, %v16057_v3 }
 0x88e   :  { %v22678_v14 = vpack.c.bf16 %v16212_v47, %v16209_v22 }
 0x88f   :  { %v16061_v10 = vpop.f32.mrb[100].mxu1  ;;  %16611 = vmatprep.subr.bf16.mxu1 %v6516_v51 }
 0x890   :  { %v16213_v15 = vpop.f32.mrb[100].mxu0  ;;  %v16062_v16 = vpop.f32.mrb[101].mxu1  ;;  %16612 = vmatpush3.bf16.msra.mxu1 %v6516_v51 }
 0x891   :  { %v16063_v20 = vadd.f32 %v16062_v16, %v16061_v10  ;;  %v16214_v27 = vpop.f32.mrb[101].mxu0  ;;  %v16064_v26 = vpop.f32.mrb[102].mxu1 }
 0x892   :  { %v16215_v38 = vadd.f32 %v16214_v27, %v16213_v15  ;;  %v16216_v63 = vpop.f32.mrb[102].mxu0  ;;  %v16065_v1 = vpop.f32.mrb[103].mxu1  ;;  %v19761_v27 = vld [vmem:[%s27285_s0 + $0x28] sm:$0xff]  }
 0x893   :  { %v16066_v9 = vadd.f32 %v16065_v1, %v16064_v26  ;;  %v16217_v23 = vpop.f32.mrb[103].mxu0 }
 0x894   :  { %v16218_v5 = vadd.f32 %v16217_v23, %v16216_v63 }
 0x895   :  { %v6517_v13 = vpack.c.bf16 %v16066_v9, %v16063_v20 }
 0x896   :  { %v22680_v36 = vpack.c.bf16 %v16218_v5, %v16215_v38  ;;  %v19762_v38 = vld [vmem:[%s27285_s0 + $0x30] sm:$0xff]  }
 0x897   :  { %v16067_v40 = vpop.f32.mrb[104].mxu1  ;;  %16613 = vmatprep.subr.bf16.mxu1 %v6517_v13 }
 0x898   :  { %v16219_v44 = vpop.f32.mrb[104].mxu0  ;;  %v16068_v45 = vpop.f32.mrb[105].mxu1  ;;  %16614 = vmatpush3.bf16.msra.mxu1 %v6517_v13 }
 0x899   :  { %v16069_v46 = vadd.f32 %v16068_v45, %v16067_v40  ;;  %v16220_v4 = vpop.f32.mrb[105].mxu0  ;;  %v16070_v12 = vpop.f32.mrb[106].mxu1 }
 0x89a   :  { %v16221_v17 = vadd.f32 %v16220_v4, %v16219_v44  ;;  %v16222_v50 = vpop.f32.mrb[106].mxu0  ;;  %v16071_v54 = vpop.f32.mrb[107].mxu1  ;;  %v19764_v44 = vld [vmem:[%s27285_s0] sm:$0xff]  }
 0x89b   :  { %v16072_v21 = vadd.f32 %v16071_v54, %v16070_v12  ;;  %v16223_v24 = vpop.f32.mrb[107].mxu0  ;;  %v19658_v12 = vld [vmem:[%s27289_s4 + $0x148] sm:$0xff]  }
 0x89c   :  { %v16224_v58 = vadd.f32 %v16223_v24, %v16222_v50  ;;  %v19659_v24 = vld [vmem:[%s27289_s4 + $0x108] sm:$0xff]  }
 0x89d   :  { %v6518_v43 = vpack.c.bf16 %v16072_v21, %v16069_v46  ;;  %v19765_v21 = vld [vmem:[%s27285_s0 + $0x8] sm:$0xff]  }
 0x89e   :  { %v22682_v25 = vpack.c.bf16 %v16224_v58, %v16221_v17  ;;  %v19766_v58 = vld [vmem:[%s27285_s0 + $0x10] sm:$0xff]  }
 0x89f   :  { %v16073_v30 = vpop.f32.mrb[108].mxu1  ;;  %16615 = vmatprep.subr.bf16.mxu1 %v6518_v43 }
 0x8a0   :  { %v16225_v19 = vpop.f32.mrb[108].mxu0  ;;  %v16074_v49 = vpop.f32.mrb[109].mxu1  ;;  %16616 = vmatpush3.bf16.msra.mxu1 %v6518_v43  ;;  %v19660_v43 = vld [vmem:[%s27289_s4 + $0x150] sm:$0xff]  }
 0x8a1   :  { %v16075_v53 = vadd.f32 %v16074_v49, %v16073_v30  ;;  %v16226_v56 = vpop.f32.mrb[109].mxu0  ;;  %v16076_v3 = vpop.f32.mrb[110].mxu1  ;;  %v19661_v49 = vld [vmem:[%s27289_s4 + $0x110] sm:$0xff]  }
 0x8a2   :  { %v16227_v8 = vadd.f32 %v16226_v56, %v16225_v19  ;;  %v16228_v18 = vpop.f32.mrb[110].mxu0  ;;  %v16077_v22 = vpop.f32.mrb[111].mxu1  ;;  %v19662_v56 = vld [vmem:[%s27289_s4 + $0x158] sm:$0xff]  }
 0x8a3   :  { %v16078_v62 = vadd.f32 %v16077_v22, %v16076_v3  ;;  %v16229_v37 = vpop.f32.mrb[111].mxu0  ;;  %v19767_v22 = vld [vmem:[%s27285_s0 + $0x18] sm:$0xff]  }
 0x8a4   :  { %v16230_v11 = vadd.f32 %v16229_v37, %v16228_v18  ;;  %v19663_v37 = vld [vmem:[%s27289_s4 + $0x118] sm:$0xff]  }
 0x8a5   :  { %v6519_v6 = vpack.c.bf16 %v16078_v62, %v16075_v53 }
 0x8a6   :  { %v22684_v47 = vpack.c.bf16 %v16230_v11, %v16227_v8  ;;  %v19664_v11 = vld [vmem:[%s27289_s4 + $0x160] sm:$0xff]  }
 0x8a7   :  { %16617 = vmatprep.subr.bf16.mxu1 %v6519_v6 }
 0x8a8   :  { %v16303_v51 = vpop.f32.mrb[112].mxu0  ;;  %16618 = vmatpush3.bf16.msra.mxu1 %v6519_v6 }
 0x8a9   :  { %v16304_v10 = vpop.f32.mrb[113].mxu0  ;;  %16627 = vmatprep.subr.bf16.mxu1 %v22662_v2 }
 0x8aa   :  { %v16305_v15 = vadd.f32 %v16304_v10, %v16303_v51  ;;  %v16306_v16 = vpop.f32.mrb[114].mxu0  ;;  %v19665_v10 = vld [vmem:[%s27289_s4 + $0x120] sm:$0xff]  }
 0x8ab   :  { %v16307_v20 = vpop.f32.mrb[115].mxu0  ;;  %16620 = vmatmul.mubr.msk.bf16.vlgmr.msra.gmra.mrb[112].mxu1 %vm1199_vm0, %v19761_v27 }
 0x8ac   :  { %v16308_v26 = vadd.f32 %v16307_v20, %v16306_v16  ;;  %16628 = vmatpush3.bf16.msra.mxu1 %v22662_v2  ;;  %16623 = vmatprep.mubr.msk.bf16.mxu1 %vm1199_vm0, %v19762_v38  ;;  %v19763_v2 = vld [vmem:[%s27285_s0 + $0x38] sm:$0xff]   ;;  %v19666_v16 = vld [vmem:[%s27289_s4 + $0x168] sm:$0xff]  }
 0x8ad   :  { %16629 = vmatprep.subr.bf16.mxu1 %v22666_v28 }
 0x8ae   :  { %v22697_v63 = vpack.c.bf16 %v16308_v26, %v16305_v15 }
 0x8b0   :  { %v16309_v1 = vpop.f32.mrb[116].mxu0  ;;  %16630 = vmatpush3.bf16.msra.mxu1 %v22666_v28  ;;  %v19656_v28 = vld [vmem:[%s27289_s4 + $0x140] sm:$0xff]  }
 0x8b1   :  { %v16310_v9 = vpop.f32.mrb[117].mxu0  ;;  %16631 = vmatprep.subr.bf16.mxu1 %v22670_v55 }
 0x8b2   :  { %v16311_v23 = vadd.f32 %v16310_v9, %v16309_v1  ;;  %v16312_v5 = vpop.f32.mrb[118].mxu0  ;;  %v19667_v1 = vld [vmem:[%s27289_s4 + $0x128] sm:$0xff]   ;;  %v19668_v9 = vld [vmem:[%s27289_s4 + $0x170] sm:$0xff]  }
 0x8b3   :  { %v16313_v13 = vpop.f32.mrb[119].mxu0  ;;  %16624 = vmatmul.mubr.msk.bf16.gmra.mrb[116].mxu1 %vm1199_vm0, %v19763_v2 }
 0x8b4   :  { %v16314_v40 = vadd.f32 %v16313_v13, %v16312_v5  ;;  %16632 = vmatpush3.bf16.msra.mxu1 %v22670_v55  ;;  %16635 = vmatprep.mubr.msk.bf16.mxu1 %vm1199_vm0, %v19764_v44  ;;  %v19657_v55 = vld [vmem:[%s27289_s4 + $0x100] sm:$0xff]   ;;  %v19669_v13 = vld [vmem:[%s27289_s4 + $0x130] sm:$0xff]  }
 0x8b5   :  { %16633 = vmatprep.subr.bf16.mxu1 %v22674_v52 }
 0x8b6   :  { %v22714_v45 = vpack.c.bf16 %v16314_v40, %v16311_v23  ;;  %v19670_v40 = vld [vmem:[%s27289_s4 + $0x178] sm:$0xff]  }
 0x8b8   :  { %v16315_v46 = vpop.f32.mrb[120].mxu0  ;;  %16634 = vmatpush3.bf16.msra.mxu1 %v22674_v52 }
 0x8b9   :  { %v16316_v4 = vpop.f32.mrb[121].mxu0  ;;  %16095 = vmatprep.subr.bf16.mxu1 %v19656_v28 }
 0x8ba   :  { %v16317_v17 = vadd.f32 %v16316_v4, %v16315_v46  ;;  %v16318_v50 = vpop.f32.mrb[122].mxu0  ;;  %v19671_v4 = vld [vmem:[%s27289_s4 + $0x138] sm:$0xff]  }
 0x8bb   :  { %v16319_v54 = vpop.f32.mrb[123].mxu0  ;;  %16636 = vmatmul.mubr.msk.bf16.vlgmr.msra.gmra.mrb[112].mxu1 %vm1199_vm0, %v19765_v21 }
 0x8bc   :  { %v16320_v52 = vadd.f32 %v16319_v54, %v16318_v50  ;;  %16096 = vmatpush3.bf16.msra.mxu1 %v19657_v55  ;;  %16639 = vmatprep.mubr.msk.bf16.mxu1 %vm1199_vm0, %v19766_v58 }
 0x8bd   :  { %16097 = vmatprep.subr.bf16.mxu1 %v19658_v12 }
 0x8be   :  { %v22737_v30 = vpack.c.bf16 %v16320_v52, %v16317_v17 }
 0x8c0   :  { %v16321_v19 = vpop.f32.mrb[124].mxu0  ;;  %16098 = vmatpush3.bf16.msra.mxu1 %v19659_v24 }
 0x8c1   :  { %v16322_v53 = vpop.f32.mrb[125].mxu0  ;;  %16099 = vmatprep.subr.bf16.mxu1 %v19660_v43 }
 0x8c2   :  { %v16323_v3 = vadd.f32 %v16322_v53, %v16321_v19  ;;  %v16324_v8 = vpop.f32.mrb[126].mxu0 }
 0x8c3   :  { %v16325_v18 = vpop.f32.mrb[127].mxu0  ;;  %16640 = vmatmul.mubr.msk.bf16.gmra.mrb[116].mxu1 %vm1199_vm0, %v19767_v22 }
 0x8c4   :  { %v16326_v62 = vadd.f32 %v16325_v18, %v16324_v8  ;;  %16100 = vmatpush3.bf16.msra.mxu1 %v19661_v49  ;;  %6811 = vmatprep.mubr.bf16.mxu1 %v22342_v35 }
 0x8c5   :  { %16101 = vmatprep.subr.bf16.mxu1 %v19662_v56 }
 0x8c6   :  { %v22756_v6 = vpack.c.bf16 %v16326_v62, %v16323_v3 }
 0x8c8   :  { %v16351_v51 = vpop.f32.mrb[128].mxu0  ;;  %16102 = vmatpush3.bf16.msra.mxu1 %v19663_v37 }
 0x8c9   :  { %v16352_v15 = vpop.f32.mrb[129].mxu0  ;;  %16103 = vmatprep.subr.bf16.mxu1 %v19664_v11 }
 0x8ca   :  { %v16353_v20 = vadd.f32 %v16352_v15, %v16351_v51  ;;  %v16354_v27 = vpop.f32.mrb[130].mxu0 }
 0x8cb   :  { %v16355_v26 = vpop.f32.mrb[131].mxu0 }
 0x8cc   :  { %v16356_v38 = vadd.f32 %v16355_v26, %v16354_v27  ;;  %16104 = vmatpush3.bf16.msra.mxu1 %v19665_v10 }
 0x8cd   :  { %16105 = vmatprep.subr.bf16.mxu1 %v19666_v16 }
 0x8ce   :  { %v22770_v23 = vpack.c.bf16 %v16356_v38, %v16353_v20 }
 0x8d0   :  { %v16357_v5 = vpop.f32.mrb[132].mxu0  ;;  %16106 = vmatpush3.bf16.msra.mxu1 %v19667_v1  ;;  %v22799_v1 = vld [vmem:[%s27285_s0 + $0x40] sm:$0xff]  }
 0x8d1   :  { %v16358_v2 = vpop.f32.mrb[133].mxu0  ;;  %16107 = vmatprep.subr.bf16.mxu1 %v19668_v9 }
 0x8d2   :  { %v16359_v44 = vadd.f32 %v16358_v2, %v16357_v5  ;;  %v16360_v28 = vpop.f32.mrb[134].mxu0 }
 0x8d3   :  { %v16361_v46 = vpop.f32.mrb[135].mxu0 }
 0x8d4   :  { %v16362_v55 = vadd.f32 %v16361_v46, %v16360_v28  ;;  %16108 = vmatpush3.bf16.msra.mxu1 %v19669_v13 }
 0x8d5   :  { %16109 = vmatprep.subr.bf16.mxu1 %v19670_v40 }
 0x8d6   :  { %v22781_v12 = vpack.c.bf16 %v16362_v55, %v16359_v44 }
 0x8d8   :  { %v16363_v17 = vpop.f32.mrb[136].mxu0  ;;  %16110 = vmatpush3.bf16.msra.mxu1 %v19671_v4 }
 0x8d9   :  { %v16364_v50 = vpop.f32.mrb[137].mxu0 }
 0x8da   :  { %v16365_v54 = vadd.f32 %v16364_v50, %v16363_v17  ;;  %v16366_v21 = vpop.f32.mrb[138].mxu0 }
 0x8db   :  { %v16367_v52 = vpop.f32.mrb[139].mxu0  ;;  %6812 = vmatmul.mubr.bf16.vlgmr.msra.gmra.mrb[120].mxu1 %v22340_v60 }
 0x8dc   :  { %v16368_v24 = vadd.f32 %v16367_v52, %v16366_v21  ;;  %6819 = vmatprep.mubr.bf16.mxu1 %v22378_v0 }
 0x8de   :  { %v22785_v58 = vpack.c.bf16 %v16368_v24, %v16365_v54 }
 0x8e0   :  { %v16369_v43 = vpop.f32.mrb[140].mxu0 }
 0x8e1   :  { %v16370_v19 = vpop.f32.mrb[141].mxu0 }
 0x8e2   :  { %v16371_v49 = vadd.f32 %v16370_v19, %v16369_v43  ;;  %v16372_v53 = vpop.f32.mrb[142].mxu0 }
 0x8e3   :  { %v16373_v56 = vpop.f32.mrb[143].mxu0  ;;  %6820 = vmatmul.mubr.bf16.gmra.mrb[124].mxu1 %v22376_v59 }
 0x8e4   :  { %v16374_v3 = vadd.f32 %v16373_v56, %v16372_v53  ;;  %6827 = vmatprep.mubr.bf16.mxu1 %v22414_v33 }
 0x8e6   :  { %v22789_v8 = vpack.c.bf16 %v16374_v3, %v16371_v49 }
 0x8e8   :  { %v16399_v18 = vpop.f32.mrb[144].mxu0 }
 0x8e9   :  { %v16400_v22 = vpop.f32.mrb[145].mxu0 }
 0x8ea   :  { %v16401_v62 = vadd.f32 %v16400_v22, %v16399_v18  ;;  %v16402_v37 = vpop.f32.mrb[146].mxu0 }
 0x8eb   :  { %v16403_v11 = vpop.f32.mrb[147].mxu0  ;;  %6828 = vmatmul.mubr.bf16.gmra.mrb[128].mxu1 %v22412_v42 }
 0x8ec   :  { %v16404_v51 = vadd.f32 %v16403_v11, %v16402_v37  ;;  %6835 = vmatprep.mubr.bf16.mxu1 %v22450_v34 }
 0x8ee   :  { %v22793_v10 = vpack.c.bf16 %v16404_v51, %v16401_v62 }
 0x8f0   :  { %v16405_v15 = vpop.f32.mrb[148].mxu0 }
 0x8f1   :  { %v16406_v16 = vpop.f32.mrb[149].mxu0 }
 0x8f2   :  { %v16407_v20 = vadd.f32 %v16406_v16, %v16405_v15  ;;  %v16408_v27 = vpop.f32.mrb[150].mxu0 }
 0x8f3   :  { %v16409_v26 = vpop.f32.mrb[151].mxu0  ;;  %6836 = vmatmul.mubr.bf16.gmra.mrb[132].mxu1 %v22448_v29 }
 0x8f4   :  { %v16410_v38 = vadd.f32 %v16409_v26, %v16408_v27  ;;  %16651 = vmatprep.mubr.msk.bf16.mxu1 %vm1199_vm0, %v22799_v1 }
 0x8f6   :  { %v22803_v9 = vpack.c.bf16 %v16410_v38, %v16407_v20 }
 0x8f8   :  { %v16411_v5 = vpop.f32.mrb[152].mxu0 }
 0x8f9   :  { %v16412_v13 = vpop.f32.mrb[153].mxu0 }
 0x8fa   :  { %v16413_v2 = vadd.f32 %v16412_v13, %v16411_v5  ;;  %v16414_v40 = vpop.f32.mrb[154].mxu0 }
 0x8fb   :  { %v16415_v44 = vpop.f32.mrb[155].mxu0 }
 0x8fc   :  { %v16416_v28 = vadd.f32 %v16415_v44, %v16414_v40 }
 0x8fe   :  { %v22805_v46 = vpack.c.bf16 %v16416_v28, %v16413_v2 }
 0x900   :  { %v16417_v55 = vpop.f32.mrb[156].mxu0 }
 0x901   :  { %v16418_v4 = vpop.f32.mrb[157].mxu0 }
 0x902   :  { %v16419_v17 = vadd.f32 %v16418_v4, %v16417_v55  ;;  %v16420_v50 = vpop.f32.mrb[158].mxu0 }
 0x903   :  { %v16421_v54 = vpop.f32.mrb[159].mxu0 }
 0x904   :  { %v16422_v21 = vadd.f32 %v16421_v54, %v16420_v50  ;;  %v22813_v50 = vld [vmem:[%s27285_s0 + $0x48] sm:$0xff]   ;;  %v22821_v54 = vld [vmem:[%s27285_s0 + $0x50] sm:$0xff]  }
 0x906   :  { %v22807_v52 = vpack.c.bf16 %v16422_v21, %v16419_v17  ;;  %v22831_v21 = vld [vmem:[%s27285_s0 + $0x58] sm:$0xff]  }
 0x9ae   :  { %v16111_v24 = vpop.f32.mrb[120].mxu1 }
 0x9af   :  { %v16112_v43 = vpop.f32.mrb[121].mxu1 }
 0x9b0   :  { %v16113_v19 = vadd.f32 %v16112_v43, %v16111_v24  ;;  %v16114_v49 = vpop.f32.mrb[122].mxu1  ;;  %v19674_v24 = vld [vmem:[%s27289_s4 + $0x2c8] sm:$0xff]  }
 0x9b1   :  { %v16115_v53 = vpop.f32.mrb[123].mxu1  ;;  %v19777_v43 = vld [vmem:[%s27285_s0 + $0x88] sm:$0xff]  }
 0x9b2   :  { %v16116_v56 = vadd.f32 %v16115_v53, %v16114_v49  ;;  %v19676_v49 = vld [vmem:[%s27289_s4 + $0x2d0] sm:$0xff]  }
 0x9b3   :  { %v19677_v53 = vld [vmem:[%s27289_s4 + $0x290] sm:$0xff]  }
 0x9b4   :  { %v6844_v3 = vpack.c.bf16 %v16116_v56, %v16113_v19  ;;  %v19778_v19 = vld [vmem:[%s27285_s0 + $0x90] sm:$0xff]   ;;  %v19678_v56 = vld [vmem:[%s27289_s4 + $0x2d8] sm:$0xff]  }
 0x9b6   :  { %v16117_v18 = vpop.f32.mrb[124].mxu1  ;;  %16643 = vmatprep.subr.bf16.mxu1 %v6844_v3 }
 0x9b7   :  { %v16118_v22 = vpop.f32.mrb[125].mxu1  ;;  %16644 = vmatpush3.bf16.msra.mxu1 %v6844_v3  ;;  %v19779_v3 = vld [vmem:[%s27285_s0 + $0x98] sm:$0xff]  }
 0x9b8   :  { %v16119_v62 = vadd.f32 %v16118_v22, %v16117_v18  ;;  %v16120_v37 = vpop.f32.mrb[126].mxu1  ;;  %v19679_v18 = vld [vmem:[%s27289_s4 + $0x298] sm:$0xff]   ;;  %v19680_v22 = vld [vmem:[%s27289_s4 + $0x2e0] sm:$0xff]  }
 0x9b9   :  { %v16121_v11 = vpop.f32.mrb[127].mxu1 }
 0x9ba   :  { %v16122_v51 = vadd.f32 %v16121_v11, %v16120_v37  ;;  %v19682_v37 = vld [vmem:[%s27289_s4 + $0x2e8] sm:$0xff]   ;;  %v19684_v11 = vld [vmem:[%s27289_s4 + $0x2f0] sm:$0xff]  }
 0x9bc   :  { %v6845_v15 = vpack.c.bf16 %v16122_v51, %v16119_v62  ;;  %v19681_v62 = vld [vmem:[%s27289_s4 + $0x2a0] sm:$0xff]   ;;  %v19685_v51 = vld [vmem:[%s27289_s4 + $0x2b0] sm:$0xff]  }
 0x9be   :  { %v16123_v16 = vpop.f32.mrb[128].mxu1  ;;  %16645 = vmatprep.subr.bf16.mxu1 %v6845_v15 }
 0x9bf   :  { %v16124_v20 = vpop.f32.mrb[129].mxu1  ;;  %16646 = vmatpush3.bf16.msra.mxu1 %v6845_v15  ;;  %v19686_v15 = vld [vmem:[%s27289_s4 + $0x2f8] sm:$0xff]  }
 0x9c0   :  { %v16125_v27 = vadd.f32 %v16124_v20, %v16123_v16  ;;  %v16126_v26 = vpop.f32.mrb[130].mxu1  ;;  %v19687_v16 = vld [vmem:[%s27289_s4 + $0x2b8] sm:$0xff]   ;;  %v22952_v20 = vld [vmem:[%s27285_s0 + $0xa0] sm:$0xff]  }
 0x9c1   :  { %v16127_v38 = vpop.f32.mrb[131].mxu1 }
 0x9c2   :  { %v16128_v5 = vadd.f32 %v16127_v38, %v16126_v26 }
 0x9c4   :  { %v6846_v13 = vpack.c.bf16 %v16128_v5, %v16125_v27 }
 0x9c6   :  { %v16129_v2 = vpop.f32.mrb[132].mxu1  ;;  %16647 = vmatprep.subr.bf16.mxu1 %v6846_v13 }
 0x9c7   :  { %v16130_v40 = vpop.f32.mrb[133].mxu1  ;;  %16648 = vmatpush3.bf16.msra.mxu1 %v6846_v13 }
 0x9c8   :  { %v16131_v44 = vadd.f32 %v16130_v40, %v16129_v2  ;;  %v16132_v28 = vpop.f32.mrb[134].mxu1 }
 0x9c9   :  { %v16133_v55 = vpop.f32.mrb[135].mxu1 }
 0x9ca   :  { %v16134_v4 = vadd.f32 %v16133_v55, %v16132_v28 }
 0x9cc   :  { %v6847_v17 = vpack.c.bf16 %v16134_v4, %v16131_v44 }
 0x9ce   :  { %16649 = vmatprep.subr.bf16.mxu1 %v6847_v17 }
 0x9cf   :  { %16650 = vmatpush3.bf16.msra.mxu1 %v6847_v17 }
 0x9d0   :  { %16659 = vmatprep.subr.bf16.mxu1 %v22664_v32 }
 0x9d2   :  { %16652 = vmatmul.mubr.msk.bf16.vlgmr.msra.gmra.mrb[112].mxu1 %vm1199_vm0, %v22813_v50 }
 0x9d3   :  { %16660 = vmatpush3.bf16.msra.mxu1 %v22664_v32  ;;  %16655 = vmatprep.mubr.msk.bf16.mxu1 %vm1199_vm0, %v22821_v54  ;;  %v22839_v32 = vld [vmem:[%s27285_s0 + $0x60] sm:$0xff]  }
 0x9d4   :  { %16661 = vmatprep.subr.bf16.mxu1 %v22668_v31 }
 0x9d7   :  { %16662 = vmatpush3.bf16.msra.mxu1 %v22668_v31  ;;  %v22849_v31 = vld [vmem:[%s27285_s0 + $0x68] sm:$0xff]  }
 0x9d8   :  { %16663 = vmatprep.subr.bf16.mxu1 %v22672_v61 }
 0x9da   :  { %16656 = vmatmul.mubr.msk.bf16.gmra.mrb[116].mxu1 %vm1199_vm0, %v22831_v21 }
 0x9db   :  { %16664 = vmatpush3.bf16.msra.mxu1 %v22672_v61  ;;  %16667 = vmatprep.mubr.msk.bf16.mxu1 %vm1199_vm0, %v22839_v32  ;;  %v22857_v61 = vld [vmem:[%s27285_s0 + $0x70] sm:$0xff]  }
 0x9dc   :  { %16665 = vmatprep.subr.bf16.mxu1 %v22676_v57 }
 0x9df   :  { %16666 = vmatpush3.bf16.msra.mxu1 %v22676_v57  ;;  %v22867_v57 = vld [vmem:[%s27285_s0 + $0x78] sm:$0xff]  }
 0x9e0   :  { %16675 = vmatprep.subr.bf16.mxu1 %v22678_v14 }
 0x9e2   :  { %16668 = vmatmul.mubr.msk.bf16.vlgmr.msra.gmra.mrb[112].mxu1 %vm1199_vm0, %v22849_v31 }
 0x9e3   :  { %16676 = vmatpush3.bf16.msra.mxu1 %v22678_v14  ;;  %16671 = vmatprep.mubr.msk.bf16.mxu1 %vm1199_vm0, %v22857_v61  ;;  %v22875_v14 = vld [vmem:[%s27285_s0 + $0x80] sm:$0xff]  }
 0x9e4   :  { %16677 = vmatprep.subr.bf16.mxu1 %v22680_v36 }
 0x9e7   :  { %16678 = vmatpush3.bf16.msra.mxu1 %v22680_v36  ;;  %v19672_v36 = vld [vmem:[%s27289_s4 + $0x2c0] sm:$0xff]  }
 0x9e8   :  { %16679 = vmatprep.subr.bf16.mxu1 %v22682_v25 }
 0x9ea   :  { %16672 = vmatmul.mubr.msk.bf16.gmra.mrb[116].mxu1 %vm1199_vm0, %v22867_v57 }
 0x9eb   :  { %16680 = vmatpush3.bf16.msra.mxu1 %v22682_v25  ;;  %16683 = vmatprep.mubr.msk.bf16.mxu1 %vm1199_vm0, %v22875_v14  ;;  %v19673_v25 = vld [vmem:[%s27289_s4 + $0x280] sm:$0xff]  }
 0x9ec   :  { %16681 = vmatprep.subr.bf16.mxu1 %v22684_v47 }
 0x9ef   :  { %16682 = vmatpush3.bf16.msra.mxu1 %v22684_v47  ;;  %v19675_v47 = vld [vmem:[%s27289_s4 + $0x288] sm:$0xff]  }
 0x9f0   :  { %16239 = vmatprep.subr.bf16.mxu1 %v19672_v36 }
 0x9f2   :  { %16684 = vmatmul.mubr.msk.bf16.vlgmr.msra.gmra.mrb[112].mxu1 %vm1199_vm0, %v19777_v43 }
 0x9f3   :  { %16240 = vmatpush3.bf16.msra.mxu1 %v19673_v25  ;;  %16687 = vmatprep.mubr.msk.bf16.mxu1 %vm1199_vm0, %v19778_v19 }
 0x9f4   :  { %16241 = vmatprep.subr.bf16.mxu1 %v19674_v24 }
 0x9f7   :  { %16242 = vmatpush3.bf16.msra.mxu1 %v19675_v47 }
 0x9f8   :  { %16243 = vmatprep.subr.bf16.mxu1 %v19676_v49 }
 0x9fa   :  { %16688 = vmatmul.mubr.msk.bf16.gmra.mrb[116].mxu1 %vm1199_vm0, %v19779_v3 }
 0x9fb   :  { %16244 = vmatpush3.bf16.msra.mxu1 %v19677_v53  ;;  %7624 = vmatprep.mubr.bf16.mxu1 %v22342_v35  ;;  %v19683_v35 = vld [vmem:[%s27289_s4 + $0x2a8] sm:$0xff]  }
 0x9fc   :  { %16245 = vmatprep.subr.bf16.mxu1 %v19678_v56 }
 0x9ff   :  { %16246 = vmatpush3.bf16.msra.mxu1 %v19679_v18 }
 0xa00   :  { %16247 = vmatprep.subr.bf16.mxu1 %v19680_v22 }
 0xa03   :  { %16248 = vmatpush3.bf16.msra.mxu1 %v19681_v62 }
 0xa04   :  { %16249 = vmatprep.subr.bf16.mxu1 %v19682_v37 }
 0xa07   :  { %16250 = vmatpush3.bf16.msra.mxu1 %v19683_v35 }
 0xa08   :  { %16251 = vmatprep.subr.bf16.mxu1 %v19684_v11  ;;  %v22978_v11 = vld [vmem:[%s27285_s0 + $0xa8] sm:$0xff]  }
 0xa0b   :  { %16252 = vmatpush3.bf16.msra.mxu1 %v19685_v51  ;;  %v22986_v51 = vld [vmem:[%s27285_s0 + $0xb0] sm:$0xff]  }
 0xa0c   :  { %16253 = vmatprep.subr.bf16.mxu1 %v19686_v15  ;;  %v22996_v15 = vld [vmem:[%s27285_s0 + $0xb8] sm:$0xff]  }
 0xa0f   :  { %16254 = vmatpush3.bf16.msra.mxu1 %v19687_v16  ;;  %v23091_v16 = vld [vmem:[%s27285_s0 + $0x108] sm:$0xff]  }
 0xa12   :  { %7625 = vmatmul.mubr.bf16.vlgmr.msra.gmra.mrb[136].mxu1 %v22340_v60  ;;  %v19689_v60 = vld [vmem:[%s27291_s6] sm:$0xff]  }
 0xa13   :  { %7632 = vmatprep.mubr.bf16.mxu1 %v22378_v0  ;;  %16755 = vmatprep.subr.bf16.mxu0 %v19689_v60  ;;  %v19693_v0 = vld [vmem:[%s27291_s6 + $0x10] sm:$0xff]  }
 0xa14   :  { %16756 = vmatpush3.bf16.msra.mxu0 %v19689_v60  ;;  %v23098_v60 = vld [vmem:[%s27285_s0 + $0x110] sm:$0xff]  }
 0xa1a   :  { %7633 = vmatmul.mubr.bf16.gmra.mrb[140].mxu1 %v22376_v59  ;;  %v19691_v59 = vld [vmem:[%s27291_s6 + $0x8] sm:$0xff]  }
 0xa1b   :  { %7640 = vmatprep.mubr.bf16.mxu1 %v22414_v33  ;;  %16757 = vmatprep.subr.bf16.mxu0 %v19691_v59  ;;  %v19697_v33 = vld [vmem:[%s27291_s6 + $0x20] sm:$0xff]  }
 0xa1c   :  { %16758 = vmatpush3.bf16.msra.mxu0 %v19691_v59  ;;  %v19694_v59 = vld [vmem:[%s27291_s6 + $0x58] sm:$0xff]  }
 0xa1d   :  { %16759 = vmatprep.subr.bf16.mxu0 %v19693_v0 }
 0xa20   :  { %16760 = vmatpush3.bf16.msra.mxu0 %v19693_v0  ;;  %v23111_v0 = vld [vmem:[%s27285_s0 + $0x118] sm:$0xff]  }
 0xa22   :  { %7641 = vmatmul.mubr.bf16.gmra.mrb[144].mxu1 %v22412_v42  ;;  %v19695_v42 = vld [vmem:[%s27291_s6 + $0x18] sm:$0xff]  }
 0xa23   :  { %7648 = vmatprep.mubr.bf16.mxu1 %v22450_v34  ;;  %16761 = vmatprep.subr.bf16.mxu0 %v19695_v42 }
 0xa24   :  { %16762 = vmatpush3.bf16.msra.mxu0 %v19695_v42  ;;  %v19696_v42 = vld [vmem:[%s27291_s6 + $0x60] sm:$0xff]  }
 0xa25   :  { %16763 = vmatprep.subr.bf16.mxu0 %v19697_v33 }
 0xa28   :  { %16764 = vmatpush3.bf16.msra.mxu0 %v19697_v33  ;;  %v19698_v33 = vld [vmem:[%s27291_s6 + $0x68] sm:$0xff]  }
 0xa2a   :  { %7649 = vmatmul.mubr.bf16.gmra.mrb[148].mxu1 %v22448_v29  ;;  %v19699_v29 = vld [vmem:[%s27291_s6 + $0x28] sm:$0xff]  }
 0xa2b   :  { %16699 = vmatprep.mubr.msk.bf16.mxu1 %vm1199_vm0, %v22952_v20  ;;  %16765 = vmatprep.subr.bf16.mxu0 %v19699_v29 }
 0xa2c   :  { %16766 = vmatpush3.bf16.msra.mxu0 %v19699_v29  ;;  %v19700_v29 = vld [vmem:[%s27291_s6 + $0x70] sm:$0xff]  }
 0xae5   :  { %v16255_v34 = vpop.f32.mrb[136].mxu1 }
 0xae6   :  { %v16256_v27 = vpop.f32.mrb[137].mxu1 }
 0xae7   :  { %v16257_v26 = vadd.f32 %v16256_v27, %v16255_v34  ;;  %v16258_v38 = vpop.f32.mrb[138].mxu1  ;;  %v19701_v34 = vld [vmem:[%s27291_s6 + $0x30] sm:$0xff]   ;;  %v19702_v27 = vld [vmem:[%s27291_s6 + $0x78] sm:$0xff]  }
 0xae8   :  { %v16259_v5 = vpop.f32.mrb[139].mxu1  ;;  %16767 = vmatprep.subr.bf16.mxu0 %v19701_v34 }
 0xae9   :  { %v16260_v13 = vadd.f32 %v16259_v5, %v16258_v38  ;;  %16768 = vmatpush3.bf16.msra.mxu0 %v19701_v34  ;;  %v19704_v38 = vld [vmem:[%s27291_s6 + $0x80] sm:$0xff]   ;;  %v19707_v34 = vld [vmem:[%s27291_s6 + $0x98] sm:$0xff]  }
 0xaea   :  { %v15633_v5 = vld [vmem:[%s27290_s5] ss:$0 sm:$0xff] }
 0xaeb   :  { %v7657_v2 = vpack.c.bf16 %v16260_v13, %v16257_v26  ;;  %v19703_v26 = vld [vmem:[%s27291_s6 + $0x38] sm:$0xff]  }
 0xaec   :  { %16769 = vmatprep.subr.bf16.mxu0 %v19703_v26 }
 0xaed   :  { %v16261_v40 = vpop.f32.mrb[140].mxu1  ;;  %16691 = vmatprep.subr.bf16.mxu1 %v7657_v2  ;;  %16770 = vmatpush3.bf16.msra.mxu0 %v19703_v26  ;;  %v19796_v26 = vld [vmem:[%s27285_s0 + $0x20] sm:$0xff]  }
 0xaee   :  { %v16262_v44 = vpop.f32.mrb[141].mxu1  ;;  %16692 = vmatpush3.bf16.msra.mxu1 %v7657_v2 }
 0xaef   :  { %v16263_v28 = vadd.f32 %v16262_v44, %v16261_v40  ;;  %v16264_v55 = vpop.f32.mrb[142].mxu1 }
 0xaf0   :  { %v16265_v4 = vpop.f32.mrb[143].mxu1 }
 0xaf1   :  { %v16266_v17 = vadd.f32 %v16265_v4, %v16264_v55 }
 0xaf3   :  { %v7658_v36 = vpack.c.bf16 %v16266_v17, %v16263_v28 }
 0xaf5   :  { %v16267_v25 = vpop.f32.mrb[144].mxu1  ;;  %16693 = vmatprep.subr.bf16.mxu1 %v7658_v36 }
 0xaf6   :  { %v16268_v24 = vpop.f32.mrb[145].mxu1  ;;  %16694 = vmatpush3.bf16.msra.mxu1 %v7658_v36 }
 0xaf7   :  { %v16269_v43 = vadd.f32 %v16268_v24, %v16267_v25  ;;  %v16270_v47 = vpop.f32.mrb[146].mxu1 }
 0xaf8   :  { %v16271_v19 = vpop.f32.mrb[147].mxu1 }
 0xaf9   :  { %v16272_v49 = vadd.f32 %v16271_v19, %v16270_v47 }
 0xafb   :  { %v7659_v53 = vpack.c.bf16 %v16272_v49, %v16269_v43 }
 0xafd   :  { %v16273_v56 = vpop.f32.mrb[148].mxu1  ;;  %16695 = vmatprep.subr.bf16.mxu1 %v7659_v53 }
 0xafe   :  { %v16274_v3 = vpop.f32.mrb[149].mxu1  ;;  %16696 = vmatpush3.bf16.msra.mxu1 %v7659_v53 }
 0xaff   :  { %v16275_v18 = vadd.f32 %v16274_v3, %v16273_v56  ;;  %v16276_v22 = vpop.f32.mrb[150].mxu1  ;;  %v19705_v3 = vld [vmem:[%s27291_s6 + $0x88] sm:$0xff]  }
 0xb00   :  { %v16277_v62 = vpop.f32.mrb[151].mxu1 }
 0xb01   :  { %v16278_v37 = vadd.f32 %v16277_v62, %v16276_v22 }
 0xb03   :  { %v7660_v35 = vpack.c.bf16 %v16278_v37, %v16275_v18 }
 0xb05   :  { %16697 = vmatprep.subr.bf16.mxu1 %v7660_v35 }
 0xb06   :  { %16698 = vmatpush3.bf16.msra.mxu1 %v7660_v35 }
 0xb07   :  { %16707 = vmatprep.subr.bf16.mxu1 %v22697_v63 }
 0xb09   :  { %16700 = vmatmul.mubr.msk.bf16.vlgmr.msra.gmra.mrb[112].mxu1 %vm1199_vm0, %v22978_v11 }
 0xb0a   :  { %16708 = vmatpush3.bf16.msra.mxu1 %v22697_v63  ;;  %16703 = vmatprep.mubr.msk.bf16.mxu1 %vm1199_vm0, %v22986_v51  ;;  %v23004_v63 = vld [vmem:[%s27285_s0 + $0xc0] sm:$0xff]  }
 0xb0b   :  { %16709 = vmatprep.subr.bf16.mxu1 %v22714_v45 }
 0xb0e   :  { %16710 = vmatpush3.bf16.msra.mxu1 %v22714_v45  ;;  %v23014_v45 = vld [vmem:[%s27285_s0 + $0xc8] sm:$0xff]  }
 0xb0f   :  { %16711 = vmatprep.subr.bf16.mxu1 %v22737_v30 }
 0xb11   :  { %16704 = vmatmul.mubr.msk.bf16.gmra.mrb[116].mxu1 %vm1199_vm0, %v22996_v15 }
 0xb12   :  { %16712 = vmatpush3.bf16.msra.mxu1 %v22737_v30  ;;  %16715 = vmatprep.mubr.msk.bf16.mxu1 %vm1199_vm0, %v23004_v63  ;;  %v23022_v30 = vld [vmem:[%s27285_s0 + $0xd0] sm:$0xff]  }
 0xb13   :  { %16713 = vmatprep.subr.bf16.mxu1 %v22756_v6 }
 0xb16   :  { %16714 = vmatpush3.bf16.msra.mxu1 %v22756_v6  ;;  %v23032_v6 = vld [vmem:[%s27285_s0 + $0xd8] sm:$0xff]  }
 0xb17   :  { %16723 = vmatprep.subr.bf16.mxu1 %v22770_v23 }
 0xb19   :  { %16716 = vmatmul.mubr.msk.bf16.vlgmr.msra.gmra.mrb[112].mxu1 %vm1199_vm0, %v23014_v45 }
 0xb1a   :  { %16724 = vmatpush3.bf16.msra.mxu1 %v22770_v23  ;;  %16719 = vmatprep.mubr.msk.bf16.mxu1 %vm1199_vm0, %v23022_v30  ;;  %v23040_v23 = vld [vmem:[%s27285_s0 + $0xe0] sm:$0xff]  }
 0xb1b   :  { %16725 = vmatprep.subr.bf16.mxu1 %v22781_v12 }
 0xb1e   :  { %16726 = vmatpush3.bf16.msra.mxu1 %v22781_v12  ;;  %v23050_v12 = vld [vmem:[%s27285_s0 + $0xe8] sm:$0xff]  }
 0xb1f   :  { %16727 = vmatprep.subr.bf16.mxu1 %v22785_v58 }
 0xb21   :  { %16720 = vmatmul.mubr.msk.bf16.gmra.mrb[116].mxu1 %vm1199_vm0, %v23032_v6 }
 0xb22   :  { %16728 = vmatpush3.bf16.msra.mxu1 %v22785_v58  ;;  %16731 = vmatprep.mubr.msk.bf16.mxu1 %vm1199_vm0, %v23040_v23  ;;  %v23058_v58 = vld [vmem:[%s27285_s0 + $0xf0] sm:$0xff]  }
 0xb23   :  { %16729 = vmatprep.subr.bf16.mxu1 %v22789_v8 }
 0xb26   :  { %16730 = vmatpush3.bf16.msra.mxu1 %v22789_v8  ;;  %v23068_v8 = vld [vmem:[%s27285_s0 + $0xf8] sm:$0xff]  }
 0xb27   :  { %16739 = vmatprep.subr.bf16.mxu1 %v22793_v10 }
 0xb29   :  { %16732 = vmatmul.mubr.msk.bf16.vlgmr.msra.gmra.mrb[112].mxu1 %vm1199_vm0, %v23050_v12 }
 0xb2a   :  { %16740 = vmatpush3.bf16.msra.mxu1 %v22793_v10  ;;  %16735 = vmatprep.mubr.msk.bf16.mxu1 %vm1199_vm0, %v23058_v58  ;;  %v23076_v10 = vld [vmem:[%s27285_s0 + $0x100] sm:$0xff]  }
 0xb2b   :  { %16741 = vmatprep.subr.bf16.mxu1 %v22803_v9 }
 0xb2e   :  { %16742 = vmatpush3.bf16.msra.mxu1 %v22803_v9  ;;  %v19688_v9 = vld [vmem:[%s27291_s6 + $0x40] sm:$0xff]  }
 0xb2f   :  { %16743 = vmatprep.subr.bf16.mxu1 %v22805_v46 }
 0xb31   :  { %16736 = vmatmul.mubr.msk.bf16.gmra.mrb[116].mxu1 %vm1199_vm0, %v23068_v8 }
 0xb32   :  { %16744 = vmatpush3.bf16.msra.mxu1 %v22805_v46  ;;  %16747 = vmatprep.mubr.msk.bf16.mxu1 %vm1199_vm0, %v23076_v10  ;;  %v19690_v46 = vld [vmem:[%s27291_s6 + $0x48] sm:$0xff]  }
 0xb33   :  { %16745 = vmatprep.subr.bf16.mxu1 %v22807_v52 }
 0xb36   :  { %16746 = vmatpush3.bf16.msra.mxu1 %v22807_v52  ;;  %v19692_v52 = vld [vmem:[%s27291_s6 + $0x50] sm:$0xff]  }
 0xb37   :  { %16779 = vmatprep.subr.bf16.mxu1 %v19688_v9 }
 0xb39   :  { %16748 = vmatmul.mubr.msk.bf16.vlgmr.msra.gmra.mrb[112].mxu1 %vm1199_vm0, %v23091_v16 }
 0xb3a   :  { %16751 = vmatprep.mubr.msk.bf16.mxu1 %vm1199_vm0, %v23098_v60  ;;  %16780 = vmatpush3.bf16.msra.mxu1 %v19688_v9 }
 0xb3b   :  { %16781 = vmatprep.subr.bf16.mxu1 %v19690_v46 }
 0xb3e   :  { %16782 = vmatpush3.bf16.msra.mxu1 %v19690_v46 }
 0xb3f   :  { %16783 = vmatprep.subr.bf16.mxu1 %v19692_v52 }
 0xb41   :  { %16752 = vmatmul.mubr.msk.bf16.gmra.mrb[116].mxu1 %vm1199_vm0, %v23111_v0 }
 0xb42   :  { %16784 = vmatpush3.bf16.msra.mxu1 %v19692_v52  ;;  %v19706_v52 = vld [vmem:[%s27291_s6 + $0x90] sm:$0xff]  }
 0xb43   :  { %16785 = vmatprep.subr.bf16.mxu1 %v19694_v59 }
 0xb46   :  { %16786 = vmatpush3.bf16.msra.mxu1 %v19694_v59 }
 0xb47   :  { %16787 = vmatprep.subr.bf16.mxu1 %v19696_v42 }
 0xb4a   :  { %16788 = vmatpush3.bf16.msra.mxu1 %v19696_v42 }
 0xb4b   :  { %16789 = vmatprep.subr.bf16.mxu1 %v19698_v33 }
 0xb4e   :  { %16790 = vmatpush3.bf16.msra.mxu1 %v19698_v33 }
 0xb4f   :  { %16791 = vmatprep.subr.bf16.mxu1 %v19700_v29 }
 0xb52   :  { %16792 = vmatpush3.bf16.msra.mxu1 %v19700_v29 }
 0xb53   :  { %16793 = vmatprep.subr.bf16.mxu1 %v19702_v27 }
 0xb56   :  { %16794 = vmatpush3.bf16.msra.mxu1 %v19702_v27  ;;  %v19708_v27 = vld [vmem:[%s27291_s6 + $0xa0] sm:$0xff]  }
 0xb57   :  { %16835 = vmatprep.subr.bf16.mxu1 %v19704_v38 }
 0xc0c   :  { %v16749_v13 = vpop.f32.mrb[112].mxu1 }
 0xc0d   :  { %v8556_v2 = vadd.f32 %v16749_v13, %v15633_v5  ;;  %v8508_v40 = vpop.f32.mrb[113].mxu1  ;;  %v19711_v13 = vld [vmem:[%s27291_s6 + $0xb8] sm:$0xff]  }
 0xc0e   :  { %v8554_v44 = vadd.f32 %v15633_v5, %v8508_v40  ;;  %v16750_v28 = vpop.f32.mrb[114].mxu1  ;;  %v19713_v40 = vld [vmem:[%s27291_s6 + $0xc8] sm:$0xff]  }
 0xc0f   :  { %v8557_v55 = vadd.f32 %v16750_v28, %v15633_v5  ;;  %v8511_v4 = vpop.f32.mrb[115].mxu1  ;;  %v8564_v36 = vmax.f32 %v8556_v2, 0.0  ;;  %v19712_v2 = vld [vmem:[%s27291_s6 + $0xc0] sm:$0xff]   ;;  %v19715_v28 = vld [vmem:[%s27291_s6 + $0xd8] sm:$0xff]  }
 0xc10   :  { %v8555_v17 = vadd.f32 %v15633_v5, %v8511_v4  ;;  %v8562_v24 = vmax.f32 %v8554_v44, 0.0  ;;  %v19714_v44 = vld [vmem:[%s27291_s6 + $0xd0] sm:$0xff]   ;;  %v19717_v4 = vld [vmem:[%s27291_s6 + $0xe8] sm:$0xff]  }
 0xc11   :  { %v8565_v25 = vmax.f32 %v8557_v55, 0.0  ;;  %v19716_v55 = vld [vmem:[%s27291_s6 + $0xe0] sm:$0xff]  }
 0xc12   :  { %v8563_v43 = vmax.f32 %v8555_v17, 0.0  ;;  %v19718_v17 = vld [vmem:[%s27291_s6 + $0xf0] sm:$0xff]  }
 0xc13   :  { %v23139_v47 = vpack.c.bf16 %v8565_v25, %v8564_v36  ;;  %v19719_v36 = vld [vmem:[%s27291_s6 + $0xf8] sm:$0xff]   ;;  %v19720_v25 = vld [vmem:[%s27291_s6 + $0x140] sm:$0xff]  }
 0xc14   :  { %v23141_v19 = vpack.c.bf16 %v8563_v43, %v8562_v24  ;;  %v16753_v49 = vpop.f32.mrb[116].mxu1  ;;  %v19721_v24 = vld [vmem:[%s27291_s6 + $0x148] sm:$0xff]   ;;  %v19722_v43 = vld [vmem:[%s27291_s6 + $0x150] sm:$0xff]  }
 0xc15   :  { %v8560_v53 = vadd.f32 %v16753_v49, %v15633_v5  ;;  %v8524_v56 = vpop.f32.mrb[117].mxu1  ;;  %v19723_v49 = vld [vmem:[%s27291_s6 + $0x158] sm:$0xff]  }
 0xc16   :  { %v8558_v18 = vadd.f32 %v15633_v5, %v8524_v56  ;;  %v16754_v22 = vpop.f32.mrb[118].mxu1  ;;  %16771 = vmatprep.mubr.bf16.mxu0 %v23141_v19  ;;  %16795 = vmatprep.mubr.bf16.mxu1 %v23141_v19  ;;  %v19725_v56 = vld [vmem:[%s27291_s6 + $0x168] sm:$0xff]  }
 0xc17   :  { %v8561_v62 = vadd.f32 %v16754_v22, %v15633_v5  ;;  %v8527_v37 = vpop.f32.mrb[119].mxu1  ;;  %16772 = vmatmul.mubr.bf16.vlgmr.msra.gmra.mrb[160].mxu0 %v23139_v47  ;;  %16796 = vmatmul.mubr.bf16.vlgmr.msra.gmra.mrb[152].mxu1 %v23139_v47  ;;  %v8568_v9 = vmax.f32 %v8560_v53, 0.0  ;;  %v19724_v53 = vld [vmem:[%s27291_s6 + $0x160] sm:$0xff]  }
 0xc18   :  { %v8559_v35 = vadd.f32 %v15633_v5, %v8527_v37  ;;  %16836 = vmatpush3.bf16.msra.mxu1 %v19704_v38  ;;  %v8566_v59 = vmax.f32 %v8558_v18, 0.0  ;;  %v19709_v38 = vld [vmem:[%s27291_s6 + $0xa8] sm:$0xff]   ;;  %v19710_v5 = vld [vmem:[%s27291_s6 + $0xb0] sm:$0xff]   ;;  %v19727_v18 = vld [vmem:[%s27291_s6 + $0x178] sm:$0xff]  }
 0xc19   :  { %v8569_v46 = vmax.f32 %v8561_v62, 0.0  ;;  %16837 = vmatprep.subr.bf16.mxu1 %v19705_v3  ;;  %v19728_v22 = vld [vmem:[%s27291_s6 + $0x180] sm:$0xff]   ;;  %v19729_v62 = vld [vmem:[%s27291_s6 + $0x188] sm:$0xff]   ;;  %v19730_v37 = vld [vmem:[%s27291_s6 + $0x190] sm:$0xff]  }
 0xc1a   :  { %v8567_v42 = vmax.f32 %v8559_v35, 0.0  ;;  %v19731_v35 = vld [vmem:[%s27291_s6 + $0x198] sm:$0xff]  }
 0xc1b   :  { %v23153_v33 = vpack.c.bf16 %v8569_v46, %v8568_v9  ;;  %v19732_v9 = vld [vmem:[%s27291_s6 + $0x1a0] sm:$0xff]   ;;  %v19733_v46 = vld [vmem:[%s27291_s6 + $0x1a8] sm:$0xff]  }
 0xc1c   :  { %v23155_v29 = vpack.c.bf16 %v8567_v42, %v8566_v59  ;;  %16838 = vmatpush3.bf16.msra.mxu1 %v19705_v3  ;;  %v19726_v3 = vld [vmem:[%s27291_s6 + $0x170] sm:$0xff]   ;;  %v19735_v59 = vld [vmem:[%s27291_s6 + $0x1b8] sm:$0xff]   ;;  %v19736_v42 = vld [vmem:[%s27291_s6 + $0x1c0] sm:$0xff]  }
 0xc1d   :  { %16839 = vmatprep.subr.bf16.mxu1 %v19706_v52 }
 0xc1e   :  { %16775 = vmatprep.mubr.bf16.mxu0 %v23155_v29  ;;  %16799 = vmatprep.mubr.bf16.mxu1 %v23155_v29 }
 0xc1f   :  { %16776 = vmatmul.mubr.bf16.gmra.mrb[164].mxu0 %v23153_v33  ;;  %16800 = vmatmul.mubr.bf16.gmra.mrb[156].mxu1 %v23153_v33 }
 0xc20   :  { %16840 = vmatpush3.bf16.msra.mxu1 %v19706_v52  ;;  %16851 = vmatprep.mubr.bf16.mxu1 %v23141_v19  ;;  %v19734_v52 = vld [vmem:[%s27291_s6 + $0x1b0] sm:$0xff]  }
 0xc21   :  { %16841 = vmatprep.subr.bf16.mxu1 %v19707_v34  ;;  %16811 = vmatprep.mubr.msk.bf16.mxu0 %vm1199_vm0, %v19796_v26  ;;  %v19739_v26 = vld [vmem:[%s27291_s6 + $0x1d8] sm:$0xff]  }
 0xc24   :  { %16842 = vmatpush3.bf16.msra.mxu1 %v19707_v34  ;;  %v19737_v34 = vld [vmem:[%s27291_s6 + $0x1c8] sm:$0xff]  }
 0xc25   :  { %16843 = vmatprep.subr.bf16.mxu1 %v19708_v27 }
 0xc28   :  { %16844 = vmatpush3.bf16.msra.mxu1 %v19708_v27  ;;  %v19738_v27 = vld [vmem:[%s27291_s6 + $0x1d0] sm:$0xff]  }
 0xc29   :  { %16845 = vmatprep.subr.bf16.mxu1 %v19709_v38 }
 0xc2c   :  { %16846 = vmatpush3.bf16.msra.mxu1 %v19709_v38  ;;  %v19740_v38 = vld [vmem:[%s27291_s6 + $0x1e0] sm:$0xff]  }
 0xc2d   :  { %16847 = vmatprep.subr.bf16.mxu1 %v19710_v5 }
 0xc30   :  { %16848 = vmatpush3.bf16.msra.mxu1 %v19710_v5  ;;  %v19741_v5 = vld [vmem:[%s27291_s6 + $0x1e8] sm:$0xff]  }
 0xc31   :  { %16849 = vmatprep.subr.bf16.mxu1 %v19711_v13 }
 0xc34   :  { %16850 = vmatpush3.bf16.msra.mxu1 %v19711_v13  ;;  %v19742_v13 = vld [vmem:[%s27291_s6 + $0x1f0] sm:$0xff]  }
 0xc35   :  { %16875 = vmatprep.subr.bf16.mxu1 %v19712_v2 }
 0xc37   :  { %16852 = vmatmul.mubr.bf16.vlgmr.msra.gmra.mrb[160].mxu1 %v23139_v47 }
 0xc38   :  { %16855 = vmatprep.mubr.bf16.mxu1 %v23155_v29  ;;  %16876 = vmatpush3.bf16.msra.mxu1 %v19712_v2  ;;  %v19743_v2 = vld [vmem:[%s27291_s6 + $0x1f8] sm:$0xff]  }
 0xc39   :  { %16877 = vmatprep.subr.bf16.mxu1 %v19713_v40 }
 0xc3c   :  { %16878 = vmatpush3.bf16.msra.mxu1 %v19713_v40 }
 0xc3d   :  { %16879 = vmatprep.subr.bf16.mxu1 %v19714_v44 }
 0xc3f   :  { %16856 = vmatmul.mubr.bf16.gmra.mrb[164].mxu1 %v23153_v33 }
 0xc40   :  { %16880 = vmatpush3.bf16.msra.mxu1 %v19714_v44  ;;  %16891 = vmatprep.mubr.bf16.mxu1 %v23141_v19 }
 0xc41   :  { %16881 = vmatprep.subr.bf16.mxu1 %v19715_v28 }
 0xc44   :  { %16882 = vmatpush3.bf16.msra.mxu1 %v19715_v28 }
 0xc45   :  { %16883 = vmatprep.subr.bf16.mxu1 %v19716_v55 }
 0xc48   :  { %16884 = vmatpush3.bf16.msra.mxu1 %v19716_v55 }
 0xc49   :  { %16885 = vmatprep.subr.bf16.mxu1 %v19717_v4 }
 0xc4c   :  { %16886 = vmatpush3.bf16.msra.mxu1 %v19717_v4 }
 0xc4d   :  { %16887 = vmatprep.subr.bf16.mxu1 %v19718_v17 }
 0xc50   :  { %16888 = vmatpush3.bf16.msra.mxu1 %v19718_v17 }
 0xc51   :  { %16889 = vmatprep.subr.bf16.mxu1 %v19719_v36 }
 0xc54   :  { %16890 = vmatpush3.bf16.msra.mxu1 %v19719_v36 }
 0xc55   :  { %16955 = vmatprep.subr.bf16.mxu1 %v19720_v25 }
 0xc57   :  { %16892 = vmatmul.mubr.bf16.vlgmr.msra.gmra.mrb[168].mxu1 %v23139_v47 }
 0xc58   :  { %16895 = vmatprep.mubr.bf16.mxu1 %v23155_v29  ;;  %16956 = vmatpush3.bf16.msra.mxu1 %v19720_v25 }
 0xc59   :  { %16957 = vmatprep.subr.bf16.mxu1 %v19721_v24 }
 0xc5c   :  { %16958 = vmatpush3.bf16.msra.mxu1 %v19721_v24 }
 0xc5d   :  { %16959 = vmatprep.subr.bf16.mxu1 %v19722_v43 }
 0xc5f   :  { %16896 = vmatmul.mubr.bf16.gmra.mrb[172].mxu1 %v23153_v33 }
 0xc60   :  { %16960 = vmatpush3.bf16.msra.mxu1 %v19722_v43  ;;  %16971 = vmatprep.mubr.bf16.mxu1 %v23141_v19 }
 0xc61   :  { %16961 = vmatprep.subr.bf16.mxu1 %v19723_v49 }
 0xc64   :  { %16962 = vmatpush3.bf16.msra.mxu1 %v19723_v49 }
 0xc65   :  { %16963 = vmatprep.subr.bf16.mxu1 %v19724_v53 }
 0xc68   :  { %16964 = vmatpush3.bf16.msra.mxu1 %v19724_v53 }
 0xc69   :  { %16965 = vmatprep.subr.bf16.mxu1 %v19725_v56 }
 0xc6c   :  { %16966 = vmatpush3.bf16.msra.mxu1 %v19725_v56 }
 0xc6d   :  { %16967 = vmatprep.subr.bf16.mxu1 %v19726_v3 }
 0xc70   :  { %16968 = vmatpush3.bf16.msra.mxu1 %v19726_v3 }
 0xc71   :  { %16969 = vmatprep.subr.bf16.mxu1 %v19727_v18 }
 0xc74   :  { %16970 = vmatpush3.bf16.msra.mxu1 %v19727_v18 }
 0xc75   :  { %16995 = vmatprep.subr.bf16.mxu1 %v19728_v22 }
 0xc77   :  { %16972 = vmatmul.mubr.bf16.vlgmr.msra.gmra.mrb[176].mxu1 %v23139_v47 }
 0xc78   :  { %16975 = vmatprep.mubr.bf16.mxu1 %v23155_v29  ;;  %16996 = vmatpush3.bf16.msra.mxu1 %v19728_v22 }
 0xc79   :  { %16997 = vmatprep.subr.bf16.mxu1 %v19729_v62 }
 0xc7c   :  { %16998 = vmatpush3.bf16.msra.mxu1 %v19729_v62 }
 0xc7d   :  { %16999 = vmatprep.subr.bf16.mxu1 %v19730_v37 }
 0xc7f   :  { %16976 = vmatmul.mubr.bf16.gmra.mrb[180].mxu1 %v23153_v33 }
 0xc80   :  { %17000 = vmatpush3.bf16.msra.mxu1 %v19730_v37  ;;  %17011 = vmatprep.mubr.bf16.mxu1 %v23141_v19 }
 0xc81   :  { %17001 = vmatprep.subr.bf16.mxu1 %v19731_v35 }
 0xc84   :  { %17002 = vmatpush3.bf16.msra.mxu1 %v19731_v35 }
 0xc85   :  { %17003 = vmatprep.subr.bf16.mxu1 %v19732_v9 }
 0xc88   :  { %17004 = vmatpush3.bf16.msra.mxu1 %v19732_v9 }
 0xc89   :  { %17005 = vmatprep.subr.bf16.mxu1 %v19733_v46 }
 0xc8c   :  { %17006 = vmatpush3.bf16.msra.mxu1 %v19733_v46 }
 0xc8d   :  { %17007 = vmatprep.subr.bf16.mxu1 %v19734_v52 }
 0xc90   :  { %17008 = vmatpush3.bf16.msra.mxu1 %v19734_v52 }
 0xc91   :  { %17009 = vmatprep.subr.bf16.mxu1 %v19735_v59 }
 0xc94   :  { %17010 = vmatpush3.bf16.msra.mxu1 %v19735_v59 }
 0xc95   :  { %17035 = vmatprep.subr.bf16.mxu1 %v19736_v42 }
 0xc97   :  { %17012 = vmatmul.mubr.bf16.vlgmr.msra.gmra.mrb[184].mxu1 %v23139_v47 }
 0xc98   :  { %17015 = vmatprep.mubr.bf16.mxu1 %v23155_v29  ;;  %17036 = vmatpush3.bf16.msra.mxu1 %v19736_v42 }
 0xc99   :  { %17037 = vmatprep.subr.bf16.mxu1 %v19737_v34 }
 0xc9c   :  { %17038 = vmatpush3.bf16.msra.mxu1 %v19737_v34  ;;  %v19797_v34 = vld [vmem:[%s27285_s0 + $0x28] sm:$0xff]  }
 0xc9d   :  { %17039 = vmatprep.subr.bf16.mxu1 %v19738_v27 }
 0xc9f   :  { %17016 = vmatmul.mubr.bf16.gmra.mrb[188].mxu1 %v23153_v33 }
 0xca0   :  { %17040 = vmatpush3.bf16.msra.mxu1 %v19738_v27  ;;  %17051 = vmatprep.mubr.bf16.mxu1 %v23141_v19  ;;  %v19798_v27 = vld [vmem:[%s27285_s0 + $0x30] sm:$0xff]  }
 0xca1   :  { %17041 = vmatprep.subr.bf16.mxu1 %v19739_v26 }
 0xca4   :  { %17042 = vmatpush3.bf16.msra.mxu1 %v19739_v26  ;;  %v19799_v26 = vld [vmem:[%s27285_s0 + $0x38] sm:$0xff]  }
 0xca5   :  { %17043 = vmatprep.subr.bf16.mxu1 %v19740_v38 }
 0xca8   :  { %17044 = vmatpush3.bf16.msra.mxu1 %v19740_v38  ;;  %v19800_v38 = vld [vmem:[%s27285_s0] sm:$0xff]  }
 0xca9   :  { %17045 = vmatprep.subr.bf16.mxu1 %v19741_v5 }
 0xcac   :  { %17046 = vmatpush3.bf16.msra.mxu1 %v19741_v5 }
 0xcad   :  { %17047 = vmatprep.subr.bf16.mxu1 %v19742_v13 }
 0xcb0   :  { %17048 = vmatpush3.bf16.msra.mxu1 %v19742_v13 }
 0xcb1   :  { %17049 = vmatprep.subr.bf16.mxu1 %v19743_v2 }
 0xcb4   :  { %17050 = vmatpush3.bf16.msra.mxu1 %v19743_v2 }
 0xcb7   :  { %17052 = vmatmul.mubr.bf16.vlgmr.msra.gmra.mrb[192].mxu1 %v23139_v47 }
 0xcb8   :  { %17055 = vmatprep.mubr.bf16.mxu1 %v23155_v29 }
 0xcbf   :  { %17056 = vmatmul.mubr.bf16.gmra.mrb[196].mxu1 %v23153_v33 }
 0xcea   :  { %v16773_v40 = vpop.f32.mrb[160].mxu0  ;;  %v16797_v44 = vpop.f32.mrb[152].mxu1 }
 0xceb   :  { %v8672_v28 = vpop.f32.mrb[161].mxu0  ;;  %v8806_v55 = vpop.f32.mrb[153].mxu1 }
 0xcec   :  { %v16774_v4 = vpop.f32.mrb[162].mxu0  ;;  %v16798_v17 = vpop.f32.mrb[154].mxu1 }
 0xced   :  { %v8704_v36 = vpack.c.bf16 %v16774_v4, %v16773_v40  ;;  %v8838_v25 = vpack.c.bf16 %v16798_v17, %v16797_v44  ;;  %v8675_v24 = vpop.f32.mrb[163].mxu0  ;;  %v8809_v43 = vpop.f32.mrb[155].mxu1  ;;  %v19802_v4 = vld [vmem:[%s27285_s0 + $0x10] sm:$0xff]  }
 0xcee   :  { %v8703_v49 = vpack.c.bf16 %v8675_v24, %v8672_v28  ;;  %v8837_v53 = vpack.c.bf16 %v8809_v43, %v8806_v55  ;;  %v19801_v55 = vld [vmem:[%s27285_s0 + $0x8] sm:$0xff]  }
 0xcf0   :  { %16803 = vmatprep.subr.bf16.mxu0 %v8837_v53 }
 0xcf1   :  { %16804 = vmatpush3.bf16.msra.mxu0 %v8837_v53  ;;  %v19803_v53 = vld [vmem:[%s27285_s0 + $0x18] sm:$0xff]  }
 0xcf2   :  { %v16777_v56 = vpop.f32.mrb[164].mxu0  ;;  %v16801_v3 = vpop.f32.mrb[156].mxu1  ;;  %16805 = vmatprep.subr.bf16.mxu0 %v8838_v25 }
 0xcf3   :  { %v8688_v18 = vpop.f32.mrb[165].mxu0  ;;  %v8822_v22 = vpop.f32.mrb[157].mxu1 }
 0xcf4   :  { %v16778_v62 = vpop.f32.mrb[166].mxu0  ;;  %v16802_v37 = vpop.f32.mrb[158].mxu1 }
 0xcf5   :  { %v8706_v35 = vpack.c.bf16 %v16778_v62, %v16777_v56  ;;  %v8840_v9 = vpack.c.bf16 %v16802_v37, %v16801_v3  ;;  %v8691_v46 = vpop.f32.mrb[167].mxu0  ;;  %v8825_v52 = vpop.f32.mrb[159].mxu1  ;;  %16806 = vmatpush3.bf16.msra.mxu0 %v8838_v25 }
 0xcf6   :  { %v8705_v59 = vpack.c.bf16 %v8691_v46, %v8688_v18  ;;  %v8839_v42 = vpack.c.bf16 %v8825_v52, %v8822_v22  ;;  %v19746_v52 = vld [vmem:[%s27291_s6 + $0x110] sm:$0xff]  }
 0xcf8   :  { %16807 = vmatprep.subr.bf16.mxu0 %v8839_v42 }
 0xcf9   :  { %16808 = vmatpush3.bf16.msra.mxu0 %v8839_v42 }
 0xcfa   :  { %16809 = vmatprep.subr.bf16.mxu0 %v8840_v9 }
 0xcfd   :  { %16810 = vmatpush3.bf16.msra.mxu0 %v8840_v9 }
 0xcfe   :  { %16819 = vmatprep.subr.bf16.mxu0 %v8703_v49 }
 0xd00   :  { %16812 = vmatmul.mubr.msk.bf16.vlgmr.msra.gmra.mrb[168].mxu0 %vm1199_vm0, %v19797_v34 }
 0xd01   :  { %16820 = vmatpush3.bf16.msra.mxu0 %v8703_v49  ;;  %16815 = vmatprep.mubr.msk.bf16.mxu0 %vm1199_vm0, %v19798_v27 }
 0xd02   :  { %16821 = vmatprep.subr.bf16.mxu0 %v8704_v36 }
 0xd05   :  { %16822 = vmatpush3.bf16.msra.mxu0 %v8704_v36 }
 0xd06   :  { %16823 = vmatprep.subr.bf16.mxu0 %v8705_v59 }
 0xd08   :  { %16816 = vmatmul.mubr.msk.bf16.gmra.mrb[172].mxu0 %vm1199_vm0, %v19799_v26 }
 0xd09   :  { %16824 = vmatpush3.bf16.msra.mxu0 %v8705_v59  ;;  %16827 = vmatprep.mubr.msk.bf16.mxu0 %vm1199_vm0, %v19800_v38  ;;  %v19747_v59 = vld [vmem:[%s27291_s6 + $0x118] sm:$0xff]  }
 0xd0a   :  { %v16853_v5 = vpop.f32.mrb[160].mxu1  ;;  %16825 = vmatprep.subr.bf16.mxu0 %v8706_v35 }
 0xd0b   :  { %v9070_v13 = vpop.f32.mrb[161].mxu1 }
 0xd0c   :  { %v16854_v2 = vpop.f32.mrb[162].mxu1 }
 0xd0d   :  { %v9102_v40 = vpack.c.bf16 %v16854_v2, %v16853_v5  ;;  %v9073_v44 = vpop.f32.mrb[163].mxu1  ;;  %16826 = vmatpush3.bf16.msra.mxu0 %v8706_v35 }
 0xd0e   :  { %v9101_v28 = vpack.c.bf16 %v9073_v44, %v9070_v13  ;;  %v19750_v13 = vld [vmem:[%s27291_s6 + $0x130] sm:$0xff]  }
 0xd10   :  { %16859 = vmatprep.subr.bf16.mxu0 %v9101_v28  ;;  %16828 = vmatmul.mubr.msk.bf16.vlgmr.msra.gmra.mrb[168].mxu0 %vm1199_vm0, %v19801_v55 }
 0xd11   :  { %16860 = vmatpush3.bf16.msra.mxu0 %v9101_v28  ;;  %16831 = vmatprep.mubr.msk.bf16.mxu0 %vm1199_vm0, %v19802_v4  ;;  %v19751_v4 = vld [vmem:[%s27291_s6 + $0x138] sm:$0xff]  }
 0xd12   :  { %v16857_v17 = vpop.f32.mrb[164].mxu1  ;;  %16861 = vmatprep.subr.bf16.mxu0 %v9102_v40 }
 0xd13   :  { %v9086_v36 = vpop.f32.mrb[165].mxu1 }
 0xd14   :  { %v16858_v25 = vpop.f32.mrb[166].mxu1 }
 0xd15   :  { %v9104_v24 = vpack.c.bf16 %v16858_v25, %v16857_v17  ;;  %v9089_v43 = vpop.f32.mrb[167].mxu1  ;;  %16862 = vmatpush3.bf16.msra.mxu0 %v9102_v40 }
 0xd16   :  { %v9103_v49 = vpack.c.bf16 %v9089_v43, %v9086_v36 }
 0xd18   :  { %16863 = vmatprep.subr.bf16.mxu0 %v9103_v49  ;;  %16832 = vmatmul.mubr.msk.bf16.gmra.mrb[172].mxu0 %vm1199_vm0, %v19803_v53 }
 0xd19   :  { %16864 = vmatpush3.bf16.msra.mxu0 %v9103_v49  ;;  %16867 = vmatprep.mubr.msk.bf16.mxu0 %vm1199_vm0, %v22799_v1 }
 0xd1a   :  { %16865 = vmatprep.subr.bf16.mxu0 %v9104_v24 }
 0xd1d   :  { %16866 = vmatpush3.bf16.msra.mxu0 %v9104_v24 }
 0xd20   :  { %16868 = vmatmul.mubr.msk.bf16.vlgmr.msra.gmra.mrb[168].mxu0 %vm1199_vm0, %v22813_v50 }
 0xd21   :  { %16871 = vmatprep.mubr.msk.bf16.mxu0 %vm1199_vm0, %v22821_v54 }
 0xd28   :  { %16872 = vmatmul.mubr.msk.bf16.gmra.mrb[172].mxu0 %vm1199_vm0, %v22831_v21  ;;  %v19744_v21 = vld [vmem:[%s27291_s6 + $0x100] sm:$0xff]  }
 0xd29   :  { %16907 = vmatprep.mubr.msk.bf16.mxu0 %vm1199_vm0, %v22839_v32  ;;  %v19745_v32 = vld [vmem:[%s27291_s6 + $0x108] sm:$0xff]  }
 0xd2a   :  { %v16893_v56 = vpop.f32.mrb[168].mxu1 }
 0xd2b   :  { %v9277_v3 = vpop.f32.mrb[169].mxu1 }
 0xd2c   :  { %v16894_v18 = vpop.f32.mrb[170].mxu1 }
 0xd2d   :  { %v9309_v22 = vpack.c.bf16 %v16894_v18, %v16893_v56  ;;  %v9280_v62 = vpop.f32.mrb[171].mxu1 }
 0xd2e   :  { %v9308_v1 = vpack.c.bf16 %v9280_v62, %v9277_v3 }
 0xd30   :  { %16899 = vmatprep.subr.bf16.mxu0 %v9308_v1 }
 0xd31   :  { %16900 = vmatpush3.bf16.msra.mxu0 %v9308_v1 }
 0xd32   :  { %v16897_v37 = vpop.f32.mrb[172].mxu1  ;;  %16901 = vmatprep.subr.bf16.mxu0 %v9309_v22 }
 0xd33   :  { %v9293_v50 = vpop.f32.mrb[173].mxu1 }
 0xd34   :  { %v16898_v35 = vpop.f32.mrb[174].mxu1 }
 0xd35   :  { %v9311_v9 = vpack.c.bf16 %v16898_v35, %v16897_v37  ;;  %v9296_v54 = vpop.f32.mrb[175].mxu1  ;;  %16902 = vmatpush3.bf16.msra.mxu0 %v9309_v22 }
 0xd36   :  { %v9310_v46 = vpack.c.bf16 %v9296_v54, %v9293_v50 }
 0xd38   :  { %16903 = vmatprep.subr.bf16.mxu0 %v9310_v46 }
 0xd39   :  { %16904 = vmatpush3.bf16.msra.mxu0 %v9310_v46 }
 0xd3a   :  { %16905 = vmatprep.subr.bf16.mxu0 %v9311_v9 }
 0xd3d   :  { %16906 = vmatpush3.bf16.msra.mxu0 %v9311_v9 }
 0xd3e   :  { %16915 = vmatprep.subr.bf16.mxu0 %v19744_v21 }
 0xd40   :  { %16908 = vmatmul.mubr.msk.bf16.vlgmr.msra.gmra.mrb[168].mxu0 %vm1199_vm0, %v22849_v31 }
 0xd41   :  { %16916 = vmatpush3.bf16.msra.mxu0 %v19744_v21  ;;  %16911 = vmatprep.mubr.msk.bf16.mxu0 %vm1199_vm0, %v22857_v61  ;;  %v19748_v61 = vld [vmem:[%s27291_s6 + $0x120] sm:$0xff]  }
 0xd42   :  { %16917 = vmatprep.subr.bf16.mxu0 %v19745_v32 }
 0xd45   :  { %16918 = vmatpush3.bf16.msra.mxu0 %v19745_v32 }
 0xd46   :  { %16919 = vmatprep.subr.bf16.mxu0 %v19746_v52 }
 0xd48   :  { %16912 = vmatmul.mubr.msk.bf16.gmra.mrb[172].mxu0 %vm1199_vm0, %v22867_v57  ;;  %v19749_v57 = vld [vmem:[%s27291_s6 + $0x128] sm:$0xff]  }
 0xd49   :  { %16920 = vmatpush3.bf16.msra.mxu0 %v19746_v52  ;;  %16931 = vmatprep.mubr.bf16.mxu0 %v23141_v19 }
 0xd4a   :  { %v16973_v31 = vpop.f32.mrb[176].mxu1  ;;  %16921 = vmatprep.subr.bf16.mxu0 %v19747_v59 }
 0xd4b   :  { %v9691_v42 = vpop.f32.mrb[177].mxu1 }
 0xd4c   :  { %v16974_v34 = vpop.f32.mrb[178].mxu1 }
 0xd4d   :  { %v23356_v27 = vpack.c.bf16 %v16974_v34, %v16973_v31  ;;  %16922 = vmatpush3.bf16.msra.mxu0 %v19747_v59  ;;  %v9694_v26 = vpop.f32.mrb[179].mxu1 }
 0xd4e   :  { %v23358_v38 = vpack.c.bf16 %v9694_v26, %v9691_v42  ;;  %16923 = vmatprep.subr.bf16.mxu0 %v19748_v61 }
 0xd51   :  { %16924 = vmatpush3.bf16.msra.mxu0 %v19748_v61 }
 0xd52   :  { %v16977_v5 = vpop.f32.mrb[180].mxu1  ;;  %16925 = vmatprep.subr.bf16.mxu0 %v19749_v57 }
 0xd53   :  { %v9707_v2 = vpop.f32.mrb[181].mxu1 }
 0xd54   :  { %v16978_v40 = vpop.f32.mrb[182].mxu1 }
 0xd55   :  { %v23366_v44 = vpack.c.bf16 %v16978_v40, %v16977_v5  ;;  %16926 = vmatpush3.bf16.msra.mxu0 %v19749_v57  ;;  %v9710_v28 = vpop.f32.mrb[183].mxu1 }
 0xd56   :  { %v23368_v55 = vpack.c.bf16 %v9710_v28, %v9707_v2  ;;  %16927 = vmatprep.subr.bf16.mxu0 %v19750_v13 }
 0xd59   :  { %16928 = vmatpush3.bf16.msra.mxu0 %v19750_v13 }
 0xd5a   :  { %16929 = vmatprep.subr.bf16.mxu0 %v19751_v4 }
 0xd5d   :  { %16930 = vmatpush3.bf16.msra.mxu0 %v19751_v4 }
 0xd60   :  { %16932 = vmatmul.mubr.bf16.vlgmr.msra.gmra.mrb[176].mxu0 %v23139_v47 }
 0xd61   :  { %16935 = vmatprep.mubr.bf16.mxu0 %v23155_v29 }
 0xd68   :  { %16936 = vmatmul.mubr.bf16.gmra.mrb[180].mxu0 %v23153_v33 }
 0xd69   :  { %16947 = vmatprep.mubr.msk.bf16.mxu0 %vm1199_vm0, %v22875_v14 }
 0xd6a   :  { %v17013_v17 = vpop.f32.mrb[184].mxu1 }
 0xd6b   :  { %v9898_v36 = vpop.f32.mrb[185].mxu1 }
 0xd6c   :  { %v17014_v25 = vpop.f32.mrb[186].mxu1 }
 0xd6d   :  { %v9930_v24 = vpack.c.bf16 %v17014_v25, %v17013_v17  ;;  %v9901_v43 = vpop.f32.mrb[187].mxu1  ;;  %v19804_v17 = vld [vmem:[%s27285_s0 + $0x88] sm:$0xff]   ;;  %v19806_v25 = vld [vmem:[%s27285_s0 + $0x98] sm:$0xff]  }
 0xd6e   :  { %v9929_v49 = vpack.c.bf16 %v9901_v43, %v9898_v36  ;;  %v19805_v36 = vld [vmem:[%s27285_s0 + $0x90] sm:$0xff]  }
 0xd72   :  { %v17017_v53 = vpop.f32.mrb[188].mxu1 }
 0xd73   :  { %v9914_v56 = vpop.f32.mrb[189].mxu1 }
 0xd74   :  { %v17018_v3 = vpop.f32.mrb[190].mxu1 }
 0xd75   :  { %v9932_v18 = vpack.c.bf16 %v17018_v3, %v17017_v53  ;;  %v9917_v22 = vpop.f32.mrb[191].mxu1 }
 0xd76   :  { %v9931_v62 = vpack.c.bf16 %v9917_v22, %v9914_v56 }
 0xd8a   :  { %v17053_v1 = vpop.f32.mrb[192].mxu1 }
 0xd8b   :  { %v10105_v37 = vpop.f32.mrb[193].mxu1 }
 0xd8c   :  { %v17054_v50 = vpop.f32.mrb[194].mxu1 }
 0xd8d   :  { %v10137_v35 = vpack.c.bf16 %v17054_v50, %v17053_v1  ;;  %v10108_v9 = vpop.f32.mrb[195].mxu1  ;;  %v19833_v1 = vmov 0.0  }
 0xd8e   :  { %v10136_v54 = vpack.c.bf16 %v10108_v9, %v10105_v37  ;;  %10694 = vmatprep.mubr.f32.mxu1 %v19833_v1 }
 0xd92   :  { %v17057_v46 = vpop.f32.mrb[196].mxu1 }
 0xd93   :  { %v10121_v14 = vpop.f32.mrb[197].mxu1 }
 0xd94   :  { %v17058_v21 = vpop.f32.mrb[198].mxu1 }
 0xd95   :  { %v10139_v32 = vpack.c.bf16 %v17058_v21, %v17057_v46  ;;  %v10124_v52 = vpop.f32.mrb[199].mxu1 }
 0xd96   :  { %v10138_v59 = vpack.c.bf16 %v10124_v52, %v10121_v14  ;;  %v23545_v14 = vld [vmem:[%s27292_s7] ss:$0 sm:$0xff] }
 0xe33   :  { %v16933_v31 = vpop.f32.mrb[176].mxu0 }
 0xe34   :  { %v9484_v61 = vpop.f32.mrb[177].mxu0 }
 0xe35   :  { %v16934_v42 = vpop.f32.mrb[178].mxu0 }
 0xe36   :  { %v9516_v34 = vpack.c.bf16 %v16934_v42, %v16933_v31  ;;  %v9487_v26 = vpop.f32.mrb[179].mxu0  ;;  %v11754_v31 = vld [vmem:[%s27293_s8 + $0x1c0] sm:$0xff] }
 0xe37   :  { %v9515_v57 = vpack.c.bf16 %v9487_v26, %v9484_v61  ;;  %v11724_v26 = vld [vmem:[%s27293_s8 + $0xd0] sm:$0xff] }
 0xe39   :  { %16939 = vmatprep.subr.bf16.mxu0 %v9515_v57 }
 0xe3a   :  { %16940 = vmatpush3.bf16.msra.mxu0 %v9515_v57 }
 0xe3b   :  { %v16937_v5 = vpop.f32.mrb[180].mxu0  ;;  %16941 = vmatprep.subr.bf16.mxu0 %v9516_v34 }
 0xe3c   :  { %v9500_v13 = vpop.f32.mrb[181].mxu0 }
 0xe3d   :  { %v16938_v2 = vpop.f32.mrb[182].mxu0 }
 0xe3e   :  { %v9518_v40 = vpack.c.bf16 %v16938_v2, %v16937_v5  ;;  %v9503_v28 = vpop.f32.mrb[183].mxu0  ;;  %16942 = vmatpush3.bf16.msra.mxu0 %v9516_v34  ;;  %v11733_v5 = vld [vmem:[%s27293_s8 + $0x118] sm:$0xff] }
 0xe3f   :  { %v9517_v4 = vpack.c.bf16 %v9503_v28, %v9500_v13 }
 0xe41   :  { %16943 = vmatprep.subr.bf16.mxu0 %v9517_v4 }
 0xe42   :  { %16944 = vmatpush3.bf16.msra.mxu0 %v9517_v4  ;;  %v11771_v4 = vld [vmem:[%s27293_s8 + $0x248] sm:$0xff] }
 0xe43   :  { %16945 = vmatprep.subr.bf16.mxu0 %v9518_v40 }
 0xe46   :  { %16946 = vmatpush3.bf16.msra.mxu0 %v9518_v40  ;;  %v11763_v40 = vld [vmem:[%s27293_s8 + $0x208] sm:$0xff] }
 0xe47   :  { %16979 = vmatprep.subr.bf16.mxu0 %v23358_v38 }
 0xe49   :  { %16948 = vmatmul.mubr.msk.bf16.vlgmr.msra.gmra.mrb[168].mxu0 %vm1199_vm0, %v19804_v17 }
 0xe4a   :  { %16980 = vmatpush3.bf16.msra.mxu0 %v23358_v38  ;;  %16951 = vmatprep.mubr.msk.bf16.mxu0 %vm1199_vm0, %v19805_v36 }
 0xe4b   :  { %16981 = vmatprep.subr.bf16.mxu0 %v23356_v27 }
 0xe4e   :  { %16982 = vmatpush3.bf16.msra.mxu0 %v23356_v27  ;;  %v11709_v27 = vld [vmem:[%s27293_s8 + $0x58] sm:$0xff] }
 0xe4f   :  { %16983 = vmatprep.subr.bf16.mxu0 %v23368_v55 }
 0xe51   :  { %16952 = vmatmul.mubr.msk.bf16.gmra.mrb[172].mxu0 %vm1199_vm0, %v19806_v25 }
 0xe52   :  { %16984 = vmatpush3.bf16.msra.mxu0 %v23368_v55  ;;  %16987 = vmatprep.mubr.msk.bf16.mxu0 %vm1199_vm0, %v22952_v20  ;;  %v19752_v20 = vld [vmem:[%s27291_s6 + $0x200] sm:$0xff]  }
 0xe53   :  { %16985 = vmatprep.subr.bf16.mxu0 %v23366_v44 }
 0xe56   :  { %16986 = vmatpush3.bf16.msra.mxu0 %v23366_v44 }
 0xe57   :  { %17019 = vmatprep.subr.bf16.mxu0 %v9929_v49 }
 0xe59   :  { %16988 = vmatmul.mubr.msk.bf16.vlgmr.msra.gmra.mrb[168].mxu0 %vm1199_vm0, %v22978_v11  ;;  %v19753_v11 = vld [vmem:[%s27291_s6 + $0x208] sm:$0xff]  }
 0xe5a   :  { %17020 = vmatpush3.bf16.msra.mxu0 %v9929_v49  ;;  %16991 = vmatprep.mubr.msk.bf16.mxu0 %vm1199_vm0, %v22986_v51  ;;  %v19754_v51 = vld [vmem:[%s27291_s6 + $0x210] sm:$0xff]  }
 0xe5b   :  { %17021 = vmatprep.subr.bf16.mxu0 %v9930_v24 }
 0xe5e   :  { %17022 = vmatpush3.bf16.msra.mxu0 %v9930_v24 }
 0xe5f   :  { %17023 = vmatprep.subr.bf16.mxu0 %v9931_v62 }
 0xe61   :  { %16992 = vmatmul.mubr.msk.bf16.gmra.mrb[172].mxu0 %vm1199_vm0, %v22996_v15  ;;  %v19755_v15 = vld [vmem:[%s27291_s6 + $0x218] sm:$0xff]  }
 0xe62   :  { %17024 = vmatpush3.bf16.msra.mxu0 %v9931_v62  ;;  %17027 = vmatprep.mubr.msk.bf16.mxu0 %vm1199_vm0, %v23004_v63  ;;  %v19756_v63 = vld [vmem:[%s27291_s6 + $0x220] sm:$0xff]  }
 0xe63   :  { %17025 = vmatprep.subr.bf16.mxu0 %v9932_v18 }
 0xe66   :  { %17026 = vmatpush3.bf16.msra.mxu0 %v9932_v18 }
 0xe67   :  { %17059 = vmatprep.subr.bf16.mxu0 %v10136_v54 }
 0xe69   :  { %17028 = vmatmul.mubr.msk.bf16.vlgmr.msra.gmra.mrb[168].mxu0 %vm1199_vm0, %v23014_v45  ;;  %v19757_v45 = vld [vmem:[%s27291_s6 + $0x228] sm:$0xff]  }
 0xe6a   :  { %17060 = vmatpush3.bf16.msra.mxu0 %v10136_v54  ;;  %17031 = vmatprep.mubr.msk.bf16.mxu0 %vm1199_vm0, %v23022_v30  ;;  %v19758_v30 = vld [vmem:[%s27291_s6 + $0x230] sm:$0xff]  }
 0xe6b   :  { %17061 = vmatprep.subr.bf16.mxu0 %v10137_v35 }
 0xe6e   :  { %17062 = vmatpush3.bf16.msra.mxu0 %v10137_v35 }
 0xe6f   :  { %17063 = vmatprep.subr.bf16.mxu0 %v10138_v59 }
 0xe71   :  { %17032 = vmatmul.mubr.msk.bf16.gmra.mrb[172].mxu0 %vm1199_vm0, %v23032_v6  ;;  %v19759_v6 = vld [vmem:[%s27291_s6 + $0x238] sm:$0xff]  }
 0xe72   :  { %17064 = vmatpush3.bf16.msra.mxu0 %v10138_v59  ;;  %17067 = vmatprep.mubr.msk.bf16.mxu0 %vm1199_vm0, %v23040_v23  ;;  %v23453_v23 = vand.u32 127, %v6075_v41 }
 0xe73   :  { %17065 = vmatprep.subr.bf16.mxu0 %v10139_v32 }
 0xe74   :  { %v23532_v50 = vadd.s32 512, %v23453_v23  ;;  %v23535_v35 = vadd.s32 256, %v23453_v23  ;;  %v23540_v46 = vadd.s32 896, %v23453_v23  ;;  %v10521_v13 = vand.u32 31, %v23453_v23 }
 0xe76   :  { %17066 = vmatpush3.bf16.msra.mxu0 %v10139_v32  ;;  %v10453_v9 = vshra.s32 %v23532_v50, 5  ;;  %v10451_v54 = vshra.s32 %v23535_v35, 5  ;;  %v23564_v61 = vshra.s32 %v23540_v46, 5  ;;  %v10528_v41 = vand.u32 31, %v23540_v46  ;;  %v11747_v46 = vld [vmem:[%s27293_s8 + $0x188] sm:$0xff] }
 0xe77   :  { %17075 = vmatprep.subr.bf16.mxu0 %v19752_v20 }
 0xe79   :  { %17068 = vmatmul.mubr.msk.bf16.vlgmr.msra.gmra.mrb[168].mxu0 %vm1199_vm0, %v23050_v12  ;;  %v23456_v12 = vadd.s32 8, %v22321_v48 }
 0xe7a   :  { %17076 = vmatpush3.bf16.msra.mxu0 %v19752_v20  ;;  %17071 = vmatprep.mubr.msk.bf16.mxu0 %vm1199_vm0, %v23058_v58  ;;  %v23459_v58 = vadd.s32 128, %v23453_v23 }
 0xe7b   :  { %17077 = vmatprep.subr.bf16.mxu0 %v19753_v11 }
 0xe7c   :  { %v10522_v21 = vand.u32 31, %v23459_v58 }
 0xe7e   :  { %17078 = vmatpush3.bf16.msra.mxu0 %v19753_v11 }
 0xe7f   :  { %17079 = vmatprep.subr.bf16.mxu0 %v19754_v51 }
 0xe81   :  { %17072 = vmatmul.mubr.msk.bf16.gmra.mrb[172].mxu0 %vm1199_vm0, %v23068_v8  ;;  %v10449_v8 = vshra.s32 %v23453_v23, 5 }
 0xe82   :  { %17080 = vmatpush3.bf16.msra.mxu0 %v19754_v51  ;;  %17091 = vmatprep.mubr.bf16.mxu0 %v23141_v19  ;;  %v23466_v19 = vadd.s32 24, %v22321_v48 }
 0xe83   :  { %17081 = vmatprep.subr.bf16.mxu0 %v19755_v15  ;;  %vm10457_vm1 = vcmp.eq.s32.totalorder %v10449_v8, %v22321_v48  ;;  %vm10465_vm2 = vcmp.eq.s32.totalorder %v10449_v8, %v23456_v12 }
 0xe84   :  { %vm23473_vm5 = vmpackc.low %vm10465_vm2, %vm10457_vm1  ;;  %vm10481_vm11 = vcmp.eq.s32.totalorder %v10449_v8, %v23466_v19 }
 0xe86   :  { %17082 = vmatpush3.bf16.msra.mxu0 %v19755_v15 }
 0xe87   :  { %17083 = vmatprep.subr.bf16.mxu0 %v19756_v63 }
 0xe8a   :  { %17084 = vmatpush3.bf16.msra.mxu0 %v19756_v63 }
 0xe8b   :  { %17085 = vmatprep.subr.bf16.mxu0 %v19757_v45 }
 0xe8e   :  { %17086 = vmatpush3.bf16.msra.mxu0 %v19757_v45  ;;  %v23688_v45 = vadd.s32 768, %v23453_v23 }
 0xe8f   :  { %17087 = vmatprep.subr.bf16.mxu0 %v19758_v30 }
 0xe92   :  { %17088 = vmatpush3.bf16.msra.mxu0 %v19758_v30 }
 0xe93   :  { %17089 = vmatprep.subr.bf16.mxu0 %v19759_v6 }
 0xe96   :  { %17090 = vmatpush3.bf16.msra.mxu0 %v19759_v6  ;;  %v10455_v6 = vshra.s32 %v23688_v45, 5 }
 0xe99   :  { %17092 = vmatmul.mubr.bf16.vlgmr.msra.gmra.mrb[184].mxu0 %v23139_v47  ;;  %v23463_v47 = vadd.s32 16, %v22321_v48 }
 0xe9a   :  { %17095 = vmatprep.mubr.bf16.mxu0 %v23155_v29  ;;  %v19832_v29 = vmov 1.0|1.0  }
 0xe9b   :  { %vm10473_vm10 = vcmp.eq.s32.totalorder %v10449_v8, %v23463_v47  ;;  %v10525_v8 = vand.u32 31, %v23532_v50  ;;  %v11708_v50 = vld [vmem:[%s27293_s8 + $0x50] sm:$0xff] }
 0xe9c   :  { %vm17121_vm12 = vmpackc.low %vm10481_vm11, %vm10473_vm10 }
 0xea1   :  { %17096 = vmatmul.mubr.bf16.gmra.mrb[188].mxu0 %v23153_v33  ;;  %v10450_v33 = vshra.s32 %v23459_v58, 5 }
 0xea2   :  { %17107 = vmatprep.mubr.msk.bf16.mxu0 %vm1199_vm0, %v23076_v10  ;;  %v10527_v10 = vand.u32 31, %v23688_v45 }
 0xea3   :  { %vm10458_vm3 = vcmp.eq.s32.totalorder %v10450_v33, %v22321_v48  ;;  %vm10466_vm4 = vcmp.eq.s32.totalorder %v10450_v33, %v23456_v12  ;;  %vm10474_vm6 = vcmp.eq.s32.totalorder %v10450_v33, %v23463_v47  ;;  %vm10482_vm7 = vcmp.eq.s32.totalorder %v10450_v33, %v23466_v19 }
 0xea4   :  { %vm23479_vm8 = vmpackc.low %vm10466_vm4, %vm10458_vm3  ;;  %vm10461_vm3 = vcmp.eq.s32.totalorder %v10453_v9, %v22321_v48  ;;  %vm10469_vm4 = vcmp.eq.s32.totalorder %v10453_v9, %v23456_v12  ;;  %v10523_v33 = vand.u32 31, %v23535_v35 }
 0xea5   :  { %18203 = vmatprep.subr.msk.bf16.mxu1 %vm23479_vm8, %v19832_v29  ;;  %vm23486_vm9 = vmpackc.low %vm10482_vm7, %vm10474_vm6  ;;  %vm10593_vm7 = vcmask 261120  }
 0xea6   :  { %18205 = vmatpush1.bf16.msk.msra.mxu1 %vm23473_vm5, %v19832_v29  ;;  %vm23557_vm10 = vmpackc.low %vm10469_vm4, %vm10461_vm3  ;;  %vm10475_vm4 = vcmp.eq.s32.totalorder %v10451_v54, %v23463_v47 }
 0xea7   :  { %18204 = vmatprep.subr.msk.bf16.mxu1 %vm23486_vm9, %v19832_v29 }
 0xeaa   :  { %18206 = vmatpush1.bf16.msk.msra.mxu1 %vm17121_vm12, %v19832_v29 }
 0xf6c   :  { %v17093_v38 = vpop.f32.mrb[184].mxu0 }
 0xf6d   :  { %v10312_v44 = vpop.f32.mrb[185].mxu0 }
 0xf6e   :  { %v17094_v55 = vpop.f32.mrb[186].mxu0 }
 0xf6f   :  { %v10344_v24 = vpack.c.bf16 %v17094_v55, %v17093_v38  ;;  %v10315_v43 = vpop.f32.mrb[187].mxu0  ;;  %v11698_v38 = vld [vmem:[%s27293_s8] sm:$0xff] }
 0xf70   :  { %v10343_v49 = vpack.c.bf16 %v10315_v43, %v10312_v44  ;;  %v11706_v44 = vld [vmem:[%s27293_s8 + $0x40] sm:$0xff]  ;;  %v11715_v43 = vld [vmem:[%s27293_s8 + $0x88] sm:$0xff] }
 0xf72   :  { %17099 = vmatprep.subr.bf16.mxu0 %v10343_v49 }
 0xf73   :  { %17100 = vmatpush3.bf16.msra.mxu0 %v10343_v49  ;;  %v11723_v49 = vld [vmem:[%s27293_s8 + $0xc8] sm:$0xff] }
 0xf74   :  { %v17097_v53 = vpop.f32.mrb[188].mxu0  ;;  %17101 = vmatprep.subr.bf16.mxu0 %v10344_v24 }
 0xf75   :  { %v10328_v56 = vpop.f32.mrb[189].mxu0 }
 0xf76   :  { %v17098_v3 = vpop.f32.mrb[190].mxu0 }
 0xf77   :  { %v10346_v18 = vpack.c.bf16 %v17098_v3, %v17097_v53  ;;  %v10331_v22 = vpop.f32.mrb[191].mxu0  ;;  %17102 = vmatpush3.bf16.msra.mxu0 %v10344_v24  ;;  %v17181_v24 = vpack.c.bf16 %v11706_v44, %v11698_v38  ;;  %v17183_v53 = vpack.c.bf16 %v11723_v49, %v11715_v43  ;;  %v11722_v3 = vld [vmem:[%s27293_s8 + $0xc0] sm:$0xff]  ;;  %v11765_v38 = vld [vmem:[%s27293_s8 + $0x218] sm:$0xff] }
 0xf78   :  { %v10345_v62 = vpack.c.bf16 %v10331_v22, %v10328_v56  ;;  %v11714_v56 = vld [vmem:[%s27293_s8 + $0x80] sm:$0xff]  ;;  %v11731_v22 = vld [vmem:[%s27293_s8 + $0x108] sm:$0xff]  ;;  %v11773_v44 = vld [vmem:[%s27293_s8 + $0x258] sm:$0xff] }
 0xf7a   :  { %17103 = vmatprep.subr.bf16.mxu0 %v10345_v62 }
 0xf7b   :  { %17104 = vmatpush3.bf16.msra.mxu0 %v10345_v62  ;;  %v11739_v62 = vld [vmem:[%s27293_s8 + $0x148] sm:$0xff] }
 0xf7c   :  { %17105 = vmatprep.subr.bf16.mxu0 %v10346_v18 }
 0xf7f   :  { %17106 = vmatpush3.bf16.msra.mxu0 %v10346_v18  ;;  %v17185_v18 = vpack.c.bf16 %v11722_v3, %v11714_v56  ;;  %v17451_v56 = vpack.c.bf16 %v11773_v44, %v11765_v38  ;;  %v11764_v3 = vld [vmem:[%s27293_s8 + $0x210] sm:$0xff]  ;;  %v11845_v38 = vld [vmem:[%s27293_s8 + $0x498] sm:$0xff] }
 0xf80   :  { %17116 = vmatprep.subr.msk.bf16.mxu0 %vm23479_vm8, %v19832_v29  ;;  %vm10459_vm8 = vcmp.eq.s32.totalorder %v10451_v54, %v22321_v48  ;;  %v11853_v44 = vld [vmem:[%s27293_s8 + $0x4d8] sm:$0xff] }
 0xf82   :  { %17108 = vmatmul.mubr.msk.bf16.vlgmr.msra.gmra.mrb[168].mxu0 %vm1199_vm0, %v23091_v16  ;;  %v23514_v16 = vadd.s32 640, %v23453_v23 }
 0xf83   :  { %17111 = vmatprep.mubr.msk.bf16.mxu0 %vm1199_vm0, %v23098_v60  ;;  %17118 = vmatpush1.bf16.msk.msra.mxu0 %vm23473_vm5, %v19832_v29 }
 0xf84   :  { %17120 = vmatprep.subr.msk.bf16.mxu0 %vm23486_vm9, %v19832_v29  ;;  %v10454_v60 = vshra.s32 %v23514_v16, 5  ;;  %vm10467_vm9 = vcmp.eq.s32.totalorder %v10451_v54, %v23456_v12  ;;  %v23654_v20 = vand.u32 31, %v23514_v16  ;;  %v17187_v16 = vpack.c.bf16 %v11739_v62, %v11731_v22  ;;  %v11781_v62 = vld [vmem:[%s27293_s8 + $0x298] sm:$0xff] }
 0xf86   :  { %vm10462_vm13 = vcmp.eq.s32.totalorder %v10454_v60, %v22321_v48  ;;  %vm10470_vm14 = vcmp.eq.s32.totalorder %v10454_v60, %v23456_v12  ;;  %vm10478_vm5 = vcmp.eq.s32.totalorder %v10454_v60, %v23463_v47  ;;  %vm10486_vm6 = vcmp.eq.s32.totalorder %v10454_v60, %v23466_v19  ;;  %v11730_v60 = vld [vmem:[%s27293_s8 + $0x100] sm:$0xff] }
 0xf87   :  { %17122 = vmatpush1.bf16.msk.msra.mxu0 %vm17121_vm12, %v19832_v29  ;;  %vm17131_vm15 = vmpackc.low %vm10470_vm14, %vm10462_vm13  ;;  %vm10477_vm14 = vcmp.eq.s32.totalorder %v10453_v9, %v23463_v47 }
 0xf88   :  { %17132 = vmatprep.subr.msk.bf16.mxu0 %vm17131_vm15, %v19832_v29  ;;  %vm23571_vm13 = vmpackc.low %vm10486_vm6, %vm10478_vm5  ;;  %vm10485_vm15 = vcmp.eq.s32.totalorder %v10453_v9, %v23466_v19  ;;  %vm10483_vm5 = vcmp.eq.s32.totalorder %v10451_v54, %v23466_v19  ;;  %v11717_v9 = vld [vmem:[%s27293_s8 + $0x98] sm:$0xff] }
 0xf89   :  { %vm23610_vm6 = vmpackc.low %vm10485_vm15, %vm10477_vm14  ;;  %vm10546_vm15 = vcmp.eq.s32.totalorder %v10522_v21, %v23463_v47  ;;  %v11725_v54 = vld [vmem:[%s27293_s8 + $0xd8] sm:$0xff] }
 0xf8a   :  { %17112 = vmatmul.mubr.msk.bf16.gmra.mrb[172].mxu0 %vm1199_vm0, %v23111_v0  ;;  %v23525_v0 = vadd.s32 384, %v23453_v23 }
 0xf8b   :  { %10682 = vmatprep.mubr.f32.mxu0 %v19833_v1 }
 0xf8c   :  { %v10452_v37 = vshra.s32 %v23525_v0, 5  ;;  %v23720_v58 = vand.u32 31, %v23525_v0  ;;  %v11738_v0 = vld [vmem:[%s27293_s8 + $0x140] sm:$0xff] }
 0xf8d   :  { %v17189_v35 = vpack.c.bf16 %v11738_v0, %v11730_v60  ;;  %v11811_v60 = vld [vmem:[%s27293_s8 + $0x388] sm:$0xff] }
 0xf8e   :  { %vm10460_vm0 = vcmp.eq.s32.totalorder %v10452_v37, %v22321_v48  ;;  %vm10468_vm1 = vcmp.eq.s32.totalorder %v10452_v37, %v23456_v12  ;;  %vm10476_vm11 = vcmp.eq.s32.totalorder %v10452_v37, %v23463_v47  ;;  %vm10484_vm12 = vcmp.eq.s32.totalorder %v10452_v37, %v23466_v19  ;;  %v11700_v37 = vld [vmem:[%s27293_s8 + $0x10] sm:$0xff]  ;;  %v11819_v0 = vld [vmem:[%s27293_s8 + $0x3c8] sm:$0xff] }
 0xf8f   :  { %vm17123_vm2 = vmpackc.low %vm10468_vm1, %vm10460_vm0  ;;  %vm10530_vm0 = vcmp.eq.s32.totalorder %v10522_v21, %v22321_v48  ;;  %vm10538_vm1 = vcmp.eq.s32.totalorder %v10522_v21, %v23456_v12 }
 0xf90   :  { %17124 = vmatprep.subr.msk.bf16.mxu1 %vm17123_vm2, %v19832_v29  ;;  %vm23585_vm2 = vmpackc.low %vm10467_vm9, %vm10459_vm8  ;;  %vm10464_vm8 = vcmp.eq.s32.totalorder %v23564_v61, %v22321_v48  ;;  %vm10472_vm9 = vcmp.eq.s32.totalorder %v23564_v61, %v23456_v12 }
 0xf91   :  { %vm17127_vm3 = vmpackc.low %vm10484_vm12, %vm10476_vm11  ;;  %vm10529_vm12 = vcmp.eq.s32.totalorder %v10521_v13, %v22321_v48 }
 0xf92   :  { %vm23638_vm11 = vmpackc.low %vm10483_vm5, %vm10475_vm4  ;;  %vm10553_vm4 = vcmp.eq.s32.totalorder %v10521_v13, %v23466_v19  ;;  %vm10534_vm5 = vcmp.eq.s32.totalorder %v23654_v20, %v22321_v48 }
 0xf93   :  { %vm17139_vm14 = vmpackc.low %vm10472_vm9, %vm10464_vm8 }
0x1055   :  { %v17109_v32 = vpop.f32.mrb[168].mxu0 }
0x1056   :  { %v23555_v52 = vadd.f32 %v17109_v32, %v23545_v14  ;;  %v10381_v59 = vpop.f32.mrb[169].mxu0 }
0x1057   :  { %v23567_v42 = vadd.f32 %v23545_v14, %v10381_v59  ;;  %v17110_v34 = vpop.f32.mrb[170].mxu0  ;;  %v11746_v59 = vld [vmem:[%s27293_s8 + $0x180] sm:$0xff] }
0x1058   :  { %v10384_v57 = vpop.f32.mrb[171].mxu0  ;;  %15881 = vmatmul.mubr.msk.f32.vlgmr.msra.gmra.mrb[200].mxu1 %vm10593_vm7, %v23555_v52  ;;  %v23600_v2 = vadd.f32 %v17110_v34, %v23545_v14  ;;  %v11716_v34 = vld [vmem:[%s27293_s8 + $0x90] sm:$0xff] }
0x1059   :  { %15879 = vmatmul.mubr.msk.f32.vlgmr.msra.gmra.mrb[192].mxu0 %vm10593_vm7, %v23567_v42  ;;  %10700 = vmatprep.mubr.f32.mxu1 %v19833_v1  ;;  %v23619_v28 = vadd.f32 %v23545_v14, %v10384_v57  ;;  %v17193_v57 = vpack.c.bf16 %v11754_v31, %v11746_v59  ;;  %v17441_v17 = vpack.c.bf16 %v11724_v26, %v11716_v34  ;;  %v11827_v59 = vld [vmem:[%s27293_s8 + $0x408] sm:$0xff]  ;;  %v11826_v26 = vld [vmem:[%s27293_s8 + $0x400] sm:$0xff] }
0x105a   :  { %17134 = vmatpush1.bf16.msk.msra.mxu0 %vm23557_vm10, %v19832_v29  ;;  %10688 = vmatprep.mubr.f32.mxu0 %v19833_v1  ;;  %vm23628_vm10 = vmpackc.low %vm10538_vm1, %vm10530_vm0  ;;  %vm10554_vm0 = vcmp.eq.s32.totalorder %v10522_v21, %v23466_v19  ;;  %v17437_v21 = vpack.c.bf16 %v11708_v50, %v11700_v37  ;;  %v17207_v50 = vpack.c.bf16 %v11819_v0, %v11811_v60  ;;  %v11835_v31 = vld [vmem:[%s27293_s8 + $0x448] sm:$0xff] }
0x105b   :  { %17136 = vmatprep.subr.msk.bf16.mxu0 %vm23571_vm13, %v19832_v29  ;;  %17126 = vmatpush1.bf16.msk.msra.mxu1 %vm23585_vm2, %v19832_v29  ;;  %vm10537_vm13 = vcmp.eq.s32.totalorder %v10521_v13, %v23456_v12  ;;  %vm17151_vm2 = vmpackc.low %vm10554_vm0, %vm10546_vm15  ;;  %vm10479_vm0 = vcmp.eq.s32.totalorder %v10455_v6, %v23463_v47  ;;  %v17211_v34 = vpack.c.bf16 %v11835_v31, %v11827_v59  ;;  %v11899_v60 = vld [vmem:[%s27293_s8 + $0x648] sm:$0xff] }
0x105c   :  { %15882 = vmatmul.mubr.msk.f32.gmra.mrb[202].mxu1 %vm10593_vm7, %v23600_v2  ;;  %17128 = vmatprep.subr.msk.bf16.mxu1 %vm17127_vm3, %v19832_v29  ;;  %vm17149_vm1 = vmpackc.low %vm10537_vm13, %vm10529_vm12  ;;  %vm10545_vm3 = vcmp.eq.s32.totalorder %v10521_v13, %v23463_v47  ;;  %vm10480_vm12 = vcmp.eq.s32.totalorder %v23564_v61, %v23463_v47  ;;  %vm10488_vm13 = vcmp.eq.s32.totalorder %v23564_v61, %v23466_v19  ;;  %v11741_v13 = vld [vmem:[%s27293_s8 + $0x158] sm:$0xff]  ;;  %v11915_v59 = vld [vmem:[%s27293_s8 + $0x6c8] sm:$0xff] }
0x105d   :  { %v17113_v36 = vpop.f32.mrb[172].mxu0  ;;  %15880 = vmatmul.mubr.msk.f32.gmra.mrb[194].mxu0 %vm10593_vm7, %v23619_v28  ;;  %10706 = vmatprep.mubr.f32.mxu1 %v19833_v1  ;;  %vm17153_vm8 = vmpackc.low %vm10553_vm4, %vm10545_vm3  ;;  %vm10540_vm3 = vcmp.eq.s32.totalorder %v23720_v58, %v23456_v12  ;;  %v17439_v61 = vpack.c.bf16 %v11725_v54, %v11717_v9  ;;  %v11780_v54 = vld [vmem:[%s27293_s8 + $0x290] sm:$0xff] }
0x105e   :  { %v10397_v25 = vpop.f32.mrb[173].mxu0  ;;  %17138 = vmatpush1.bf16.msk.msra.mxu0 %vm23610_vm6, %v19832_v29  ;;  %10908 = vmatprep.mubr.f32.mxu0 %v19833_v1  ;;  %vm10542_vm6 = vcmp.eq.s32.totalorder %v23654_v20, %v23456_v12  ;;  %v23693_v30 = vadd.f32 %v17113_v36, %v23545_v14  ;;  %vm17143_vm15 = vmpackc.low %vm10488_vm13, %vm10480_vm12  ;;  %vm10549_vm13 = vcmp.eq.s32.totalorder %v10525_v8, %v23463_v47 }
0x105f   :  { %v23657_v11 = vadd.f32 %v23545_v14, %v10397_v25  ;;  %v17114_v51 = vpop.f32.mrb[174].mxu0  ;;  %17148 = vmatprep.subr.msk.bf16.mxu0 %vm23628_vm10, %v19832_v29  ;;  %17130 = vmatpush1.bf16.msk.msra.mxu1 %vm23638_vm11, %v19832_v29  ;;  %vm17163_vm9 = vmpackc.low %vm10542_vm6, %vm10534_vm5  ;;  %vm10463_vm10 = vcmp.eq.s32.totalorder %v10455_v6, %v22321_v48  ;;  %vm10471_vm11 = vcmp.eq.s32.totalorder %v10455_v6, %v23456_v12  ;;  %v11762_v25 = vld [vmem:[%s27293_s8 + $0x200] sm:$0xff] }
0x1060   :  { %v10400_v15 = vpop.f32.mrb[175].mxu0  ;;  %17140 = vmatprep.subr.msk.bf16.mxu1 %vm17139_vm14, %v19832_v29  ;;  %v23705_v23 = vadd.f32 %v17114_v51, %v23545_v14  ;;  %vm17141_vm14 = vmpackc.low %vm10471_vm11, %vm10463_vm10  ;;  %vm10533_vm6 = vcmp.eq.s32.totalorder %v10525_v8, %v22321_v48  ;;  %vm10558_vm10 = vcmp.eq.s32.totalorder %v23654_v20, %v23466_v19  ;;  %v17195_v36 = vpack.c.bf16 %v11771_v4, %v11763_v40  ;;  %v11732_v51 = vld [vmem:[%s27293_s8 + $0x110] sm:$0xff]  ;;  %v11813_v4 = vld [vmem:[%s27293_s8 + $0x398] sm:$0xff] }
0x1061   :  { %15883 = vmatmul.mubr.msk.f32.gmra.mrb[204].mxu1 %vm10593_vm7, %v23657_v11  ;;  %15911 = vmatmul.mubr.msk.f32.vlgmr.msra.gmra.mrb[196].mxu0 %vm10593_vm7, %v23567_v42  ;;  %v23679_v63 = vadd.f32 %v23545_v14, %v10400_v15  ;;  %v11755_v14 = vld [vmem:[%s27293_s8 + $0x1c8] sm:$0xff]  ;;  %v11740_v15 = vld [vmem:[%s27293_s8 + $0x150] sm:$0xff] }
0x1062   :  { %10712 = vmatprep.mubr.f32.mxu1 %v19833_v1  ;;  %10914 = vmatprep.mubr.f32.mxu0 %v19833_v1  ;;  %v17191_v32 = vpack.c.bf16 %v11755_v14, %v11747_v46  ;;  %v11788_v46 = vld [vmem:[%s27293_s8 + $0x2d0] sm:$0xff] }
0x1063   :  { %17150 = vmatpush1.bf16.msk.msra.mxu0 %vm17149_vm1, %v19832_v29  ;;  %vm10487_vm1 = vcmp.eq.s32.totalorder %v10455_v6, %v23466_v19  ;;  %v11749_v6 = vld [vmem:[%s27293_s8 + $0x198] sm:$0xff] }
0x1064   :  { %17152 = vmatprep.subr.msk.bf16.mxu0 %vm17151_vm2, %v19832_v29  ;;  %vm10532_vm2 = vcmp.eq.s32.totalorder %v23720_v58, %v22321_v48  ;;  %vm17145_vm4 = vmpackc.low %vm10487_vm1, %vm10479_vm0  ;;  %vm10531_vm0 = vcmp.eq.s32.totalorder %v10523_v33, %v22321_v48  ;;  %vm10539_vm1 = vcmp.eq.s32.totalorder %v10523_v33, %v23456_v12 }
0x1065   :  { %15884 = vmatmul.mubr.msk.f32.gmra.mrb[206].mxu1 %vm10593_vm7, %v23679_v63  ;;  %15912 = vmatmul.mubr.msk.f32.gmra.mrb[198].mxu0 %vm10593_vm7, %v23619_v28  ;;  %vm17155_vm5 = vmpackc.low %vm10540_vm3, %vm10532_vm2  ;;  %vm10548_vm2 = vcmp.eq.s32.totalorder %v23720_v58, %v23463_v47  ;;  %vm10556_vm3 = vcmp.eq.s32.totalorder %v23720_v58, %v23466_v19  ;;  %v11757_v58 = vld [vmem:[%s27293_s8 + $0x1d8] sm:$0xff] }
0x1066   :  { %10718 = vmatprep.mubr.f32.mxu1 %v19833_v1  ;;  %10920 = vmatprep.mubr.f32.mxu0 %v19833_v1 }
0x1067   :  { %17154 = vmatpush1.bf16.msk.msra.mxu0 %vm17153_vm8, %v19832_v29  ;;  %vm10541_vm8 = vcmp.eq.s32.totalorder %v10525_v8, %v23456_v12 }
0x1068   :  { %17164 = vmatprep.subr.msk.bf16.mxu0 %vm17163_vm9, %v19832_v29  ;;  %vm10550_vm9 = vcmp.eq.s32.totalorder %v23654_v20, %v23463_v47  ;;  %vm17165_vm11 = vmpackc.low %vm10541_vm8, %vm10533_vm6  ;;  %vm10547_vm6 = vcmp.eq.s32.totalorder %v10523_v33, %v23463_v47  ;;  %vm10555_vm8 = vcmp.eq.s32.totalorder %v10523_v33, %v23466_v19  ;;  %v17443_v20 = vpack.c.bf16 %v11741_v13, %v11733_v5  ;;  %v11787_v33 = vld [vmem:[%s27293_s8 + $0x2c8] sm:$0xff]  ;;  %v11796_v5 = vld [vmem:[%s27293_s8 + $0x310] sm:$0xff] }
0x1069   :  { %15885 = vmatmul.mubr.msk.f32.gmra.mrb[208].mxu1 %vm10593_vm7, %v23693_v30  ;;  %15913 = vmatmul.mubr.msk.f32.gmra.mrb[200].mxu0 %vm10593_vm7, %v23555_v52  ;;  %vm17167_vm12 = vmpackc.low %vm10558_vm10, %vm10550_vm9  ;;  %vm10536_vm9 = vcmp.eq.s32.totalorder %v10528_v41, %v22321_v48  ;;  %vm10544_vm10 = vcmp.eq.s32.totalorder %v10528_v41, %v23456_v12  ;;  %v11804_v13 = vld [vmem:[%s27293_s8 + $0x350] sm:$0xff] }
0x106a   :  { %10724 = vmatprep.mubr.f32.mxu1 %v19833_v1  ;;  %10926 = vmatprep.mubr.f32.mxu0 %v19833_v1 }
0x106d   :  { %15886 = vmatmul.mubr.msk.f32.gmra.mrb[210].mxu1 %vm10593_vm7, %v23705_v23  ;;  %15914 = vmatmul.mubr.msk.f32.gmra.mrb[202].mxu0 %vm10593_vm7, %v23600_v2 }
0x106e   :  { %10795 = vmatprep.mubr.f32.mxu1 %v19833_v1  ;;  %10932 = vmatprep.mubr.f32.mxu0 %v19833_v1 }
0x1071   :  { %15895 = vmatmul.mubr.msk.f32.vlgmr.msra.gmra.mrb[212].mxu1 %vm10593_vm7, %v23567_v42  ;;  %15915 = vmatmul.mubr.msk.f32.gmra.mrb[204].mxu0 %vm10593_vm7, %v23657_v11 }
0x1072   :  { %10801 = vmatprep.mubr.f32.mxu1 %v19833_v1  ;;  %10938 = vmatprep.mubr.f32.mxu0 %v19833_v1 }
0x1073   :  { %17142 = vmatpush1.bf16.msk.msra.mxu1 %vm17141_vm14, %v19832_v29  ;;  %vm10557_vm14 = vcmp.eq.s32.totalorder %v10525_v8, %v23466_v19  ;;  %v11779_v8 = vld [vmem:[%s27293_s8 + $0x288] sm:$0xff] }
0x1074   :  { %17144 = vmatprep.subr.msk.bf16.mxu1 %vm17143_vm15, %v19832_v29  ;;  %vm17169_vm15 = vmpackc.low %vm10557_vm14, %vm10549_vm13  ;;  %vm10535_vm13 = vcmp.eq.s32.totalorder %v10527_v10, %v22321_v48  ;;  %vm10543_vm14 = vcmp.eq.s32.totalorder %v10527_v10, %v23456_v12  ;;  %v11699_v12 = vld [vmem:[%s27293_s8 + $0x8] sm:$0xff] }
0x1075   :  { %15896 = vmatmul.mubr.msk.f32.gmra.mrb[214].mxu1 %vm10593_vm7, %v23619_v28  ;;  %15916 = vmatmul.mubr.msk.f32.gmra.mrb[206].mxu0 %vm10593_vm7, %v23679_v63 }
0x1076   :  { %10807 = vmatprep.mubr.f32.mxu1 %v19833_v1  ;;  %10944 = vmatprep.mubr.f32.mxu0 %v19833_v1 }
0x1077   :  { %17146 = vmatpush1.bf16.msk.msra.mxu1 %vm17145_vm4, %v19832_v29  ;;  %vm17157_vm4 = vmpackc.low %vm10539_vm1, %vm10531_vm0  ;;  %vm10560_vm0 = vcmp.eq.s32.totalorder %v10528_v41, %v23466_v19 }
0x1078   :  { %17156 = vmatprep.subr.msk.bf16.mxu1 %vm17155_vm5, %v19832_v29  ;;  %vm17159_vm5 = vmpackc.low %vm10556_vm3, %vm10548_vm2  ;;  %vm10551_vm3 = vcmp.eq.s32.totalorder %v10527_v10, %v23463_v47 }
0x1079   :  { %15897 = vmatmul.mubr.msk.f32.gmra.mrb[216].mxu1 %vm10593_vm7, %v23555_v52  ;;  %15917 = vmatmul.mubr.msk.f32.gmra.mrb[208].mxu0 %vm10593_vm7, %v23693_v30  ;;  %vm17173_vm1 = vmpackc.low %vm10543_vm14, %vm10535_vm13 }
0x107a   :  { %10813 = vmatprep.mubr.f32.mxu1 %v19833_v1  ;;  %10950 = vmatprep.mubr.f32.mxu0 %v19833_v1 }
0x107d   :  { %15898 = vmatmul.mubr.msk.f32.gmra.mrb[218].mxu1 %vm10593_vm7, %v23600_v2  ;;  %15918 = vmatmul.mubr.msk.f32.gmra.mrb[210].mxu0 %vm10593_vm7, %v23705_v23 }
0x107e   :  { %10819 = vmatprep.mubr.f32.mxu1 %v19833_v1  ;;  %11134 = vmatprep.mubr.f32.mxu0 %v19833_v1 }
0x1081   :  { %15899 = vmatmul.mubr.msk.f32.gmra.mrb[220].mxu1 %vm10593_vm7, %v23657_v11  ;;  %15943 = vmatmul.mubr.msk.f32.vlgmr.msra.gmra.mrb[212].mxu0 %vm10593_vm7, %v23567_v42 }
0x1082   :  { %10825 = vmatprep.mubr.f32.mxu1 %v19833_v1  ;;  %11140 = vmatprep.mubr.f32.mxu0 %v19833_v1 }
0x1083   :  { %17166 = vmatpush1.bf16.msk.msra.mxu0 %vm17165_vm11, %v19832_v29  ;;  %vm17161_vm11 = vmpackc.low %vm10555_vm8, %vm10547_vm6 }
0x1084   :  { %17168 = vmatprep.subr.msk.bf16.mxu0 %vm17167_vm12, %v19832_v29  ;;  %vm17171_vm12 = vmpackc.low %vm10544_vm10, %vm10536_vm9 }
0x1085   :  { %15900 = vmatmul.mubr.msk.f32.gmra.mrb[222].mxu1 %vm10593_vm7, %v23679_v63  ;;  %15944 = vmatmul.mubr.msk.f32.gmra.mrb[214].mxu0 %vm10593_vm7, %v23619_v28 }
0x1086   :  { %10831 = vmatprep.mubr.f32.mxu1 %v19833_v1  ;;  %11146 = vmatprep.mubr.f32.mxu0 %v19833_v1 }
0x1087   :  { %17170 = vmatpush1.bf16.msk.msra.mxu0 %vm17169_vm15, %v19832_v29  ;;  %vm10552_vm15 = vcmp.eq.s32.totalorder %v10528_v41, %v23463_v47  ;;  %v11707_v47 = vld [vmem:[%s27293_s8 + $0x48] sm:$0xff]  ;;  %v17445_v41 = vpack.c.bf16 %v11740_v15, %v11732_v51  ;;  %v11842_v51 = vld [vmem:[%s27293_s8 + $0x480] sm:$0xff] }
0x1088   :  { %vm17175_vm2 = vmpackc.low %vm10560_vm0, %vm10552_vm15 }
0x1089   :  { %15901 = vmatmul.mubr.msk.f32.gmra.mrb[224].mxu1 %vm10593_vm7, %v23693_v30  ;;  %15945 = vmatmul.mubr.msk.f32.gmra.mrb[216].mxu0 %vm10593_vm7, %v23555_v52 }
0x108a   :  { %10837 = vmatprep.mubr.f32.mxu1 %v19833_v1  ;;  %11152 = vmatprep.mubr.f32.mxu0 %v19833_v1 }
0x108d   :  { %15902 = vmatmul.mubr.msk.f32.gmra.mrb[226].mxu1 %vm10593_vm7, %v23705_v23  ;;  %15946 = vmatmul.mubr.msk.f32.gmra.mrb[218].mxu0 %vm10593_vm7, %v23600_v2 }
0x108e   :  { %11021 = vmatprep.mubr.f32.mxu1 %v19833_v1  ;;  %11158 = vmatprep.mubr.f32.mxu0 %v19833_v1 }
0x1091   :  { %15927 = vmatmul.mubr.msk.f32.vlgmr.msra.gmra.mrb[228].mxu1 %vm10593_vm7, %v23567_v42  ;;  %15947 = vmatmul.mubr.msk.f32.gmra.mrb[220].mxu0 %vm10593_vm7, %v23657_v11 }
0x1092   :  { %11027 = vmatprep.mubr.f32.mxu1 %v19833_v1  ;;  %11164 = vmatprep.mubr.f32.mxu0 %v19833_v1 }
0x1093   :  { %17158 = vmatpush1.bf16.msk.msra.mxu1 %vm17157_vm4, %v19832_v29  ;;  %vm10559_vm4 = vcmp.eq.s32.totalorder %v10527_v10, %v23466_v19  ;;  %v11701_v19 = vld [vmem:[%s27293_s8 + $0x18] sm:$0xff]  ;;  %v17199_v10 = vpack.c.bf16 %v11787_v33, %v11779_v8 }
0x1094   :  { %17160 = vmatprep.subr.msk.bf16.mxu1 %vm17159_vm5, %v19832_v29  ;;  %vm17177_vm5 = vmpackc.low %vm10559_vm4, %vm10551_vm3  ;;  %v17435_v55 = vpack.c.bf16 %v11709_v27, %v11701_v19  ;;  %v11748_v19 = vld [vmem:[%s27293_s8 + $0x190] sm:$0xff]  ;;  %v11829_v8 = vld [vmem:[%s27293_s8 + $0x418] sm:$0xff] }
0x1095   :  { %15928 = vmatmul.mubr.msk.f32.gmra.mrb[230].mxu1 %vm10593_vm7, %v23619_v28  ;;  %15948 = vmatmul.mubr.msk.f32.gmra.mrb[222].mxu0 %vm10593_vm7, %v23679_v63  ;;  %v11837_v33 = vld [vmem:[%s27293_s8 + $0x458] sm:$0xff] }
0x1096   :  { %11033 = vmatprep.mubr.f32.mxu1 %v19833_v1  ;;  %11170 = vmatprep.mubr.f32.mxu0 %v19833_v1 }
0x1097   :  { %17162 = vmatpush1.bf16.msk.msra.mxu1 %vm17161_vm11, %v19832_v29 }
0x1098   :  { %17172 = vmatprep.subr.msk.bf16.mxu1 %vm17171_vm12, %v19832_v29 }
0x1099   :  { %15929 = vmatmul.mubr.msk.f32.gmra.mrb[232].mxu1 %vm10593_vm7, %v23555_v52  ;;  %15949 = vmatmul.mubr.msk.f32.gmra.mrb[224].mxu0 %vm10593_vm7, %v23693_v30 }
0x109a   :  { %11039 = vmatprep.mubr.f32.mxu1 %v19833_v1  ;;  %11176 = vmatprep.mubr.f32.mxu0 %v19833_v1 }
0x109d   :  { %15930 = vmatmul.mubr.msk.f32.gmra.mrb[234].mxu1 %vm10593_vm7, %v23600_v2  ;;  %15950 = vmatmul.mubr.msk.f32.gmra.mrb[226].mxu0 %vm10593_vm7, %v23705_v23 }
0x109e   :  { %11045 = vmatprep.mubr.f32.mxu1 %v19833_v1  ;;  %11360 = vmatprep.mubr.f32.mxu0 %v19833_v1 }
0x10a1   :  { %15931 = vmatmul.mubr.msk.f32.gmra.mrb[236].mxu1 %vm10593_vm7, %v23657_v11  ;;  %15975 = vmatmul.mubr.msk.f32.vlgmr.msra.gmra.mrb[228].mxu0 %vm10593_vm7, %v23567_v42 }
0x10a2   :  { %11051 = vmatprep.mubr.f32.mxu1 %v19833_v1  ;;  %11366 = vmatprep.mubr.f32.mxu0 %v19833_v1 }
0x10a5   :  { %15932 = vmatmul.mubr.msk.f32.gmra.mrb[238].mxu1 %vm10593_vm7, %v23679_v63  ;;  %15976 = vmatmul.mubr.msk.f32.gmra.mrb[230].mxu0 %vm10593_vm7, %v23619_v28 }
0x10a6   :  { %11057 = vmatprep.mubr.f32.mxu1 %v19833_v1  ;;  %11372 = vmatprep.mubr.f32.mxu0 %v19833_v1 }
0x10a9   :  { %15933 = vmatmul.mubr.msk.f32.gmra.mrb[240].mxu1 %vm10593_vm7, %v23693_v30  ;;  %15977 = vmatmul.mubr.msk.f32.gmra.mrb[232].mxu0 %vm10593_vm7, %v23555_v52 }
0x10aa   :  { %11063 = vmatprep.mubr.f32.mxu1 %v19833_v1  ;;  %11378 = vmatprep.mubr.f32.mxu0 %v19833_v1 }
0x10ad   :  { %15934 = vmatmul.mubr.msk.f32.gmra.mrb[242].mxu1 %vm10593_vm7, %v23705_v23  ;;  %15978 = vmatmul.mubr.msk.f32.gmra.mrb[234].mxu0 %vm10593_vm7, %v23600_v2 }
0x10ae   :  { %11247 = vmatprep.mubr.f32.mxu1 %v19833_v1  ;;  %11384 = vmatprep.mubr.f32.mxu0 %v19833_v1 }
0x10b1   :  { %15959 = vmatmul.mubr.msk.f32.vlgmr.msra.gmra.mrb[244].mxu1 %vm10593_vm7, %v23567_v42  ;;  %15979 = vmatmul.mubr.msk.f32.gmra.mrb[236].mxu0 %vm10593_vm7, %v23657_v11 }
0x10b2   :  { %11253 = vmatprep.mubr.f32.mxu1 %v19833_v1  ;;  %11390 = vmatprep.mubr.f32.mxu0 %v19833_v1 }
0x10b3   :  { %17174 = vmatpush1.bf16.msk.msra.mxu1 %vm17173_vm1, %v19832_v29 }
0x10b4   :  { %17176 = vmatprep.subr.msk.bf16.mxu1 %vm17175_vm2, %v19832_v29 }
0x10b5   :  { %15960 = vmatmul.mubr.msk.f32.gmra.mrb[246].mxu1 %vm10593_vm7, %v23619_v28  ;;  %15980 = vmatmul.mubr.msk.f32.gmra.mrb[238].mxu0 %vm10593_vm7, %v23679_v63 }
0x10b6   :  { %11259 = vmatprep.mubr.f32.mxu1 %v19833_v1  ;;  %11396 = vmatprep.mubr.f32.mxu0 %v19833_v1 }
0x10b7   :  { %17178 = vmatpush1.bf16.msk.msra.mxu1 %vm17177_vm5, %v19832_v29  ;;  %v17179_v29 = vpack.c.bf16 %v11707_v47, %v11699_v12  ;;  %v11778_v12 = vld [vmem:[%s27293_s8 + $0x280] sm:$0xff]  ;;  %v17447_v47 = vpack.c.bf16 %v11757_v58, %v11749_v6  ;;  %v11820_v6 = vld [vmem:[%s27293_s8 + $0x3d0] sm:$0xff] }
0x10b8   :  { %17436 = vmatprep.subr.bf16.mxu1 %v17435_v55  ;;  %v11795_v55 = vld [vmem:[%s27293_s8 + $0x308] sm:$0xff] }
0x10b9   :  { %15961 = vmatmul.mubr.msk.f32.gmra.mrb[248].mxu1 %vm10593_vm7, %v23555_v52  ;;  %15981 = vmatmul.mubr.msk.f32.gmra.mrb[240].mxu0 %vm10593_vm7, %v23693_v30 }
0x10ba   :  { %11265 = vmatprep.mubr.f32.mxu1 %v19833_v1  ;;  %11402 = vmatprep.mubr.f32.mxu0 %v19833_v1 }
0x10bb   :  { %17180 = vmatprep.subr.bf16.mxu0 %v17179_v29  ;;  %v11756_v29 = vld [vmem:[%s27293_s8 + $0x1d0] sm:$0xff] }
0x10bc   :  { %17182 = vmatpush1.bf16.msra.mxu0 %v17181_v24  ;;  %v11803_v24 = vld [vmem:[%s27293_s8 + $0x348] sm:$0xff]  ;;  %v17449_v43 = vpack.c.bf16 %v11756_v29, %v11748_v19  ;;  %v17467_v19 = vpack.c.bf16 %v11837_v33, %v11829_v8  ;;  %v11828_v29 = vld [vmem:[%s27293_s8 + $0x410] sm:$0xff]  ;;  %v11917_v8 = vld [vmem:[%s27293_s8 + $0x6d8] sm:$0xff] }
0x10bd   :  { %15962 = vmatmul.mubr.msk.f32.gmra.mrb[250].mxu1 %vm10593_vm7, %v23600_v2  ;;  %15982 = vmatmul.mubr.msk.f32.gmra.mrb[242].mxu0 %vm10593_vm7, %v23705_v23  ;;  %v17203_v49 = vpack.c.bf16 %v11803_v24, %v11795_v55  ;;  %v11875_v55 = vld [vmem:[%s27293_s8 + $0x588] sm:$0xff] }
0x10be   :  { %11271 = vmatprep.mubr.f32.mxu1 %v19833_v1  ;;  %17184 = vmatprep.subr.bf16.mxu0 %v17183_v53  ;;  %v11794_v53 = vld [vmem:[%s27293_s8 + $0x300] sm:$0xff]  ;;  %v11883_v24 = vld [vmem:[%s27293_s8 + $0x5c8] sm:$0xff] }
0x10bf   :  { %v11939_v33 = vld [vmem:[%s27293_s8 + $0x788] sm:$0xff] }
0x10c0   :  { %17186 = vmatpush1.bf16.msra.mxu0 %v17185_v18  ;;  %v11772_v18 = vld [vmem:[%s27293_s8 + $0x250] sm:$0xff] }
0x10c1   :  { %15963 = vmatmul.mubr.msk.f32.gmra.mrb[252].mxu1 %vm10593_vm7, %v23657_v11  ;;  %17188 = vmatprep.subr.bf16.mxu0 %v17187_v16  ;;  %v11789_v16 = vld [vmem:[%s27293_s8 + $0x2d8] sm:$0xff]  ;;  %v17453_v37 = vpack.c.bf16 %v11772_v18, %v11764_v3  ;;  %v11852_v3 = vld [vmem:[%s27293_s8 + $0x4d0] sm:$0xff] }
0x10c2   :  { %11277 = vmatprep.mubr.f32.mxu1 %v19833_v1  ;;  %v17455_v9 = vpack.c.bf16 %v11789_v16, %v11781_v62  ;;  %v11869_v62 = vld [vmem:[%s27293_s8 + $0x558] sm:$0xff]  ;;  %v11891_v16 = vld [vmem:[%s27293_s8 + $0x608] sm:$0xff] }
0x10c4   :  { %17190 = vmatpush1.bf16.msra.mxu0 %v17189_v35  ;;  %v11810_v35 = vld [vmem:[%s27293_s8 + $0x380] sm:$0xff] }
0x10c5   :  { %15964 = vmatmul.mubr.msk.f32.gmra.mrb[254].mxu1 %vm10593_vm7, %v23679_v63  ;;  %17192 = vmatprep.subr.bf16.mxu0 %v17191_v32  ;;  %v11805_v32 = vld [vmem:[%s27293_s8 + $0x358] sm:$0xff] }
0x10c6   :  { %11283 = vmatprep.mubr.f32.mxu1 %v19833_v1 }
0x10c8   :  { %17194 = vmatpush1.bf16.msra.mxu0 %v17193_v57 }
0x10c9   :  { %15965 = vmatmul.mubr.msk.f32.gmra.mrb[0].mxu1 %vm10593_vm7, %v23693_v30  ;;  %17196 = vmatprep.subr.bf16.mxu0 %v17195_v36  ;;  %v11843_v36 = vld [vmem:[%s27293_s8 + $0x488] sm:$0xff] }
0x10ca   :  { %11289 = vmatprep.mubr.f32.mxu1 %v19833_v1 }
0x10cd   :  { %15966 = vmatmul.mubr.msk.f32.gmra.mrb[2].mxu1 %vm10593_vm7, %v23705_v23 }
0x10ce   :  { %11473 = vmatprep.mubr.f32.mxu1 %v19833_v1 }
0x10d1   :  { %15991 = vmatmul.mubr.msk.f32.vlgmr.msra.gmra.mrb[4].mxu1 %vm10593_vm7, %v23567_v42  ;;  %v11770_v42 = vld [vmem:[%s27293_s8 + $0x240] sm:$0xff] }
0x10d2   :  { %11479 = vmatprep.mubr.f32.mxu1 %v19833_v1  ;;  %17438 = vmatpush1.bf16.msra.mxu1 %v17437_v21  ;;  %v17197_v45 = vpack.c.bf16 %v11770_v42, %v11762_v25  ;;  %v11797_v21 = vld [vmem:[%s27293_s8 + $0x318] sm:$0xff]  ;;  %v11851_v25 = vld [vmem:[%s27293_s8 + $0x4c8] sm:$0xff]  ;;  %v17461_v42 = vpack.c.bf16 %v11804_v13, %v11796_v5  ;;  %v11884_v5 = vld [vmem:[%s27293_s8 + $0x5d0] sm:$0xff] }
0x10d3   :  { %17440 = vmatprep.subr.bf16.mxu1 %v17439_v61  ;;  %v17457_v61 = vpack.c.bf16 %v11788_v46, %v11780_v54  ;;  %v17459_v57 = vpack.c.bf16 %v11805_v32, %v11797_v21  ;;  %v11868_v54 = vld [vmem:[%s27293_s8 + $0x550] sm:$0xff]  ;;  %v11885_v21 = vld [vmem:[%s27293_s8 + $0x5d8] sm:$0xff]  ;;  %v11907_v32 = vld [vmem:[%s27293_s8 + $0x688] sm:$0xff] }
0x10d4   :  { %17198 = vmatpush1.bf16.msra.mxu0 %v17197_v45  ;;  %v11812_v45 = vld [vmem:[%s27293_s8 + $0x390] sm:$0xff] }
0x10d5   :  { %15992 = vmatmul.mubr.msk.f32.gmra.mrb[6].mxu1 %vm10593_vm7, %v23619_v28  ;;  %v11786_v28 = vld [vmem:[%s27293_s8 + $0x2c0] sm:$0xff]  ;;  %17200 = vmatprep.subr.bf16.mxu0 %v17199_v10  ;;  %v11867_v10 = vld [vmem:[%s27293_s8 + $0x548] sm:$0xff] }
0x10d6   :  { %11485 = vmatprep.mubr.f32.mxu1 %v19833_v1  ;;  %17442 = vmatpush1.bf16.msra.mxu1 %v17441_v17  ;;  %v17201_v27 = vpack.c.bf16 %v11786_v28, %v11778_v12  ;;  %v11821_v17 = vld [vmem:[%s27293_s8 + $0x3d8] sm:$0xff]  ;;  %v17465_v12 = vpack.c.bf16 %v11820_v6, %v11812_v45  ;;  %v11900_v45 = vld [vmem:[%s27293_s8 + $0x650] sm:$0xff] }
0x10d7   :  { %17444 = vmatprep.subr.bf16.mxu1 %v17443_v20  ;;  %v17215_v20 = vpack.c.bf16 %v11851_v25, %v11843_v36  ;;  %v17463_v15 = vpack.c.bf16 %v11821_v17, %v11813_v4  ;;  %v11901_v4 = vld [vmem:[%s27293_s8 + $0x658] sm:$0xff]  ;;  %v11923_v17 = vld [vmem:[%s27293_s8 + $0x708] sm:$0xff] }
0x10d8   :  { %17202 = vmatpush1.bf16.msra.mxu0 %v17201_v27  ;;  %v11931_v36 = vld [vmem:[%s27293_s8 + $0x748] sm:$0xff] }
0x10d9   :  { %15993 = vmatmul.mubr.msk.f32.gmra.mrb[8].mxu1 %vm10593_vm7, %v23555_v52  ;;  %v11802_v52 = vld [vmem:[%s27293_s8 + $0x340] sm:$0xff]  ;;  %17204 = vmatprep.subr.bf16.mxu0 %v17203_v49  ;;  %v17223_v49 = vpack.c.bf16 %v11883_v24, %v11875_v55  ;;  %v11963_v55 = vld [vmem:[%s27293_s8 + $0x848] sm:$0xff] }
0x10da   :  { %11491 = vmatprep.mubr.f32.mxu1 %v19833_v1  ;;  %17446 = vmatpush1.bf16.msra.mxu1 %v17445_v41  ;;  %v17205_v22 = vpack.c.bf16 %v11802_v52, %v11794_v53  ;;  %v11859_v41 = vld [vmem:[%s27293_s8 + $0x508] sm:$0xff]  ;;  %v11874_v53 = vld [vmem:[%s27293_s8 + $0x580] sm:$0xff] }
0x10db   :  { %17448 = vmatprep.subr.bf16.mxu1 %v17447_v47  ;;  %v17219_v28 = vpack.c.bf16 %v11867_v10, %v11859_v41  ;;  %v11858_v47 = vld [vmem:[%s27293_s8 + $0x500] sm:$0xff]  ;;  %v11947_v41 = vld [vmem:[%s27293_s8 + $0x7c8] sm:$0xff] }
0x10dc   :  { %17206 = vmatpush1.bf16.msra.mxu0 %v17205_v22  ;;  %v11882_v52 = vld [vmem:[%s27293_s8 + $0x5c0] sm:$0xff]  ;;  %v11861_v22 = vld [vmem:[%s27293_s8 + $0x518] sm:$0xff] }
0x10dd   :  { %15994 = vmatmul.mubr.msk.f32.gmra.mrb[10].mxu1 %vm10593_vm7, %v23600_v2  ;;  %v11818_v2 = vld [vmem:[%s27293_s8 + $0x3c0] sm:$0xff]  ;;  %17208 = vmatprep.subr.bf16.mxu0 %v17207_v50  ;;  %v17225_v18 = vpack.c.bf16 %v11882_v52, %v11874_v53  ;;  %v11924_v53 = vld [vmem:[%s27293_s8 + $0x710] sm:$0xff] }
0x10de   :  { %11497 = vmatprep.mubr.f32.mxu1 %v19833_v1  ;;  %17450 = vmatpush1.bf16.msra.mxu1 %v17449_v43  ;;  %v17209_v14 = vpack.c.bf16 %v11818_v2, %v11810_v35  ;;  %v11890_v50 = vld [vmem:[%s27293_s8 + $0x600] sm:$0xff]  ;;  %v17475_v2 = vpack.c.bf16 %v11869_v62, %v11861_v22  ;;  %v11932_v52 = vld [vmem:[%s27293_s8 + $0x750] sm:$0xff] }
0x10df   :  { %17452 = vmatprep.subr.bf16.mxu1 %v17451_v56  ;;  %v11844_v56 = vld [vmem:[%s27293_s8 + $0x490] sm:$0xff]  ;;  %v11898_v35 = vld [vmem:[%s27293_s8 + $0x640] sm:$0xff] }
0x10e0   :  { %17210 = vmatpush1.bf16.msra.mxu0 %v17209_v14  ;;  %v17473_v0 = vpack.c.bf16 %v11852_v3, %v11844_v56  ;;  %v17229_v46 = vpack.c.bf16 %v11898_v35, %v11890_v50  ;;  %v11877_v14 = vld [vmem:[%s27293_s8 + $0x598] sm:$0xff]  ;;  %v17493_v3 = vpack.c.bf16 %v11932_v52, %v11924_v53  ;;  %v11940_v22 = vld [vmem:[%s27293_s8 + $0x790] sm:$0xff] }
0x10e1   :  { %15995 = vmatmul.mubr.msk.f32.gmra.mrb[12].mxu1 %vm10593_vm7, %v23657_v11  ;;  %v11834_v11 = vld [vmem:[%s27293_s8 + $0x440] sm:$0xff]  ;;  %17212 = vmatprep.subr.bf16.mxu0 %v17211_v34  ;;  %v11949_v56 = vld [vmem:[%s27293_s8 + $0x7d8] sm:$0xff]  ;;  %v11948_v62 = vld [vmem:[%s27293_s8 + $0x7d0] sm:$0xff] }
0x10e2   :  { %11503 = vmatprep.mubr.f32.mxu1 %v19833_v1  ;;  %17454 = vmatpush1.bf16.msra.mxu1 %v17453_v37  ;;  %v17213_v40 = vpack.c.bf16 %v11834_v11, %v11826_v26  ;;  %v17227_v37 = vpack.c.bf16 %v11899_v60, %v11891_v16  ;;  %v11906_v34 = vld [vmem:[%s27293_s8 + $0x680] sm:$0xff]  ;;  %v17479_v11 = vpack.c.bf16 %v11885_v21, %v11877_v14  ;;  %v11957_v16 = vld [vmem:[%s27293_s8 + $0x818] sm:$0xff] }
0x10e3   :  { %17456 = vmatprep.subr.bf16.mxu1 %v17455_v9  ;;  %v11860_v9 = vld [vmem:[%s27293_s8 + $0x510] sm:$0xff]  ;;  %v11914_v26 = vld [vmem:[%s27293_s8 + $0x6c0] sm:$0xff]  ;;  %v11965_v60 = vld [vmem:[%s27293_s8 + $0x858] sm:$0xff] }
0x10e4   :  { %17214 = vmatpush1.bf16.msra.mxu0 %v17213_v40  ;;  %v17477_v31 = vpack.c.bf16 %v11868_v54, %v11860_v9  ;;  %v17233_v13 = vpack.c.bf16 %v11914_v26, %v11906_v34  ;;  %v11893_v40 = vld [vmem:[%s27293_s8 + $0x618] sm:$0xff] }
0x10e5   :  { %15996 = vmatmul.mubr.msk.f32.gmra.mrb[14].mxu1 %vm10593_vm7, %v23679_v63  ;;  %v11850_v63 = vld [vmem:[%s27293_s8 + $0x4c0] sm:$0xff]  ;;  %17216 = vmatprep.subr.bf16.mxu0 %v17215_v20 }
0x10e6   :  { %11509 = vmatprep.mubr.f32.mxu1 %v19833_v1  ;;  %17458 = vmatpush1.bf16.msra.mxu1 %v17457_v61  ;;  %v17217_v58 = vpack.c.bf16 %v11850_v63, %v11842_v51  ;;  %v17231_v61 = vpack.c.bf16 %v11915_v59, %v11907_v32  ;;  %v11922_v20 = vld [vmem:[%s27293_s8 + $0x700] sm:$0xff]  ;;  %v17483_v63 = vpack.c.bf16 %v11901_v4, %v11893_v40 }
0x10e7   :  { %17460 = vmatprep.subr.bf16.mxu1 %v17459_v57  ;;  %v11876_v57 = vld [vmem:[%s27293_s8 + $0x590] sm:$0xff]  ;;  %v11930_v51 = vld [vmem:[%s27293_s8 + $0x740] sm:$0xff] }
0x10e8   :  { %17218 = vmatpush1.bf16.msra.mxu0 %v17217_v58  ;;  %v17481_v25 = vpack.c.bf16 %v11884_v5, %v11876_v57  ;;  %v17237_v6 = vpack.c.bf16 %v11930_v51, %v11922_v20  ;;  %v11909_v58 = vld [vmem:[%s27293_s8 + $0x698] sm:$0xff] }
0x10e9   :  { %15997 = vmatmul.mubr.msk.f32.gmra.mrb[16].mxu1 %vm10593_vm7, %v23693_v30  ;;  %v11866_v30 = vld [vmem:[%s27293_s8 + $0x540] sm:$0xff]  ;;  %17220 = vmatprep.subr.bf16.mxu0 %v17219_v28 }
0x10ea   :  { %11515 = vmatprep.mubr.f32.mxu1 %v19833_v1  ;;  %17462 = vmatpush1.bf16.msra.mxu1 %v17461_v42  ;;  %v11836_v1 = vld [vmem:[%s27293_s8 + $0x450] sm:$0xff]  ;;  %v17221_v27 = vpack.c.bf16 %v11866_v30, %v11858_v47  ;;  %v17235_v42 = vpack.c.bf16 %v11931_v36, %v11923_v17  ;;  %v11938_v28 = vld [vmem:[%s27293_s8 + $0x780] sm:$0xff]  ;;  %v17487_v30 = vpack.c.bf16 %v11917_v8, %v11909_v58 }
0x10eb   :  { %17464 = vmatprep.subr.bf16.mxu1 %v17463_v15  ;;  %v17469_v43 = vpack.c.bf16 %v11836_v1, %v11828_v29  ;;  %v11892_v15 = vld [vmem:[%s27293_s8 + $0x610] sm:$0xff]  ;;  %v11946_v47 = vld [vmem:[%s27293_s8 + $0x7c0] sm:$0xff] }
0x10ec   :  { %17222 = vmatpush1.bf16.msra.mxu0 %v17221_v27  ;;  %v17485_v10 = vpack.c.bf16 %v11900_v45, %v11892_v15  ;;  %v11916_v29 = vld [vmem:[%s27293_s8 + $0x6d0] sm:$0xff]  ;;  %v17241_v1 = vpack.c.bf16 %v11946_v47, %v11938_v28  ;;  %v11925_v27 = vld [vmem:[%s27293_s8 + $0x718] sm:$0xff] }
0x10ed   :  { %15998 = vmatmul.mubr.msk.f32.gmra.mrb[18].mxu1 %vm10593_vm7, %v23705_v23  ;;  %v17471_v23 = vpack.c.bf16 %v11853_v44, %v11845_v38  ;;  %17224 = vmatprep.subr.bf16.mxu0 %v17223_v49  ;;  %v11933_v38 = vld [vmem:[%s27293_s8 + $0x758] sm:$0xff]  ;;  %v11955_v44 = vld [vmem:[%s27293_s8 + $0x808] sm:$0xff] }
0x10ee   :  { %17466 = vmatpush1.bf16.msra.mxu1 %v17465_v12  ;;  %v17239_v12 = vpack.c.bf16 %v11947_v41, %v11939_v33  ;;  %v17491_v49 = vpack.c.bf16 %v11933_v38, %v11925_v27 }
0x10ef   :  { %17468 = vmatprep.subr.bf16.mxu1 %v17467_v19  ;;  %v11908_v19 = vld [vmem:[%s27293_s8 + $0x690] sm:$0xff] }
0x10f0   :  { %17226 = vmatpush1.bf16.msra.mxu0 %v17225_v18  ;;  %v17489_v24 = vpack.c.bf16 %v11916_v29, %v11908_v19 }
0x10f1   :  { %17228 = vmatprep.subr.bf16.mxu0 %v17227_v37  ;;  %v17499_v37 = vpack.c.bf16 %v11965_v60, %v11957_v16 }
0x10f2   :  { %17470 = vmatpush1.bf16.msra.mxu1 %v17469_v43  ;;  %v17243_v43 = vpack.c.bf16 %v11963_v55, %v11955_v44 }
0x10f3   :  { %17472 = vmatprep.subr.bf16.mxu1 %v17471_v23  ;;  %v11941_v23 = vld [vmem:[%s27293_s8 + $0x798] sm:$0xff] }
0x10f4   :  { %17230 = vmatpush1.bf16.msra.mxu0 %v17229_v46  ;;  %v17495_v18 = vpack.c.bf16 %v11949_v56, %v11941_v23 }
0x10f5   :  { %17232 = vmatprep.subr.bf16.mxu0 %v17231_v61 }
0x10f6   :  { %17474 = vmatpush1.bf16.msra.mxu1 %v17473_v0  ;;  %v17497_v0 = vpack.c.bf16 %v11948_v62, %v11940_v22 }
0x10f7   :  { %17476 = vmatprep.subr.bf16.mxu1 %v17475_v2 }
0x10f8   :  { %17234 = vmatpush1.bf16.msra.mxu0 %v17233_v13 }
0x10f9   :  { %17236 = vmatprep.subr.bf16.mxu0 %v17235_v42 }
0x10fa   :  { %17478 = vmatpush1.bf16.msra.mxu1 %v17477_v31 }
0x10fb   :  { %17480 = vmatprep.subr.bf16.mxu1 %v17479_v11 }
0x10fc   :  { %17238 = vmatpush1.bf16.msra.mxu0 %v17237_v6 }
0x10fd   :  { %17240 = vmatprep.subr.bf16.mxu0 %v17239_v12 }
0x10fe   :  { %17482 = vmatpush1.bf16.msra.mxu1 %v17481_v25 }
0x10ff   :  { %17484 = vmatprep.subr.bf16.mxu1 %v17483_v63 }
0x1100   :  { %17242 = vmatpush1.bf16.msra.mxu0 %v17241_v1 }
0x1101   :  { %17244 = vmatprep.subr.bf16.mxu0 %v17243_v43 }
0x1102   :  { %17486 = vmatpush1.bf16.msra.mxu1 %v17485_v10 }
0x1103   :  { %17488 = vmatprep.subr.bf16.mxu1 %v17487_v30 }
0x1106   :  { %17490 = vmatpush1.bf16.msra.mxu1 %v17489_v24 }
0x1107   :  { %17492 = vmatprep.subr.bf16.mxu1 %v17491_v49 }
0x110a   :  { %17494 = vmatpush1.bf16.msra.mxu1 %v17493_v3 }
0x110b   :  { %17496 = vmatprep.subr.bf16.mxu1 %v17495_v18 }
0x110e   :  { %17498 = vmatpush1.bf16.msra.mxu1 %v17497_v0 }
0x110f   :  { %17500 = vmatprep.subr.bf16.mxu1 %v17499_v37 }
0x112b   :  { %v10696_v50 = vpop.f32.mrb[200].mxu1 }
0x112c   :  { %v10684_v35 = vpop.f32.mrb[192].mxu0  ;;  %v10698_v2 = vpop.f32.mrb[201].mxu1 }
0x112d   :  { %v10686_v9 = vpop.f32.mrb[193].mxu0 }
0x112f   :  { %v10702_v54 = vpop.f32.mrb[202].mxu1 }
0x1130   :  { %v10690_v46 = vpop.f32.mrb[194].mxu0  ;;  %v10704_v14 = vpop.f32.mrb[203].mxu1 }
0x1131   :  { %v10692_v21 = vpop.f32.mrb[195].mxu0 }
0x1134   :  { %v24320_v32 = vpop.f32.mrb[204].mxu1  ;;  %v24322_v59 = vpop.f32.mrb[196].mxu0 }
0x1135   :  { %v24324_v31 = vpop.f32.mrb[205].mxu1  ;;  %v24326_v61 = vpop.f32.mrb[197].mxu0 }
0x1138   :  { %v24328_v34 = vpop.f32.mrb[206].mxu1  ;;  %v24330_v26 = vpop.f32.mrb[198].mxu0 }
0x1139   :  { %v24332_v11 = vpop.f32.mrb[207].mxu1  ;;  %v24334_v57 = vpop.f32.mrb[199].mxu0 }
0x113c   :  { %v24336_v5 = vpop.f32.mrb[208].mxu1  ;;  %v24338_v13 = vpop.f32.mrb[200].mxu0 }
0x113d   :  { %v24340_v40 = vpop.f32.mrb[209].mxu1  ;;  %v24342_v4 = vpop.f32.mrb[201].mxu0 }
0x1140   :  { %v24344_v17 = vpop.f32.mrb[210].mxu1  ;;  %v24346_v36 = vpop.f32.mrb[202].mxu0 }
0x1141   :  { %v24348_v25 = vpop.f32.mrb[211].mxu1  ;;  %v24350_v42 = vpop.f32.mrb[203].mxu0 }
0x1144   :  { %v24352_v20 = vpop.f32.mrb[212].mxu1  ;;  %v24354_v51 = vpop.f32.mrb[204].mxu0 }
0x1145   :  { %v24356_v63 = vpop.f32.mrb[213].mxu1  ;;  %v24358_v15 = vpop.f32.mrb[205].mxu0 }
0x1148   :  { %v24360_v45 = vpop.f32.mrb[214].mxu1  ;;  %v24362_v6 = vpop.f32.mrb[206].mxu0 }
0x1149   :  { %v24364_v58 = vpop.f32.mrb[215].mxu1  ;;  %v24366_v8 = vpop.f32.mrb[207].mxu0 }
0x114c   :  { %v24368_v33 = vpop.f32.mrb[216].mxu1  ;;  %v24370_v41 = vpop.f32.mrb[208].mxu0 }
0x114d   :  { %v24372_v10 = vpop.f32.mrb[217].mxu1  ;;  %v24374_v12 = vpop.f32.mrb[209].mxu0 }
0x1150   :  { %v24376_v28 = vpop.f32.mrb[218].mxu1  ;;  %v24378_v47 = vpop.f32.mrb[210].mxu0 }
0x1151   :  { %v24380_v30 = vpop.f32.mrb[219].mxu1  ;;  %v24382_v19 = vpop.f32.mrb[211].mxu0 }
0x1154   :  { %v24384_v29 = vpop.f32.mrb[220].mxu1  ;;  %v11136_v1 = vpop.f32.mrb[212].mxu0 }
0x1155   :  { %v11522_v27 = vmul.f32 %v11136_v1, %v10684_v35  ;;  %v24386_v38 = vpop.f32.mrb[221].mxu1  ;;  %v11138_v44 = vpop.f32.mrb[213].mxu0 }
0x1156   :  { %v11523_v55 = vmul.f32 %v11138_v44, %v10686_v9 }
0x1158   :  { %v24388_v24 = vpop.f32.mrb[222].mxu1  ;;  %v11142_v43 = vpop.f32.mrb[214].mxu0 }
0x1159   :  { %v11530_v49 = vmul.f32 %v11142_v43, %v10690_v46  ;;  %v24390_v53 = vpop.f32.mrb[223].mxu1  ;;  %v11144_v52 = vpop.f32.mrb[215].mxu0 }
0x115a   :  { %v11531_v23 = vmul.f32 %v11144_v52, %v10692_v21 }
0x115b   :  { %v11586_v56 = vadd.f32 %v11530_v49, %v11522_v27 }
0x115c   :  { %v11599_v3 = vadd.f32 %v11531_v23, %v11523_v55  ;;  %v24392_v18 = vpop.f32.mrb[224].mxu1  ;;  %v11148_v22 = vpop.f32.mrb[216].mxu0 }
0x115d   :  { %v11538_v62 = vmul.f32 %v11148_v22, %v10696_v50  ;;  %v24394_v16 = vpop.f32.mrb[225].mxu1  ;;  %v11150_v60 = vpop.f32.mrb[217].mxu0 }
0x115e   :  { %v11539_v0 = vmul.f32 %v11150_v60, %v10698_v2 }
0x115f   :  { %v11587_v37 = vadd.f32 %v11586_v56, %v11538_v62 }
0x1160   :  { %v11600_v35 = vadd.f32 %v11599_v3, %v11539_v0  ;;  %v24396_v9 = vpop.f32.mrb[226].mxu1  ;;  %v11154_v1 = vpop.f32.mrb[218].mxu0 }
0x1161   :  { %v11546_v46 = vmul.f32 %v11154_v1, %v10702_v54  ;;  %v24398_v44 = vpop.f32.mrb[227].mxu1  ;;  %v11156_v43 = vpop.f32.mrb[219].mxu0 }
0x1162   :  { %v11547_v21 = vmul.f32 %v11156_v43, %v10704_v14 }
0x1163   :  { %v11588_v27 = vadd.f32 %v11587_v37, %v11546_v46 }
0x1164   :  { %v11601_v55 = vadd.f32 %v11600_v35, %v11547_v21  ;;  %v24400_v49 = vpop.f32.mrb[228].mxu1  ;;  %v11160_v52 = vpop.f32.mrb[220].mxu0 }
0x1165   :  { %v11554_v50 = vmul.f32 %v11160_v52, %v24320_v32  ;;  %v24403_v23 = vpop.f32.mrb[229].mxu1  ;;  %v11162_v2 = vpop.f32.mrb[221].mxu0 }
0x1166   :  { %v11555_v56 = vmul.f32 %v11162_v2, %v24324_v31 }
0x1167   :  { %v11589_v3 = vadd.f32 %v11588_v27, %v11554_v50 }
0x1168   :  { %v11602_v22 = vadd.f32 %v11601_v55, %v11555_v56  ;;  %v24406_v62 = vpop.f32.mrb[230].mxu1  ;;  %v11166_v54 = vpop.f32.mrb[222].mxu0 }
0x1169   :  { %v11562_v60 = vmul.f32 %v11166_v54, %v24328_v34  ;;  %v24409_v14 = vpop.f32.mrb[231].mxu1  ;;  %v11168_v0 = vpop.f32.mrb[223].mxu0 }
0x116a   :  { %v11563_v37 = vmul.f32 %v11168_v0, %v24332_v11 }
0x116b   :  { %v11590_v35 = vadd.f32 %v11589_v3, %v11562_v60 }
0x116c   :  { %v11603_v1 = vadd.f32 %v11602_v22, %v11563_v37  ;;  %v24412_v32 = vpop.f32.mrb[232].mxu1  ;;  %v11172_v46 = vpop.f32.mrb[224].mxu0 }
0x116d   :  { %v11570_v43 = vmul.f32 %v11172_v46, %v24336_v5  ;;  %v24415_v31 = vpop.f32.mrb[233].mxu1  ;;  %v11174_v21 = vpop.f32.mrb[225].mxu0 }
0x116e   :  { %v11571_v27 = vmul.f32 %v11174_v21, %v24340_v40 }
0x116f   :  { %v11591_v55 = vadd.f32 %v11590_v35, %v11570_v43 }
0x1170   :  { %v11604_v52 = vadd.f32 %v11603_v1, %v11571_v27  ;;  %v24418_v34 = vpop.f32.mrb[234].mxu1  ;;  %v11178_v50 = vpop.f32.mrb[226].mxu0 }
0x1171   :  { %v11578_v2 = vmul.f32 %v11178_v50, %v24344_v17  ;;  %v24421_v11 = vpop.f32.mrb[235].mxu1  ;;  %v11180_v56 = vpop.f32.mrb[227].mxu0 }
0x1172   :  { %v11579_v3 = vmul.f32 %v11180_v56, %v24348_v25 }
0x1173   :  { %v11592_v22 = vadd.f32 %v11591_v55, %v11578_v2 }
0x1174   :  { %v11605_v54 = vadd.f32 %v11604_v52, %v11579_v3  ;;  %v24424_v5 = vpop.f32.mrb[236].mxu1  ;;  %v11362_v60 = vpop.f32.mrb[228].mxu0 }
0x1175   :  { %v11593_v0 = vrot.slane %v11592_v22, 4  ;;  %v11526_v40 = vmul.f32 %v11362_v60, %v24322_v59  ;;  %v24427_v37 = vpop.f32.mrb[237].mxu1  ;;  %v11364_v35 = vpop.f32.mrb[229].mxu0 }
0x1176   :  { %v11606_v1 = vrot.slane %v11605_v54, 4  ;;  %v11527_v46 = vmul.f32 %v11364_v35, %v24326_v61 }
0x1177   :  { %v11594_v17 = vadd.f32 %v11593_v0, %v11592_v22 }
0x1178   :  { %v11607_v43 = vadd.f32 %v11606_v1, %v11605_v54  ;;  %v24430_v21 = vpop.f32.mrb[238].mxu1  ;;  %v11368_v27 = vpop.f32.mrb[230].mxu0 }
0x1179   :  { %v11595_v25 = vrot.slane %v11594_v17, 2  ;;  %v11534_v55 = vmul.f32 %v11368_v27, %v24330_v26  ;;  %v24433_v52 = vpop.f32.mrb[239].mxu1  ;;  %v11370_v50 = vpop.f32.mrb[231].mxu0 }
0x117a   :  { %v11608_v2 = vrot.slane %v11607_v43, 2  ;;  %v11535_v59 = vmul.f32 %v11370_v50, %v24334_v57  ;;  %v11954_v57 = vld [vmem:[%s27293_s8 + $0x800] sm:$0xff] }
0x117b   :  { %v11596_v56 = vadd.f32 %v11595_v25, %v11594_v17  ;;  %v11638_v3 = vadd.f32 %v11534_v55, %v11526_v40  ;;  %v11962_v40 = vld [vmem:[%s27293_s8 + $0x840] sm:$0xff] }
0x117c   :  { %v11609_v60 = vadd.f32 %v11608_v2, %v11607_v43  ;;  %v11651_v39 = vadd.f32 %v11535_v59, %v11527_v46  ;;  %v24436_v7 = vpop.f32.mrb[240].mxu1  ;;  %v11374_v61 = vpop.f32.mrb[232].mxu0  ;;  %v11964_v43 = vld [vmem:[%s27293_s8 + $0x850] sm:$0xff]  ;;  %v11979_v2 = vld [vmem:[%s27293_s8 + $0x8c8] sm:$0xff]  ;;  %v11973_v59 = vld [vmem:[%s27293_s8 + $0x898] sm:$0xff] }
0x117d   :  { %v11597_v22 = vrot.slane %v11596_v56, 1  ;;  %v11542_v54 = vmul.f32 %v11374_v61, %v24338_v13  ;;  %v24439_v0 = vpop.f32.mrb[241].mxu1  ;;  %v11376_v35 = vpop.f32.mrb[233].mxu0  ;;  %v11956_v13 = vld [vmem:[%s27293_s8 + $0x810] sm:$0xff] }
0x117e   :  { %v11610_v26 = vrot.slane %v11609_v60, 1  ;;  %v11543_v1 = vmul.f32 %v11376_v35, %v24342_v4  ;;  %v11971_v4 = vld [vmem:[%s27293_s8 + $0x888] sm:$0xff]  ;;  %v17501_v35 = vpack.c.bf16 %v11964_v43, %v11956_v13 }
0x117f   :  { %v11598_v46 = vadd.f32 %v11597_v22, %v11596_v56  ;;  %v11639_v17 = vadd.f32 %v11638_v3, %v11542_v54  ;;  %v11981_v56 = vld [vmem:[%s27293_s8 + $0x8d8] sm:$0xff]  ;;  %v17245_v54 = vpack.c.bf16 %v11962_v40, %v11954_v57  ;;  %v11980_v57 = vld [vmem:[%s27293_s8 + $0x8d0] sm:$0xff]  ;;  %v11987_v40 = vld [vmem:[%s27293_s8 + $0x908] sm:$0xff] }
0x1180   :  { %v11652_v27 = vadd.f32 %v11651_v39, %v11543_v1  ;;  %v24457_v25 = vpop.f32.mrb[242].mxu1  ;;  %v11380_v55 = vpop.f32.mrb[234].mxu0  ;;  %v11611_v50 = vadd.f32 %v11610_v26, %v11609_v60  ;;  %v11970_v26 = vld [vmem:[%s27293_s8 + $0x880] sm:$0xff] }
0x1181   :  { %v11550_v3 = vmul.f32 %v11380_v55, %v24346_v36  ;;  %v24469_v61 = vpop.f32.mrb[243].mxu1  ;;  %v11382_v39 = vpop.f32.mrb[235].mxu0  ;;  %v11978_v1 = vld [vmem:[%s27293_s8 + $0x8c0] sm:$0xff]  ;;  %v24480_v48 = vmul.f32 0.015625, %v11598_v46  ;;  %v17247_v55 = vpack.c.bf16 %v11979_v2, %v11971_v4  ;;  %v11995_v46 = vld [vmem:[%s27293_s8 + $0x948] sm:$0xff]  ;;  %v11997_v4 = vld [vmem:[%s27293_s8 + $0x958] sm:$0xff] }
0x1182   :  { %27334 = vst [vmem:[#allocation6_spill] sm:$0xff] %v24469_v61  ;;  %v11551_v22 = vmul.f32 %v11382_v39, %v24350_v42  ;;  %v24472_v60 = vmul.f32 0.015625, %v11611_v50  ;;  %v17503_v61 = vpack.c.bf16 %v11981_v56, %v11973_v59  ;;  %v11972_v42 = vld [vmem:[%s27293_s8 + $0x890] sm:$0xff]  ;;  %v11986_v39 = vld [vmem:[%s27293_s8 + $0x900] sm:$0xff] }
0x1183   :  { %v11640_v36 = vadd.f32 %v11639_v17, %v11550_v3  ;;  %v11989_v17 = vld [vmem:[%s27293_s8 + $0x918] sm:$0xff]  ;;  %v17249_v3 = vpack.c.bf16 %v11978_v1, %v11970_v26  ;;  %v11996_v26 = vld [vmem:[%s27293_s8 + $0x950] sm:$0xff] }
0x1184   :  { %27335 = vst [vmem:[#allocation7_spill] sm:$0xff] %v24472_v60  ;;  %v11653_v13 = vadd.f32 %v11652_v27, %v11551_v22  ;;  %v11249_v43 = vpop.f32.mrb[244].mxu1  ;;  %v11386_v50 = vpop.f32.mrb[236].mxu0  ;;  %12828 = vmatprep.mubr.f32.mxu0 %v24472_v60  ;;  %13112 = vmatprep.mubr.f32.mxu1 %v24472_v60 }
0x1185   :  { %v11524_v27 = vmul.f32 %v11249_v43, %v24352_v20  ;;  %v11558_v2 = vmul.f32 %v11386_v50, %v24354_v51  ;;  %v11251_v59 = vpop.f32.mrb[245].mxu1  ;;  %v11388_v56 = vpop.f32.mrb[237].mxu0  ;;  %12829 = vmatmul.mubr.f32.vlgmr.msra.gmra.mrb[244].mxu0 %v24480_v48  ;;  %13113 = vmatmul.mubr.f32.vlgmr.msra.gmra.mrb[20].mxu1 %v24480_v48  ;;  %v17505_v20 = vpack.c.bf16 %v11980_v57, %v11972_v42  ;;  %v11994_v51 = vld [vmem:[%s27293_s8 + $0x940] sm:$0xff]  ;;  %v11988_v43 = vld [vmem:[%s27293_s8 + $0x910] sm:$0xff] }
0x1186   :  { %v11525_v22 = vmul.f32 %v11251_v59, %v24356_v63  ;;  %v11559_v60 = vmul.f32 %v11388_v56, %v24358_v15  ;;  %17246 = vmatpush1.bf16.msra.mxu0 %v17245_v54  ;;  %17502 = vmatpush1.bf16.msra.mxu1 %v17501_v35  ;;  %v17251_v63 = vpack.c.bf16 %v11995_v46, %v11987_v40  ;;  %v12003_v54 = vld [vmem:[%s27293_s8 + $0x988] sm:$0xff]  ;;  %v12005_v59 = vld [vmem:[%s27293_s8 + $0x998] sm:$0xff] }
0x1187   :  { %v11641_v1 = vadd.f32 %v11640_v36, %v11558_v2  ;;  %17248 = vmatprep.subr.bf16.mxu0 %v17247_v55  ;;  %17504 = vmatprep.subr.bf16.mxu1 %v17503_v61  ;;  %v17507_v15 = vpack.c.bf16 %v11997_v4, %v11989_v17  ;;  %v12011_v35 = vld [vmem:[%s27293_s8 + $0x9c8] sm:$0xff]  ;;  %v12013_v61 = vld [vmem:[%s27293_s8 + $0x9d8] sm:$0xff]  ;;  %v17253_v17 = vpack.c.bf16 %v11994_v51, %v11986_v39  ;;  %v12012_v39 = vld [vmem:[%s27293_s8 + $0x9d0] sm:$0xff] }
0x1188   :  { %v11654_v42 = vadd.f32 %v11653_v13, %v11559_v60  ;;  %v11255_v57 = vpop.f32.mrb[246].mxu1  ;;  %v11392_v50 = vpop.f32.mrb[238].mxu0  ;;  %v17509_v4 = vpack.c.bf16 %v11996_v26, %v11988_v43  ;;  %v12002_v60 = vld [vmem:[%s27293_s8 + $0x980] sm:$0xff]  ;;  %v17255_v56 = vpack.c.bf16 %v12011_v35, %v12003_v54 }
0x1189   :  { %v11532_v36 = vmul.f32 %v11255_v57, %v24360_v45  ;;  %v11566_v55 = vmul.f32 %v11392_v50, %v24362_v6  ;;  %v11257_v40 = vpop.f32.mrb[247].mxu1  ;;  %v11394_v46 = vpop.f32.mrb[239].mxu0  ;;  %v12010_v45 = vld [vmem:[%s27293_s8 + $0x9c0] sm:$0xff]  ;;  %v12004_v6 = vld [vmem:[%s27293_s8 + $0x990] sm:$0xff] }
0x118a   :  { %v11533_v13 = vmul.f32 %v11257_v40, %v24364_v58  ;;  %v11567_v2 = vmul.f32 %v11394_v46, %v24366_v8  ;;  %17250 = vmatpush1.bf16.msra.mxu0 %v17249_v3  ;;  %17506 = vmatpush1.bf16.msra.mxu1 %v17505_v20  ;;  %v17511_v58 = vpack.c.bf16 %v12013_v61, %v12005_v59  ;;  %v12019_v8 = vld [vmem:[%s27293_s8 + $0xa08] sm:$0xff]  ;;  %v12028_v40 = vld [vmem:[%s27293_s8 + $0xa50] sm:$0xff] }
0x118b   :  { %v11612_v51 = vadd.f32 %v11532_v36, %v11524_v27  ;;  %v11642_v43 = vadd.f32 %v11641_v1, %v11566_v55  ;;  %17252 = vmatprep.subr.bf16.mxu0 %v17251_v63  ;;  %17508 = vmatprep.subr.bf16.mxu1 %v17507_v15  ;;  %v12027_v3 = vld [vmem:[%s27293_s8 + $0xa48] sm:$0xff]  ;;  %v12021_v27 = vld [vmem:[%s27293_s8 + $0xa18] sm:$0xff]  ;;  %v17257_v59 = vpack.c.bf16 %v12010_v45, %v12002_v60 }
0x118c   :  { %v11625_v20 = vadd.f32 %v11533_v13, %v11525_v22  ;;  %v11655_v26 = vadd.f32 %v11654_v42, %v11567_v2  ;;  %v11261_v54 = vpop.f32.mrb[248].mxu1  ;;  %v11398_v35 = vpop.f32.mrb[240].mxu0  ;;  %v12029_v1 = vld [vmem:[%s27293_s8 + $0xa58] sm:$0xff]  ;;  %v17513_v61 = vpack.c.bf16 %v12012_v39, %v12004_v6  ;;  %v12018_v22 = vld [vmem:[%s27293_s8 + $0xa00] sm:$0xff]  ;;  %v17259_v55 = vpack.c.bf16 %v12027_v3, %v12019_v8 }
0x118d   :  { %v11540_v63 = vmul.f32 %v11261_v54, %v24368_v33  ;;  %v11574_v15 = vmul.f32 %v11398_v35, %v24370_v41  ;;  %v11263_v57 = vpop.f32.mrb[249].mxu1  ;;  %v11400_v50 = vpop.f32.mrb[241].mxu0  ;;  %v12026_v33 = vld [vmem:[%s27293_s8 + $0xa40] sm:$0xff]  ;;  %v12020_v41 = vld [vmem:[%s27293_s8 + $0xa10] sm:$0xff]  ;;  %v12037_v6 = vld [vmem:[%s27293_s8 + $0xa98] sm:$0xff] }
0x118e   :  { %v11541_v42 = vmul.f32 %v11263_v57, %v24372_v10  ;;  %v11575_v36 = vmul.f32 %v11400_v50, %v24374_v12  ;;  %17254 = vmatpush1.bf16.msra.mxu0 %v17253_v17  ;;  %17510 = vmatpush1.bf16.msra.mxu1 %v17509_v4  ;;  %v17515_v10 = vpack.c.bf16 %v12029_v1, %v12021_v27  ;;  %v12035_v12 = vld [vmem:[%s27293_s8 + $0xa88] sm:$0xff]  ;;  %v12034_v35 = vld [vmem:[%s27293_s8 + $0xa80] sm:$0xff] }
0x118f   :  { %v11613_v46 = vadd.f32 %v11612_v51, %v11540_v63  ;;  %v11643_v60 = vadd.f32 %v11642_v43, %v11574_v15  ;;  %17256 = vmatprep.subr.bf16.mxu0 %v17255_v56  ;;  %17512 = vmatprep.subr.bf16.mxu1 %v17511_v58  ;;  %v12043_v17 = vld [vmem:[%s27293_s8 + $0xac8] sm:$0xff]  ;;  %v12045_v56 = vld [vmem:[%s27293_s8 + $0xad8] sm:$0xff]  ;;  %v17261_v8 = vpack.c.bf16 %v12026_v33, %v12018_v22 }
0x1190   :  { %v11626_v4 = vadd.f32 %v11625_v20, %v11541_v42  ;;  %v11656_v13 = vadd.f32 %v11655_v26, %v11575_v36  ;;  %v11267_v2 = vpop.f32.mrb[250].mxu1  ;;  %v11404_v45 = vpop.f32.mrb[242].mxu0  ;;  %v17517_v3 = vpack.c.bf16 %v12028_v40, %v12020_v41  ;;  %v17263_v54 = vpack.c.bf16 %v12043_v17, %v12035_v12  ;;  %v12051_v63 = vld [vmem:[%s27293_s8 + $0xb08] sm:$0xff]  ;;  %v12061_v22 = vld [vmem:[%s27293_s8 + $0xb58] sm:$0xff]  ;;  %v12050_v40 = vld [vmem:[%s27293_s8 + $0xb00] sm:$0xff] }
0x1191   :  { %v11548_v39 = vmul.f32 %v11267_v2, %v24376_v28  ;;  %v11582_v51 = vmul.f32 %v11404_v45, %v24378_v47  ;;  %v11269_v43 = vpop.f32.mrb[251].mxu1  ;;  %v11406_v58 = vpop.f32.mrb[243].mxu0  ;;  %v12042_v28 = vld [vmem:[%s27293_s8 + $0xac0] sm:$0xff]  ;;  %v17519_v1 = vpack.c.bf16 %v12045_v56, %v12037_v6  ;;  %v12060_v12 = vld [vmem:[%s27293_s8 + $0xb50] sm:$0xff]  ;;  %v12067_v17 = vld [vmem:[%s27293_s8 + $0xb88] sm:$0xff] }
0x1192   :  { %v11549_v20 = vmul.f32 %v11269_v43, %v24380_v30  ;;  %v11583_v26 = vmul.f32 %v11406_v58, %v24382_v19  ;;  %17258 = vmatpush1.bf16.msra.mxu0 %v17257_v59  ;;  %17514 = vmatpush1.bf16.msra.mxu1 %v17513_v61  ;;  %v12036_v30 = vld [vmem:[%s27293_s8 + $0xa90] sm:$0xff]  ;;  %v12059_v59 = vld [vmem:[%s27293_s8 + $0xb48] sm:$0xff]  ;;  %v12053_v61 = vld [vmem:[%s27293_s8 + $0xb18] sm:$0xff]  ;;  %v17265_v33 = vpack.c.bf16 %v12042_v28, %v12034_v35 }
0x1193   :  { %v11614_v47 = vadd.f32 %v11613_v46, %v11548_v39  ;;  %v24598_v27 = vadd.f32 %v11643_v60, %v11582_v51  ;;  %17260 = vmatprep.subr.bf16.mxu0 %v17259_v55  ;;  %17516 = vmatprep.subr.bf16.mxu1 %v17515_v10  ;;  %v12044_v19 = vld [vmem:[%s27293_s8 + $0xad0] sm:$0xff]  ;;  %v12058_v46 = vld [vmem:[%s27293_s8 + $0xb40] sm:$0xff]  ;;  %v17267_v10 = vpack.c.bf16 %v12059_v59, %v12051_v63  ;;  %v12075_v2 = vld [vmem:[%s27293_s8 + $0xbc8] sm:$0xff] }
0x1194   :  { %v11627_v15 = vadd.f32 %v11626_v4, %v11549_v20  ;;  %v24609_v57 = vadd.f32 %v11656_v13, %v11583_v26  ;;  %v11273_v50 = vpop.f32.mrb[252].mxu1  ;;  %v17521_v41 = vpack.c.bf16 %v12044_v19, %v12036_v30  ;;  %v12069_v45 = vld [vmem:[%s27293_s8 + $0xb98] sm:$0xff]  ;;  %v17269_v43 = vpack.c.bf16 %v12058_v46, %v12050_v40  ;;  %v12083_v35 = vld [vmem:[%s27293_s8 + $0xc08] sm:$0xff] }
0x1195   :  { %v11556_v42 = vmul.f32 %v11273_v50, %v24384_v29  ;;  %v11275_v36 = vpop.f32.mrb[253].mxu1  ;;  %v17523_v29 = vpack.c.bf16 %v12061_v22, %v12053_v61  ;;  %v12077_v6 = vld [vmem:[%s27293_s8 + $0xbd8] sm:$0xff]  ;;  %v17271_v26 = vpack.c.bf16 %v12075_v2, %v12067_v17  ;;  %v12082_v22 = vld [vmem:[%s27293_s8 + $0xc00] sm:$0xff] }
0x1196   :  { %v11557_v55 = vmul.f32 %v11275_v36, %v24386_v38  ;;  %17262 = vmatpush1.bf16.msra.mxu0 %v17261_v8  ;;  %17518 = vmatpush1.bf16.msra.mxu1 %v17517_v3  ;;  %v12052_v38 = vld [vmem:[%s27293_s8 + $0xb10] sm:$0xff]  ;;  %v12066_v8 = vld [vmem:[%s27293_s8 + $0xb80] sm:$0xff]  ;;  %v12085_v30 = vld [vmem:[%s27293_s8 + $0xc18] sm:$0xff] }
0x1197   :  { %v11615_v60 = vadd.f32 %v11614_v47, %v11556_v42  ;;  %17264 = vmatprep.subr.bf16.mxu0 %v17263_v54  ;;  %17520 = vmatprep.subr.bf16.mxu1 %v17519_v1  ;;  %v17525_v58 = vpack.c.bf16 %v12060_v12, %v12052_v38  ;;  %v12074_v3 = vld [vmem:[%s27293_s8 + $0xbc0] sm:$0xff]  ;;  %v12076_v54 = vld [vmem:[%s27293_s8 + $0xbd0] sm:$0xff]  ;;  %v12091_v1 = vld [vmem:[%s27293_s8 + $0xc48] sm:$0xff] }
0x1198   :  { %v11628_v4 = vadd.f32 %v11627_v15, %v11557_v55  ;;  %v11279_v13 = vpop.f32.mrb[254].mxu1  ;;  %v12093_v19 = vld [vmem:[%s27293_s8 + $0xc58] sm:$0xff]  ;;  %v17273_v59 = vpack.c.bf16 %v12074_v3, %v12066_v8  ;;  %v12090_v42 = vld [vmem:[%s27293_s8 + $0xc40] sm:$0xff]  ;;  %v17275_v55 = vpack.c.bf16 %v12091_v1, %v12083_v35  ;;  %v12123_v8 = vld [vmem:[%s27293_s8 + $0xd48] sm:$0xff] }
0x1199   :  { %v11564_v56 = vmul.f32 %v11279_v13, %v24388_v24  ;;  %v11281_v39 = vpop.f32.mrb[255].mxu1  ;;  %v17527_v24 = vpack.c.bf16 %v12077_v6, %v12069_v45  ;;  %v12098_v2 = vld [vmem:[%s27293_s8 + $0xc80] sm:$0xff]  ;;  %v12117_v3 = vld [vmem:[%s27293_s8 + $0xd18] sm:$0xff] }
0x119a   :  { %v11565_v51 = vmul.f32 %v11281_v39, %v24390_v53  ;;  %17266 = vmatpush1.bf16.msra.mxu0 %v17265_v33  ;;  %17522 = vmatpush1.bf16.msra.mxu1 %v17521_v41  ;;  %v12068_v53 = vld [vmem:[%s27293_s8 + $0xb90] sm:$0xff]  ;;  %v12099_v41 = vld [vmem:[%s27293_s8 + $0xc88] sm:$0xff]  ;;  %v12106_v45 = vld [vmem:[%s27293_s8 + $0xcc0] sm:$0xff] }
0x119b   :  { %v11616_v20 = vadd.f32 %v11615_v60, %v11564_v56  ;;  %17268 = vmatprep.subr.bf16.mxu0 %v17267_v10  ;;  %17524 = vmatprep.subr.bf16.mxu1 %v17523_v29  ;;  %v17529_v61 = vpack.c.bf16 %v12076_v54, %v12068_v53  ;;  %v12092_v33 = vld [vmem:[%s27293_s8 + $0xc50] sm:$0xff]  ;;  %v12107_v60 = vld [vmem:[%s27293_s8 + $0xcc8] sm:$0xff]  ;;  %v12101_v10 = vld [vmem:[%s27293_s8 + $0xc98] sm:$0xff]  ;;  %v17281_v35 = vpack.c.bf16 %v12106_v45, %v12098_v2 }
0x119c   :  { %v11629_v28 = vadd.f32 %v11628_v4, %v11565_v51  ;;  %v11285_v47 = vpop.f32.mrb[0].mxu1  ;;  %v12109_v29 = vld [vmem:[%s27293_s8 + $0xcd8] sm:$0xff]  ;;  %v17277_v4 = vpack.c.bf16 %v12090_v42, %v12082_v22  ;;  %v12108_v39 = vld [vmem:[%s27293_s8 + $0xcd0] sm:$0xff]  ;;  %v12115_v51 = vld [vmem:[%s27293_s8 + $0xd08] sm:$0xff] }
0x119d   :  { %v11572_v63 = vmul.f32 %v11285_v47, %v24392_v18  ;;  %v11287_v15 = vpop.f32.mrb[1].mxu1  ;;  %v17531_v18 = vpack.c.bf16 %v12093_v19, %v12085_v30  ;;  %v17535_v56 = vpack.c.bf16 %v12109_v29, %v12101_v10  ;;  %v12114_v47 = vld [vmem:[%s27293_s8 + $0xd00] sm:$0xff]  ;;  %v17283_v30 = vpack.c.bf16 %v12123_v8, %v12115_v51  ;;  %v12124_v19 = vld [vmem:[%s27293_s8 + $0xd50] sm:$0xff]  ;;  %v12141_v22 = vld [vmem:[%s27293_s8 + $0xdd8] sm:$0xff] }
0x119e   :  { %v11573_v50 = vmul.f32 %v11287_v15, %v24394_v16  ;;  %17270 = vmatpush1.bf16.msra.mxu0 %v17269_v43  ;;  %17526 = vmatpush1.bf16.msra.mxu1 %v17525_v58  ;;  %v12084_v16 = vld [vmem:[%s27293_s8 + $0xc10] sm:$0xff]  ;;  %v12122_v1 = vld [vmem:[%s27293_s8 + $0xd40] sm:$0xff]  ;;  %v12149_v45 = vld [vmem:[%s27293_s8 + $0xe18] sm:$0xff] }
0x119f   :  { %v11617_v36 = vadd.f32 %v11616_v20, %v11572_v63  ;;  %17272 = vmatprep.subr.bf16.mxu0 %v17271_v26  ;;  %17528 = vmatprep.subr.bf16.mxu1 %v17527_v24  ;;  %v17533_v13 = vpack.c.bf16 %v12092_v33, %v12084_v16  ;;  %v12125_v20 = vld [vmem:[%s27293_s8 + $0xd58] sm:$0xff]  ;;  %v12131_v63 = vld [vmem:[%s27293_s8 + $0xd88] sm:$0xff]  ;;  %v17285_v16 = vpack.c.bf16 %v12122_v1, %v12114_v47  ;;  %v12140_v29 = vld [vmem:[%s27293_s8 + $0xdd0] sm:$0xff] }
0x11a0   :  { %v11630_v40 = vadd.f32 %v11629_v28, %v11573_v50  ;;  %v11291_v46 = vpop.f32.mrb[2].mxu1  ;;  %v12171_v1 = vld [vmem:[%s27293_s8 + $0xec8] sm:$0xff] }
0x11a1   :  { %v11580_v38 = vmul.f32 %v11291_v46, %v24396_v9  ;;  %v11293_v12 = vpop.f32.mrb[3].mxu1  ;;  %v17279_v9 = vpack.c.bf16 %v12107_v60, %v12099_v41  ;;  %v12130_v41 = vld [vmem:[%s27293_s8 + $0xd80] sm:$0xff] }
0x11a2   :  { %v11581_v17 = vmul.f32 %v11293_v12, %v24398_v44  ;;  %17274 = vmatpush1.bf16.msra.mxu0 %v17273_v59  ;;  %17530 = vmatpush1.bf16.msra.mxu1 %v17529_v61  ;;  %v12100_v44 = vld [vmem:[%s27293_s8 + $0xc90] sm:$0xff]  ;;  %v12139_v59 = vld [vmem:[%s27293_s8 + $0xdc8] sm:$0xff]  ;;  %v12133_v61 = vld [vmem:[%s27293_s8 + $0xd98] sm:$0xff] }
0x11a3   :  { %v24706_v6 = vadd.f32 %v11617_v36, %v11580_v38  ;;  %17276 = vmatprep.subr.bf16.mxu0 %v17275_v55  ;;  %17532 = vmatprep.subr.bf16.mxu1 %v17531_v18  ;;  %v17537_v28 = vpack.c.bf16 %v12108_v39, %v12100_v44  ;;  %v17543_v10 = vpack.c.bf16 %v12141_v22, %v12133_v61  ;;  %v12147_v38 = vld [vmem:[%s27293_s8 + $0xe08] sm:$0xff]  ;;  %v12170_v61 = vld [vmem:[%s27293_s8 + $0xec0] sm:$0xff] }
0x11a4   :  { %v11631_v43 = vadd.f32 %v11630_v40, %v11581_v17  ;;  %v11475_v58 = vpop.f32.mrb[4].mxu1  ;;  %v12138_v40 = vld [vmem:[%s27293_s8 + $0xdc0] sm:$0xff]  ;;  %v12155_v12 = vld [vmem:[%s27293_s8 + $0xe48] sm:$0xff]  ;;  %v11658_v17 = vrot.slane %v24609_v57, 4 }
0x11a5   :  { %v11528_v26 = vmul.f32 %v11475_v58, %v24400_v49  ;;  %v11477_v24 = vpop.f32.mrb[5].mxu1  ;;  %v17539_v49 = vpack.c.bf16 %v12125_v20, %v12117_v3  ;;  %v11619_v46 = vrot.slane %v24706_v6, 4  ;;  %v17289_v39 = vpack.c.bf16 %v12138_v40, %v12130_v41  ;;  %v12146_v3 = vld [vmem:[%s27293_s8 + $0xe00] sm:$0xff] }
0x11a6   :  { %v11632_v53 = vrot.slane %v11631_v43, 4  ;;  %v11529_v54 = vmul.f32 %v11477_v24, %v24403_v23  ;;  %17278 = vmatpush1.bf16.msra.mxu0 %v17277_v4  ;;  %17534 = vmatpush1.bf16.msra.mxu1 %v17533_v13  ;;  %v12116_v23 = vld [vmem:[%s27293_s8 + $0xd10] sm:$0xff]  ;;  %v17291_v8 = vpack.c.bf16 %v12155_v12, %v12147_v38  ;;  %v12154_v20 = vld [vmem:[%s27293_s8 + $0xe40] sm:$0xff] }
0x11a7   :  { %17280 = vmatprep.subr.bf16.mxu0 %v17279_v9  ;;  %17536 = vmatprep.subr.bf16.mxu1 %v17535_v56  ;;  %v17541_v33 = vpack.c.bf16 %v12124_v19, %v12116_v23  ;;  %v12157_v9 = vld [vmem:[%s27293_s8 + $0xe58] sm:$0xff] }
0x11a8   :  { %v11633_v15 = vadd.f32 %v11632_v53, %v11631_v43  ;;  %v11481_v50 = vpop.f32.mrb[6].mxu1  ;;  %v17547_v24 = vpack.c.bf16 %v12157_v9, %v12149_v45  ;;  %v12156_v53 = vld [vmem:[%s27293_s8 + $0xe50] sm:$0xff]  ;;  %v12195_v9 = vld [vmem:[%s27293_s8 + $0xf88] sm:$0xff] }
0x11a9   :  { %v11536_v42 = vmul.f32 %v11481_v50, %v24406_v62  ;;  %v11483_v36 = vpop.f32.mrb[7].mxu1  ;;  %v12132_v62 = vld [vmem:[%s27293_s8 + $0xd90] sm:$0xff] }
0x11aa   :  { %v11634_v55 = vrot.slane %v11633_v15, 2  ;;  %v11537_v18 = vmul.f32 %v11483_v36, %v24409_v14  ;;  %17282 = vmatpush1.bf16.msra.mxu0 %v17281_v35  ;;  %17538 = vmatpush1.bf16.msra.mxu1 %v17537_v28  ;;  %v17287_v14 = vpack.c.bf16 %v12139_v59, %v12131_v63  ;;  %v17545_v58 = vpack.c.bf16 %v12140_v29, %v12132_v62  ;;  %v12162_v59 = vld [vmem:[%s27293_s8 + $0xe80] sm:$0xff]  ;;  %v12181_v62 = vld [vmem:[%s27293_s8 + $0xf18] sm:$0xff]  ;;  %v12188_v45 = vld [vmem:[%s27293_s8 + $0xf50] sm:$0xff] }
0x11ab   :  { %v11664_v60 = vadd.f32 %v11536_v42, %v11528_v26  ;;  %17284 = vmatprep.subr.bf16.mxu0 %v17283_v30  ;;  %17540 = vmatprep.subr.bf16.mxu1 %v17539_v49  ;;  %v11620_v26 = vadd.f32 %v11619_v46, %v24706_v6  ;;  %v11659_v35 = vadd.f32 %v11658_v17, %v24609_v57  ;;  %v12165_v30 = vld [vmem:[%s27293_s8 + $0xe98] sm:$0xff]  ;;  %v12178_v17 = vld [vmem:[%s27293_s8 + $0xf00] sm:$0xff] }
0x11ac   :  { %v11635_v4 = vadd.f32 %v11634_v55, %v11633_v15  ;;  %v11677_v13 = vadd.f32 %v11537_v18, %v11529_v54  ;;  %v11487_v2 = vpop.f32.mrb[8].mxu1  ;;  %v12163_v54 = vld [vmem:[%s27293_s8 + $0xe88] sm:$0xff]  ;;  %v12173_v49 = vld [vmem:[%s27293_s8 + $0xed8] sm:$0xff]  ;;  %v17293_v15 = vpack.c.bf16 %v12154_v20, %v12146_v3  ;;  %v12172_v55 = vld [vmem:[%s27293_s8 + $0xed0] sm:$0xff] }
0x11ad   :  { %v11544_v56 = vmul.f32 %v11487_v2, %v24412_v32  ;;  %v11489_v44 = vpop.f32.mrb[9].mxu1  ;;  %v11621_v22 = vrot.slane %v11620_v26, 2  ;;  %v17295_v42 = vpack.c.bf16 %v12171_v1, %v12163_v54  ;;  %v17551_v36 = vpack.c.bf16 %v12173_v49, %v12165_v30  ;;  %v12179_v18 = vld [vmem:[%s27293_s8 + $0xf08] sm:$0xff]  ;;  %v12189_v46 = vld [vmem:[%s27293_s8 + $0xf58] sm:$0xff] }
0x11ae   :  { %v11636_v51 = vrot.slane %v11635_v4, 1  ;;  %v11545_v43 = vmul.f32 %v11489_v44, %v24415_v31  ;;  %17286 = vmatpush1.bf16.msra.mxu0 %v17285_v16  ;;  %17542 = vmatpush1.bf16.msra.mxu1 %v17541_v33  ;;  %v12148_v31 = vld [vmem:[%s27293_s8 + $0xe10] sm:$0xff]  ;;  %v12187_v16 = vld [vmem:[%s27293_s8 + $0xf48] sm:$0xff]  ;;  %v11660_v33 = vrot.slane %v11659_v35, 2 }
0x11af   :  { %v11665_v32 = vadd.f32 %v11664_v60, %v11544_v56  ;;  %17288 = vmatprep.subr.bf16.mxu0 %v17287_v14  ;;  %17544 = vmatprep.subr.bf16.mxu1 %v17543_v10  ;;  %v17549_v50 = vpack.c.bf16 %v12156_v53, %v12148_v31  ;;  %v17297_v10 = vpack.c.bf16 %v12170_v61, %v12162_v59  ;;  %v12202_v31 = vld [vmem:[%s27293_s8 + $0xfc0] sm:$0xff]  ;;  %v12196_v53 = vld [vmem:[%s27293_s8 + $0xf90] sm:$0xff] }
0x11b0   :  { %v11678_v28 = vadd.f32 %v11677_v13, %v11545_v43  ;;  %v11493_v6 = vpop.f32.mrb[10].mxu1  ;;  %v11637_v47 = vadd.f32 %v11636_v51, %v11635_v4  ;;  %v17299_v12 = vpack.c.bf16 %v12187_v16, %v12179_v18  ;;  %v12186_v4 = vld [vmem:[%s27293_s8 + $0xf40] sm:$0xff]  ;;  %v11622_v13 = vadd.f32 %v11621_v22, %v11620_v26  ;;  %v12203_v51 = vld [vmem:[%s27293_s8 + $0xfc8] sm:$0xff]  ;;  %v12197_v43 = vld [vmem:[%s27293_s8 + $0xf98] sm:$0xff] }
0x11b1   :  { %v11552_v23 = vmul.f32 %v11493_v6, %v24418_v34  ;;  %v11495_v19 = vpop.f32.mrb[11].mxu1  ;;  %v12164_v34 = vld [vmem:[%s27293_s8 + $0xe90] sm:$0xff]  ;;  %v11661_v56 = vadd.f32 %v11660_v33, %v11659_v35  ;;  %v17301_v26 = vpack.c.bf16 %v12186_v4, %v12178_v17  ;;  %v12211_v6 = vld [vmem:[%s27293_s8 + $0x1008] sm:$0xff]  ;;  %v12226_v4 = vld [vmem:[%s27293_s8 + $0x1080] sm:$0xff] }
0x11b2   :  { %v11553_v57 = vmul.f32 %v11495_v19, %v24421_v11  ;;  %17290 = vmatpush1.bf16.msra.mxu0 %v17289_v39  ;;  %17546 = vmatpush1.bf16.msra.mxu1 %v17545_v58  ;;  %v24810_v63 = vmul.f32 0.015625, %v11637_v47  ;;  %v17553_v38 = vpack.c.bf16 %v12172_v55, %v12164_v34  ;;  %v12205_v58 = vld [vmem:[%s27293_s8 + $0xfd8] sm:$0xff]  ;;  %v12219_v47 = vld [vmem:[%s27293_s8 + $0x1048] sm:$0xff]  ;;  %v12212_v16 = vld [vmem:[%s27293_s8 + $0x1010] sm:$0xff] }
0x11b3   :  { %v11666_v11 = vadd.f32 %v11665_v32, %v11552_v23  ;;  %17292 = vmatprep.subr.bf16.mxu0 %v17291_v8  ;;  %17548 = vmatprep.subr.bf16.mxu1 %v17547_v24  ;;  %v12194_v24 = vld [vmem:[%s27293_s8 + $0xf80] sm:$0xff]  ;;  %v17559_v35 = vpack.c.bf16 %v12205_v58, %v12197_v43  ;;  %v11662_v1 = vrot.slane %v11661_v56, 1  ;;  %v12213_v23 = vld [vmem:[%s27293_s8 + $0x1018] sm:$0xff]  ;;  %v17307_v34 = vpack.c.bf16 %v12219_v47, %v12211_v6  ;;  %v12220_v33 = vld [vmem:[%s27293_s8 + $0x1050] sm:$0xff] }
0x11b4   :  { %v11679_v41 = vadd.f32 %v11678_v28, %v11553_v57  ;;  %v11499_v40 = vpop.f32.mrb[12].mxu1  ;;  %12899 = vmatprep.mubr.f32.mxu0 %v24810_v63  ;;  %13183 = vmatprep.mubr.f32.mxu1 %v24810_v63  ;;  %v12204_v28 = vld [vmem:[%s27293_s8 + $0xfd0] sm:$0xff]  ;;  %v12221_v19 = vld [vmem:[%s27293_s8 + $0x1058] sm:$0xff]  ;;  %v17565_v17 = vpack.c.bf16 %v12220_v33, %v12212_v16  ;;  %v12258_v47 = vld [vmem:[%s27293_s8 + $0x1180] sm:$0xff] }
0x11b5   :  { %v11560_v60 = vmul.f32 %v11499_v40, %v24424_v5  ;;  %v11501_v14 = vpop.f32.mrb[13].mxu1  ;;  %v17555_v5 = vpack.c.bf16 %v12189_v46, %v12181_v62  ;;  %v17561_v61 = vpack.c.bf16 %v12204_v28, %v12196_v53  ;;  %v12235_v46 = vld [vmem:[%s27293_s8 + $0x10c8] sm:$0xff]  ;;  %v12253_v43 = vld [vmem:[%s27293_s8 + $0x1158] sm:$0xff] }
0x11b6   :  { %v11561_v29 = vmul.f32 %v11501_v14, %v24427_v37  ;;  %17294 = vmatpush1.bf16.msra.mxu0 %v17293_v15  ;;  %17550 = vmatpush1.bf16.msra.mxu1 %v17549_v50  ;;  %v12180_v37 = vld [vmem:[%s27293_s8 + $0xf10] sm:$0xff]  ;;  %v17305_v50 = vpack.c.bf16 %v12202_v31, %v12194_v24  ;;  %v12237_v14 = vld [vmem:[%s27293_s8 + $0x10d8] sm:$0xff]  ;;  %v12259_v53 = vld [vmem:[%s27293_s8 + $0x1188] sm:$0xff] }
0x11b7   :  { %v11667_v2 = vadd.f32 %v11666_v11, %v11560_v60  ;;  %17296 = vmatprep.subr.bf16.mxu0 %v17295_v42  ;;  %17552 = vmatprep.subr.bf16.mxu1 %v17551_v36  ;;  %v17557_v32 = vpack.c.bf16 %v12188_v45, %v12180_v37  ;;  %v17563_v42 = vpack.c.bf16 %v12221_v19, %v12213_v23  ;;  %v12210_v36 = vld [vmem:[%s27293_s8 + $0x1000] sm:$0xff]  ;;  %v12229_v60 = vld [vmem:[%s27293_s8 + $0x1098] sm:$0xff]  ;;  %v12252_v31 = vld [vmem:[%s27293_s8 + $0x1150] sm:$0xff] }
0x11b8   :  { %v11680_v44 = vadd.f32 %v11679_v41, %v11561_v29  ;;  %v11505_v39 = vpop.f32.mrb[14].mxu1  ;;  %v12227_v41 = vld [vmem:[%s27293_s8 + $0x1088] sm:$0xff]  ;;  %v12268_v23 = vld [vmem:[%s27293_s8 + $0x11d0] sm:$0xff]  ;;  %v12301_v16 = vld [vmem:[%s27293_s8 + $0x12d8] sm:$0xff] }
0x11b9   :  { %v11568_v8 = vmul.f32 %v11505_v39, %v24430_v21  ;;  %v11507_v3 = vpop.f32.mrb[15].mxu1  ;;  %v11623_v21 = vrot.slane %v11622_v13, 1  ;;  %v17311_v45 = vpack.c.bf16 %v12235_v46, %v12227_v41  ;;  %v12251_v39 = vld [vmem:[%s27293_s8 + $0x1148] sm:$0xff]  ;;  %v12298_v46 = vld [vmem:[%s27293_s8 + $0x12c0] sm:$0xff] }
0x11ba   :  { %v11569_v20 = vmul.f32 %v11507_v3, %v24433_v52  ;;  %17298 = vmatpush1.bf16.msra.mxu0 %v17297_v10  ;;  %17554 = vmatpush1.bf16.msra.mxu1 %v17553_v38  ;;  %v17303_v52 = vpack.c.bf16 %v12203_v51, %v12195_v9  ;;  %v27336_v10 = vld [vmem:[#allocation6_spill] sm:$0xff]  ;;  %v17567_v9 = vpack.c.bf16 %v12237_v14, %v12229_v60  ;;  %v12245_v51 = vld [vmem:[%s27293_s8 + $0x1118] sm:$0xff]  ;;  %v12275_v19 = vld [vmem:[%s27293_s8 + $0x1208] sm:$0xff] }
0x11bb   :  { %v11668_v54 = vadd.f32 %v11667_v2, %v11568_v8  ;;  %17300 = vmatprep.subr.bf16.mxu0 %v17299_v12  ;;  %17556 = vmatprep.subr.bf16.mxu1 %v17555_v5  ;;  %v11624_v11 = vadd.f32 %v11623_v21, %v11622_v13  ;;  %v12234_v13 = vld [vmem:[%s27293_s8 + $0x10c0] sm:$0xff]  ;;  %v12228_v2 = vld [vmem:[%s27293_s8 + $0x1090] sm:$0xff]  ;;  %v17571_v24 = vpack.c.bf16 %v12253_v43, %v12245_v51  ;;  %v12267_v21 = vld [vmem:[%s27293_s8 + $0x11c8] sm:$0xff] }
0x11bc   :  { %v11681_v30 = vadd.f32 %v11680_v44, %v11569_v20  ;;  %v11511_v49 = vpop.f32.mrb[16].mxu1  ;;  %v12243_v44 = vld [vmem:[%s27293_s8 + $0x1108] sm:$0xff]  ;;  %v17313_v58 = vpack.c.bf16 %v12234_v13, %v12226_v4  ;;  %v12242_v20 = vld [vmem:[%s27293_s8 + $0x1100] sm:$0xff]  ;;  %v17319_v6 = vpack.c.bf16 %v12267_v21, %v12259_v53  ;;  %v12292_v60 = vld [vmem:[%s27293_s8 + $0x1290] sm:$0xff] }
0x11bd   :  { %v11576_v57 = vmul.f32 %v11511_v49, %v24436_v7  ;;  %v11513_v15 = vpop.f32.mrb[17].mxu1  ;;  %v12218_v7 = vld [vmem:[%s27293_s8 + $0x1040] sm:$0xff]  ;;  %v17315_v3 = vpack.c.bf16 %v12251_v39, %v12243_v44  ;;  %v12317_v4 = vld [vmem:[%s27293_s8 + $0x1358] sm:$0xff]  ;;  %v12308_v44 = vld [vmem:[%s27293_s8 + $0x1310] sm:$0xff] }
0x11be   :  { %v11577_v59 = vmul.f32 %v11513_v15, %v24439_v0  ;;  %17302 = vmatpush1.bf16.msra.mxu0 %v17301_v26  ;;  %17558 = vmatpush1.bf16.msra.mxu1 %v17557_v32  ;;  %v11663_v0 = vadd.f32 %v11662_v1, %v11661_v56  ;;  %v17309_v38 = vpack.c.bf16 %v12218_v7, %v12210_v36  ;;  %v12236_v56 = vld [vmem:[%s27293_s8 + $0x10d0] sm:$0xff]  ;;  %v12250_v26 = vld [vmem:[%s27293_s8 + $0x1140] sm:$0xff]  ;;  %v12277_v15 = vld [vmem:[%s27293_s8 + $0x1218] sm:$0xff] }
0x11bf   :  { %v11669_v22 = vadd.f32 %v11668_v54, %v11576_v57  ;;  %17304 = vmatprep.subr.bf16.mxu0 %v17303_v52  ;;  %17560 = vmatprep.subr.bf16.mxu1 %v17559_v35  ;;  %v17569_v8 = vpack.c.bf16 %v12236_v56, %v12228_v2  ;;  %v12244_v32 = vld [vmem:[%s27293_s8 + $0x1110] sm:$0xff]  ;;  %v12261_v54 = vld [vmem:[%s27293_s8 + $0x1198] sm:$0xff]  ;;  %v17317_v35 = vpack.c.bf16 %v12250_v26, %v12242_v20  ;;  %v12266_v1 = vld [vmem:[%s27293_s8 + $0x11c0] sm:$0xff] }
0x11c0   :  { %v11682_v55 = vadd.f32 %v11681_v30, %v11577_v59  ;;  %v11517_v18 = vpop.f32.mrb[18].mxu1  ;;  %v24933_v37 = vmul.f32 0.015625, %v11663_v0  ;;  %v12269_v52 = vld [vmem:[%s27293_s8 + $0x11d8] sm:$0xff]  ;;  %v17573_v28 = vpack.c.bf16 %v12252_v31, %v12244_v32  ;;  %v12260_v30 = vld [vmem:[%s27293_s8 + $0x1190] sm:$0xff]  ;;  %v12283_v57 = vld [vmem:[%s27293_s8 + $0x1248] sm:$0xff]  ;;  %v17321_v59 = vpack.c.bf16 %v12266_v1, %v12258_v47 }
0x11c1   :  { %v11584_v40 = vmul.f32 %v11517_v18, %v24457_v25  ;;  %v11519_v62 = vpop.f32.mrb[19].mxu1  ;;  %v24920_v25 = vmul.f32 0.015625, %v11624_v11  ;;  %v17575_v49 = vpack.c.bf16 %v12269_v52, %v12261_v54  ;;  %v12282_v11 = vld [vmem:[%s27293_s8 + $0x1240] sm:$0xff]  ;;  %v12284_v7 = vld [vmem:[%s27293_s8 + $0x1250] sm:$0xff]  ;;  %v12299_v18 = vld [vmem:[%s27293_s8 + $0x12c8] sm:$0xff] }
0x11c2   :  { %v11585_v29 = vmul.f32 %v11519_v62, %v27336_v10  ;;  %17306 = vmatpush1.bf16.msra.mxu0 %v17305_v50  ;;  %17562 = vmatpush1.bf16.msra.mxu1 %v17561_v61  ;;  %v12285_v50 = vld [vmem:[%s27293_s8 + $0x1258] sm:$0xff]  ;;  %v17577_v61 = vpack.c.bf16 %v12268_v23, %v12260_v30  ;;  %v12290_v62 = vld [vmem:[%s27293_s8 + $0x1280] sm:$0xff]  ;;  %v12300_v10 = vld [vmem:[%s27293_s8 + $0x12d0] sm:$0xff] }
0x11c3   :  { %v24918_v12 = vadd.f32 %v11669_v22, %v11584_v40  ;;  %17308 = vmatprep.subr.bf16.mxu0 %v17307_v34  ;;  %17564 = vmatprep.subr.bf16.mxu1 %v17563_v42  ;;  %v17323_v34 = vpack.c.bf16 %v12283_v57, %v12275_v19  ;;  %v12274_v22 = vld [vmem:[%s27293_s8 + $0x1200] sm:$0xff]  ;;  %v12276_v42 = vld [vmem:[%s27293_s8 + $0x1210] sm:$0xff]  ;;  %v17579_v36 = vpack.c.bf16 %v12285_v50, %v12277_v15  ;;  %v12293_v0 = vld [vmem:[%s27293_s8 + $0x1298] sm:$0xff] }
0x11c4   :  { %v24931_v5 = vadd.f32 %v11682_v55, %v11585_v29  ;;  %v12291_v55 = vld [vmem:[%s27293_s8 + $0x1288] sm:$0xff]  ;;  %v17325_v33 = vpack.c.bf16 %v12282_v11, %v12274_v22  ;;  %v17581_v41 = vpack.c.bf16 %v12284_v7, %v12276_v42  ;;  %v17583_v14 = vpack.c.bf16 %v12301_v16, %v12293_v0  ;;  %v12314_v56 = vld [vmem:[%s27293_s8 + $0x1340] sm:$0xff]  ;;  %v12316_v51 = vld [vmem:[%s27293_s8 + $0x1350] sm:$0xff] }
0x11c5   :  { %12900 = vmatmul.mubr.f32.vlgmr.msra.gmra.mrb[244].mxu0 %v24920_v25  ;;  %13184 = vmatmul.mubr.f32.vlgmr.msra.gmra.mrb[20].mxu1 %v24920_v25  ;;  %v17327_v40 = vpack.c.bf16 %v12299_v18, %v12291_v55  ;;  %v12307_v29 = vld [vmem:[%s27293_s8 + $0x1308] sm:$0xff]  ;;  %v17329_v13 = vpack.c.bf16 %v12298_v46, %v12290_v62  ;;  %v17585_v2 = vpack.c.bf16 %v12300_v10, %v12292_v60  ;;  %v12330_v31 = vld [vmem:[%s27293_s8 + $0x13c0] sm:$0xff]  ;;  %v12324_v53 = vld [vmem:[%s27293_s8 + $0x1390] sm:$0xff] }
0x11c6   :  { %17310 = vmatpush1.bf16.msra.mxu0 %v17309_v38  ;;  %12970 = vmatprep.mubr.f32.mxu0 %v24933_v37  ;;  %v12315_v38 = vld [vmem:[%s27293_s8 + $0x1348] sm:$0xff]  ;;  %v17589_v26 = vpack.c.bf16 %v12316_v51, %v12308_v44  ;;  %v12332_v54 = vld [vmem:[%s27293_s8 + $0x13d0] sm:$0xff]  ;;  %v12346_v23 = vld [vmem:[%s27293_s8 + $0x1440] sm:$0xff] }
0x11c7   :  { %17566 = vmatpush1.bf16.msra.mxu1 %v17565_v17  ;;  %13254 = vmatprep.mubr.f32.mxu1 %v24933_v37  ;;  %v12309_v17 = vld [vmem:[%s27293_s8 + $0x1318] sm:$0xff]  ;;  %v12323_v43 = vld [vmem:[%s27293_s8 + $0x1388] sm:$0xff]  ;;  %v17593_v1 = vpack.c.bf16 %v12332_v54, %v12324_v53  ;;  %v12340_v19 = vld [vmem:[%s27293_s8 + $0x1410] sm:$0xff] }
0x11c8   :  { %17312 = vmatprep.subr.bf16.mxu0 %v17311_v45  ;;  %17568 = vmatprep.subr.bf16.mxu1 %v17567_v9  ;;  %v17331_v45 = vpack.c.bf16 %v12315_v38, %v12307_v29  ;;  %v12306_v9 = vld [vmem:[%s27293_s8 + $0x1300] sm:$0xff]  ;;  %v17587_v39 = vpack.c.bf16 %v12317_v4, %v12309_v17  ;;  %v12339_v52 = vld [vmem:[%s27293_s8 + $0x1408] sm:$0xff]  ;;  %v12348_v15 = vld [vmem:[%s27293_s8 + $0x1450] sm:$0xff] }
0x11c9   :  { %v17333_v20 = vpack.c.bf16 %v12314_v56, %v12306_v9  ;;  %v12355_v50 = vld [vmem:[%s27293_s8 + $0x1488] sm:$0xff]  ;;  %v17597_v11 = vpack.c.bf16 %v12348_v15, %v12340_v19  ;;  %v12362_v7 = vld [vmem:[%s27293_s8 + $0x14c0] sm:$0xff]  ;;  %v12356_v55 = vld [vmem:[%s27293_s8 + $0x1490] sm:$0xff]  ;;  %v11645_v56 = vrot.slane %v24598_v27, 4 }
0x11ca   :  { %17314 = vmatpush1.bf16.msra.mxu0 %v17313_v58  ;;  %v12331_v58 = vld [vmem:[%s27293_s8 + $0x13c8] sm:$0xff]  ;;  %v12364_v0 = vld [vmem:[%s27293_s8 + $0x14d0] sm:$0xff]  ;;  %v12378_v10 = vld [vmem:[%s27293_s8 + $0x1540] sm:$0xff] }
0x11cb   :  { %17570 = vmatpush1.bf16.msra.mxu1 %v17569_v8  ;;  %17316 = vmatprep.subr.bf16.mxu0 %v17315_v3  ;;  %v12325_v8 = vld [vmem:[%s27293_s8 + $0x1398] sm:$0xff]  ;;  %v17335_v32 = vpack.c.bf16 %v12331_v58, %v12323_v43  ;;  %v12371_v16 = vld [vmem:[%s27293_s8 + $0x1508] sm:$0xff]  ;;  %v17601_v46 = vpack.c.bf16 %v12364_v0, %v12356_v55  ;;  %v12372_v29 = vld [vmem:[%s27293_s8 + $0x1510] sm:$0xff] }
0x11cc   :  { %17572 = vmatprep.subr.bf16.mxu1 %v17571_v24  ;;  %v12333_v3 = vld [vmem:[%s27293_s8 + $0x13d8] sm:$0xff]  ;;  %v12322_v24 = vld [vmem:[%s27293_s8 + $0x1380] sm:$0xff]  ;;  %v12380_v17 = vld [vmem:[%s27293_s8 + $0x1550] sm:$0xff] }
0x11cd   :  { %v17591_v21 = vpack.c.bf16 %v12333_v3, %v12325_v8  ;;  %v17337_v47 = vpack.c.bf16 %v12330_v31, %v12322_v24  ;;  %v12387_v4 = vld [vmem:[%s27293_s8 + $0x1588] sm:$0xff]  ;;  %v17605_v44 = vpack.c.bf16 %v12380_v17, %v12372_v29  ;;  %v12386_v51 = vld [vmem:[%s27293_s8 + $0x1580] sm:$0xff]  ;;  %v12388_v58 = vld [vmem:[%s27293_s8 + $0x1590] sm:$0xff] }
0x11ce   :  { %17318 = vmatpush1.bf16.msra.mxu0 %v17317_v35  ;;  %v12347_v35 = vld [vmem:[%s27293_s8 + $0x1448] sm:$0xff]  ;;  %v12394_v43 = vld [vmem:[%s27293_s8 + $0x15c0] sm:$0xff]  ;;  %v12396_v3 = vld [vmem:[%s27293_s8 + $0x15d0] sm:$0xff] }
0x11cf   :  { %17574 = vmatpush1.bf16.msra.mxu1 %v17573_v28  ;;  %17320 = vmatprep.subr.bf16.mxu0 %v17319_v6  ;;  %v12341_v28 = vld [vmem:[%s27293_s8 + $0x1418] sm:$0xff]  ;;  %v17339_v30 = vpack.c.bf16 %v12347_v35, %v12339_v52  ;;  %v17353_v53 = vpack.c.bf16 %v12394_v43, %v12386_v51  ;;  %v17609_v54 = vpack.c.bf16 %v12396_v3, %v12388_v58  ;;  %v12402_v35 = vld [vmem:[%s27293_s8 + $0x1600] sm:$0xff]  ;;  %v12459_v29 = vld [vmem:[%s27293_s8 + $0x17c8] sm:$0xff] }
0x11d0   :  { %17576 = vmatprep.subr.bf16.mxu1 %v17575_v49  ;;  %v12349_v6 = vld [vmem:[%s27293_s8 + $0x1458] sm:$0xff]  ;;  %v12338_v49 = vld [vmem:[%s27293_s8 + $0x1400] sm:$0xff]  ;;  %v12460_v43 = vld [vmem:[%s27293_s8 + $0x17d0] sm:$0xff] }
0x11d1   :  { %v17595_v57 = vpack.c.bf16 %v12349_v6, %v12341_v28  ;;  %v17341_v22 = vpack.c.bf16 %v12346_v23, %v12338_v49  ;;  %v12405_v24 = vld [vmem:[%s27293_s8 + $0x1618] sm:$0xff]  ;;  %v12410_v28 = vld [vmem:[%s27293_s8 + $0x1640] sm:$0xff]  ;;  %v12404_v6 = vld [vmem:[%s27293_s8 + $0x1610] sm:$0xff] }
0x11d2   :  { %17322 = vmatpush1.bf16.msra.mxu0 %v17321_v59  ;;  %v12363_v59 = vld [vmem:[%s27293_s8 + $0x14c8] sm:$0xff]  ;;  %v12413_v31 = vld [vmem:[%s27293_s8 + $0x1658] sm:$0xff] }
0x11d3   :  { %17578 = vmatpush1.bf16.msra.mxu1 %v17577_v61  ;;  %17324 = vmatprep.subr.bf16.mxu0 %v17323_v34  ;;  %v12357_v61 = vld [vmem:[%s27293_s8 + $0x1498] sm:$0xff]  ;;  %v17343_v42 = vpack.c.bf16 %v12363_v59, %v12355_v50  ;;  %v12467_v58 = vld [vmem:[%s27293_s8 + $0x1808] sm:$0xff] }
0x11d4   :  { %17580 = vmatprep.subr.bf16.mxu1 %v17579_v36  ;;  %v12365_v34 = vld [vmem:[%s27293_s8 + $0x14d8] sm:$0xff]  ;;  %v12354_v36 = vld [vmem:[%s27293_s8 + $0x1480] sm:$0xff] }
0x11d5   :  { %v17599_v18 = vpack.c.bf16 %v12365_v34, %v12357_v61  ;;  %v17345_v62 = vpack.c.bf16 %v12362_v7, %v12354_v36  ;;  %v12421_v23 = vld [vmem:[%s27293_s8 + $0x1698] sm:$0xff]  ;;  %v12418_v61 = vld [vmem:[%s27293_s8 + $0x1680] sm:$0xff]  ;;  %v12420_v34 = vld [vmem:[%s27293_s8 + $0x1690] sm:$0xff] }
0x11d6   :  { %17326 = vmatpush1.bf16.msra.mxu0 %v17325_v33  ;;  %v12379_v33 = vld [vmem:[%s27293_s8 + $0x1548] sm:$0xff]  ;;  %v12429_v19 = vld [vmem:[%s27293_s8 + $0x16d8] sm:$0xff] }
0x11d7   :  { %17582 = vmatpush1.bf16.msra.mxu1 %v17581_v41  ;;  %17328 = vmatprep.subr.bf16.mxu0 %v17327_v40  ;;  %v12373_v41 = vld [vmem:[%s27293_s8 + $0x1518] sm:$0xff]  ;;  %v17347_v60 = vpack.c.bf16 %v12379_v33, %v12371_v16  ;;  %v12443_v36 = vld [vmem:[%s27293_s8 + $0x1748] sm:$0xff] }
0x11d8   :  { %17584 = vmatprep.subr.bf16.mxu1 %v17583_v14  ;;  %v12381_v40 = vld [vmem:[%s27293_s8 + $0x1558] sm:$0xff]  ;;  %v12370_v14 = vld [vmem:[%s27293_s8 + $0x1500] sm:$0xff] }
0x11d9   :  { %v17603_v38 = vpack.c.bf16 %v12381_v40, %v12373_v41  ;;  %v17349_v9 = vpack.c.bf16 %v12378_v10, %v12370_v14  ;;  %v12437_v55 = vld [vmem:[%s27293_s8 + $0x1718] sm:$0xff]  ;;  %v12434_v40 = vld [vmem:[%s27293_s8 + $0x1700] sm:$0xff]  ;;  %v12444_v14 = vld [vmem:[%s27293_s8 + $0x1750] sm:$0xff] }
0x11da   :  { %17330 = vmatpush1.bf16.msra.mxu0 %v17329_v13  ;;  %v12395_v13 = vld [vmem:[%s27293_s8 + $0x15c8] sm:$0xff]  ;;  %v12453_v17 = vld [vmem:[%s27293_s8 + $0x1798] sm:$0xff] }
0x11db   :  { %17586 = vmatpush1.bf16.msra.mxu1 %v17585_v2  ;;  %17332 = vmatprep.subr.bf16.mxu0 %v17331_v45  ;;  %v12389_v2 = vld [vmem:[%s27293_s8 + $0x1598] sm:$0xff]  ;;  %v12451_v10 = vld [vmem:[%s27293_s8 + $0x1788] sm:$0xff] }
0x11dc   :  { %17588 = vmatprep.subr.bf16.mxu1 %v17587_v39  ;;  %v12397_v45 = vld [vmem:[%s27293_s8 + $0x15d8] sm:$0xff]  ;;  %v17351_v39 = vpack.c.bf16 %v12395_v13, %v12387_v4 }
0x11dd   :  { %v17607_v8 = vpack.c.bf16 %v12397_v45, %v12389_v2  ;;  %v12461_v4 = vld [vmem:[%s27293_s8 + $0x17d8] sm:$0xff] }
0x11de   :  { %17334 = vmatpush1.bf16.msra.mxu0 %v17333_v20  ;;  %v12403_v20 = vld [vmem:[%s27293_s8 + $0x1608] sm:$0xff]  ;;  %v17623_v51 = vpack.c.bf16 %v12461_v4, %v12453_v17  ;;  %v12514_v17 = vld [vmem:[%s27293_s8 + $0x1980] sm:$0xff] }
0x11df   :  { %17590 = vmatpush1.bf16.msra.mxu1 %v17589_v26  ;;  %17336 = vmatprep.subr.bf16.mxu0 %v17335_v32  ;;  %v12411_v26 = vld [vmem:[%s27293_s8 + $0x1648] sm:$0xff]  ;;  %v11684_v32 = vrot.slane %v24931_v5, 4  ;;  %v12522_v4 = vld [vmem:[%s27293_s8 + $0x19c0] sm:$0xff] }
0x11e0   :  { %17592 = vmatprep.subr.bf16.mxu1 %v17591_v21  ;;  %v11646_v21 = vadd.f32 %v11645_v56, %v24598_v27  ;;  %v17355_v52 = vpack.c.bf16 %v12411_v26, %v12403_v20  ;;  %v12412_v27 = vld [vmem:[%s27293_s8 + $0x1650] sm:$0xff]  ;;  %v12450_v56 = vld [vmem:[%s27293_s8 + $0x1780] sm:$0xff]  ;;  %v12469_v20 = vld [vmem:[%s27293_s8 + $0x1818] sm:$0xff] }
0x11e1   :  { %v11685_v49 = vadd.f32 %v11684_v32, %v24931_v5  ;;  %v17613_v50 = vpack.c.bf16 %v12412_v27, %v12404_v6  ;;  %v12426_v5 = vld [vmem:[%s27293_s8 + $0x16c0] sm:$0xff]  ;;  %v12477_v26 = vld [vmem:[%s27293_s8 + $0x1858] sm:$0xff]  ;;  %v12491_v27 = vld [vmem:[%s27293_s8 + $0x18c8] sm:$0xff] }
0x11e2   :  { %17338 = vmatpush1.bf16.msra.mxu0 %v17337_v47  ;;  %v17611_v47 = vpack.c.bf16 %v12413_v31, %v12405_v24  ;;  %v11647_v15 = vrot.slane %v11646_v21, 2  ;;  %v17361_v0 = vpack.c.bf16 %v12426_v5, %v12418_v61  ;;  %v12492_v61 = vld [vmem:[%s27293_s8 + $0x18d0] sm:$0xff]  ;;  %v12499_v5 = vld [vmem:[%s27293_s8 + $0x1908] sm:$0xff] }
0x11e3   :  { %17594 = vmatpush1.bf16.msra.mxu1 %v17593_v1  ;;  %17340 = vmatprep.subr.bf16.mxu0 %v17339_v30  ;;  %v12419_v1 = vld [vmem:[%s27293_s8 + $0x1688] sm:$0xff]  ;;  %v11686_v7 = vrot.slane %v11685_v49, 2 }
0x11e4   :  { %17596 = vmatprep.subr.bf16.mxu1 %v17595_v57  ;;  %v12427_v30 = vld [vmem:[%s27293_s8 + $0x16c8] sm:$0xff]  ;;  %v17357_v57 = vpack.c.bf16 %v12410_v28, %v12402_v35  ;;  %v11648_v16 = vadd.f32 %v11647_v15, %v11646_v21  ;;  %v12466_v21 = vld [vmem:[%s27293_s8 + $0x1800] sm:$0xff]  ;;  %v12468_v35 = vld [vmem:[%s27293_s8 + $0x1810] sm:$0xff] }
0x11e5   :  { %v17359_v59 = vpack.c.bf16 %v12427_v30, %v12419_v1  ;;  %v12476_v28 = vld [vmem:[%s27293_s8 + $0x1850] sm:$0xff]  ;;  %v12485_v30 = vld [vmem:[%s27293_s8 + $0x1898] sm:$0xff]  ;;  %v12490_v15 = vld [vmem:[%s27293_s8 + $0x18c0] sm:$0xff] }
0x11e6   :  { %17342 = vmatpush1.bf16.msra.mxu0 %v17341_v22  ;;  %v17615_v22 = vpack.c.bf16 %v12429_v19, %v12421_v23  ;;  %v11649_v2 = vrot.slane %v11648_v16, 1  ;;  %v17629_v19 = vpack.c.bf16 %v12476_v28, %v12468_v35  ;;  %v12546_v28 = vld [vmem:[%s27293_s8 + $0x1a80] sm:$0xff] }
0x11e7   :  { %17598 = vmatpush1.bf16.msra.mxu1 %v17597_v11  ;;  %17344 = vmatprep.subr.bf16.mxu0 %v17343_v42  ;;  %v12428_v11 = vld [vmem:[%s27293_s8 + $0x16d0] sm:$0xff]  ;;  %v12435_v42 = vld [vmem:[%s27293_s8 + $0x1708] sm:$0xff] }
0x11e8   :  { %17600 = vmatprep.subr.bf16.mxu1 %v17599_v18  ;;  %v12445_v18 = vld [vmem:[%s27293_s8 + $0x1758] sm:$0xff]  ;;  %v17617_v33 = vpack.c.bf16 %v12428_v11, %v12420_v34  ;;  %v17363_v41 = vpack.c.bf16 %v12443_v36, %v12435_v42  ;;  %v11650_v31 = vadd.f32 %v11649_v2, %v11648_v16  ;;  %v12507_v34 = vld [vmem:[%s27293_s8 + $0x1948] sm:$0xff]  ;;  %v12506_v16 = vld [vmem:[%s27293_s8 + $0x1940] sm:$0xff] }
0x11e9   :  { %v12501_v42 = vld [vmem:[%s27293_s8 + $0x1918] sm:$0xff] }
0x11ea   :  { %17346 = vmatpush1.bf16.msra.mxu0 %v17345_v62  ;;  %v12442_v62 = vld [vmem:[%s27293_s8 + $0x1740] sm:$0xff]  ;;  %v25318_v23 = vmul.f32 0.015625, %v11650_v31  ;;  %v12509_v36 = vld [vmem:[%s27293_s8 + $0x1958] sm:$0xff]  ;;  %v12555_v31 = vld [vmem:[%s27293_s8 + $0x1ac8] sm:$0xff] }
0x11eb   :  { %17602 = vmatpush1.bf16.msra.mxu1 %v17601_v46  ;;  %17348 = vmatprep.subr.bf16.mxu0 %v17347_v60  ;;  %v12436_v46 = vld [vmem:[%s27293_s8 + $0x1710] sm:$0xff]  ;;  %v17619_v60 = vpack.c.bf16 %v12445_v18, %v12437_v55  ;;  %v17365_v13 = vpack.c.bf16 %v12442_v62, %v12434_v40  ;;  %v17379_v18 = vpack.c.bf16 %v12507_v34, %v12499_v5  ;;  %v12515_v62 = vld [vmem:[%s27293_s8 + $0x1988] sm:$0xff]  ;;  %v12570_v5 = vld [vmem:[%s27293_s8 + $0x1b40] sm:$0xff] }
0x11ec   :  { %17604 = vmatprep.subr.bf16.mxu1 %v17603_v38  ;;  %v11687_v38 = vadd.f32 %v11686_v7, %v11685_v49  ;;  %v17621_v45 = vpack.c.bf16 %v12444_v14, %v12436_v46  ;;  %v12493_v49 = vld [vmem:[%s27293_s8 + $0x18d8] sm:$0xff]  ;;  %v12508_v40 = vld [vmem:[%s27293_s8 + $0x1950] sm:$0xff]  ;;  %v12523_v46 = vld [vmem:[%s27293_s8 + $0x19c8] sm:$0xff] }
0x11ed   :  { %v17631_v11 = vpack.c.bf16 %v12493_v49, %v12485_v30  ;;  %v12525_v14 = vld [vmem:[%s27293_s8 + $0x19d8] sm:$0xff]  ;;  %v12563_v30 = vld [vmem:[%s27293_s8 + $0x1b08] sm:$0xff]  ;;  %v12564_v34 = vld [vmem:[%s27293_s8 + $0x1b10] sm:$0xff] }
0x11ee   :  { %17350 = vmatpush1.bf16.msra.mxu0 %v17349_v9  ;;  %v17367_v9 = vpack.c.bf16 %v12459_v29, %v12451_v10  ;;  %v11688_v3 = vrot.slane %v11687_v38, 1  ;;  %v12571_v49 = vld [vmem:[%s27293_s8 + $0x1b48] sm:$0xff] }
0x11ef   :  { %17606 = vmatpush1.bf16.msra.mxu1 %v17605_v44  ;;  %17352 = vmatprep.subr.bf16.mxu0 %v17351_v39  ;;  %v12458_v44 = vld [vmem:[%s27293_s8 + $0x17c0] sm:$0xff]  ;;  %v12452_v39 = vld [vmem:[%s27293_s8 + $0x1790] sm:$0xff] }
0x11f0   :  { %17608 = vmatprep.subr.bf16.mxu1 %v17607_v8  ;;  %v12475_v8 = vld [vmem:[%s27293_s8 + $0x1848] sm:$0xff]  ;;  %v17369_v32 = vpack.c.bf16 %v12458_v44, %v12450_v56  ;;  %v17625_v24 = vpack.c.bf16 %v12460_v43, %v12452_v39  ;;  %v11689_v6 = vadd.f32 %v11688_v3, %v11687_v38  ;;  %v17383_v38 = vpack.c.bf16 %v12523_v46, %v12515_v62  ;;  %v12533_v44 = vld [vmem:[%s27293_s8 + $0x1a18] sm:$0xff]  ;;  %v12538_v3 = vld [vmem:[%s27293_s8 + $0x1a40] sm:$0xff] }
0x11f1   :  { %v12539_v56 = vld [vmem:[%s27293_s8 + $0x1a48] sm:$0xff]  ;;  %v12541_v39 = vld [vmem:[%s27293_s8 + $0x1a58] sm:$0xff]  ;;  %v12580_v62 = vld [vmem:[%s27293_s8 + $0x1b90] sm:$0xff] }
0x11f2   :  { %17354 = vmatpush1.bf16.msra.mxu0 %v17353_v53  ;;  %v17371_v53 = vpack.c.bf16 %v12475_v8, %v12467_v58  ;;  %v12530_v8 = vld [vmem:[%s27293_s8 + $0x1a00] sm:$0xff] }
0x11f3   :  { %17610 = vmatpush1.bf16.msra.mxu1 %v17609_v54  ;;  %17356 = vmatprep.subr.bf16.mxu0 %v17355_v52  ;;  %v12474_v54 = vld [vmem:[%s27293_s8 + $0x1840] sm:$0xff]  ;;  %v17627_v52 = vpack.c.bf16 %v12477_v26, %v12469_v20  ;;  %v12532_v20 = vld [vmem:[%s27293_s8 + $0x1a10] sm:$0xff]  ;;  %v17643_v26 = vpack.c.bf16 %v12541_v39, %v12533_v44  ;;  %v12611_v39 = vld [vmem:[%s27293_s8 + $0x1c88] sm:$0xff] }
0x11f4   :  { %17612 = vmatprep.subr.bf16.mxu1 %v17611_v47  ;;  %v12483_v47 = vld [vmem:[%s27293_s8 + $0x1888] sm:$0xff]  ;;  %v17373_v1 = vpack.c.bf16 %v12474_v54, %v12466_v21  ;;  %v12557_v21 = vld [vmem:[%s27293_s8 + $0x1ad8] sm:$0xff]  ;;  %v17389_v54 = vpack.c.bf16 %v12538_v3, %v12530_v8  ;;  %v12604_v44 = vld [vmem:[%s27293_s8 + $0x1c50] sm:$0xff] }
0x11f6   :  { %17358 = vmatpush1.bf16.msra.mxu0 %v17357_v57  ;;  %v12482_v57 = vld [vmem:[%s27293_s8 + $0x1880] sm:$0xff] }
0x11f7   :  { %17614 = vmatpush1.bf16.msra.mxu1 %v17613_v50  ;;  %17360 = vmatprep.subr.bf16.mxu0 %v17359_v59  ;;  %v12484_v50 = vld [vmem:[%s27293_s8 + $0x1890] sm:$0xff]  ;;  %v17375_v59 = vpack.c.bf16 %v12491_v27, %v12483_v47  ;;  %v17377_v7 = vpack.c.bf16 %v12490_v15, %v12482_v57  ;;  %v12573_v57 = vld [vmem:[%s27293_s8 + $0x1b58] sm:$0xff] }
0x11f8   :  { %17616 = vmatprep.subr.bf16.mxu1 %v17615_v22  ;;  %v25339_v22 = vmul.f32 0.015625, %v11689_v6  ;;  %v17633_v55 = vpack.c.bf16 %v12492_v61, %v12484_v50  ;;  %v12554_v6 = vld [vmem:[%s27293_s8 + $0x1ac0] sm:$0xff]  ;;  %v12548_v47 = vld [vmem:[%s27293_s8 + $0x1a90] sm:$0xff] }
0x11f9   :  { %v17393_v15 = vpack.c.bf16 %v12554_v6, %v12546_v28  ;;  %v12562_v61 = vld [vmem:[%s27293_s8 + $0x1b00] sm:$0xff] }
0x11fa   :  { %17362 = vmatpush1.bf16.msra.mxu0 %v17361_v0  ;;  %v12498_v0 = vld [vmem:[%s27293_s8 + $0x1900] sm:$0xff] }
0x11fb   :  { %17618 = vmatpush1.bf16.msra.mxu1 %v17617_v33  ;;  %17364 = vmatprep.subr.bf16.mxu0 %v17363_v41  ;;  %v12500_v33 = vld [vmem:[%s27293_s8 + $0x1910] sm:$0xff]  ;;  %v17635_v41 = vpack.c.bf16 %v12509_v36, %v12501_v42  ;;  %v17381_v10 = vpack.c.bf16 %v12506_v16, %v12498_v0  ;;  %v12579_v36 = vld [vmem:[%s27293_s8 + $0x1b88] sm:$0xff]  ;;  %v17397_v0 = vpack.c.bf16 %v12570_v5, %v12562_v61  ;;  %v11671_v5 = vrot.slane %v24918_v12, 4 }
0x11fc   :  { %17620 = vmatprep.subr.bf16.mxu1 %v17619_v60  ;;  %v12517_v60 = vld [vmem:[%s27293_s8 + $0x1998] sm:$0xff]  ;;  %v17637_v29 = vpack.c.bf16 %v12508_v40, %v12500_v33  ;;  %v12572_v42 = vld [vmem:[%s27293_s8 + $0x1b50] sm:$0xff]  ;;  %v12586_v40 = vld [vmem:[%s27293_s8 + $0x1bc0] sm:$0xff] }
0x11fd   :  { %v17639_v2 = vpack.c.bf16 %v12525_v14, %v12517_v60  ;;  %v17653_v16 = vpack.c.bf16 %v12572_v42, %v12564_v34  ;;  %v12588_v60 = vld [vmem:[%s27293_s8 + $0x1bd0] sm:$0xff]  ;;  %v12595_v14 = vld [vmem:[%s27293_s8 + $0x1c08] sm:$0xff]  ;;  %v12642_v42 = vld [vmem:[%s27293_s8 + $0x1d80] sm:$0xff] }
0x11fe   :  { %17366 = vmatpush1.bf16.msra.mxu0 %v17365_v13  ;;  %v12516_v13 = vld [vmem:[%s27293_s8 + $0x1990] sm:$0xff] }
0x11ff   :  { %17622 = vmatpush1.bf16.msra.mxu1 %v17621_v45  ;;  %17368 = vmatprep.subr.bf16.mxu0 %v17367_v9  ;;  %v12524_v45 = vld [vmem:[%s27293_s8 + $0x19d0] sm:$0xff]  ;;  %v12531_v9 = vld [vmem:[%s27293_s8 + $0x1a08] sm:$0xff] }
0x1200   :  { %17624 = vmatprep.subr.bf16.mxu1 %v17623_v51  ;;  %v17385_v51 = vpack.c.bf16 %v12522_v4, %v12514_v17  ;;  %v17641_v43 = vpack.c.bf16 %v12524_v45, %v12516_v13  ;;  %v17387_v58 = vpack.c.bf16 %v12539_v56, %v12531_v9  ;;  %v17657_v4 = vpack.c.bf16 %v12588_v60, %v12580_v62  ;;  %v12602_v45 = vld [vmem:[%s27293_s8 + $0x1c40] sm:$0xff]  ;;  %v12596_v9 = vld [vmem:[%s27293_s8 + $0x1c10] sm:$0xff] }
0x1201   :  { %v17661_v3 = vpack.c.bf16 %v12604_v44, %v12596_v9  ;;  %v11672_v62 = vadd.f32 %v11671_v5, %v24918_v12  ;;  %v12668_v12 = vld [vmem:[%s27293_s8 + $0x1e50] sm:$0xff] }
0x1202   :  { %17370 = vmatpush1.bf16.msra.mxu0 %v17369_v32  ;;  %v12540_v32 = vld [vmem:[%s27293_s8 + $0x1a50] sm:$0xff] }
0x1203   :  { %17626 = vmatpush1.bf16.msra.mxu1 %v17625_v24  ;;  %17372 = vmatprep.subr.bf16.mxu0 %v17371_v53  ;;  %v12547_v24 = vld [vmem:[%s27293_s8 + $0x1a88] sm:$0xff]  ;;  %v12549_v53 = vld [vmem:[%s27293_s8 + $0x1a98] sm:$0xff]  ;;  %v11673_v9 = vrot.slane %v11672_v62, 2 }
0x1204   :  { %17628 = vmatprep.subr.bf16.mxu1 %v17627_v52  ;;  %v17645_v52 = vpack.c.bf16 %v12540_v32, %v12532_v20  ;;  %v17391_v35 = vpack.c.bf16 %v12555_v31, %v12547_v24  ;;  %v17647_v27 = vpack.c.bf16 %v12557_v21, %v12549_v53  ;;  %v12618_v32 = vld [vmem:[%s27293_s8 + $0x1cc0] sm:$0xff]  ;;  %v12612_v24 = vld [vmem:[%s27293_s8 + $0x1c90] sm:$0xff]  ;;  %v12627_v21 = vld [vmem:[%s27293_s8 + $0x1d08] sm:$0xff] }
0x1205   :  { %12971 = vmatmul.mubr.f32.vlgmr.msra.gmra.mrb[244].mxu0 %v25318_v23  ;;  %v12620_v53 = vld [vmem:[%s27293_s8 + $0x1cd0] sm:$0xff] }
0x1206   :  { %13255 = vmatmul.mubr.f32.vlgmr.msra.gmra.mrb[20].mxu1 %v25318_v23  ;;  %17374 = vmatpush1.bf16.msra.mxu0 %v17373_v1  ;;  %v12556_v1 = vld [vmem:[%s27293_s8 + $0x1ad0] sm:$0xff]  ;;  %v17665_v6 = vpack.c.bf16 %v12620_v53, %v12612_v24 }
0x1207   :  { %13041 = vmatprep.mubr.f32.mxu0 %v25339_v22  ;;  %17630 = vmatpush1.bf16.msra.mxu1 %v17629_v19  ;;  %v12565_v19 = vld [vmem:[%s27293_s8 + $0x1b18] sm:$0xff]  ;;  %v17649_v50 = vpack.c.bf16 %v12556_v1, %v12548_v47  ;;  %v12634_v1 = vld [vmem:[%s27293_s8 + $0x1d40] sm:$0xff] }
0x1208   :  { %13325 = vmatprep.mubr.f32.mxu1 %v25339_v22  ;;  %17376 = vmatprep.subr.bf16.mxu0 %v17375_v59  ;;  %v17395_v59 = vpack.c.bf16 %v12571_v49, %v12563_v30  ;;  %v12628_v30 = vld [vmem:[%s27293_s8 + $0x1d10] sm:$0xff] }
0x1209   :  { %17632 = vmatprep.subr.bf16.mxu1 %v17631_v11  ;;  %v17651_v11 = vpack.c.bf16 %v12573_v57, %v12565_v19  ;;  %v12636_v19 = vld [vmem:[%s27293_s8 + $0x1d50] sm:$0xff]  ;;  %v12643_v57 = vld [vmem:[%s27293_s8 + $0x1d88] sm:$0xff] }
0x120a   :  { %17378 = vmatpush1.bf16.msra.mxu0 %v17377_v7  ;;  %v12587_v7 = vld [vmem:[%s27293_s8 + $0x1bc8] sm:$0xff]  ;;  %v17669_v34 = vpack.c.bf16 %v12636_v19, %v12628_v30  ;;  %v12717_v30 = vld [vmem:[%s27293_s8 + $0x1fd8] sm:$0xff] }
0x120b   :  { %17634 = vmatpush1.bf16.msra.mxu1 %v17633_v55  ;;  %17380 = vmatprep.subr.bf16.mxu0 %v17379_v18  ;;  %v12581_v55 = vld [vmem:[%s27293_s8 + $0x1b98] sm:$0xff]  ;;  %v17399_v33 = vpack.c.bf16 %v12587_v7, %v12579_v36  ;;  %v12650_v36 = vld [vmem:[%s27293_s8 + $0x1dc0] sm:$0xff]  ;;  %v12644_v7 = vld [vmem:[%s27293_s8 + $0x1d90] sm:$0xff] }
0x120c   :  { %17636 = vmatprep.subr.bf16.mxu1 %v17635_v41  ;;  %v12589_v18 = vld [vmem:[%s27293_s8 + $0x1bd8] sm:$0xff]  ;;  %v12578_v41 = vld [vmem:[%s27293_s8 + $0x1b80] sm:$0xff] }
0x120d   :  { %v17655_v46 = vpack.c.bf16 %v12589_v18, %v12581_v55  ;;  %v17401_v17 = vpack.c.bf16 %v12586_v40, %v12578_v41  ;;  %v12652_v18 = vld [vmem:[%s27293_s8 + $0x1dd0] sm:$0xff]  ;;  %v12669_v41 = vld [vmem:[%s27293_s8 + $0x1e58] sm:$0xff]  ;;  %v17417_v40 = vpack.c.bf16 %v12650_v36, %v12642_v42  ;;  %v11711_v42 = vld [vmem:[%s27293_s8 + $0x68] sm:$0xff] }
0x120e   :  { %17382 = vmatpush1.bf16.msra.mxu0 %v17381_v10  ;;  %v12603_v10 = vld [vmem:[%s27293_s8 + $0x1c48] sm:$0xff]  ;;  %v11705_v36 = vld [vmem:[%s27293_s8 + $0x38] sm:$0xff] }
0x120f   :  { %17638 = vmatpush1.bf16.msra.mxu1 %v17637_v29  ;;  %17384 = vmatprep.subr.bf16.mxu0 %v17383_v38  ;;  %v12597_v29 = vld [vmem:[%s27293_s8 + $0x1c18] sm:$0xff]  ;;  %v17403_v13 = vpack.c.bf16 %v12603_v10, %v12595_v14  ;;  %v12658_v14 = vld [vmem:[%s27293_s8 + $0x1e00] sm:$0xff] }
0x1210   :  { %17640 = vmatprep.subr.bf16.mxu1 %v17639_v2  ;;  %v12605_v38 = vld [vmem:[%s27293_s8 + $0x1c58] sm:$0xff]  ;;  %v12594_v2 = vld [vmem:[%s27293_s8 + $0x1c00] sm:$0xff] }
0x1211   :  { %v17659_v56 = vpack.c.bf16 %v12605_v38, %v12597_v29  ;;  %v17405_v8 = vpack.c.bf16 %v12602_v45, %v12594_v2  ;;  %v12666_v10 = vld [vmem:[%s27293_s8 + $0x1e40] sm:$0xff]  ;;  %v12660_v29 = vld [vmem:[%s27293_s8 + $0x1e10] sm:$0xff]  ;;  %v12685_v2 = vld [vmem:[%s27293_s8 + $0x1ed8] sm:$0xff] }
0x1212   :  { %17386 = vmatpush1.bf16.msra.mxu0 %v17385_v51  ;;  %v12619_v51 = vld [vmem:[%s27293_s8 + $0x1cc8] sm:$0xff]  ;;  %v17421_v45 = vpack.c.bf16 %v12666_v10, %v12658_v14 }
0x1213   :  { %17642 = vmatpush1.bf16.msra.mxu1 %v17641_v43  ;;  %17388 = vmatprep.subr.bf16.mxu0 %v17387_v58  ;;  %v12613_v43 = vld [vmem:[%s27293_s8 + $0x1c98] sm:$0xff]  ;;  %v17407_v20 = vpack.c.bf16 %v12619_v51, %v12611_v39  ;;  %v12674_v39 = vld [vmem:[%s27293_s8 + $0x1e80] sm:$0xff]  ;;  %v11727_v14 = vld [vmem:[%s27293_s8 + $0xe8] sm:$0xff] }
0x1214   :  { %17644 = vmatprep.subr.bf16.mxu1 %v17643_v26  ;;  %v12621_v58 = vld [vmem:[%s27293_s8 + $0x1cd8] sm:$0xff]  ;;  %v12610_v26 = vld [vmem:[%s27293_s8 + $0x1c80] sm:$0xff] }
0x1215   :  { %v17663_v31 = vpack.c.bf16 %v12621_v58, %v12613_v43  ;;  %v17409_v28 = vpack.c.bf16 %v12618_v32, %v12610_v26  ;;  %v12682_v51 = vld [vmem:[%s27293_s8 + $0x1ec0] sm:$0xff]  ;;  %v12676_v43 = vld [vmem:[%s27293_s8 + $0x1e90] sm:$0xff]  ;;  %v12693_v26 = vld [vmem:[%s27293_s8 + $0x1f18] sm:$0xff] }
0x1216   :  { %17390 = vmatpush1.bf16.msra.mxu0 %v17389_v54  ;;  %v12635_v54 = vld [vmem:[%s27293_s8 + $0x1d48] sm:$0xff]  ;;  %v12701_v32 = vld [vmem:[%s27293_s8 + $0x1f58] sm:$0xff]  ;;  %v17425_v24 = vpack.c.bf16 %v12682_v51, %v12674_v39 }
0x1217   :  { %17646 = vmatpush1.bf16.msra.mxu1 %v17645_v52  ;;  %17392 = vmatprep.subr.bf16.mxu0 %v17391_v35  ;;  %v12629_v52 = vld [vmem:[%s27293_s8 + $0x1d18] sm:$0xff]  ;;  %v17411_v47 = vpack.c.bf16 %v12635_v54, %v12627_v21  ;;  %v12690_v54 = vld [vmem:[%s27293_s8 + $0x1f00] sm:$0xff] }
0x1218   :  { %17648 = vmatprep.subr.bf16.mxu1 %v17647_v27  ;;  %v12637_v35 = vld [vmem:[%s27293_s8 + $0x1d58] sm:$0xff]  ;;  %v12626_v27 = vld [vmem:[%s27293_s8 + $0x1d00] sm:$0xff] }
0x1219   :  { %v17667_v49 = vpack.c.bf16 %v12637_v35, %v12629_v52  ;;  %v17413_v61 = vpack.c.bf16 %v12634_v1, %v12626_v27  ;;  %v12698_v52 = vld [vmem:[%s27293_s8 + $0x1f40] sm:$0xff]  ;;  %v12692_v35 = vld [vmem:[%s27293_s8 + $0x1f10] sm:$0xff]  ;;  %v12715_v27 = vld [vmem:[%s27293_s8 + $0x1fc8] sm:$0xff] }
0x121a   :  { %17394 = vmatpush1.bf16.msra.mxu0 %v17393_v15  ;;  %v12651_v15 = vld [vmem:[%s27293_s8 + $0x1dc8] sm:$0xff]  ;;  %v12709_v1 = vld [vmem:[%s27293_s8 + $0x1f98] sm:$0xff] }
0x121b   :  { %17650 = vmatpush1.bf16.msra.mxu1 %v17649_v50  ;;  %17396 = vmatprep.subr.bf16.mxu0 %v17395_v59  ;;  %v12645_v50 = vld [vmem:[%s27293_s8 + $0x1d98] sm:$0xff]  ;;  %v17687_v5 = vpack.c.bf16 %v12717_v30, %v12709_v1  ;;  %v11758_v1 = vld [vmem:[%s27293_s8 + $0x1e0] sm:$0xff]  ;;  %v11752_v30 = vld [vmem:[%s27293_s8 + $0x1b0] sm:$0xff] }
0x121c   :  { %17652 = vmatprep.subr.bf16.mxu1 %v17651_v11  ;;  %v12653_v59 = vld [vmem:[%s27293_s8 + $0x1dd8] sm:$0xff]  ;;  %v17415_v11 = vpack.c.bf16 %v12651_v15, %v12643_v57 }
0x121d   :  { %v17671_v55 = vpack.c.bf16 %v12653_v59, %v12645_v50  ;;  %v12706_v50 = vld [vmem:[%s27293_s8 + $0x1f80] sm:$0xff]  ;;  %v11737_v51 = vld [vmem:[%s27293_s8 + $0x138] sm:$0xff] }
0x121e   :  { %17398 = vmatpush1.bf16.msra.mxu0 %v17397_v0  ;;  %v12659_v0 = vld [vmem:[%s27293_s8 + $0x1e08] sm:$0xff]  ;;  %v12714_v59 = vld [vmem:[%s27293_s8 + $0x1fc0] sm:$0xff] }
0x121f   :  { %17654 = vmatpush1.bf16.msra.mxu1 %v17653_v16  ;;  %17400 = vmatprep.subr.bf16.mxu0 %v17399_v33  ;;  %v12667_v16 = vld [vmem:[%s27293_s8 + $0x1e48] sm:$0xff]  ;;  %v12661_v33 = vld [vmem:[%s27293_s8 + $0x1e18] sm:$0xff] }
0x1220   :  { %17656 = vmatprep.subr.bf16.mxu1 %v17655_v46  ;;  %v17673_v46 = vpack.c.bf16 %v12652_v18, %v12644_v7  ;;  %v17419_v60 = vpack.c.bf16 %v12667_v16, %v12659_v0  ;;  %v17675_v38 = vpack.c.bf16 %v12669_v41, %v12661_v33  ;;  %v11713_v7 = vld [vmem:[%s27293_s8 + $0x78] sm:$0xff]  ;;  %v11702_v33 = vld [vmem:[%s27293_s8 + $0x20] sm:$0xff] }
0x1221   :  { %v11710_v41 = vld [vmem:[%s27293_s8 + $0x60] sm:$0xff] }
0x1222   :  { %17402 = vmatpush1.bf16.msra.mxu0 %v17401_v17  ;;  %v12675_v17 = vld [vmem:[%s27293_s8 + $0x1e88] sm:$0xff]  ;;  %v17693_v10 = vpack.c.bf16 %v11710_v41, %v11702_v33  ;;  %v11793_v33 = vld [vmem:[%s27293_s8 + $0x2f8] sm:$0xff] }
0x1223   :  { %17658 = vmatpush1.bf16.msra.mxu1 %v17657_v4  ;;  %17404 = vmatprep.subr.bf16.mxu0 %v17403_v13  ;;  %v12683_v4 = vld [vmem:[%s27293_s8 + $0x1ec8] sm:$0xff]  ;;  %v12677_v13 = vld [vmem:[%s27293_s8 + $0x1e98] sm:$0xff] }
0x1224   :  { %17660 = vmatprep.subr.bf16.mxu1 %v17659_v56  ;;  %v17677_v56 = vpack.c.bf16 %v12668_v12, %v12660_v29  ;;  %v17423_v44 = vpack.c.bf16 %v12683_v4, %v12675_v17  ;;  %v17679_v58 = vpack.c.bf16 %v12685_v2, %v12677_v13  ;;  %v11721_v29 = vld [vmem:[%s27293_s8 + $0xb8] sm:$0xff]  ;;  %v11718_v4 = vld [vmem:[%s27293_s8 + $0xa0] sm:$0xff]  ;;  %v11720_v2 = vld [vmem:[%s27293_s8 + $0xb0] sm:$0xff] }
0x1225   :  { %v11726_v13 = vld [vmem:[%s27293_s8 + $0xe0] sm:$0xff] }
0x1226   :  { %17406 = vmatpush1.bf16.msra.mxu0 %v17405_v8  ;;  %v12684_v8 = vld [vmem:[%s27293_s8 + $0x1ed0] sm:$0xff] }
0x1227   :  { %17662 = vmatpush1.bf16.msra.mxu1 %v17661_v3  ;;  %17408 = vmatprep.subr.bf16.mxu0 %v17407_v20  ;;  %v12691_v3 = vld [vmem:[%s27293_s8 + $0x1f08] sm:$0xff]  ;;  %v17681_v53 = vpack.c.bf16 %v12684_v8, %v12676_v43  ;;  %v11745_v43 = vld [vmem:[%s27293_s8 + $0x178] sm:$0xff] }
0x1228   :  { %17664 = vmatprep.subr.bf16.mxu1 %v17663_v31  ;;  %v12699_v20 = vld [vmem:[%s27293_s8 + $0x1f48] sm:$0xff]  ;;  %v11674_v31 = vadd.f32 %v11673_v9, %v11672_v62  ;;  %v11704_v62 = vld [vmem:[%s27293_s8 + $0x30] sm:$0xff]  ;;  %v27337_v8 = vld [vmem:[#allocation7_spill] sm:$0xff] }
0x1229   :  { %v17427_v21 = vpack.c.bf16 %v12699_v20, %v12691_v3  ;;  %v11728_v9 = vld [vmem:[%s27293_s8 + $0xf0] sm:$0xff] }
0x122a   :  { %17410 = vmatpush1.bf16.msra.mxu0 %v17409_v28  ;;  %v17683_v28 = vpack.c.bf16 %v12701_v32, %v12693_v26  ;;  %v11675_v19 = vrot.slane %v11674_v31, 1  ;;  %v17953_v3 = vpack.c.bf16 %v11728_v9, %v11720_v2  ;;  %v11734_v26 = vld [vmem:[%s27293_s8 + $0x120] sm:$0xff] }
0x122b   :  { %17666 = vmatpush1.bf16.msra.mxu1 %v17665_v6  ;;  %17412 = vmatprep.subr.bf16.mxu0 %v17411_v47  ;;  %v12700_v6 = vld [vmem:[%s27293_s8 + $0x1f50] sm:$0xff]  ;;  %v12707_v47 = vld [vmem:[%s27293_s8 + $0x1f88] sm:$0xff]  ;;  %v11742_v32 = vld [vmem:[%s27293_s8 + $0x160] sm:$0xff] }
0x122c   :  { %17668 = vmatprep.subr.bf16.mxu1 %v17667_v49  ;;  %v17429_v49 = vpack.c.bf16 %v12698_v52, %v12690_v54  ;;  %v17685_v57 = vpack.c.bf16 %v12700_v6, %v12692_v35  ;;  %v17431_v15 = vpack.c.bf16 %v12715_v27, %v12707_v47  ;;  %v11676_v0 = vadd.f32 %v11675_v19, %v11674_v31  ;;  %v11759_v54 = vld [vmem:[%s27293_s8 + $0x1e8] sm:$0xff]  ;;  %v11753_v52 = vld [vmem:[%s27293_s8 + $0x1b8] sm:$0xff]  ;;  %v11750_v27 = vld [vmem:[%s27293_s8 + $0x1a0] sm:$0xff] }
0x122d   :  { %v17955_v31 = vpack.c.bf16 %v11745_v43, %v11737_v51  ;;  %v11761_v35 = vld [vmem:[%s27293_s8 + $0x1f8] sm:$0xff]  ;;  %v11760_v19 = vld [vmem:[%s27293_s8 + $0x1f0] sm:$0xff] }
0x122e   :  { %17414 = vmatpush1.bf16.msra.mxu0 %v17413_v61  ;;  %v12708_v61 = vld [vmem:[%s27293_s8 + $0x1f90] sm:$0xff]  ;;  %v25712_v12 = vmul.f32 0.015625, %v11676_v0  ;;  %v11791_v0 = vld [vmem:[%s27293_s8 + $0x2e8] sm:$0xff] }
0x122f   :  { %17670 = vmatpush1.bf16.msra.mxu1 %v17669_v34  ;;  %17416 = vmatprep.subr.bf16.mxu0 %v17415_v11  ;;  %v12716_v34 = vld [vmem:[%s27293_s8 + $0x1fd0] sm:$0xff]  ;;  %v11703_v11 = vld [vmem:[%s27293_s8 + $0x28] sm:$0xff] }
0x1230   :  { %17672 = vmatprep.subr.bf16.mxu1 %v17671_v55  ;;  %v17433_v55 = vpack.c.bf16 %v12714_v59, %v12706_v50  ;;  %v17689_v18 = vpack.c.bf16 %v12716_v34, %v12708_v61  ;;  %v17691_v16 = vpack.c.bf16 %v11711_v42, %v11703_v11  ;;  %v11769_v50 = vld [vmem:[%s27293_s8 + $0x238] sm:$0xff]  ;;  %v17705_v61 = vpack.c.bf16 %v11758_v1, %v11750_v27  ;;  %v11766_v11 = vld [vmem:[%s27293_s8 + $0x220] sm:$0xff]  ;;  %v11808_v43 = vld [vmem:[%s27293_s8 + $0x370] sm:$0xff] }
0x1231   :  { %v11777_v59 = vld [vmem:[%s27293_s8 + $0x278] sm:$0xff]  ;;  %v11774_v42 = vld [vmem:[%s27293_s8 + $0x260] sm:$0xff] }
0x1232   :  { %17418 = vmatpush1.bf16.msra.mxu0 %v17417_v40  ;;  %v17947_v40 = vpack.c.bf16 %v11713_v7, %v11705_v36  ;;  %v11768_v36 = vld [vmem:[%s27293_s8 + $0x230] sm:$0xff]  ;;  %v17963_v7 = vpack.c.bf16 %v11777_v59, %v11769_v50  ;;  %v17709_v41 = vpack.c.bf16 %v11774_v42, %v11766_v11  ;;  %v11847_v59 = vld [vmem:[%s27293_s8 + $0x4a8] sm:$0xff] }
0x1233   :  { %17674 = vmatpush1.bf16.msra.mxu1 %v17673_v46  ;;  %17420 = vmatprep.subr.bf16.mxu0 %v17419_v60  ;;  %v11712_v46 = vld [vmem:[%s27293_s8 + $0x70] sm:$0xff]  ;;  %v11719_v60 = vld [vmem:[%s27293_s8 + $0xa8] sm:$0xff] }
0x1234   :  { %17676 = vmatprep.subr.bf16.mxu1 %v17675_v38  ;;  %v11729_v38 = vld [vmem:[%s27293_s8 + $0xf8] sm:$0xff]  ;;  %v17949_v17 = vpack.c.bf16 %v11712_v46, %v11704_v62  ;;  %v11782_v46 = vld [vmem:[%s27293_s8 + $0x2a0] sm:$0xff]  ;;  %v11840_v50 = vld [vmem:[%s27293_s8 + $0x470] sm:$0xff] }
0x1235   :  { %v17951_v39 = vpack.c.bf16 %v11729_v38, %v11721_v29  ;;  %v11792_v29 = vld [vmem:[%s27293_s8 + $0x2f0] sm:$0xff]  ;;  %v11799_v38 = vld [vmem:[%s27293_s8 + $0x328] sm:$0xff] }
0x1236   :  { %17422 = vmatpush1.bf16.msra.mxu0 %v17421_v45  ;;  %v17695_v45 = vpack.c.bf16 %v11727_v14, %v11719_v60  ;;  %v11790_v60 = vld [vmem:[%s27293_s8 + $0x2e0] sm:$0xff]  ;;  %v11784_v14 = vld [vmem:[%s27293_s8 + $0x2b0] sm:$0xff] }
0x1237   :  { %17678 = vmatpush1.bf16.msra.mxu1 %v17677_v56  ;;  %17424 = vmatprep.subr.bf16.mxu0 %v17423_v44  ;;  %v11735_v56 = vld [vmem:[%s27293_s8 + $0x128] sm:$0xff]  ;;  %v17713_v2 = vpack.c.bf16 %v11790_v60, %v11782_v46 }
0x1238   :  { %17680 = vmatprep.subr.bf16.mxu1 %v17679_v58  ;;  %v11743_v44 = vld [vmem:[%s27293_s8 + $0x168] sm:$0xff]  ;;  %v17697_v58 = vpack.c.bf16 %v11726_v13, %v11718_v4  ;;  %v11801_v4 = vld [vmem:[%s27293_s8 + $0x338] sm:$0xff] }
0x1239   :  { %v17699_v20 = vpack.c.bf16 %v11743_v44, %v11735_v56  ;;  %v11809_v13 = vld [vmem:[%s27293_s8 + $0x378] sm:$0xff]  ;;  %v11798_v56 = vld [vmem:[%s27293_s8 + $0x320] sm:$0xff] }
0x123a   :  { %17426 = vmatpush1.bf16.msra.mxu0 %v17425_v24  ;;  %v11736_v24 = vld [vmem:[%s27293_s8 + $0x130] sm:$0xff]  ;;  %v11806_v44 = vld [vmem:[%s27293_s8 + $0x360] sm:$0xff]  ;;  %v17971_v51 = vpack.c.bf16 %v11809_v13, %v11801_v4  ;;  %v11879_v13 = vld [vmem:[%s27293_s8 + $0x5a8] sm:$0xff] }
0x123b   :  { %17682 = vmatpush1.bf16.msra.mxu1 %v17681_v53  ;;  %17428 = vmatprep.subr.bf16.mxu0 %v17427_v21  ;;  %v11744_v53 = vld [vmem:[%s27293_s8 + $0x170] sm:$0xff]  ;;  %v11751_v21 = vld [vmem:[%s27293_s8 + $0x1a8] sm:$0xff] }
0x123c   :  { %17684 = vmatprep.subr.bf16.mxu1 %v17683_v28  ;;  %v17701_v28 = vpack.c.bf16 %v11742_v32, %v11734_v26  ;;  %v17957_v6 = vpack.c.bf16 %v11744_v53, %v11736_v24  ;;  %v17703_v47 = vpack.c.bf16 %v11759_v54, %v11751_v21  ;;  %v17717_v26 = vpack.c.bf16 %v11806_v44, %v11798_v56  ;;  %v11822_v53 = vld [vmem:[%s27293_s8 + $0x3e0] sm:$0xff]  ;;  %v11816_v21 = vld [vmem:[%s27293_s8 + $0x3b0] sm:$0xff] }
0x123d   :  { %v11872_v4 = vld [vmem:[%s27293_s8 + $0x570] sm:$0xff] }
0x123e   :  { %17430 = vmatpush1.bf16.msra.mxu0 %v17429_v49  ;;  %v17959_v49 = vpack.c.bf16 %v11761_v35, %v11753_v52  ;;  %v11824_v52 = vld [vmem:[%s27293_s8 + $0x3f0] sm:$0xff]  ;;  %v11831_v35 = vld [vmem:[%s27293_s8 + $0x428] sm:$0xff] }
0x123f   :  { %17686 = vmatpush1.bf16.msra.mxu1 %v17685_v57  ;;  %17432 = vmatprep.subr.bf16.mxu0 %v17431_v15  ;;  %v11767_v57 = vld [vmem:[%s27293_s8 + $0x228] sm:$0xff]  ;;  %v17977_v1 = vpack.c.bf16 %v11824_v52, %v11816_v21  ;;  %v11902_v52 = vld [vmem:[%s27293_s8 + $0x660] sm:$0xff] }
0x1240   :  { %17688 = vmatprep.subr.bf16.mxu1 %v17687_v5  ;;  %v11775_v15 = vld [vmem:[%s27293_s8 + $0x268] sm:$0xff]  ;;  %v17961_v5 = vpack.c.bf16 %v11760_v19, %v11752_v30  ;;  %v11838_v19 = vld [vmem:[%s27293_s8 + $0x460] sm:$0xff] }
0x1241   :  { %v17707_v34 = vpack.c.bf16 %v11775_v15, %v11767_v57  ;;  %v11832_v57 = vld [vmem:[%s27293_s8 + $0x430] sm:$0xff] }
0x1242   :  { %17434 = vmatpush1.bf16.msra.mxu0 %v17433_v55  ;;  %v11776_v55 = vld [vmem:[%s27293_s8 + $0x270] sm:$0xff]  ;;  %v17981_v42 = vpack.c.bf16 %v11840_v50, %v11832_v57  ;;  %v11918_v50 = vld [vmem:[%s27293_s8 + $0x6e0] sm:$0xff] }
0x1243   :  { %17690 = vmatpush1.bf16.msra.mxu1 %v17689_v18  ;;  %17692 = vmatprep.subr.bf16.mxu0 %v17691_v16  ;;  %v11783_v18 = vld [vmem:[%s27293_s8 + $0x2a8] sm:$0xff]  ;;  %v11785_v16 = vld [vmem:[%s27293_s8 + $0x2b8] sm:$0xff] }
0x1244   :  { %17948 = vmatprep.subr.bf16.mxu1 %v17947_v40  ;;  %v17965_v40 = vpack.c.bf16 %v11776_v55, %v11768_v36  ;;  %v17711_v62 = vpack.c.bf16 %v11791_v0, %v11783_v18  ;;  %v11854_v55 = vld [vmem:[%s27293_s8 + $0x4e0] sm:$0xff]  ;;  %v11848_v18 = vld [vmem:[%s27293_s8 + $0x4b0] sm:$0xff] }
0x1245   :  { %13042 = vmatmul.mubr.f32.vlgmr.msra.gmra.mrb[244].mxu0 %v25712_v12 }
0x1246   :  { %13326 = vmatmul.mubr.f32.vlgmr.msra.gmra.mrb[20].mxu1 %v25712_v12  ;;  %17694 = vmatpush1.bf16.msra.mxu0 %v17693_v10  ;;  %v17967_v10 = vpack.c.bf16 %v11793_v33, %v11785_v16  ;;  %v11856_v16 = vld [vmem:[%s27293_s8 + $0x4f0] sm:$0xff]  ;;  %v11863_v33 = vld [vmem:[%s27293_s8 + $0x528] sm:$0xff] }
0x1247   :  { %13396 = vmatprep.mubr.f32.mxu0 %v27337_v8  ;;  %17950 = vmatpush1.bf16.msra.mxu1 %v17949_v17  ;;  %v11807_v17 = vld [vmem:[%s27293_s8 + $0x368] sm:$0xff]  ;;  %v17985_v60 = vpack.c.bf16 %v11856_v16, %v11848_v18  ;;  %v11934_v16 = vld [vmem:[%s27293_s8 + $0x760] sm:$0xff] }
0x1248   :  { %13680 = vmatprep.mubr.f32.mxu1 %v27337_v8  ;;  %17696 = vmatprep.subr.bf16.mxu0 %v17695_v45  ;;  %v17969_v45 = vpack.c.bf16 %v11792_v29, %v11784_v14  ;;  %v17715_v9 = vpack.c.bf16 %v11807_v17, %v11799_v38  ;;  %v11823_v8 = vld [vmem:[%s27293_s8 + $0x3e8] sm:$0xff]  ;;  %v11870_v29 = vld [vmem:[%s27293_s8 + $0x560] sm:$0xff]  ;;  %v11864_v38 = vld [vmem:[%s27293_s8 + $0x530] sm:$0xff] }
0x1249   :  { %17952 = vmatprep.subr.bf16.mxu1 %v17951_v39  ;;  %v11800_v39 = vld [vmem:[%s27293_s8 + $0x330] sm:$0xff]  ;;  %v17989_v44 = vpack.c.bf16 %v11872_v4, %v11864_v38  ;;  %v11950_v4 = vld [vmem:[%s27293_s8 + $0x7e0] sm:$0xff] }
0x124a   :  { %17698 = vmatpush1.bf16.msra.mxu0 %v17697_v58  ;;  %v11815_v58 = vld [vmem:[%s27293_s8 + $0x3a8] sm:$0xff]  ;;  %v17973_v32 = vpack.c.bf16 %v11808_v43, %v11800_v39  ;;  %v11886_v43 = vld [vmem:[%s27293_s8 + $0x5e0] sm:$0xff] }
0x124b   :  { %17954 = vmatpush1.bf16.msra.mxu1 %v17953_v3  ;;  %17700 = vmatprep.subr.bf16.mxu0 %v17699_v20  ;;  %v11817_v3 = vld [vmem:[%s27293_s8 + $0x3b8] sm:$0xff]  ;;  %v17719_v24 = vpack.c.bf16 %v11823_v8, %v11815_v58  ;;  %v11880_v58 = vld [vmem:[%s27293_s8 + $0x5b0] sm:$0xff] }
0x124c   :  { %17956 = vmatprep.subr.bf16.mxu1 %v17955_v31  ;;  %v11825_v20 = vld [vmem:[%s27293_s8 + $0x3f8] sm:$0xff]  ;;  %v11814_v31 = vld [vmem:[%s27293_s8 + $0x3a0] sm:$0xff] }
0x124d   :  { %v17975_v54 = vpack.c.bf16 %v11825_v20, %v11817_v3  ;;  %v17721_v27 = vpack.c.bf16 %v11822_v53, %v11814_v31  ;;  %v11888_v3 = vld [vmem:[%s27293_s8 + $0x5f0] sm:$0xff]  ;;  %v11895_v20 = vld [vmem:[%s27293_s8 + $0x628] sm:$0xff] }
0x124e   :  { %17702 = vmatpush1.bf16.msra.mxu0 %v17701_v28  ;;  %v11839_v28 = vld [vmem:[%s27293_s8 + $0x468] sm:$0xff]  ;;  %v17993_v53 = vpack.c.bf16 %v11888_v3, %v11880_v58  ;;  %v11966_v3 = vld [vmem:[%s27293_s8 + $0x860] sm:$0xff] }
0x124f   :  { %17958 = vmatpush1.bf16.msra.mxu1 %v17957_v6  ;;  %17704 = vmatprep.subr.bf16.mxu0 %v17703_v47  ;;  %v11833_v6 = vld [vmem:[%s27293_s8 + $0x438] sm:$0xff]  ;;  %v17723_v30 = vpack.c.bf16 %v11839_v28, %v11831_v35  ;;  %v11896_v35 = vld [vmem:[%s27293_s8 + $0x630] sm:$0xff] }
0x1250   :  { %17960 = vmatprep.subr.bf16.mxu1 %v17959_v49  ;;  %v11841_v47 = vld [vmem:[%s27293_s8 + $0x478] sm:$0xff]  ;;  %v11830_v49 = vld [vmem:[%s27293_s8 + $0x420] sm:$0xff] }
0x1251   :  { %v17979_v15 = vpack.c.bf16 %v11841_v47, %v11833_v6  ;;  %v17725_v11 = vpack.c.bf16 %v11838_v19, %v11830_v49  ;;  %v11904_v6 = vld [vmem:[%s27293_s8 + $0x670] sm:$0xff]  ;;  %v11911_v47 = vld [vmem:[%s27293_s8 + $0x6a8] sm:$0xff] }
0x1252   :  { %17706 = vmatpush1.bf16.msra.mxu0 %v17705_v61  ;;  %v11855_v61 = vld [vmem:[%s27293_s8 + $0x4e8] sm:$0xff]  ;;  %v17997_v19 = vpack.c.bf16 %v11904_v6, %v11896_v35  ;;  %v11974_v35 = vld [vmem:[%s27293_s8 + $0x8a0] sm:$0xff]  ;;  %v11976_v6 = vld [vmem:[%s27293_s8 + $0x8b0] sm:$0xff] }
0x1253   :  { %17962 = vmatpush1.bf16.msra.mxu1 %v17961_v5  ;;  %17708 = vmatprep.subr.bf16.mxu0 %v17707_v34  ;;  %v11849_v5 = vld [vmem:[%s27293_s8 + $0x4b8] sm:$0xff]  ;;  %v17727_v36 = vpack.c.bf16 %v11855_v61, %v11847_v59  ;;  %v11912_v59 = vld [vmem:[%s27293_s8 + $0x6b0] sm:$0xff] }
0x1254   :  { %17964 = vmatprep.subr.bf16.mxu1 %v17963_v7  ;;  %v11857_v34 = vld [vmem:[%s27293_s8 + $0x4f8] sm:$0xff]  ;;  %v11846_v7 = vld [vmem:[%s27293_s8 + $0x4a0] sm:$0xff] }
0x1255   :  { %v17983_v0 = vpack.c.bf16 %v11857_v34, %v11849_v5  ;;  %v17729_v46 = vpack.c.bf16 %v11854_v55, %v11846_v7  ;;  %v11920_v5 = vld [vmem:[%s27293_s8 + $0x6f0] sm:$0xff]  ;;  %v11927_v34 = vld [vmem:[%s27293_s8 + $0x728] sm:$0xff] }
0x1256   :  { %17710 = vmatpush1.bf16.msra.mxu0 %v17709_v41  ;;  %v11871_v41 = vld [vmem:[%s27293_s8 + $0x568] sm:$0xff]  ;;  %v18001_v55 = vpack.c.bf16 %v11920_v5, %v11912_v59  ;;  %v11998_v5 = vld [vmem:[%s27293_s8 + $0x960] sm:$0xff] }
0x1257   :  { %17966 = vmatpush1.bf16.msra.mxu1 %v17965_v40  ;;  %17712 = vmatprep.subr.bf16.mxu0 %v17711_v62  ;;  %v11865_v40 = vld [vmem:[%s27293_s8 + $0x538] sm:$0xff]  ;;  %v17731_v14 = vpack.c.bf16 %v11871_v41, %v11863_v33  ;;  %v11928_v33 = vld [vmem:[%s27293_s8 + $0x730] sm:$0xff] }
0x1258   :  { %17968 = vmatprep.subr.bf16.mxu1 %v17967_v10  ;;  %v11873_v62 = vld [vmem:[%s27293_s8 + $0x578] sm:$0xff]  ;;  %v11862_v10 = vld [vmem:[%s27293_s8 + $0x520] sm:$0xff] }
0x1259   :  { %v17987_v17 = vpack.c.bf16 %v11873_v62, %v11865_v40  ;;  %v17733_v56 = vpack.c.bf16 %v11870_v29, %v11862_v10  ;;  %v11936_v40 = vld [vmem:[%s27293_s8 + $0x770] sm:$0xff]  ;;  %v11943_v62 = vld [vmem:[%s27293_s8 + $0x7a8] sm:$0xff] }
0x125a   :  { %17714 = vmatpush1.bf16.msra.mxu0 %v17713_v2  ;;  %v11887_v2 = vld [vmem:[%s27293_s8 + $0x5e8] sm:$0xff]  ;;  %v18005_v29 = vpack.c.bf16 %v11936_v40, %v11928_v33  ;;  %v12014_v33 = vld [vmem:[%s27293_s8 + $0x9e0] sm:$0xff] }
0x125b   :  { %17970 = vmatpush1.bf16.msra.mxu1 %v17969_v45  ;;  %17716 = vmatprep.subr.bf16.mxu0 %v17715_v9  ;;  %v11881_v45 = vld [vmem:[%s27293_s8 + $0x5b8] sm:$0xff]  ;;  %v17735_v39 = vpack.c.bf16 %v11887_v2, %v11879_v13  ;;  %v11944_v13 = vld [vmem:[%s27293_s8 + $0x7b0] sm:$0xff] }
0x125c   :  { %17972 = vmatprep.subr.bf16.mxu1 %v17971_v51  ;;  %v11889_v9 = vld [vmem:[%s27293_s8 + $0x5f8] sm:$0xff]  ;;  %v11878_v51 = vld [vmem:[%s27293_s8 + $0x5a0] sm:$0xff] }
0x125d   :  { %v17991_v8 = vpack.c.bf16 %v11889_v9, %v11881_v45  ;;  %v17737_v31 = vpack.c.bf16 %v11886_v43, %v11878_v51  ;;  %v11952_v45 = vld [vmem:[%s27293_s8 + $0x7f0] sm:$0xff]  ;;  %v11959_v9 = vld [vmem:[%s27293_s8 + $0x828] sm:$0xff] }
0x125e   :  { %17718 = vmatpush1.bf16.msra.mxu0 %v17717_v26  ;;  %v11903_v26 = vld [vmem:[%s27293_s8 + $0x668] sm:$0xff]  ;;  %v18009_v43 = vpack.c.bf16 %v11952_v45, %v11944_v13  ;;  %v12030_v13 = vld [vmem:[%s27293_s8 + $0xa60] sm:$0xff] }
0x125f   :  { %17974 = vmatpush1.bf16.msra.mxu1 %v17973_v32  ;;  %17720 = vmatprep.subr.bf16.mxu0 %v17719_v24  ;;  %v11897_v32 = vld [vmem:[%s27293_s8 + $0x638] sm:$0xff]  ;;  %v17739_v21 = vpack.c.bf16 %v11903_v26, %v11895_v20  ;;  %v11960_v26 = vld [vmem:[%s27293_s8 + $0x830] sm:$0xff] }
0x1260   :  { %17976 = vmatprep.subr.bf16.mxu1 %v17975_v54  ;;  %v11905_v24 = vld [vmem:[%s27293_s8 + $0x678] sm:$0xff]  ;;  %v11894_v54 = vld [vmem:[%s27293_s8 + $0x620] sm:$0xff] }
0x1261   :  { %v17995_v28 = vpack.c.bf16 %v11905_v24, %v11897_v32  ;;  %v17741_v49 = vpack.c.bf16 %v11902_v52, %v11894_v54  ;;  %v11968_v32 = vld [vmem:[%s27293_s8 + $0x870] sm:$0xff]  ;;  %v11975_v24 = vld [vmem:[%s27293_s8 + $0x8a8] sm:$0xff]  ;;  %v11985_v54 = vld [vmem:[%s27293_s8 + $0x8f8] sm:$0xff] }
0x1262   :  { %17722 = vmatpush1.bf16.msra.mxu0 %v17721_v27  ;;  %v11919_v27 = vld [vmem:[%s27293_s8 + $0x6e8] sm:$0xff]  ;;  %v18013_v52 = vpack.c.bf16 %v11968_v32, %v11960_v26  ;;  %v12040_v26 = vld [vmem:[%s27293_s8 + $0xab0] sm:$0xff] }
0x1263   :  { %17978 = vmatpush1.bf16.msra.mxu1 %v17977_v1  ;;  %17724 = vmatprep.subr.bf16.mxu0 %v17723_v30  ;;  %v11913_v1 = vld [vmem:[%s27293_s8 + $0x6b8] sm:$0xff]  ;;  %v17743_v57 = vpack.c.bf16 %v11919_v27, %v11911_v47  ;;  %v11984_v27 = vld [vmem:[%s27293_s8 + $0x8f0] sm:$0xff] }
0x1264   :  { %17980 = vmatprep.subr.bf16.mxu1 %v17979_v15  ;;  %v11921_v30 = vld [vmem:[%s27293_s8 + $0x6f8] sm:$0xff]  ;;  %v11910_v15 = vld [vmem:[%s27293_s8 + $0x6a0] sm:$0xff] }
0x1265   :  { %v17999_v61 = vpack.c.bf16 %v11921_v30, %v11913_v1  ;;  %v17745_v7 = vpack.c.bf16 %v11918_v50, %v11910_v15  ;;  %v11991_v1 = vld [vmem:[%s27293_s8 + $0x928] sm:$0xff]  ;;  %v18017_v50 = vpack.c.bf16 %v11984_v27, %v11976_v6  ;;  %v12054_v6 = vld [vmem:[%s27293_s8 + $0xb20] sm:$0xff]  ;;  %v12056_v27 = vld [vmem:[%s27293_s8 + $0xb30] sm:$0xff] }
0x1266   :  { %17726 = vmatpush1.bf16.msra.mxu0 %v17725_v11  ;;  %v11935_v11 = vld [vmem:[%s27293_s8 + $0x768] sm:$0xff] }
0x1267   :  { %17982 = vmatpush1.bf16.msra.mxu1 %v17981_v42  ;;  %17728 = vmatprep.subr.bf16.mxu0 %v17727_v36  ;;  %v11929_v42 = vld [vmem:[%s27293_s8 + $0x738] sm:$0xff]  ;;  %v17747_v18 = vpack.c.bf16 %v11935_v11, %v11927_v34  ;;  %v11999_v30 = vld [vmem:[%s27293_s8 + $0x968] sm:$0xff]  ;;  %v11992_v34 = vld [vmem:[%s27293_s8 + $0x930] sm:$0xff] }
0x1268   :  { %17984 = vmatprep.subr.bf16.mxu1 %v17983_v0  ;;  %v11937_v36 = vld [vmem:[%s27293_s8 + $0x778] sm:$0xff]  ;;  %v11926_v0 = vld [vmem:[%s27293_s8 + $0x720] sm:$0xff]  ;;  %v17763_v59 = vpack.c.bf16 %v11999_v30, %v11991_v1  ;;  %v12000_v11 = vld [vmem:[%s27293_s8 + $0x970] sm:$0xff] }
0x1269   :  { %v18003_v41 = vpack.c.bf16 %v11937_v36, %v11929_v42  ;;  %v17749_v10 = vpack.c.bf16 %v11934_v16, %v11926_v0  ;;  %v12007_v42 = vld [vmem:[%s27293_s8 + $0x9a8] sm:$0xff]  ;;  %v12006_v16 = vld [vmem:[%s27293_s8 + $0x9a0] sm:$0xff]  ;;  %v12064_v30 = vld [vmem:[%s27293_s8 + $0xb70] sm:$0xff] }
0x126a   :  { %17730 = vmatpush1.bf16.msra.mxu0 %v17729_v46  ;;  %v11951_v46 = vld [vmem:[%s27293_s8 + $0x7e8] sm:$0xff] }
0x126b   :  { %17986 = vmatpush1.bf16.msra.mxu1 %v17985_v60  ;;  %17732 = vmatprep.subr.bf16.mxu0 %v17731_v14  ;;  %v11945_v60 = vld [vmem:[%s27293_s8 + $0x7b8] sm:$0xff]  ;;  %v17751_v38 = vpack.c.bf16 %v11951_v46, %v11943_v62  ;;  %v12015_v36 = vld [vmem:[%s27293_s8 + $0x9e8] sm:$0xff]  ;;  %v12016_v62 = vld [vmem:[%s27293_s8 + $0x9f0] sm:$0xff] }
0x126c   :  { %17988 = vmatprep.subr.bf16.mxu1 %v17987_v17  ;;  %v11953_v14 = vld [vmem:[%s27293_s8 + $0x7f8] sm:$0xff]  ;;  %v11942_v17 = vld [vmem:[%s27293_s8 + $0x7a0] sm:$0xff]  ;;  %v17767_v0 = vpack.c.bf16 %v12015_v36, %v12007_v42  ;;  %v12023_v46 = vld [vmem:[%s27293_s8 + $0xa28] sm:$0xff] }
0x126d   :  { %v18007_v2 = vpack.c.bf16 %v11953_v14, %v11945_v60  ;;  %v17753_v51 = vpack.c.bf16 %v11950_v4, %v11942_v17  ;;  %v12031_v60 = vld [vmem:[%s27293_s8 + $0xa68] sm:$0xff]  ;;  %v12025_v14 = vld [vmem:[%s27293_s8 + $0xa38] sm:$0xff]  ;;  %v12022_v4 = vld [vmem:[%s27293_s8 + $0xa20] sm:$0xff] }
0x126e   :  { %17734 = vmatpush1.bf16.msra.mxu0 %v17733_v56  ;;  %v11967_v56 = vld [vmem:[%s27293_s8 + $0x868] sm:$0xff]  ;;  %v17771_v17 = vpack.c.bf16 %v12031_v60, %v12023_v46  ;;  %v12080_v42 = vld [vmem:[%s27293_s8 + $0xbf0] sm:$0xff] }
0x126f   :  { %17990 = vmatpush1.bf16.msra.mxu1 %v17989_v44  ;;  %17736 = vmatprep.subr.bf16.mxu0 %v17735_v39  ;;  %v11961_v44 = vld [vmem:[%s27293_s8 + $0x838] sm:$0xff]  ;;  %v17755_v58 = vpack.c.bf16 %v11967_v56, %v11959_v9  ;;  %v12032_v9 = vld [vmem:[%s27293_s8 + $0xa70] sm:$0xff]  ;;  %v12039_v56 = vld [vmem:[%s27293_s8 + $0xaa8] sm:$0xff] }
0x1270   :  { %17992 = vmatprep.subr.bf16.mxu1 %v17991_v8  ;;  %v11969_v39 = vld [vmem:[%s27293_s8 + $0x878] sm:$0xff]  ;;  %v11958_v8 = vld [vmem:[%s27293_s8 + $0x820] sm:$0xff]  ;;  %v12087_v36 = vld [vmem:[%s27293_s8 + $0xc28] sm:$0xff] }
0x1271   :  { %v18011_v20 = vpack.c.bf16 %v11969_v39, %v11961_v44  ;;  %v12047_v44 = vld [vmem:[%s27293_s8 + $0xae8] sm:$0xff]  ;;  %v12041_v39 = vld [vmem:[%s27293_s8 + $0xab8] sm:$0xff]  ;;  %v12096_v46 = vld [vmem:[%s27293_s8 + $0xc70] sm:$0xff] }
0x1272   :  { %17738 = vmatpush1.bf16.msra.mxu0 %v17737_v31  ;;  %v11983_v31 = vld [vmem:[%s27293_s8 + $0x8e8] sm:$0xff] }
0x1273   :  { %17994 = vmatpush1.bf16.msra.mxu1 %v17993_v53  ;;  %17740 = vmatprep.subr.bf16.mxu0 %v17739_v21  ;;  %v17757_v53 = vpack.c.bf16 %v11966_v3, %v11958_v8  ;;  %v11977_v21 = vld [vmem:[%s27293_s8 + $0x8b8] sm:$0xff]  ;;  %v17759_v47 = vpack.c.bf16 %v11983_v31, %v11975_v24  ;;  %v17775_v8 = vpack.c.bf16 %v12047_v44, %v12039_v56  ;;  %v12038_v3 = vld [vmem:[%s27293_s8 + $0xaa0] sm:$0xff]  ;;  %v12048_v24 = vld [vmem:[%s27293_s8 + $0xaf0] sm:$0xff] }
0x1274   :  { %17996 = vmatprep.subr.bf16.mxu1 %v17995_v28  ;;  %v11982_v28 = vld [vmem:[%s27293_s8 + $0x8e0] sm:$0xff]  ;;  %v12055_v31 = vld [vmem:[%s27293_s8 + $0xb28] sm:$0xff]  ;;  %v12112_v56 = vld [vmem:[%s27293_s8 + $0xcf0] sm:$0xff] }
0x1275   :  { %v17761_v15 = vpack.c.bf16 %v11982_v28, %v11974_v35  ;;  %v18033_v35 = vpack.c.bf16 %v12048_v24, %v12040_v26  ;;  %v12103_v60 = vld [vmem:[%s27293_s8 + $0xca8] sm:$0xff]  ;;  %v12126_v26 = vld [vmem:[%s27293_s8 + $0xd60] sm:$0xff] }
0x1276   :  { %17742 = vmatpush1.bf16.msra.mxu0 %v17741_v49  ;;  %v18015_v49 = vpack.c.bf16 %v11985_v54, %v11977_v21  ;;  %v12057_v21 = vld [vmem:[%s27293_s8 + $0xb38] sm:$0xff]  ;;  %v12119_v44 = vld [vmem:[%s27293_s8 + $0xd28] sm:$0xff] }
0x1277   :  { %17998 = vmatpush1.bf16.msra.mxu1 %v17997_v19  ;;  %17744 = vmatprep.subr.bf16.mxu0 %v17743_v57  ;;  %v11993_v19 = vld [vmem:[%s27293_s8 + $0x938] sm:$0xff] }
0x1278   :  { %18000 = vmatprep.subr.bf16.mxu1 %v17999_v61  ;;  %v12001_v57 = vld [vmem:[%s27293_s8 + $0x978] sm:$0xff]  ;;  %v11990_v61 = vld [vmem:[%s27293_s8 + $0x920] sm:$0xff] }
0x1279   :  { %v12065_v54 = vld [vmem:[%s27293_s8 + $0xb78] sm:$0xff] }
0x127a   :  { %17746 = vmatpush1.bf16.msra.mxu0 %v17745_v7  ;;  %v12009_v7 = vld [vmem:[%s27293_s8 + $0x9b8] sm:$0xff]  ;;  %v18035_v1 = vpack.c.bf16 %v12065_v54, %v12057_v21  ;;  %v12143_v21 = vld [vmem:[%s27293_s8 + $0xde8] sm:$0xff] }
0x127b   :  { %18002 = vmatpush1.bf16.msra.mxu1 %v18001_v55  ;;  %17748 = vmatprep.subr.bf16.mxu0 %v17747_v18  ;;  %v17765_v55 = vpack.c.bf16 %v11998_v5, %v11990_v61  ;;  %v18021_v18 = vpack.c.bf16 %v12000_v11, %v11992_v34  ;;  %v12070_v5 = vld [vmem:[%s27293_s8 + $0xba0] sm:$0xff]  ;;  %v12137_v54 = vld [vmem:[%s27293_s8 + $0xdb8] sm:$0xff] }
0x127c   :  { %18004 = vmatprep.subr.bf16.mxu1 %v18003_v41  ;;  %v12008_v41 = vld [vmem:[%s27293_s8 + $0x9b0] sm:$0xff]  ;;  %v12078_v34 = vld [vmem:[%s27293_s8 + $0xbe0] sm:$0xff] }
0x127e   :  { %17750 = vmatpush1.bf16.msra.mxu0 %v17749_v10  ;;  %v12033_v10 = vld [vmem:[%s27293_s8 + $0xa78] sm:$0xff] }
0x127f   :  { %18006 = vmatpush1.bf16.msra.mxu1 %v18005_v29  ;;  %17752 = vmatprep.subr.bf16.mxu0 %v17751_v38  ;;  %v17769_v29 = vpack.c.bf16 %v12014_v33, %v12006_v16  ;;  %v18025_v38 = vpack.c.bf16 %v12016_v62, %v12008_v41  ;;  %v18027_v45 = vpack.c.bf16 %v12033_v10, %v12025_v14  ;;  %v12086_v33 = vld [vmem:[%s27293_s8 + $0xc20] sm:$0xff]  ;;  %v12111_v14 = vld [vmem:[%s27293_s8 + $0xce8] sm:$0xff]  ;;  %v12105_v10 = vld [vmem:[%s27293_s8 + $0xcb8] sm:$0xff] }
0x1280   :  { %18008 = vmatprep.subr.bf16.mxu1 %v18007_v2  ;;  %v12024_v2 = vld [vmem:[%s27293_s8 + $0xa30] sm:$0xff]  ;;  %v12094_v41 = vld [vmem:[%s27293_s8 + $0xc60] sm:$0xff] }
0x1282   :  { %17754 = vmatpush1.bf16.msra.mxu0 %v17753_v51  ;;  %v12049_v51 = vld [vmem:[%s27293_s8 + $0xaf8] sm:$0xff] }
0x1283   :  { %18010 = vmatpush1.bf16.msra.mxu1 %v18009_v43  ;;  %17756 = vmatprep.subr.bf16.mxu0 %v17755_v58  ;;  %v17773_v43 = vpack.c.bf16 %v12030_v13, %v12022_v4  ;;  %v18029_v58 = vpack.c.bf16 %v12032_v9, %v12024_v2  ;;  %v18031_v32 = vpack.c.bf16 %v12049_v51, %v12041_v39  ;;  %v12102_v13 = vld [vmem:[%s27293_s8 + $0xca0] sm:$0xff]  ;;  %v12127_v39 = vld [vmem:[%s27293_s8 + $0xd68] sm:$0xff]  ;;  %v12121_v51 = vld [vmem:[%s27293_s8 + $0xd38] sm:$0xff] }
0x1284   :  { %18012 = vmatprep.subr.bf16.mxu1 %v18011_v20  ;;  %v12046_v20 = vld [vmem:[%s27293_s8 + $0xae0] sm:$0xff]  ;;  %v17791_v4 = vpack.c.bf16 %v12111_v14, %v12103_v60  ;;  %v12176_v60 = vld [vmem:[%s27293_s8 + $0xef0] sm:$0xff]  ;;  %v12183_v14 = vld [vmem:[%s27293_s8 + $0xf28] sm:$0xff] }
0x1285   :  { %13397 = vmatmul.mubr.f32.vlgmr.msra.gmra.mrb[246].mxu0 %v24480_v48  ;;  %v12110_v2 = vld [vmem:[%s27293_s8 + $0xce0] sm:$0xff] }
0x1286   :  { %13681 = vmatmul.mubr.f32.vlgmr.msra.gmra.mrb[22].mxu1 %v24480_v48  ;;  %17758 = vmatpush1.bf16.msra.mxu0 %v17757_v53  ;;  %v18019_v48 = vpack.c.bf16 %v12001_v57, %v11993_v19  ;;  %v12063_v53 = vld [vmem:[%s27293_s8 + $0xb68] sm:$0xff]  ;;  %v12073_v57 = vld [vmem:[%s27293_s8 + $0xbb8] sm:$0xff] }
0x1287   :  { %13467 = vmatprep.mubr.f32.mxu0 %v24810_v63  ;;  %18014 = vmatpush1.bf16.msra.mxu1 %v18013_v52  ;;  %v17777_v52 = vpack.c.bf16 %v12046_v20, %v12038_v3  ;;  %v17779_v28 = vpack.c.bf16 %v12063_v53, %v12055_v31  ;;  %v12079_v19 = vld [vmem:[%s27293_s8 + $0xbe8] sm:$0xff]  ;;  %v17795_v3 = vpack.c.bf16 %v12127_v39, %v12119_v44  ;;  %v12118_v20 = vld [vmem:[%s27293_s8 + $0xd20] sm:$0xff]  ;;  %v12128_v31 = vld [vmem:[%s27293_s8 + $0xd70] sm:$0xff] }
0x1288   :  { %13751 = vmatprep.mubr.f32.mxu1 %v24810_v63  ;;  %17760 = vmatprep.subr.bf16.mxu0 %v17759_v47  ;;  %v12017_v63 = vld [vmem:[%s27293_s8 + $0x9f8] sm:$0xff]  ;;  %v12062_v47 = vld [vmem:[%s27293_s8 + $0xb60] sm:$0xff]  ;;  %v12135_v53 = vld [vmem:[%s27293_s8 + $0xda8] sm:$0xff] }
0x1289   :  { %18016 = vmatprep.subr.bf16.mxu1 %v18015_v49  ;;  %v18023_v40 = vpack.c.bf16 %v12017_v63, %v12009_v7  ;;  %v12071_v49 = vld [vmem:[%s27293_s8 + $0xba8] sm:$0xff]  ;;  %v12089_v63 = vld [vmem:[%s27293_s8 + $0xc38] sm:$0xff]  ;;  %v12192_v44 = vld [vmem:[%s27293_s8 + $0xf70] sm:$0xff] }
0x128a   :  { %17762 = vmatpush1.bf16.msra.mxu0 %v17761_v15  ;;  %v12081_v15 = vld [vmem:[%s27293_s8 + $0xbf8] sm:$0xff]  ;;  %v17783_v61 = vpack.c.bf16 %v12079_v19, %v12071_v49  ;;  %v12095_v7 = vld [vmem:[%s27293_s8 + $0xc68] sm:$0xff]  ;;  %v12144_v49 = vld [vmem:[%s27293_s8 + $0xdf0] sm:$0xff] }
0x128b   :  { %18018 = vmatpush1.bf16.msra.mxu1 %v18017_v50  ;;  %17764 = vmatprep.subr.bf16.mxu0 %v17763_v59  ;;  %v17781_v50 = vpack.c.bf16 %v12062_v47, %v12054_v6  ;;  %v18037_v59 = vpack.c.bf16 %v12064_v30, %v12056_v27  ;;  %v18039_v11 = vpack.c.bf16 %v12081_v15, %v12073_v57  ;;  %v12134_v47 = vld [vmem:[%s27293_s8 + $0xda0] sm:$0xff]  ;;  %v12151_v19 = vld [vmem:[%s27293_s8 + $0xe28] sm:$0xff]  ;;  %v12153_v15 = vld [vmem:[%s27293_s8 + $0xe38] sm:$0xff] }
0x128c   :  { %18020 = vmatprep.subr.bf16.mxu1 %v18019_v48  ;;  %v12072_v48 = vld [vmem:[%s27293_s8 + $0xbb0] sm:$0xff]  ;;  %v17787_v16 = vpack.c.bf16 %v12095_v7, %v12087_v36  ;;  %v17799_v6 = vpack.c.bf16 %v12143_v21, %v12135_v53  ;;  %v12142_v27 = vld [vmem:[%s27293_s8 + $0xde0] sm:$0xff]  ;;  %v12159_v57 = vld [vmem:[%s27293_s8 + $0xe68] sm:$0xff] }
0x128d   :  { %v12160_v36 = vld [vmem:[%s27293_s8 + $0xe70] sm:$0xff]  ;;  %v12167_v7 = vld [vmem:[%s27293_s8 + $0xea8] sm:$0xff] }
0x128e   :  { %17766 = vmatpush1.bf16.msra.mxu0 %v17765_v55  ;;  %v12097_v55 = vld [vmem:[%s27293_s8 + $0xc78] sm:$0xff]  ;;  %v12199_v39 = vld [vmem:[%s27293_s8 + $0xfa8] sm:$0xff]  ;;  %v12208_v53 = vld [vmem:[%s27293_s8 + $0xff0] sm:$0xff] }
0x128f   :  { %18022 = vmatpush1.bf16.msra.mxu1 %v18021_v18  ;;  %17768 = vmatprep.subr.bf16.mxu0 %v17767_v0  ;;  %v17785_v18 = vpack.c.bf16 %v12078_v34, %v12070_v5  ;;  %v18041_v0 = vpack.c.bf16 %v12080_v42, %v12072_v48  ;;  %v18043_v62 = vpack.c.bf16 %v12097_v55, %v12089_v63  ;;  %v12150_v34 = vld [vmem:[%s27293_s8 + $0xe20] sm:$0xff]  ;;  %v12175_v63 = vld [vmem:[%s27293_s8 + $0xee8] sm:$0xff]  ;;  %v12169_v55 = vld [vmem:[%s27293_s8 + $0xeb8] sm:$0xff] }
0x1290   :  { %18024 = vmatprep.subr.bf16.mxu1 %v18023_v40  ;;  %v12088_v40 = vld [vmem:[%s27293_s8 + $0xc30] sm:$0xff]  ;;  %v17803_v5 = vpack.c.bf16 %v12159_v57, %v12151_v19  ;;  %v12158_v48 = vld [vmem:[%s27293_s8 + $0xe60] sm:$0xff]  ;;  %v12215_v21 = vld [vmem:[%s27293_s8 + $0x1028] sm:$0xff] }
0x1291   :  { %v12224_v19 = vld [vmem:[%s27293_s8 + $0x1070] sm:$0xff]  ;;  %v12231_v57 = vld [vmem:[%s27293_s8 + $0x10a8] sm:$0xff] }
0x1292   :  { %17770 = vmatpush1.bf16.msra.mxu0 %v17769_v29  ;;  %v12113_v29 = vld [vmem:[%s27293_s8 + $0xcf8] sm:$0xff] }
0x1293   :  { %18026 = vmatpush1.bf16.msra.mxu1 %v18025_v38  ;;  %17772 = vmatprep.subr.bf16.mxu0 %v17771_v17  ;;  %v17789_v38 = vpack.c.bf16 %v12094_v41, %v12086_v33  ;;  %v18045_v17 = vpack.c.bf16 %v12096_v46, %v12088_v40  ;;  %v18047_v9 = vpack.c.bf16 %v12113_v29, %v12105_v10  ;;  %v12166_v41 = vld [vmem:[%s27293_s8 + $0xea0] sm:$0xff]  ;;  %v12191_v10 = vld [vmem:[%s27293_s8 + $0xf68] sm:$0xff]  ;;  %v12185_v29 = vld [vmem:[%s27293_s8 + $0xf38] sm:$0xff] }
0x1294   :  { %18028 = vmatprep.subr.bf16.mxu1 %v18027_v45  ;;  %v12104_v45 = vld [vmem:[%s27293_s8 + $0xcb0] sm:$0xff]  ;;  %v17807_v33 = vpack.c.bf16 %v12175_v63, %v12167_v7  ;;  %v12174_v40 = vld [vmem:[%s27293_s8 + $0xee0] sm:$0xff]  ;;  %v12247_v7 = vld [vmem:[%s27293_s8 + $0x1128] sm:$0xff] }
0x1295   :  { %v12255_v63 = vld [vmem:[%s27293_s8 + $0x1168] sm:$0xff] }
0x1296   :  { %17774 = vmatpush1.bf16.msra.mxu0 %v17773_v43  ;;  %v12129_v43 = vld [vmem:[%s27293_s8 + $0xd78] sm:$0xff] }
0x1297   :  { %18030 = vmatpush1.bf16.msra.mxu1 %v18029_v58  ;;  %17776 = vmatprep.subr.bf16.mxu0 %v17775_v8  ;;  %v17793_v58 = vpack.c.bf16 %v12110_v2, %v12102_v13  ;;  %v18049_v8 = vpack.c.bf16 %v12112_v56, %v12104_v45  ;;  %v18051_v24 = vpack.c.bf16 %v12129_v43, %v12121_v51  ;;  %v12182_v2 = vld [vmem:[%s27293_s8 + $0xf20] sm:$0xff]  ;;  %v12207_v51 = vld [vmem:[%s27293_s8 + $0xfe8] sm:$0xff]  ;;  %v12201_v43 = vld [vmem:[%s27293_s8 + $0xfb8] sm:$0xff] }
0x1298   :  { %18032 = vmatprep.subr.bf16.mxu1 %v18031_v32  ;;  %v12120_v32 = vld [vmem:[%s27293_s8 + $0xd30] sm:$0xff]  ;;  %v17811_v13 = vpack.c.bf16 %v12191_v10, %v12183_v14  ;;  %v12190_v45 = vld [vmem:[%s27293_s8 + $0xf60] sm:$0xff]  ;;  %v12263_v14 = vld [vmem:[%s27293_s8 + $0x11a8] sm:$0xff] }
0x1299   :  { %v12271_v10 = vld [vmem:[%s27293_s8 + $0x11e8] sm:$0xff] }
0x129a   :  { %17778 = vmatpush1.bf16.msra.mxu0 %v17777_v52  ;;  %v12145_v52 = vld [vmem:[%s27293_s8 + $0xdf8] sm:$0xff] }
0x129b   :  { %18034 = vmatpush1.bf16.msra.mxu1 %v18033_v35  ;;  %17780 = vmatprep.subr.bf16.mxu0 %v17779_v28  ;;  %v17797_v35 = vpack.c.bf16 %v12126_v26, %v12118_v20  ;;  %v18053_v28 = vpack.c.bf16 %v12128_v31, %v12120_v32  ;;  %v18055_v30 = vpack.c.bf16 %v12145_v52, %v12137_v54  ;;  %v12198_v26 = vld [vmem:[%s27293_s8 + $0xfa0] sm:$0xff]  ;;  %v12223_v54 = vld [vmem:[%s27293_s8 + $0x1068] sm:$0xff]  ;;  %v12217_v52 = vld [vmem:[%s27293_s8 + $0x1038] sm:$0xff] }
0x129c   :  { %18036 = vmatprep.subr.bf16.mxu1 %v18035_v1  ;;  %v12136_v1 = vld [vmem:[%s27293_s8 + $0xdb0] sm:$0xff]  ;;  %v17815_v20 = vpack.c.bf16 %v12207_v51, %v12199_v39  ;;  %v12206_v32 = vld [vmem:[%s27293_s8 + $0xfe0] sm:$0xff]  ;;  %v12287_v39 = vld [vmem:[%s27293_s8 + $0x1268] sm:$0xff] }
0x129d   :  { %v12281_v51 = vld [vmem:[%s27293_s8 + $0x1238] sm:$0xff] }
0x129e   :  { %17782 = vmatpush1.bf16.msra.mxu0 %v17781_v50  ;;  %v12161_v50 = vld [vmem:[%s27293_s8 + $0xe78] sm:$0xff] }
0x129f   :  { %18038 = vmatpush1.bf16.msra.mxu1 %v18037_v59  ;;  %17784 = vmatprep.subr.bf16.mxu0 %v17783_v61  ;;  %v17801_v59 = vpack.c.bf16 %v12142_v27, %v12134_v47  ;;  %v18057_v61 = vpack.c.bf16 %v12144_v49, %v12136_v1  ;;  %v18059_v42 = vpack.c.bf16 %v12161_v50, %v12153_v15  ;;  %v12214_v27 = vld [vmem:[%s27293_s8 + $0x1020] sm:$0xff]  ;;  %v12216_v49 = vld [vmem:[%s27293_s8 + $0x1030] sm:$0xff]  ;;  %v12239_v15 = vld [vmem:[%s27293_s8 + $0x10e8] sm:$0xff] }
0x12a0   :  { %18040 = vmatprep.subr.bf16.mxu1 %v18039_v11  ;;  %v12152_v11 = vld [vmem:[%s27293_s8 + $0xe30] sm:$0xff]  ;;  %v17819_v47 = vpack.c.bf16 %v12223_v54, %v12215_v21  ;;  %v12222_v1 = vld [vmem:[%s27293_s8 + $0x1060] sm:$0xff]  ;;  %v12303_v21 = vld [vmem:[%s27293_s8 + $0x12e8] sm:$0xff] }
0x12a1   :  { %v17821_v50 = vpack.c.bf16 %v12222_v1, %v12214_v27  ;;  %v12297_v54 = vld [vmem:[%s27293_s8 + $0x12b8] sm:$0xff]  ;;  %v12302_v27 = vld [vmem:[%s27293_s8 + $0x12e0] sm:$0xff]  ;;  %v12296_v1 = vld [vmem:[%s27293_s8 + $0x12b0] sm:$0xff] }
0x12a2   :  { %17786 = vmatpush1.bf16.msra.mxu0 %v17785_v18  ;;  %v12177_v18 = vld [vmem:[%s27293_s8 + $0xef8] sm:$0xff] }
0x12a3   :  { %18042 = vmatpush1.bf16.msra.mxu1 %v18041_v0  ;;  %17788 = vmatprep.subr.bf16.mxu0 %v17787_v16  ;;  %v17805_v0 = vpack.c.bf16 %v12158_v48, %v12150_v34  ;;  %v18061_v16 = vpack.c.bf16 %v12160_v36, %v12152_v11  ;;  %v18063_v46 = vpack.c.bf16 %v12177_v18, %v12169_v55  ;;  %v12230_v34 = vld [vmem:[%s27293_s8 + $0x10a0] sm:$0xff]  ;;  %v12232_v11 = vld [vmem:[%s27293_s8 + $0x10b0] sm:$0xff]  ;;  %v12249_v18 = vld [vmem:[%s27293_s8 + $0x1138] sm:$0xff] }
0x12a4   :  { %18044 = vmatprep.subr.bf16.mxu1 %v18043_v62  ;;  %v12168_v62 = vld [vmem:[%s27293_s8 + $0xeb0] sm:$0xff]  ;;  %v12238_v48 = vld [vmem:[%s27293_s8 + $0x10e0] sm:$0xff] }
0x12a5   :  { %v12240_v36 = vld [vmem:[%s27293_s8 + $0x10f0] sm:$0xff] }
0x12a6   :  { %17790 = vmatpush1.bf16.msra.mxu0 %v17789_v38  ;;  %v12193_v38 = vld [vmem:[%s27293_s8 + $0xf78] sm:$0xff] }
0x12a7   :  { %18046 = vmatpush1.bf16.msra.mxu1 %v18045_v17  ;;  %17792 = vmatprep.subr.bf16.mxu0 %v17791_v4  ;;  %v17809_v17 = vpack.c.bf16 %v12174_v40, %v12166_v41  ;;  %v18065_v4 = vpack.c.bf16 %v12176_v60, %v12168_v62  ;;  %v18067_v56 = vpack.c.bf16 %v12193_v38, %v12185_v29  ;;  %v12246_v40 = vld [vmem:[%s27293_s8 + $0x1120] sm:$0xff]  ;;  %v12256_v60 = vld [vmem:[%s27293_s8 + $0x1170] sm:$0xff]  ;;  %v12265_v29 = vld [vmem:[%s27293_s8 + $0x11b8] sm:$0xff] }
0x12a8   :  { %18048 = vmatprep.subr.bf16.mxu1 %v18047_v9  ;;  %v12184_v9 = vld [vmem:[%s27293_s8 + $0xf30] sm:$0xff]  ;;  %v17827_v41 = vpack.c.bf16 %v12255_v63, %v12247_v7  ;;  %v12254_v62 = vld [vmem:[%s27293_s8 + $0x1160] sm:$0xff]  ;;  %v12327_v7 = vld [vmem:[%s27293_s8 + $0x13a8] sm:$0xff] }
0x12a9   :  { %v17829_v38 = vpack.c.bf16 %v12254_v62, %v12246_v40  ;;  %v12335_v63 = vld [vmem:[%s27293_s8 + $0x13e8] sm:$0xff]  ;;  %v12334_v40 = vld [vmem:[%s27293_s8 + $0x13e0] sm:$0xff]  ;;  %v12328_v62 = vld [vmem:[%s27293_s8 + $0x13b0] sm:$0xff] }
0x12aa   :  { %17794 = vmatpush1.bf16.msra.mxu0 %v17793_v58  ;;  %v12209_v58 = vld [vmem:[%s27293_s8 + $0xff8] sm:$0xff] }
0x12ab   :  { %18050 = vmatpush1.bf16.msra.mxu1 %v18049_v8  ;;  %17796 = vmatprep.subr.bf16.mxu0 %v17795_v3  ;;  %v17813_v8 = vpack.c.bf16 %v12190_v45, %v12182_v2  ;;  %v18069_v3 = vpack.c.bf16 %v12192_v44, %v12184_v9  ;;  %v18071_v31 = vpack.c.bf16 %v12209_v58, %v12201_v43  ;;  %v12270_v2 = vld [vmem:[%s27293_s8 + $0x11e0] sm:$0xff]  ;;  %v12264_v45 = vld [vmem:[%s27293_s8 + $0x11b0] sm:$0xff]  ;;  %v12279_v44 = vld [vmem:[%s27293_s8 + $0x1228] sm:$0xff] }
0x12ac   :  { %18052 = vmatprep.subr.bf16.mxu1 %v18051_v24  ;;  %v12200_v24 = vld [vmem:[%s27293_s8 + $0xfb0] sm:$0xff]  ;;  %v12289_v43 = vld [vmem:[%s27293_s8 + $0x1278] sm:$0xff] }
0x12ae   :  { %17798 = vmatpush1.bf16.msra.mxu0 %v17797_v35  ;;  %v12225_v35 = vld [vmem:[%s27293_s8 + $0x1078] sm:$0xff] }
0x12af   :  { %18054 = vmatpush1.bf16.msra.mxu1 %v18053_v28  ;;  %17800 = vmatprep.subr.bf16.mxu0 %v17799_v6  ;;  %v17817_v28 = vpack.c.bf16 %v12206_v32, %v12198_v26  ;;  %v18073_v6 = vpack.c.bf16 %v12208_v53, %v12200_v24  ;;  %v12286_v26 = vld [vmem:[%s27293_s8 + $0x1260] sm:$0xff]  ;;  %v12280_v32 = vld [vmem:[%s27293_s8 + $0x1230] sm:$0xff]  ;;  %v18091_v24 = vpack.c.bf16 %v12289_v43, %v12281_v51  ;;  %v12295_v53 = vld [vmem:[%s27293_s8 + $0x12a8] sm:$0xff] }
0x12b0   :  { %18056 = vmatprep.subr.bf16.mxu1 %v18055_v30  ;;  %v18075_v30 = vpack.c.bf16 %v12225_v35, %v12217_v52  ;;  %v12305_v52 = vld [vmem:[%s27293_s8 + $0x12f8] sm:$0xff] }
0x12b1   :  { %v12369_v51 = vld [vmem:[%s27293_s8 + $0x14f8] sm:$0xff] }
0x12b2   :  { %17802 = vmatpush1.bf16.msra.mxu0 %v17801_v59  ;;  %v12233_v59 = vld [vmem:[%s27293_s8 + $0x10b8] sm:$0xff] }
0x12b3   :  { %18058 = vmatpush1.bf16.msra.mxu1 %v18057_v61  ;;  %17804 = vmatprep.subr.bf16.mxu0 %v17803_v5  ;;  %v12241_v61 = vld [vmem:[%s27293_s8 + $0x10f8] sm:$0xff]  ;;  %v18077_v5 = vpack.c.bf16 %v12224_v19, %v12216_v49  ;;  %v12304_v49 = vld [vmem:[%s27293_s8 + $0x12f0] sm:$0xff]  ;;  %v12311_v19 = vld [vmem:[%s27293_s8 + $0x1328] sm:$0xff] }
0x12b4   :  { %18060 = vmatprep.subr.bf16.mxu1 %v18059_v42  ;;  %v17823_v42 = vpack.c.bf16 %v12239_v15, %v12231_v57  ;;  %v18079_v55 = vpack.c.bf16 %v12241_v61, %v12233_v59  ;;  %v12319_v57 = vld [vmem:[%s27293_s8 + $0x1368] sm:$0xff]  ;;  %v12313_v15 = vld [vmem:[%s27293_s8 + $0x1338] sm:$0xff]  ;;  %v18097_v61 = vpack.c.bf16 %v12304_v49, %v12296_v1 }
0x12b5   :  { %v12391_v49 = vld [vmem:[%s27293_s8 + $0x15a8] sm:$0xff] }
0x12b6   :  { %17806 = vmatpush1.bf16.msra.mxu0 %v17805_v0  ;;  %v12257_v0 = vld [vmem:[%s27293_s8 + $0x1178] sm:$0xff] }
0x12b7   :  { %18062 = vmatpush1.bf16.msra.mxu1 %v18061_v16  ;;  %17808 = vmatprep.subr.bf16.mxu0 %v17807_v33  ;;  %v17825_v16 = vpack.c.bf16 %v12238_v48, %v12230_v34  ;;  %v18081_v33 = vpack.c.bf16 %v12240_v36, %v12232_v11  ;;  %v12310_v34 = vld [vmem:[%s27293_s8 + $0x1320] sm:$0xff]  ;;  %v12312_v11 = vld [vmem:[%s27293_s8 + $0x1330] sm:$0xff] }
0x12b8   :  { %18064 = vmatprep.subr.bf16.mxu1 %v18063_v46  ;;  %v12248_v46 = vld [vmem:[%s27293_s8 + $0x1130] sm:$0xff]  ;;  %v12318_v48 = vld [vmem:[%s27293_s8 + $0x1360] sm:$0xff] }
0x12b9   :  { %v12320_v36 = vld [vmem:[%s27293_s8 + $0x1370] sm:$0xff] }
0x12ba   :  { %17810 = vmatpush1.bf16.msra.mxu0 %v17809_v17  ;;  %v18085_v17 = vpack.c.bf16 %v12256_v60, %v12248_v46  ;;  %v12343_v60 = vld [vmem:[%s27293_s8 + $0x1428] sm:$0xff] }
0x12bb   :  { %18066 = vmatpush1.bf16.msra.mxu1 %v18065_v4  ;;  %17812 = vmatprep.subr.bf16.mxu0 %v17811_v13  ;;  %v17831_v4 = vpack.c.bf16 %v12271_v10, %v12263_v14  ;;  %v12262_v13 = vld [vmem:[%s27293_s8 + $0x11a0] sm:$0xff]  ;;  %v12351_v14 = vld [vmem:[%s27293_s8 + $0x1468] sm:$0xff]  ;;  %v12345_v10 = vld [vmem:[%s27293_s8 + $0x1438] sm:$0xff] }
0x12bc   :  { %18068 = vmatprep.subr.bf16.mxu1 %v18067_v56  ;;  %v12272_v56 = vld [vmem:[%s27293_s8 + $0x11f0] sm:$0xff]  ;;  %v17833_v58 = vpack.c.bf16 %v12270_v2, %v12262_v13  ;;  %v12350_v13 = vld [vmem:[%s27293_s8 + $0x1460] sm:$0xff] }
0x12bd   :  { %v12344_v2 = vld [vmem:[%s27293_s8 + $0x1430] sm:$0xff] }
0x12be   :  { %17814 = vmatpush1.bf16.msra.mxu0 %v17813_v8  ;;  %v18089_v8 = vpack.c.bf16 %v12272_v56, %v12264_v45  ;;  %v12359_v56 = vld [vmem:[%s27293_s8 + $0x14a8] sm:$0xff] }
0x12bf   :  { %18070 = vmatpush1.bf16.msra.mxu1 %v18069_v3  ;;  %17816 = vmatprep.subr.bf16.mxu0 %v17815_v20  ;;  %v17835_v3 = vpack.c.bf16 %v12287_v39, %v12279_v44  ;;  %v12278_v20 = vld [vmem:[%s27293_s8 + $0x1220] sm:$0xff]  ;;  %v12367_v44 = vld [vmem:[%s27293_s8 + $0x14e8] sm:$0xff]  ;;  %v12361_v39 = vld [vmem:[%s27293_s8 + $0x14b8] sm:$0xff] }
0x12c0   :  { %18072 = vmatprep.subr.bf16.mxu1 %v18071_v31  ;;  %v12288_v31 = vld [vmem:[%s27293_s8 + $0x1270] sm:$0xff]  ;;  %v17837_v35 = vpack.c.bf16 %v12286_v26, %v12278_v20  ;;  %v12366_v20 = vld [vmem:[%s27293_s8 + $0x14e0] sm:$0xff] }
0x12c1   :  { %v12360_v26 = vld [vmem:[%s27293_s8 + $0x14b0] sm:$0xff] }
0x12c2   :  { %17818 = vmatpush1.bf16.msra.mxu0 %v17817_v28  ;;  %v18093_v28 = vpack.c.bf16 %v12288_v31, %v12280_v32  ;;  %v18111_v32 = vpack.c.bf16 %v12369_v51, %v12361_v39  ;;  %v12375_v31 = vld [vmem:[%s27293_s8 + $0x1528] sm:$0xff]  ;;  %v12449_v39 = vld [vmem:[%s27293_s8 + $0x1778] sm:$0xff] }
0x12c3   :  { %18074 = vmatpush1.bf16.msra.mxu1 %v18073_v6  ;;  %17820 = vmatprep.subr.bf16.mxu0 %v17819_v47  ;;  %v17839_v6 = vpack.c.bf16 %v12303_v21, %v12295_v53  ;;  %v12294_v47 = vld [vmem:[%s27293_s8 + $0x12a0] sm:$0xff]  ;;  %v12383_v53 = vld [vmem:[%s27293_s8 + $0x1568] sm:$0xff]  ;;  %v12377_v21 = vld [vmem:[%s27293_s8 + $0x1538] sm:$0xff] }
0x12c4   :  { %18076 = vmatprep.subr.bf16.mxu1 %v18075_v30  ;;  %v18095_v30 = vpack.c.bf16 %v12305_v52, %v12297_v54  ;;  %v17841_v59 = vpack.c.bf16 %v12302_v27, %v12294_v47  ;;  %v12385_v54 = vld [vmem:[%s27293_s8 + $0x1578] sm:$0xff]  ;;  %v12382_v47 = vld [vmem:[%s27293_s8 + $0x1560] sm:$0xff]  ;;  %v12376_v27 = vld [vmem:[%s27293_s8 + $0x1530] sm:$0xff] }
0x12c5   :  { %13468 = vmatmul.mubr.f32.vlgmr.msra.gmra.mrb[246].mxu0 %v24920_v25  ;;  %v18115_v1 = vpack.c.bf16 %v12385_v54, %v12377_v21  ;;  %v12465_v21 = vld [vmem:[%s27293_s8 + $0x17f8] sm:$0xff] }
0x12c6   :  { %13752 = vmatmul.mubr.f32.vlgmr.msra.gmra.mrb[22].mxu1 %v24920_v25  ;;  %17822 = vmatpush1.bf16.msra.mxu0 %v17821_v50  ;;  %v18083_v25 = vpack.c.bf16 %v12257_v0, %v12249_v18  ;;  %v12321_v50 = vld [vmem:[%s27293_s8 + $0x1378] sm:$0xff]  ;;  %v17845_v0 = vpack.c.bf16 %v12318_v48, %v12310_v34  ;;  %v12398_v34 = vld [vmem:[%s27293_s8 + $0x15e0] sm:$0xff]  ;;  %v12392_v48 = vld [vmem:[%s27293_s8 + $0x15b0] sm:$0xff] }
0x12c7   :  { %13538 = vmatprep.mubr.f32.mxu0 %v24933_v37  ;;  %18078 = vmatpush1.bf16.msra.mxu1 %v18077_v5  ;;  %v17843_v5 = vpack.c.bf16 %v12319_v57, %v12311_v19  ;;  %v12337_v18 = vld [vmem:[%s27293_s8 + $0x13f8] sm:$0xff]  ;;  %v12399_v19 = vld [vmem:[%s27293_s8 + $0x15e8] sm:$0xff] }
0x12c8   :  { %13822 = vmatprep.mubr.f32.mxu1 %v24933_v37  ;;  %17824 = vmatprep.subr.bf16.mxu0 %v17823_v42  ;;  %v12273_v37 = vld [vmem:[%s27293_s8 + $0x11f8] sm:$0xff]  ;;  %v18099_v42 = vpack.c.bf16 %v12321_v50, %v12313_v15 }
0x12c9   :  { %18080 = vmatprep.subr.bf16.mxu1 %v18079_v55  ;;  %v18087_v9 = vpack.c.bf16 %v12273_v37, %v12265_v29  ;;  %v12329_v55 = vld [vmem:[%s27293_s8 + $0x13b8] sm:$0xff] }
0x12ca   :  { %17826 = vmatpush1.bf16.msra.mxu0 %v17825_v16  ;;  %v18101_v16 = vpack.c.bf16 %v12320_v36, %v12312_v11  ;;  %v18103_v46 = vpack.c.bf16 %v12337_v18, %v12329_v55  ;;  %v12353_v29 = vld [vmem:[%s27293_s8 + $0x1478] sm:$0xff]  ;;  %v12407_v36 = vld [vmem:[%s27293_s8 + $0x1628] sm:$0xff] }
0x12cb   :  { %18082 = vmatpush1.bf16.msra.mxu1 %v18081_v33  ;;  %17828 = vmatprep.subr.bf16.mxu0 %v17827_v41  ;;  %v17847_v33 = vpack.c.bf16 %v12335_v63, %v12327_v7  ;;  %v12326_v41 = vld [vmem:[%s27293_s8 + $0x13a0] sm:$0xff]  ;;  %v18107_v45 = vpack.c.bf16 %v12353_v29, %v12345_v10  ;;  %v12393_v57 = vld [vmem:[%s27293_s8 + $0x15b8] sm:$0xff]  ;;  %v12415_v7 = vld [vmem:[%s27293_s8 + $0x1668] sm:$0xff] }
0x12cc   :  { %18084 = vmatprep.subr.bf16.mxu1 %v18083_v25  ;;  %v12336_v25 = vld [vmem:[%s27293_s8 + $0x13f0] sm:$0xff]  ;;  %v17849_v37 = vpack.c.bf16 %v12334_v40, %v12326_v41  ;;  %v12401_v15 = vld [vmem:[%s27293_s8 + $0x15f8] sm:$0xff]  ;;  %v12414_v41 = vld [vmem:[%s27293_s8 + $0x1660] sm:$0xff] }
0x12cd   :  { %v18119_v11 = vpack.c.bf16 %v12401_v15, %v12393_v57  ;;  %v12409_v63 = vld [vmem:[%s27293_s8 + $0x1638] sm:$0xff]  ;;  %v12408_v40 = vld [vmem:[%s27293_s8 + $0x1630] sm:$0xff] }
0x12ce   :  { %17830 = vmatpush1.bf16.msra.mxu0 %v17829_v38  ;;  %v18105_v38 = vpack.c.bf16 %v12336_v25, %v12328_v62  ;;  %v12417_v55 = vld [vmem:[%s27293_s8 + $0x1678] sm:$0xff]  ;;  %v12423_v25 = vld [vmem:[%s27293_s8 + $0x16a8] sm:$0xff] }
0x12cf   :  { %18086 = vmatpush1.bf16.msra.mxu1 %v18085_v17  ;;  %17832 = vmatprep.subr.bf16.mxu0 %v17831_v4  ;;  %v17851_v17 = vpack.c.bf16 %v12351_v14, %v12343_v60  ;;  %v12342_v4 = vld [vmem:[%s27293_s8 + $0x1420] sm:$0xff]  ;;  %v18123_v62 = vpack.c.bf16 %v12417_v55, %v12409_v63  ;;  %v12431_v60 = vld [vmem:[%s27293_s8 + $0x16e8] sm:$0xff]  ;;  %v12425_v14 = vld [vmem:[%s27293_s8 + $0x16b8] sm:$0xff] }
0x12d0   :  { %18088 = vmatprep.subr.bf16.mxu1 %v18087_v9  ;;  %v12352_v9 = vld [vmem:[%s27293_s8 + $0x1470] sm:$0xff]  ;;  %v17853_v43 = vpack.c.bf16 %v12350_v13, %v12342_v4  ;;  %v12433_v10 = vld [vmem:[%s27293_s8 + $0x16f8] sm:$0xff]  ;;  %v12430_v4 = vld [vmem:[%s27293_s8 + $0x16e0] sm:$0xff] }
0x12d1   :  { %v12424_v13 = vld [vmem:[%s27293_s8 + $0x16b0] sm:$0xff]  ;;  %v12481_v57 = vld [vmem:[%s27293_s8 + $0x1878] sm:$0xff] }
0x12d2   :  { %17834 = vmatpush1.bf16.msra.mxu0 %v17833_v58  ;;  %v18109_v58 = vpack.c.bf16 %v12352_v9, %v12344_v2  ;;  %v18127_v2 = vpack.c.bf16 %v12433_v10, %v12425_v14  ;;  %v12439_v9 = vld [vmem:[%s27293_s8 + $0x1728] sm:$0xff]  ;;  %v12489_v63 = vld [vmem:[%s27293_s8 + $0x18b8] sm:$0xff] }
0x12d3   :  { %18090 = vmatpush1.bf16.msra.mxu1 %v18089_v8  ;;  %17836 = vmatprep.subr.bf16.mxu0 %v17835_v3  ;;  %v17855_v8 = vpack.c.bf16 %v12367_v44, %v12359_v56  ;;  %v12358_v3 = vld [vmem:[%s27293_s8 + $0x14a0] sm:$0xff]  ;;  %v12447_v56 = vld [vmem:[%s27293_s8 + $0x1768] sm:$0xff]  ;;  %v12441_v44 = vld [vmem:[%s27293_s8 + $0x1738] sm:$0xff] }
0x12d4   :  { %18092 = vmatprep.subr.bf16.mxu1 %v18091_v24  ;;  %v12368_v24 = vld [vmem:[%s27293_s8 + $0x14f0] sm:$0xff]  ;;  %v17857_v52 = vpack.c.bf16 %v12366_v20, %v12358_v3  ;;  %v12446_v3 = vld [vmem:[%s27293_s8 + $0x1760] sm:$0xff]  ;;  %v12497_v55 = vld [vmem:[%s27293_s8 + $0x18f8] sm:$0xff] }
0x12d5   :  { %v12440_v20 = vld [vmem:[%s27293_s8 + $0x1730] sm:$0xff]  ;;  %v12513_v14 = vld [vmem:[%s27293_s8 + $0x1978] sm:$0xff] }
0x12d6   :  { %17838 = vmatpush1.bf16.msra.mxu0 %v17837_v35  ;;  %v18113_v35 = vpack.c.bf16 %v12368_v24, %v12360_v26  ;;  %v18131_v26 = vpack.c.bf16 %v12449_v39, %v12441_v44  ;;  %v12455_v24 = vld [vmem:[%s27293_s8 + $0x17a8] sm:$0xff] }
0x12d7   :  { %18094 = vmatpush1.bf16.msra.mxu1 %v18093_v28  ;;  %17840 = vmatprep.subr.bf16.mxu0 %v17839_v6  ;;  %v17859_v28 = vpack.c.bf16 %v12383_v53, %v12375_v31  ;;  %v12374_v6 = vld [vmem:[%s27293_s8 + $0x1520] sm:$0xff]  ;;  %v12463_v31 = vld [vmem:[%s27293_s8 + $0x17e8] sm:$0xff]  ;;  %v12457_v53 = vld [vmem:[%s27293_s8 + $0x17b8] sm:$0xff] }
0x12d8   :  { %18096 = vmatprep.subr.bf16.mxu1 %v18095_v30  ;;  %v12384_v30 = vld [vmem:[%s27293_s8 + $0x1570] sm:$0xff]  ;;  %v17861_v50 = vpack.c.bf16 %v12382_v47, %v12374_v6  ;;  %v12462_v6 = vld [vmem:[%s27293_s8 + $0x17e0] sm:$0xff] }
0x12d9   :  { %v12456_v47 = vld [vmem:[%s27293_s8 + $0x17b0] sm:$0xff] }
0x12da   :  { %17842 = vmatpush1.bf16.msra.mxu0 %v17841_v59  ;;  %v18117_v59 = vpack.c.bf16 %v12384_v30, %v12376_v27  ;;  %v18135_v27 = vpack.c.bf16 %v12465_v21, %v12457_v53  ;;  %v12471_v30 = vld [vmem:[%s27293_s8 + $0x1828] sm:$0xff] }
0x12db   :  { %18098 = vmatpush1.bf16.msra.mxu1 %v18097_v61  ;;  %17844 = vmatprep.subr.bf16.mxu0 %v17843_v5  ;;  %v17863_v61 = vpack.c.bf16 %v12399_v19, %v12391_v49  ;;  %v12390_v5 = vld [vmem:[%s27293_s8 + $0x15a0] sm:$0xff]  ;;  %v12479_v49 = vld [vmem:[%s27293_s8 + $0x1868] sm:$0xff]  ;;  %v12473_v19 = vld [vmem:[%s27293_s8 + $0x1838] sm:$0xff] }
0x12dc   :  { %18100 = vmatprep.subr.bf16.mxu1 %v18099_v42  ;;  %v12400_v42 = vld [vmem:[%s27293_s8 + $0x15f0] sm:$0xff]  ;;  %v17865_v18 = vpack.c.bf16 %v12398_v34, %v12390_v5  ;;  %v12478_v5 = vld [vmem:[%s27293_s8 + $0x1860] sm:$0xff]  ;;  %v18139_v34 = vpack.c.bf16 %v12481_v57, %v12473_v19  ;;  %v27338_v57 = vld [vmem:[#allocation5_spill] sm:$0xff] }
0x12dd   :  { %v26981_v19 = vld [vmem:[%s27294_s9] sm:$0xff] }
0x12de   :  { %17846 = vmatpush1.bf16.msra.mxu0 %v17845_v0  ;;  %v18121_v0 = vpack.c.bf16 %v12400_v42, %v12392_v48  ;;  %v12472_v48 = vld [vmem:[%s27293_s8 + $0x1830] sm:$0xff]  ;;  %v12487_v42 = vld [vmem:[%s27293_s8 + $0x18a8] sm:$0xff] }
0x12df   :  { %18102 = vmatpush1.bf16.msra.mxu1 %v18101_v16  ;;  %17848 = vmatprep.subr.bf16.mxu0 %v17847_v33  ;;  %v17867_v16 = vpack.c.bf16 %v12415_v7, %v12407_v36  ;;  %v12406_v33 = vld [vmem:[%s27293_s8 + $0x1620] sm:$0xff]  ;;  %v12495_v36 = vld [vmem:[%s27293_s8 + $0x18e8] sm:$0xff] }
0x12e0   :  { %18104 = vmatprep.subr.bf16.mxu1 %v18103_v46  ;;  %v12416_v46 = vld [vmem:[%s27293_s8 + $0x1670] sm:$0xff]  ;;  %v17869_v29 = vpack.c.bf16 %v12414_v41, %v12406_v33  ;;  %v17887_v41 = vpack.c.bf16 %v12495_v36, %v12487_v42 }
0x12e1   :  { %v12488_v33 = vld [vmem:[%s27293_s8 + $0x18b0] sm:$0xff] }
0x12e2   :  { %17850 = vmatpush1.bf16.msra.mxu0 %v17849_v37  ;;  %v18125_v37 = vpack.c.bf16 %v12416_v46, %v12408_v40  ;;  %v12496_v40 = vld [vmem:[%s27293_s8 + $0x18f0] sm:$0xff]  ;;  %v12511_v46 = vld [vmem:[%s27293_s8 + $0x1968] sm:$0xff] }
0x12e3   :  { %18106 = vmatpush1.bf16.msra.mxu1 %v18105_v38  ;;  %17852 = vmatprep.subr.bf16.mxu0 %v17851_v17  ;;  %v17871_v38 = vpack.c.bf16 %v12431_v60, %v12423_v25  ;;  %v12422_v17 = vld [vmem:[%s27293_s8 + $0x16a0] sm:$0xff]  ;;  %v18143_v25 = vpack.c.bf16 %v12497_v55, %v12489_v63  ;;  %v12505_v60 = vld [vmem:[%s27293_s8 + $0x1938] sm:$0xff]  ;;  %v12552_v42 = vld [vmem:[%s27293_s8 + $0x1ab0] sm:$0xff] }
0x12e4   :  { %18108 = vmatprep.subr.bf16.mxu1 %v18107_v45  ;;  %v12432_v45 = vld [vmem:[%s27293_s8 + $0x16f0] sm:$0xff]  ;;  %v17873_v51 = vpack.c.bf16 %v12430_v4, %v12422_v17  ;;  %v12510_v17 = vld [vmem:[%s27293_s8 + $0x1960] sm:$0xff]  ;;  %v12567_v63 = vld [vmem:[%s27293_s8 + $0x1b28] sm:$0xff] }
0x12e5   :  { %v12504_v4 = vld [vmem:[%s27293_s8 + $0x1930] sm:$0xff]  ;;  %v12575_v55 = vld [vmem:[%s27293_s8 + $0x1b68] sm:$0xff] }
0x12e6   :  { %17854 = vmatpush1.bf16.msra.mxu0 %v17853_v43  ;;  %v18129_v43 = vpack.c.bf16 %v12432_v45, %v12424_v13  ;;  %v12512_v13 = vld [vmem:[%s27293_s8 + $0x1970] sm:$0xff]  ;;  %v12527_v45 = vld [vmem:[%s27293_s8 + $0x19e8] sm:$0xff] }
0x12e7   :  { %18110 = vmatpush1.bf16.msra.mxu1 %v18109_v58  ;;  %17856 = vmatprep.subr.bf16.mxu0 %v17855_v8  ;;  %v17875_v58 = vpack.c.bf16 %v12447_v56, %v12439_v9  ;;  %v12438_v8 = vld [vmem:[%s27293_s8 + $0x1720] sm:$0xff]  ;;  %v12521_v9 = vld [vmem:[%s27293_s8 + $0x19b8] sm:$0xff]  ;;  %v18149_v44 = vpack.c.bf16 %v12512_v13, %v12504_v4  ;;  %v12583_v13 = vld [vmem:[%s27293_s8 + $0x1ba8] sm:$0xff] }
0x12e8   :  { %18112 = vmatprep.subr.bf16.mxu1 %v18111_v32  ;;  %v12448_v32 = vld [vmem:[%s27293_s8 + $0x1770] sm:$0xff]  ;;  %v17877_v54 = vpack.c.bf16 %v12446_v3, %v12438_v8 }
0x12e9   :  { %v12528_v3 = vld [vmem:[%s27293_s8 + $0x19f0] sm:$0xff] }
0x12ea   :  { %17858 = vmatpush1.bf16.msra.mxu0 %v17857_v52  ;;  %v18133_v52 = vpack.c.bf16 %v12448_v32, %v12440_v20  ;;  %v12535_v20 = vld [vmem:[%s27293_s8 + $0x1a28] sm:$0xff]  ;;  %v12537_v32 = vld [vmem:[%s27293_s8 + $0x1a38] sm:$0xff] }
0x12eb   :  { %18114 = vmatpush1.bf16.msra.mxu1 %v18113_v35  ;;  %17860 = vmatprep.subr.bf16.mxu0 %v17859_v28  ;;  %v17879_v35 = vpack.c.bf16 %v12463_v31, %v12455_v24  ;;  %v12454_v28 = vld [vmem:[%s27293_s8 + $0x17a0] sm:$0xff]  ;;  %v12545_v24 = vld [vmem:[%s27293_s8 + $0x1a78] sm:$0xff] }
0x12ec   :  { %18116 = vmatprep.subr.bf16.mxu1 %v18115_v1  ;;  %v12464_v1 = vld [vmem:[%s27293_s8 + $0x17f0] sm:$0xff]  ;;  %v17881_v15 = vpack.c.bf16 %v12462_v6, %v12454_v28  ;;  %v18155_v28 = vpack.c.bf16 %v12545_v24, %v12537_v32  ;;  %v12582_v32 = vld [vmem:[%s27293_s8 + $0x1ba0] sm:$0xff] }
0x12ed   :  { %v12544_v6 = vld [vmem:[%s27293_s8 + $0x1a70] sm:$0xff]  ;;  %v12590_v24 = vld [vmem:[%s27293_s8 + $0x1be0] sm:$0xff] }
0x12ee   :  { %17862 = vmatpush1.bf16.msra.mxu0 %v17861_v50  ;;  %v18137_v50 = vpack.c.bf16 %v12464_v1, %v12456_v47  ;;  %v12551_v47 = vld [vmem:[%s27293_s8 + $0x1aa8] sm:$0xff]  ;;  %v12553_v1 = vld [vmem:[%s27293_s8 + $0x1ab8] sm:$0xff] }
0x12ef   :  { %18118 = vmatpush1.bf16.msra.mxu1 %v18117_v59  ;;  %17864 = vmatprep.subr.bf16.mxu0 %v17863_v61  ;;  %v17883_v59 = vpack.c.bf16 %v12479_v49, %v12471_v30  ;;  %v12470_v61 = vld [vmem:[%s27293_s8 + $0x1820] sm:$0xff]  ;;  %v12561_v30 = vld [vmem:[%s27293_s8 + $0x1af8] sm:$0xff] }
0x12f0   :  { %18120 = vmatprep.subr.bf16.mxu1 %v18119_v11  ;;  %v12480_v11 = vld [vmem:[%s27293_s8 + $0x1870] sm:$0xff]  ;;  %v17885_v7 = vpack.c.bf16 %v12478_v5, %v12470_v61  ;;  %v12738_v5 = vsub.s32 3, %v27338_v57  ;;  %v18159_v36 = vpack.c.bf16 %v12561_v30, %v12553_v1  ;;  %v17913_v1 = vpack.c.bf16 %v12590_v24, %v12582_v32  ;;  %v12665_v32 = vld [vmem:[%s27293_s8 + $0x1e38] sm:$0xff] }
0x12f1   :  { %v12673_v24 = vld [vmem:[%s27293_s8 + $0x1e78] sm:$0xff] }
0x12f2   :  { %17866 = vmatpush1.bf16.msra.mxu0 %v17865_v18  ;;  %v18141_v18 = vpack.c.bf16 %v12480_v11, %v12472_v48  ;;  %v12550_v48 = vld [vmem:[%s27293_s8 + $0x1aa0] sm:$0xff] }
0x12f3   :  { %18122 = vmatpush1.bf16.msra.mxu1 %v18121_v0  ;;  %17868 = vmatprep.subr.bf16.mxu0 %v17867_v16  ;;  %v12486_v0 = vld [vmem:[%s27293_s8 + $0x18a0] sm:$0xff] }
0x12f4   :  { %18124 = vmatprep.subr.bf16.mxu1 %v18123_v62  ;;  %v12494_v16 = vld [vmem:[%s27293_s8 + $0x18e0] sm:$0xff]  ;;  %v12503_v62 = vld [vmem:[%s27293_s8 + $0x1928] sm:$0xff] }
0x12f5   :  { %v17889_v10 = vpack.c.bf16 %v12494_v16, %v12486_v0  ;;  %v12558_v11 = vld [vmem:[%s27293_s8 + $0x1ae0] sm:$0xff]  ;;  %v12569_v16 = vld [vmem:[%s27293_s8 + $0x1b38] sm:$0xff] }
0x12f6   :  { %17870 = vmatpush1.bf16.msra.mxu0 %v17869_v29  ;;  %v18145_v29 = vpack.c.bf16 %v12496_v40, %v12488_v33  ;;  %v12577_v33 = vld [vmem:[%s27293_s8 + $0x1b78] sm:$0xff]  ;;  %v27340_v40 = vsub.s32 1, %v27338_v57 }
0x12f7   :  { %18126 = vmatpush1.bf16.msra.mxu1 %v18125_v37  ;;  %17872 = vmatprep.subr.bf16.mxu0 %v17871_v38  ;;  %v17891_v37 = vpack.c.bf16 %v12511_v46, %v12503_v62  ;;  %v12502_v38 = vld [vmem:[%s27293_s8 + $0x1920] sm:$0xff]  ;;  %v18163_v4 = vpack.c.bf16 %v12577_v33, %v12569_v16  ;;  %v12616_v33 = vld [vmem:[%s27293_s8 + $0x1cb0] sm:$0xff] }
0x12f8   :  { %18128 = vmatprep.subr.bf16.mxu1 %v18127_v2  ;;  %v12519_v2 = vld [vmem:[%s27293_s8 + $0x19a8] sm:$0xff]  ;;  %v17893_v56 = vpack.c.bf16 %v12510_v17, %v12502_v38  ;;  %v12731_v62 = vrot.slane %v26981_v19, %v27340_v40  ;;  %v12568_v38 = vld [vmem:[%s27293_s8 + $0x1b30] sm:$0xff]  ;;  %v12622_v16 = vld [vmem:[%s27293_s8 + $0x1ce0] sm:$0xff] }
0x12f9   :  { %v17895_v39 = vpack.c.bf16 %v12527_v45, %v12519_v2  ;;  %v12591_v2 = vld [vmem:[%s27293_s8 + $0x1be8] sm:$0xff]  ;;  %v12624_v40 = vld [vmem:[%s27293_s8 + $0x1cf0] sm:$0xff] }
0x12fa   :  { %17874 = vmatpush1.bf16.msra.mxu0 %v17873_v51  ;;  %v12518_v51 = vld [vmem:[%s27293_s8 + $0x19a0] sm:$0xff] }
0x12fb   :  { %18130 = vmatpush1.bf16.msra.mxu1 %v18129_v43  ;;  %17876 = vmatprep.subr.bf16.mxu0 %v17875_v58  ;;  %v12526_v43 = vld [vmem:[%s27293_s8 + $0x19e0] sm:$0xff]  ;;  %v12520_v58 = vld [vmem:[%s27293_s8 + $0x19b0] sm:$0xff] }
0x12fc   :  { %18132 = vmatprep.subr.bf16.mxu1 %v18131_v26  ;;  %v12543_v26 = vld [vmem:[%s27293_s8 + $0x1a68] sm:$0xff]  ;;  %v17897_v31 = vpack.c.bf16 %v12526_v43, %v12518_v51  ;;  %v18153_v53 = vpack.c.bf16 %v12528_v3, %v12520_v58 }
0x12fd   :  { %v17899_v21 = vpack.c.bf16 %v12543_v26, %v12535_v20  ;;  %v17911_v26 = vpack.c.bf16 %v12591_v2, %v12583_v13  ;;  %v12647_v13 = vld [vmem:[%s27293_s8 + $0x1da8] sm:$0xff] }
0x12fe   :  { %17878 = vmatpush1.bf16.msra.mxu0 %v17877_v54  ;;  %v12534_v54 = vld [vmem:[%s27293_s8 + $0x1a20] sm:$0xff]  ;;  %v12655_v2 = vld [vmem:[%s27293_s8 + $0x1de8] sm:$0xff] }
0x12ff   :  { %18134 = vmatpush1.bf16.msra.mxu1 %v18133_v52  ;;  %17880 = vmatprep.subr.bf16.mxu0 %v17879_v35  ;;  %v12542_v52 = vld [vmem:[%s27293_s8 + $0x1a60] sm:$0xff]  ;;  %v12536_v35 = vld [vmem:[%s27293_s8 + $0x1a30] sm:$0xff] }
0x1300   :  { %18136 = vmatprep.subr.bf16.mxu1 %v18135_v27  ;;  %v12559_v27 = vld [vmem:[%s27293_s8 + $0x1ae8] sm:$0xff]  ;;  %v17901_v49 = vpack.c.bf16 %v12542_v52, %v12534_v54  ;;  %v18157_v61 = vpack.c.bf16 %v12544_v6, %v12536_v35  ;;  %v12592_v54 = vld [vmem:[%s27293_s8 + $0x1bf0] sm:$0xff]  ;;  %v12601_v6 = vld [vmem:[%s27293_s8 + $0x1c38] sm:$0xff] }
0x1301   :  { %v12599_v52 = vld [vmem:[%s27293_s8 + $0x1c28] sm:$0xff] }
0x1302   :  { %17882 = vmatpush1.bf16.msra.mxu0 %v17881_v15  ;;  %v12734_v15 = vsub.s32 2, %v27338_v57  ;;  %v12607_v35 = vld [vmem:[%s27293_s8 + $0x1c68] sm:$0xff] }
0x1303   :  { %18138 = vmatpush1.bf16.msra.mxu1 %v18137_v50  ;;  %17884 = vmatprep.subr.bf16.mxu0 %v17883_v59  ;;  %v19834_v50 = vmov 1966171168  }
0x1304   :  { %18140 = vmatprep.subr.bf16.mxu1 %v18139_v34  ;;  %v13913_v59 = vunpack.c.l.s4 %v19834_v50  ;;  %v17903_v34 = vpack.c.bf16 %v12559_v27, %v12551_v47  ;;  %v12609_v47 = vld [vmem:[%s27293_s8 + $0x1c78] sm:$0xff]  ;;  %v12598_v50 = vld [vmem:[%s27293_s8 + $0x1c20] sm:$0xff] }
0x1305   :  { %13539 = vmatmul.mubr.f32.vlgmr.msra.gmra.mrb[246].mxu0 %v25318_v23 }
0x1306   :  { %13823 = vmatmul.mubr.f32.vlgmr.msra.gmra.mrb[22].mxu1 %v25318_v23  ;;  %17886 = vmatpush1.bf16.msra.mxu0 %v17885_v7  ;;  %v18147_v23 = vpack.c.bf16 %v12513_v14, %v12505_v60  ;;  %v12560_v7 = vld [vmem:[%s27293_s8 + $0x1af0] sm:$0xff]  ;;  %v13914_v46 = vunpack.c.0.s8 %v13913_v59  ;;  %v12739_v60 = vrot.slane %v26981_v19, %v12738_v5  ;;  %v12606_v59 = vld [vmem:[%s27293_s8 + $0x1c60] sm:$0xff]  ;;  %v18171_v5 = vpack.c.bf16 %v12609_v47, %v12601_v6  ;;  %v12679_v47 = vld [vmem:[%s27293_s8 + $0x1ea8] sm:$0xff] }
0x1307   :  { %13609 = vmatprep.mubr.f32.mxu0 %v25339_v22  ;;  %18142 = vmatpush1.bf16.msra.mxu1 %v18141_v18  ;;  %v27339_v18 = vsub.s32 0, %v27338_v57  ;;  %v18161_v14 = vpack.c.bf16 %v12560_v7, %v12552_v42  ;;  %v12617_v42 = vld [vmem:[%s27293_s8 + $0x1cb8] sm:$0xff]  ;;  %v12672_v6 = vld [vmem:[%s27293_s8 + $0x1e70] sm:$0xff] }
0x1308   :  { %13893 = vmatprep.mubr.f32.mxu1 %v25339_v22  ;;  %17888 = vmatprep.subr.bf16.mxu0 %v17887_v41  ;;  %v12529_v22 = vld [vmem:[%s27293_s8 + $0x19f8] sm:$0xff]  ;;  %v12735_v41 = vrot.slane %v26981_v19, %v12734_v15  ;;  %v27042_v43 = vsub.s32 %v13914_v46, %v27338_v57  ;;  %v17915_v15 = vpack.c.bf16 %v12607_v35, %v12599_v52  ;;  %v12639_v46 = vld [vmem:[%s27293_s8 + $0x1d68] sm:$0xff]  ;;  %v12670_v52 = vld [vmem:[%s27293_s8 + $0x1e60] sm:$0xff] }
0x1309   :  { %18144 = vmatprep.subr.bf16.mxu1 %v18143_v25  ;;  %v18151_v8 = vpack.c.bf16 %v12529_v22, %v12521_v9  ;;  %v12727_v0 = vrot.slane %v26981_v19, %v27339_v18  ;;  %v17905_v25 = vpack.c.bf16 %v12558_v11, %v12550_v48  ;;  %v12615_v48 = vld [vmem:[%s27293_s8 + $0x1ca8] sm:$0xff]  ;;  %v12664_v35 = vld [vmem:[%s27293_s8 + $0x1e30] sm:$0xff] }
0x130a   :  { %17890 = vmatpush1.bf16.msra.mxu0 %v17889_v10  ;;  %v17907_v10 = vpack.c.bf16 %v12575_v55, %v12567_v63  ;;  %v12623_v11 = vld [vmem:[%s27293_s8 + $0x1ce8] sm:$0xff]  ;;  %v17917_v63 = vpack.c.bf16 %v12606_v59, %v12598_v50  ;;  %v18189_v59 = vpack.c.bf16 %v12672_v6, %v12664_v35 }
0x130b   :  { %18146 = vmatpush1.bf16.msra.mxu1 %v18145_v29  ;;  %17892 = vmatprep.subr.bf16.mxu0 %v17891_v37  ;;  %v12566_v29 = vld [vmem:[%s27293_s8 + $0x1b20] sm:$0xff]  ;;  %v17919_v18 = vpack.c.bf16 %v12623_v11, %v12615_v48  ;;  %v12680_v48 = vld [vmem:[%s27293_s8 + $0x1eb0] sm:$0xff] }
0x130c   :  { %18148 = vmatprep.subr.bf16.mxu1 %v18147_v23  ;;  %v12574_v37 = vld [vmem:[%s27293_s8 + $0x1b60] sm:$0xff]  ;;  %v12576_v23 = vld [vmem:[%s27293_s8 + $0x1b70] sm:$0xff] }
0x130d   :  { %v18165_v20 = vpack.c.bf16 %v12576_v23, %v12568_v38  ;;  %v12638_v38 = vld [vmem:[%s27293_s8 + $0x1d60] sm:$0xff]  ;;  %v12640_v23 = vld [vmem:[%s27293_s8 + $0x1d70] sm:$0xff] }
0x130e   :  { %17894 = vmatpush1.bf16.msra.mxu0 %v17893_v56  ;;  %v12585_v56 = vld [vmem:[%s27293_s8 + $0x1bb8] sm:$0xff] }
0x130f   :  { %18150 = vmatpush1.bf16.msra.mxu1 %v18149_v44  ;;  %17896 = vmatprep.subr.bf16.mxu0 %v17895_v39  ;;  %v12593_v44 = vld [vmem:[%s27293_s8 + $0x1bf8] sm:$0xff] }
0x1310   :  { %18152 = vmatprep.subr.bf16.mxu1 %v18151_v8  ;;  %v17909_v8 = vpack.c.bf16 %v12574_v37, %v12566_v29  ;;  %v12630_v37 = vld [vmem:[%s27293_s8 + $0x1d20] sm:$0xff] }
0x1312   :  { %17898 = vmatpush1.bf16.msra.mxu0 %v17897_v31  ;;  %v12584_v31 = vld [vmem:[%s27293_s8 + $0x1bb0] sm:$0xff] }
0x1313   :  { %18154 = vmatpush1.bf16.msra.mxu1 %v18153_v53  ;;  %17900 = vmatprep.subr.bf16.mxu0 %v17899_v21  ;;  %v18167_v21 = vpack.c.bf16 %v12593_v44, %v12585_v56  ;;  %v17927_v44 = vpack.c.bf16 %v12655_v2, %v12647_v13  ;;  %v12712_v2 = vld [vmem:[%s27293_s8 + $0x1fb0] sm:$0xff] }
0x1314   :  { %18156 = vmatprep.subr.bf16.mxu1 %v18155_v28 }
0x1316   :  { %17902 = vmatpush1.bf16.msra.mxu0 %v17901_v49  ;;  %v18169_v49 = vpack.c.bf16 %v12592_v54, %v12584_v31  ;;  %v12662_v54 = vld [vmem:[%s27293_s8 + $0x1e20] sm:$0xff] }
0x1317   :  { %18158 = vmatpush1.bf16.msra.mxu1 %v18157_v61  ;;  %17904 = vmatprep.subr.bf16.mxu0 %v17903_v34  ;;  %v12600_v61 = vld [vmem:[%s27293_s8 + $0x1c30] sm:$0xff]  ;;  %v17933_v50 = vpack.c.bf16 %v12670_v52, %v12662_v54 }
0x1318   :  { %v13043_v17 = vpop.f32.mrb[244].mxu0  ;;  %18160 = vmatprep.subr.bf16.mxu1 %v18159_v36  ;;  %v12608_v34 = vld [vmem:[%s27293_s8 + $0x1c70] sm:$0xff]  ;;  %v12625_v36 = vld [vmem:[%s27293_s8 + $0x1cf8] sm:$0xff] }
0x1319   :  { %v18207_v45 = vadd.f32 %v13043_v17, %v12727_v0  ;;  %v13327_v9 = vpop.f32.mrb[20].mxu1  ;;  %v13045_v22 = vpop.f32.mrb[245].mxu0  ;;  %v18173_v55 = vpack.c.bf16 %v12608_v34, %v12600_v61  ;;  %v12614_v0 = vld [vmem:[%s27293_s8 + $0x1ca0] sm:$0xff]  ;;  %v12632_v17 = vld [vmem:[%s27293_s8 + $0x1d30] sm:$0xff] }
0x131a   :  { %v18209_v39 = vadd.f32 %v13327_v9, %v12735_v41  ;;  %v18208_v51 = vadd.f32 %v13045_v22, %v12731_v62  ;;  %v13329_v58 = vpop.f32.mrb[21].mxu1  ;;  %17906 = vmatpush1.bf16.msra.mxu0 %v17905_v25  ;;  %v18175_v41 = vpack.c.bf16 %v12625_v36, %v12617_v42  ;;  %v12631_v62 = vld [vmem:[%s27293_s8 + $0x1d28] sm:$0xff]  ;;  %v12633_v25 = vld [vmem:[%s27293_s8 + $0x1d38] sm:$0xff]  ;;  %v17925_v22 = vpack.c.bf16 %v12638_v38, %v12630_v37  ;;  %v12686_v34 = vld [vmem:[%s27293_s8 + $0x1ee0] sm:$0xff] }
0x131b   :  { %v18210_v3 = vadd.f32 %v13329_v58, %v12739_v60  ;;  %18162 = vmatpush1.bf16.msra.mxu1 %v18161_v14  ;;  %17908 = vmatprep.subr.bf16.mxu0 %v17907_v10  ;;  %v12641_v60 = vld [vmem:[%s27293_s8 + $0x1d78] sm:$0xff]  ;;  %v17921_v14 = vpack.c.bf16 %v12622_v16, %v12614_v0  ;;  %v18177_v10 = vpack.c.bf16 %v12624_v40, %v12616_v33  ;;  %v12648_v58 = vld [vmem:[%s27293_s8 + $0x1db0] sm:$0xff]  ;;  %v12695_v36 = vld [vmem:[%s27293_s8 + $0x1f28] sm:$0xff] }
0x131c   :  { %v13908_v53 = vcombine.low %v18207_v45, %v18208_v51  ;;  %18164 = vmatprep.subr.bf16.mxu1 %v18163_v4  ;;  %v17923_v29 = vpack.c.bf16 %v12639_v46, %v12631_v62  ;;  %v18179_v4 = vpack.c.bf16 %v12641_v60, %v12633_v25  ;;  %v12649_v45 = vld [vmem:[%s27293_s8 + $0x1db8] sm:$0xff]  ;;  %v18181_v56 = vpack.c.bf16 %v12640_v23, %v12632_v17  ;;  %v12654_v51 = vld [vmem:[%s27293_s8 + $0x1de0] sm:$0xff]  ;;  %v12688_v42 = vld [vmem:[%s27293_s8 + $0x1ef0] sm:$0xff] }
0x131d   :  { %v13909_v28 = vcombine.low %v18209_v39, %v18210_v3  ;;  %v12657_v9 = vld [vmem:[%s27293_s8 + $0x1df8] sm:$0xff]  ;;  %v12646_v39 = vld [vmem:[%s27293_s8 + $0x1da0] sm:$0xff]  ;;  %v12656_v3 = vld [vmem:[%s27293_s8 + $0x1df0] sm:$0xff]  ;;  %v18193_v16 = vpack.c.bf16 %v12688_v42, %v12680_v48 }
0x131e   :  { %v27069_v27 = vrot.slane %v13908_v53, %v27042_v43  ;;  %17910 = vmatpush1.bf16.msra.mxu0 %v17909_v8  ;;  %v18183_v8 = vpack.c.bf16 %v12657_v9, %v12649_v45  ;;  %v17929_v31 = vpack.c.bf16 %v12654_v51, %v12646_v39  ;;  %v18185_v53 = vpack.c.bf16 %v12656_v3, %v12648_v58  ;;  %v12702_v40 = vld [vmem:[%s27293_s8 + $0x1f60] sm:$0xff]  ;;  %v12696_v62 = vld [vmem:[%s27293_s8 + $0x1f30] sm:$0xff]  ;;  %v12711_v60 = vld [vmem:[%s27293_s8 + $0x1fa8] sm:$0xff] }
0x131f   :  { %v27072_v30 = vrot.slane %v13909_v28, %v27042_v43  ;;  %18166 = vmatpush1.bf16.msra.mxu1 %v18165_v20  ;;  %17912 = vmatprep.subr.bf16.mxu0 %v17911_v26  ;;  %v12663_v20 = vld [vmem:[%s27293_s8 + $0x1e28] sm:$0xff]  ;;  %v18187_v28 = vpack.c.bf16 %v12673_v24, %v12665_v32  ;;  %v12704_v25 = vld [vmem:[%s27293_s8 + $0x1f70] sm:$0xff]  ;;  %v12718_v23 = vld [vmem:[%s27293_s8 + $0x1fe0] sm:$0xff]  ;;  %v12746_v39 = vsub.s32 5, %v27338_v57  ;;  %v12754_v51 = vsub.s32 7, %v27338_v57 }
0x1320   :  { %18168 = vmatprep.subr.bf16.mxu1 %v18167_v21  ;;  %v12671_v26 = vld [vmem:[%s27293_s8 + $0x1e68] sm:$0xff]  ;;  %v18197_v38 = vpack.c.bf16 %v12704_v25, %v12696_v62  ;;  %v12720_v45 = vld [vmem:[%s27293_s8 + $0x1ff0] sm:$0xff] }
0x1321   :  { %v13940_v7 = vcombine.low %v27069_v27, %v27072_v30  ;;  %v17931_v21 = vpack.c.bf16 %v12671_v26, %v12663_v20  ;;  %v12747_v3 = vrot.slane %v26981_v19, %v12746_v39  ;;  %v12755_v20 = vrot.slane %v26981_v19, %v12754_v51 }
0x1322   :  { %17914 = vmatpush1.bf16.msra.mxu0 %v17913_v1  ;;  %v12687_v1 = vld [vmem:[%s27293_s8 + $0x1ee8] sm:$0xff] }
0x1323   :  { %18170 = vmatpush1.bf16.msra.mxu1 %v18169_v49  ;;  %17916 = vmatprep.subr.bf16.mxu0 %v17915_v15  ;;  %v12681_v49 = vld [vmem:[%s27293_s8 + $0x1eb8] sm:$0xff]  ;;  %v17935_v61 = vpack.c.bf16 %v12687_v1, %v12679_v47 }
0x1324   :  { %18172 = vmatprep.subr.bf16.mxu1 %v18171_v5  ;;  %v12689_v15 = vld [vmem:[%s27293_s8 + $0x1ef8] sm:$0xff]  ;;  %v12678_v5 = vld [vmem:[%s27293_s8 + $0x1ea0] sm:$0xff] }
0x1325   :  { %v18191_v11 = vpack.c.bf16 %v12689_v15, %v12681_v49  ;;  %v17937_v0 = vpack.c.bf16 %v12686_v34, %v12678_v5 }
0x1326   :  { %17918 = vmatpush1.bf16.msra.mxu0 %v17917_v63  ;;  %v12703_v63 = vld [vmem:[%s27293_s8 + $0x1f68] sm:$0xff] }
0x1327   :  { %18174 = vmatpush1.bf16.msra.mxu1 %v18173_v55  ;;  %17920 = vmatprep.subr.bf16.mxu0 %v17919_v18  ;;  %v12697_v55 = vld [vmem:[%s27293_s8 + $0x1f38] sm:$0xff]  ;;  %v17939_v33 = vpack.c.bf16 %v12703_v63, %v12695_v36 }
0x1328   :  { %18176 = vmatprep.subr.bf16.mxu1 %v18175_v41  ;;  %v12705_v18 = vld [vmem:[%s27293_s8 + $0x1f78] sm:$0xff]  ;;  %v12694_v41 = vld [vmem:[%s27293_s8 + $0x1f20] sm:$0xff] }
0x1329   :  { %v18195_v46 = vpack.c.bf16 %v12705_v18, %v12697_v55  ;;  %v17941_v37 = vpack.c.bf16 %v12702_v40, %v12694_v41 }
0x132a   :  { %17922 = vmatpush1.bf16.msra.mxu0 %v17921_v14  ;;  %v12719_v14 = vld [vmem:[%s27293_s8 + $0x1fe8] sm:$0xff] }
0x132b   :  { %18178 = vmatpush1.bf16.msra.mxu1 %v18177_v10  ;;  %17924 = vmatprep.subr.bf16.mxu0 %v17923_v29  ;;  %v12713_v10 = vld [vmem:[%s27293_s8 + $0x1fb8] sm:$0xff]  ;;  %v17943_v17 = vpack.c.bf16 %v12719_v14, %v12711_v60 }
0x132c   :  { %18180 = vmatprep.subr.bf16.mxu1 %v18179_v4  ;;  %v12721_v29 = vld [vmem:[%s27293_s8 + $0x1ff8] sm:$0xff]  ;;  %v12710_v4 = vld [vmem:[%s27293_s8 + $0x1fa0] sm:$0xff]  ;;  %s19835_s8 = smov [#allocation2]  }
0x132d   :  { %v18199_v13 = vpack.c.bf16 %v12721_v29, %v12713_v10  ;;  %v17945_v9 = vpack.c.bf16 %v12718_v23, %v12710_v4  ;;  %s13965_s7 = sshll.u32 %s19835_s8, 4  ;;  %s13966_s7 = int_to_ptr.vmem [resolvable:$true] %s13965_s7 }
0x132e   :  { %17926 = vmatpush1.bf16.msra.mxu0 %v17925_v22  ;;  %v18201_v22 = vpack.c.bf16 %v12720_v45, %v12712_v2  ;;  %s19807_s4 = scalar_lea.vmem %s13966_s7, 128  ;;  %p19812_p1 = scmp.lt.s32.totalorder %s13966_s7, %s13966_s7 }
0x132f   :  { %18182 = vmatpush1.bf16.msra.mxu1 %v18181_v56  ;;  %17928 = vmatprep.subr.bf16.mxu0 %v17927_v44  ;;  %v12742_v56 = vsub.s32 4, %v27338_v57  ;;  %v12750_v44 = vsub.s32 6, %v27338_v57  ;;  %p19808_p0 = scmp.ne.s32.totalorder %s13966_s7, %s19807_s4  ;;  %p19813_p2 = scmp.lt.s32.totalorder %s19807_s4, %s19807_s4 }
0x1330   :  { %18184 = vmatprep.subr.bf16.mxu1 %v18183_v8 }
0x1331   :  { %v12743_v58 = vrot.slane %v26981_v19, %v12742_v56  ;;  %v12751_v8 = vrot.slane %v26981_v19, %v12750_v44  ;;  %v13948_v19 = vrot.slane %v13940_v7, %v27042_v43  ;;  %p19814_p3 = por %p19813_p2, %p19812_p1 }
0x1332   :  { %17930 = vmatpush1.bf16.msra.mxu0 %v17929_v31 }
0x1333   :  { %18186 = vmatpush1.bf16.msra.mxu1 %v18185_v53  ;;  %17932 = vmatprep.subr.bf16.mxu0 %v17931_v21  ;;  %p19815_p4 = pnand %p19814_p3, %p19808_p0 }
0x1334   :  { %18188 = vmatprep.subr.bf16.mxu1 %v18187_v28 }
0x1336   :  { %17934 = vmatpush1.bf16.msra.mxu0 %v17933_v50 }
0x1337   :  { %18190 = vmatpush1.bf16.msra.mxu1 %v18189_v59  ;;  %17936 = vmatprep.subr.bf16.mxu0 %v17935_v61 }
0x1338   :  { %18192 = vmatprep.subr.bf16.mxu1 %v18191_v11 }
0x133a   :  { %17938 = vmatpush1.bf16.msra.mxu0 %v17937_v0 }
0x133b   :  { %18194 = vmatpush1.bf16.msra.mxu1 %v18193_v16  ;;  %17940 = vmatprep.subr.bf16.mxu0 %v17939_v33 }
0x133c   :  { %18196 = vmatprep.subr.bf16.mxu1 %v18195_v46 }
0x133e   :  { %17942 = vmatpush1.bf16.msra.mxu0 %v17941_v37 }
0x133f   :  { %18198 = vmatpush1.bf16.msra.mxu1 %v18197_v38  ;;  %17944 = vmatprep.subr.bf16.mxu0 %v17943_v17 }
0x1340   :  { %18200 = vmatprep.subr.bf16.mxu1 %v18199_v13 }
0x1342   :  { %17946 = vmatpush1.bf16.msra.mxu0 %v17945_v9 }
0x1343   :  { %18202 = vmatpush1.bf16.msra.mxu1 %v18201_v22 }
0x1345   :  { %13610 = vmatmul.mubr.f32.vlgmr.msra.gmra.mrb[246].mxu0 %v25712_v12 }
0x1346   :  { %13894 = vmatmul.mubr.f32.vlgmr.msra.gmra.mrb[22].mxu1 %v25712_v12 }
0x1418   :  { %v13611_v26 = vpop.f32.mrb[246].mxu0 }
0x1419   :  { %v18211_v32 = vadd.f32 %v13611_v26, %v12743_v58  ;;  %v13895_v24 = vpop.f32.mrb[22].mxu1  ;;  %v13613_v12 = vpop.f32.mrb[247].mxu0 }
0x141a   :  { %v18213_v31 = vadd.f32 %v13895_v24, %v12751_v8  ;;  %v18212_v53 = vadd.f32 %v13613_v12, %v12747_v3  ;;  %v13897_v21 = vpop.f32.mrb[23].mxu1 }
0x141b   :  { %v18214_v54 = vadd.f32 %v13897_v21, %v12755_v20 }
0x141c   :  { %v13910_v52 = vcombine.low %v18211_v32, %v18212_v53 }
0x141d   :  { %v13911_v35 = vcombine.low %v18213_v31, %v18214_v54 }
0x141e   :  { %v13932_v57 = vrot.slane %v13910_v52, %v27042_v43 }
0x141f   :  { %v13939_v28 = vrot.slane %v13911_v35, %v27042_v43 }
0x1421   :  { %v13941_v6 = vcombine.low %v13932_v57, %v13939_v28 }
0x1423   :  { %v13955_v47 = vrot.slane %v13941_v6, %v27042_v43 }
0x1425   :  { %v13956_v1 = vcombine.low %v13948_v19, %v13955_v47 }
0x1427   :  { %13958 = vst [vmem:[#allocation2] sm:$0xff] %v13956_v1 }
0x1428   :  { %19818 = shalt.err (!%p19815_p4)
}
0x1429   :  { %s19819_s28 = scalar_lea.hbm %s27295_s10, 128 }
0x142a   :  { %p19820_p5 = scmp.ne.s32.totalorder %s27295_s10, %s19819_s28  ;;  %p19823_p6 = scmp.lt.u32.totalorder %s19819_s28, %s27295_s10 }
0x142c   :  { %p19825_p7 = pnand %p19823_p6, %p19820_p5 }
0x142e   :  { %19828 = shalt.err (!%p19825_p7)
}
0x142f   :  { %13968 = dma.vmem_to_hbm [thread:$0]  %s13966_s7, 128, %s27295_s10, [#allocation3]  }
0x1430   :  { %19829 = dma.done.wait [#allocation3], 128  }
0x1431   :  { %19830 = vsyncadd [#allocation3], 4294967168 }
0x1432   :  { %13972 = vsyncpa [#allocation3], 1 }

</bundles_post_ra>
